<compile_context>
chip_gen: v5e
topology: v5e:2x2
jax: 0.10.0
libtpu: 0.0.40
codegen_flags: <defaults>
</compile_context>

<pallas_src>
import jax
import jax.numpy as jnp
from jax.experimental import pallas as pl
from jax.experimental.pallas import tpu as pltpu

LEAKY_SLOPE = 0.1
BN_EPS = 1e-5
LANE = 128


def _round_up(x, m):
    return (x + m - 1) // m * m


def _vmem_capacity_bytes():
    """Physical VMEM for the current generation (fallback: v7x's 64 MiB)."""
    try:
        cap = int(getattr(pltpu.get_tpu_info(), "vmem_capacity_bytes", 0))
        if cap > 0:
            return cap
    except Exception:
        pass
    return 64 * 1024 * 1024


def _pick_tile_h(H, W, Cp, Cmp, budget, max_tile_h=None):
    """Largest divisor of H (full H preferred) whose working set fits budget."""

    def vmem_need(th):
        m = th * W
        rows = th + 2
        b = 2 * th * W * Cp * 2               # x tile, double-buffered (bf16)
        b += 2 * 2 * W * Cp * 2               # halo rows above/below
        b += 2 * th * W * Cp * 2              # output tile, double-buffered
        b += (Cp * Cmp + 9 * Cmp * Cp) * 2    # weights (single-buffered, bf16)
        b += (Cmp + Cp) * 4                   # biases (f32)
        b += rows * W * Cp * 2                # xs scratch (bf16)
        b += rows * W * Cmp * 4               # hs scratch (f32)
        b += m * 9 * Cmp * 2                  # im2col scratch (bf16)
        b += rows * W * Cmp * 4               # 1x1 f32 intermediate
        b += m * Cp * 4                       # 3x3 f32 intermediate
        return b

    cap_h = H if max_tile_h is None else min(H, max(1, max_tile_h))
    best = 1
    for th in range(1, cap_h + 1):
        if H % th == 0 and vmem_need(th) <= budget:
            best = th
    # TODO(synk): support ragged (non-divisor) tile_h via a masked last tile
    # for large prime H that does not fit at full height (never hit by the
    # Darknet-53 spatial sizes 13/26/52/104/208/416).
    return best


# ------------------------------- kernel ------------------------------------ #

def _resblock_unit_kernel(xc_ref, xp_ref, xn_ref, w1_ref, b1_ref, w2_ref,
                          b2_ref, o_ref, xs_ref, hs_ref, im_ref):
    """One residual unit: LReLU(BN(1x1 conv)) -> LReLU(BN(3x3 conv)) -> + x.

    xc_ref : (1, th, W, Cin) bf16  current row tile of x (also the residual)
    xp_ref : (1, 1,  W, Cin) bf16  row above the tile (clamped at r == 0)
    xn_ref : (1, 1,  W, Cin) bf16  row below the tile (clamped at r == last)
    w1_ref : (Cin, Cmid) bf16        b1_ref : (1, Cmid) f32
    w2_ref : (9*Cmid, Cout) bf16     b2_ref : (1, Cout) f32
    o_ref  : (1, th, W, Cout) bf16
    xs_ref : VMEM (th+2, W, Cin) bf16   -- staged x slab (tile + halo rows)
    hs_ref : VMEM (th+2, W, Cmid) f32   -- 1x1 output halo slab
    im_ref : VMEM (th*W, 9*Cmid) bf16   -- im2col slab for the single 3x3 dot
    """
    r = pl.program_id(1)
    last_r = pl.num_programs(1) - 1
    _, th, W, cin = xc_ref.shape
    cmid = w1_ref.shape[1]
    cout = o_ref.shape[-1]
    m = th * W

    # Stage tile + one halo row above/below into a single bf16 slab so the
    # 1x1 conv is one M=(th+2)*W matmul (no tiny latency-bound halo matmuls).
    xs_ref[0:1] = xp_ref[0]
    xs_ref[1:th + 1] = xc_ref[0]
    xs_ref[th + 1:th + 2] = xn_ref[0]

    # 1x1 conv + folded BN + LeakyReLU (bf16 operands, f32 accumulate).
    h = jnp.dot(xs_ref[...].reshape((th + 2) * W, cin), w1_ref[...],
                preferred_element_type=jnp.float32) + b1_ref[...]
    h = jnp.maximum(h, LEAKY_SLOPE * h)
    hs_ref[...] = h.reshape(th + 2, W, cmid)

    # Halo rows outside the image contribute zero to the 3x3 conv (padding=1):
    # explicit row stores, no NaN-unsafe 0.0-multiply masks.
    @pl.when(r == 0)
    def _():
        hs_ref[0:1] = jnp.zeros((1, W, cmid), hs_ref.dtype)

    @pl.when(r == last_r)
    def _():
        hs_ref[th + 1:th + 2] = jnp.zeros((1, W, cmid), hs_ref.dtype)

    # im2col: concatenate the 9 shifted taps along K so the 3x3 conv is a
    # single (m, 9*Cmid) x (9*Cmid, Cout) MXU dot (one drain, one acc pass).
    # dx taps use a sublane roll (XLU) + a cheap single-row iota edge mask;
    # dy taps are static slices along the free outer row axis.
    hs = hs_ref[...]
    col = jax.lax.broadcasted_iota(jnp.int32, (1, W, cmid), 1)
    for dx in range(3):
        if dx == 0:          # tap needs h[:, x - 1]
            s = jnp.where(col == 0, 0.0, pltpu.roll(hs, 1, 1))
        elif dx == 2:        # tap needs h[:, x + 1]
            s = jnp.where(col == W - 1, 0.0, pltpu.roll(hs, W - 1, 1))
        else:
            s = hs
        s = s.astype(jnp.bfloat16)
        for dy in range(3):
            k = dy * 3 + dx
            im_ref[:, k * cmid:(k + 1) * cmid] = s[dy:dy + th].reshape(m, cmid)

    # 3x3 conv + folded BN + LeakyReLU + residual, all in f32, one bf16 cast.
    y = jnp.dot(im_ref[...], w2_ref[...],
                preferred_element_type=jnp.float32) + b2_ref[...]
    y = jnp.maximum(y, LEAKY_SLOPE * y)
    y = y.reshape(th, W, cout) + xc_ref[0].astype(jnp.float32)
    o_ref[0] = y.astype(o_ref.dtype)


# ------------------------------- wrapper ------------------------------------ #

def _resblock_unit(x, w1, b1, w2, b2, *, max_tile_h=None):
    """x: (N, H, W, Cp) bf16, channels already padded to a multiple of 128."""
    N, H, W, Cp = x.shape
    Cmp = w1.shape[1]
    cap = _vmem_capacity_bytes()
    th = _pick_tile_h(H, W, Cp, Cmp, budget=int(0.6 * cap),
                      max_tile_h=max_tile_h)
    R = H // th

    row_blk = pl.BlockSpec((1, th, W, Cp), lambda n, r: (n, r, 0, 0))
    prev_blk = pl.BlockSpec(
        (1, 1, W, Cp), lambda n, r: (n, jnp.maximum(r * th - 1, 0), 0, 0))
    next_blk = pl.BlockSpec(
        (1, 1, W, Cp), lambda n, r: (n, jnp.minimum((r + 1) * th, H - 1), 0, 0))

    # TODO(synk): for very large Cin (>=1024 unpadded) add a K ("arbitrary")
    # grid axis with an f32 VMEM accumulator so resident weights shrink
    # further on v7x's 64 MiB VMEM.
    # TODO(synk): input_output_aliases={0: 0} would drop one HBM activation
    # buffer per unit, but the halo rows of x are re-read one grid step after
    # the overlapping output tile is written back, so aliasing is unsafe with
    # this tiling; revisit with an "arbitrary" row axis that carries hs rows.
    def call(single_buffer_weights):
        wkw = (dict(pipeline_mode=pl.Buffered(1))
               if single_buffer_weights else {})
        const2 = lambda n, r: (0, 0)
        grid_spec = pltpu.PrefetchScalarGridSpec(
            num_scalar_prefetch=0,
            grid=(N, R),
            in_specs=[
                row_blk, prev_blk, next_blk,
                pl.BlockSpec((Cp, Cmp), const2, **wkw),
                pl.BlockSpec((1, Cmp), const2, **wkw),
                pl.BlockSpec((9 * Cmp, Cp), const2, **wkw),
                pl.BlockSpec((1, Cp), const2, **wkw),
            ],
            out_specs=row_blk,
            scratch_shapes=[
                pltpu.VMEM((th + 2, W, Cp), jnp.bfloat16),    # staged x slab
                pltpu.VMEM((th + 2, W, Cmp), jnp.float32),    # 1x1 halo slab
                pltpu.VMEM((th * W, 9 * Cmp), jnp.bfloat16),  # im2col slab
            ],
        )
        return pl.pallas_call(
            _resblock_unit_kernel,
            out_shape=jax.ShapeDtypeStruct((N, H, W, Cp), jnp.bfloat16),
            grid_spec=grid_spec,
            compiler_params=pltpu.CompilerParams(
                dimension_semantics=("parallel", "parallel"),
                vmem_limit_bytes=int(0.85 * cap)),
        )(x, x, x, w1, b1, w2, b2)

    try:
        return call(True)      # single-buffered grid-invariant weights
    except Exception:
        return call(False)     # fallback if Buffered(1) is rejected


# ------------------------------ parameters ---------------------------------- #

def init_resblock_params(key, ch, nblocks=1):
    """Synthetic raw parameters matching the PyTorch module (conv weight/bias
    plus eval-mode BatchNorm gamma/beta/mean/var)."""
    params = []
    cmid = ch // 2
    for _ in range(nblocks):
        key, *ks = jax.random.split(key, 13)
        params.append(dict(
            # conv1: 1x1, ch -> cmid  (PyTorch (cmid, ch, 1, 1) -> (ch, cmid))
            w1=0.1 * jax.random.normal(ks[0], (ch, cmid), jnp.float32),
            b1=0.1 * jax.random.normal(ks[1], (cmid,), jnp.float32),
            g1=1.0 + 0.1 * jax.random.normal(ks[2], (cmid,), jnp.float32),
            be1=0.1 * jax.random.normal(ks[3], (cmid,), jnp.float32),
            m1=0.1 * jax.random.normal(ks[4], (cmid,), jnp.float32),
            v1=0.5 + jnp.abs(jax.random.normal(ks[5], (cmid,), jnp.float32)),
            # conv2: 3x3, cmid -> ch  (HWIO)
            w2=0.1 * jax.random.normal(ks[6], (3, 3, cmid, ch), jnp.float32),
            b2=0.1 * jax.random.normal(ks[7], (ch,), jnp.float32),
            g2=1.0 + 0.1 * jax.random.normal(ks[8], (ch,), jnp.float32),
            be2=0.1 * jax.random.normal(ks[9], (ch,), jnp.float32),
            m2=0.1 * jax.random.normal(ks[10], (ch,), jnp.float32),
            v2=0.5 + jnp.abs(jax.random.normal(ks[11], (ch,), jnp.float32)),
        ))
    return params


def prepare_kernel_params(params):
    """Fold conv bias + eval-mode BN into (weight, bias), zero-pad channels to
    a lane multiple (128) and pre-cast weights to bf16 for the MXU."""
    prepped = []
    for p in params:
        ch, cmid = p["w1"].shape
        cp, cmp_ = _round_up(ch, LANE), _round_up(cmid, LANE)
        s1 = p["g1"] / jnp.sqrt(p["v1"] + BN_EPS)
        s2 = p["g2"] / jnp.sqrt(p["v2"] + BN_EPS)
        w1 = p["w1"] * s1[None, :]
        b1 = p["be1"] + s1 * (p["b1"] - p["m1"])
        w2 = p["w2"] * s2[None, None, None, :]
        b2 = p["be2"] + s2 * (p["b2"] - p["m2"])

        w1p = jnp.zeros((cp, cmp_), jnp.float32).at[:ch, :cmid].set(w1)
        w2p = jnp.zeros((3, 3, cmp_, cp), jnp.float32).at[:, :, :cmid, :ch].set(w2)
        b1p = jnp.zeros((1, cmp_), jnp.float32).at[0, :cmid].set(b1)
        b2p = jnp.zeros((1, cp), jnp.float32).at[0, :ch].set(b2)
        prepped.append(dict(
            w1=w1p.astype(jnp.bfloat16),
            b1=b1p,
            # tap order k = dy*3 + dx matches the in-kernel im2col layout.
            w2=w2p.reshape(9 * cmp_, cp).astype(jnp.bfloat16),
            b2=b2p,
        ))
    return prepped


# -------------------------------- forward ----------------------------------- #

def resblock_forward(x_nchw, params, *, max_tile_h=None):
    prepped = prepare_kernel_params(params)
    _, ch, _, _ = x_nchw.shape
    cp = _round_up(ch, LANE)
    x = jnp.transpose(x_nchw, (0, 2, 3, 1))                      # -> NHWC
    x = jnp.pad(x, ((0, 0), (0, 0), (0, 0), (0, cp - ch)))       # lane-dense C
    x = x.astype(jnp.bfloat16)                                   # bf16 in HBM
    for p in prepped:
        x = _resblock_unit(x, p["w1"], p["b1"], p["w2"], p["b2"],
                           max_tile_h=max_tile_h)
    return jnp.transpose(x[..., :ch].astype(jnp.float32), (0, 3, 1, 2))


def resblock_reference(x_nchw, params):
    """Pure-JAX f32 reference: Conv(+bias) -> BatchNorm(eval) -> LeakyReLU."""
    x = jnp.transpose(x_nchw, (0, 2, 3, 1)).astype(jnp.float32)
    dn = ("NHWC", "HWIO", "NHWC")

    def cbl(t, w, b, g, be, m, v, padding):
        y = jax.lax.conv_general_dilated(t, w, (1, 1), padding,
                                         dimension_numbers=dn) + b
        y = (y - m) / jnp.sqrt(v + BN_EPS) * g + be
        return jnp.where(y >= 0, y, LEAKY_SLOPE * y)

    for p in params:
        w1 = p["w1"].reshape(1, 1, *p["w1"].shape)
        h = cbl(x, w1, p["b1"], p["g1"], p["be1"], p["m1"], p["v1"], "VALID")
        y = cbl(h, p["w2"], p["b2"], p["g2"], p["be2"], p["m2"], p["v2"], "SAME")
        x = y + x
    return jnp.transpose(x, (0, 3, 1, 2))


# --------------------------------- main -------------------------------------- #

if __name__ == "__main__":
    key = jax.random.PRNGKey(0)
    kx, kp = jax.random.split(key)

    N, CH, H, W = 2, 4, 16, 16               # resblock(ch=4, nblocks=2)
    x = jax.random.normal(kx, (N, CH, H, W), jnp.float32)
    params = init_resblock_params(kp, CH, nblocks=2)

    ref = jax.block_until_ready(resblock_reference(x, params))

    # (a) default: full-H tile (single grid row step per image)
    out_full = jax.block_until_ready(resblock_forward(x, params))
    # (b) forced small tile: exercises the multi-tile halo / pl.when path
    out_tile = jax.block_until_ready(resblock_forward(x, params, max_tile_h=4))

    for out in (out_full, out_tile):
        assert out.shape == (N, CH, H, W)
        err = float(jnp.max(jnp.abs(out - ref)))
        # bf16 activations + bf16 MXU operands vs. a pure-f32 reference.
        assert jnp.allclose(out, ref, atol=5e-2, rtol=5e-2), err
    print("KERNEL_OK")
</pallas_src>

<mosaic_0001>
module attributes {stable_mosaic.version = 11 : i64} {
  func.func @_resblock_unit_kernel(%arg0: i32, %arg1: i32, %arg2: memref<1x16x16x128xbf16, #tpu.memory_space<vmem>>, %arg3: memref<1x1x16x128xbf16, #tpu.memory_space<vmem>>, %arg4: memref<1x1x16x128xbf16, #tpu.memory_space<vmem>>, %arg5: memref<128x128xbf16, #tpu.memory_space<vmem>>, %arg6: memref<1x128xf32, #tpu.memory_space<vmem>>, %arg7: memref<1152x128xbf16, #tpu.memory_space<vmem>>, %arg8: memref<1x128xf32, #tpu.memory_space<vmem>>, %arg9: memref<1x16x16x128xbf16, #tpu.memory_space<vmem>>, %arg10: memref<18x16x128xbf16, #tpu.memory_space<vmem>>, %arg11: memref<18x16x128xf32, #tpu.memory_space<vmem>>, %arg12: memref<256x1152xbf16, #tpu.memory_space<vmem>>) attributes {dimension_semantics = [#tpu.dimension_semantics<parallel>, #tpu.dimension_semantics<parallel>], iteration_bounds = array<i64: 2, 1>, scalar_prefetch = 0 : i64, scratch_operands = 3 : i64, tpu.core_type = #tpu.core_type<tc>, window_params = [{transform_indices = @transform_0, window_bounds = array<i64: 1, 16, 16, 128>}, {transform_indices = @transform_1, window_bounds = array<i64: 1, 1, 16, 128>}, {transform_indices = @transform_2, window_bounds = array<i64: 1, 1, 16, 128>}, {pipeline_mode = #tpu.pipeline_mode<synchronous>, transform_indices = @transform_3, window_bounds = array<i64: 128, 128>}, {pipeline_mode = #tpu.pipeline_mode<synchronous>, transform_indices = @transform_4, window_bounds = array<i64: 1, 128>}, {pipeline_mode = #tpu.pipeline_mode<synchronous>, transform_indices = @transform_5, window_bounds = array<i64: 1152, 128>}, {pipeline_mode = #tpu.pipeline_mode<synchronous>, transform_indices = @transform_6, window_bounds = array<i64: 1, 128>}, {transform_indices = @transform_7, window_bounds = array<i64: 1, 16, 16, 128>}]} {
    %c0 = arith.constant 0 : index
    %c0_0 = arith.constant 0 : index
    %c0_1 = arith.constant 0 : index
    %c0_2 = arith.constant 0 : index
    %0 = vector.load %arg3[%c0, %c0_0, %c0_1, %c0_2] : memref<1x1x16x128xbf16, #tpu.memory_space<vmem>>, vector<1x1x16x128xbf16>
    %1 = vector.shape_cast %0 : vector<1x1x16x128xbf16> to vector<1x16x128xbf16>
    %c0_3 = arith.constant 0 : index
    %c0_4 = arith.constant 0 : index
    %c0_5 = arith.constant 0 : index
    %2 = vector.load %arg10[%c0_3, %c0_4, %c0_5] : memref<18x16x128xbf16, #tpu.memory_space<vmem>>, vector<1x16x128xbf16>
    tpu.vector_store %arg10[%c0_3, %c0_4, %c0_5], %1 {strides = array<i32>} : memref<18x16x128xbf16, #tpu.memory_space<vmem>>, vector<1x16x128xbf16>,
    %c0_6 = arith.constant 0 : index
    %c0_7 = arith.constant 0 : index
    %c0_8 = arith.constant 0 : index
    %c0_9 = arith.constant 0 : index
    %3 = vector.load %arg2[%c0_6, %c0_7, %c0_8, %c0_9] : memref<1x16x16x128xbf16, #tpu.memory_space<vmem>>, vector<1x16x16x128xbf16>
    %4 = vector.shape_cast %3 : vector<1x16x16x128xbf16> to vector<16x16x128xbf16>
    %c1 = arith.constant 1 : index
    %c0_10 = arith.constant 0 : index
    %c0_11 = arith.constant 0 : index
    %5 = vector.load %arg10[%c1, %c0_10, %c0_11] : memref<18x16x128xbf16, #tpu.memory_space<vmem>>, vector<16x16x128xbf16>
    tpu.vector_store %arg10[%c1, %c0_10, %c0_11], %4 {strides = array<i32>} : memref<18x16x128xbf16, #tpu.memory_space<vmem>>, vector<16x16x128xbf16>,
    %c0_12 = arith.constant 0 : index
    %c0_13 = arith.constant 0 : index
    %c0_14 = arith.constant 0 : index
    %c0_15 = arith.constant 0 : index
    %6 = vector.load %arg4[%c0_12, %c0_13, %c0_14, %c0_15] : memref<1x1x16x128xbf16, #tpu.memory_space<vmem>>, vector<1x1x16x128xbf16>
    %7 = vector.shape_cast %6 : vector<1x1x16x128xbf16> to vector<1x16x128xbf16>
    %c17 = arith.constant 17 : index
    %c0_16 = arith.constant 0 : index
    %c0_17 = arith.constant 0 : index
    %8 = vector.load %arg10[%c17, %c0_16, %c0_17] : memref<18x16x128xbf16, #tpu.memory_space<vmem>>, vector<1x16x128xbf16>
    tpu.vector_store %arg10[%c17, %c0_16, %c0_17], %7 {strides = array<i32>} : memref<18x16x128xbf16, #tpu.memory_space<vmem>>, vector<1x16x128xbf16>,
    %c0_18 = arith.constant 0 : index
    %c0_19 = arith.constant 0 : index
    %c0_20 = arith.constant 0 : index
    %9 = vector.load %arg10[%c0_18, %c0_19, %c0_20] : memref<18x16x128xbf16, #tpu.memory_space<vmem>>, vector<18x16x128xbf16>
    %10 = vector.shape_cast %9 : vector<18x16x128xbf16> to vector<288x128xbf16>
    %c0_21 = arith.constant 0 : index
    %c0_22 = arith.constant 0 : index
    %11 = vector.load %arg5[%c0_21, %c0_22] : memref<128x128xbf16, #tpu.memory_space<vmem>>, vector<128x128xbf16>
    %cst = arith.constant dense<0.000000e+00> : vector<288x128xf32>
    %12 = tpu.matmul %10, %11, %cst {dimension_numbers = #tpu.dot_dimension_numbers<[1], [0], [0], [1], [0, 0, 1, 1], [], []>} : vector<288x128xbf16>, vector<128x128xbf16>, vector<288x128xf32> -> vector<288x128xf32>
    %c0_23 = arith.constant 0 : index
    %c0_24 = arith.constant 0 : index
    %13 = vector.load %arg6[%c0_23, %c0_24] : memref<1x128xf32, #tpu.memory_space<vmem>>, vector<1x128xf32>
    %14 = vector.broadcast %13 : vector<1x128xf32> to vector<288x128xf32>
    %15 = arith.addf %12, %14 : vector<288x128xf32>
    %cst_25 = arith.constant 1.000000e-01 : f32
    %16 = vector.broadcast %cst_25 : f32 to vector<288x128xf32>
    %17 = arith.mulf %16, %15 : vector<288x128xf32>
    %18 = arith.maximumf %15, %17 : vector<288x128xf32>
    %19 = vector.shape_cast %18 : vector<288x128xf32> to vector<18x16x128xf32>
    %c0_26 = arith.constant 0 : index
    %c0_27 = arith.constant 0 : index
    %c0_28 = arith.constant 0 : index
    %20 = vector.load %arg11[%c0_26, %c0_27, %c0_28] : memref<18x16x128xf32, #tpu.memory_space<vmem>>, vector<18x16x128xf32>
    tpu.vector_store %arg11[%c0_26, %c0_27, %c0_28], %19 {strides = array<i32>} : memref<18x16x128xf32, #tpu.memory_space<vmem>>, vector<18x16x128xf32>,
    %c0_i32 = arith.constant 0 : i32
    %21 = arith.cmpi eq, %arg1, %c0_i32 : i32
    %22 = arith.extui %21 : i1 to i32
    %c0_i32_29 = arith.constant 0 : i32
    %23 = arith.cmpi ne, %22, %c0_i32_29 : i32
    scf.if %23 {
      %cst_65 = arith.constant 0.000000e+00 : f32
      %91 = vector.broadcast %cst_65 : f32 to vector<1x16x128xf32>
      %c0_66 = arith.constant 0 : index
      %c0_67 = arith.constant 0 : index
      %c0_68 = arith.constant 0 : index
      %92 = vector.load %arg11[%c0_66, %c0_67, %c0_68] : memref<18x16x128xf32, #tpu.memory_space<vmem>>, vector<1x16x128xf32>
      tpu.vector_store %arg11[%c0_66, %c0_67, %c0_68], %91 {strides = array<i32>} : memref<18x16x128xf32, #tpu.memory_space<vmem>>, vector<1x16x128xf32>,
    } else {
    }
    %c0_i32_30 = arith.constant 0 : i32
    %24 = arith.cmpi eq, %arg1, %c0_i32_30 : i32
    %25 = arith.extui %24 : i1 to i32
    %c0_i32_31 = arith.constant 0 : i32
    %26 = arith.cmpi ne, %25, %c0_i32_31 : i32
    scf.if %26 {
      %cst_65 = arith.constant 0.000000e+00 : f32
      %91 = vector.broadcast %cst_65 : f32 to vector<1x16x128xf32>
      %c17_66 = arith.constant 17 : index
      %c0_67 = arith.constant 0 : index
      %c0_68 = arith.constant 0 : index
      %92 = vector.load %arg11[%c17_66, %c0_67, %c0_68] : memref<18x16x128xf32, #tpu.memory_space<vmem>>, vector<1x16x128xf32>
      tpu.vector_store %arg11[%c17_66, %c0_67, %c0_68], %91 {strides = array<i32>} : memref<18x16x128xf32, #tpu.memory_space<vmem>>, vector<1x16x128xf32>,
    } else {
    }
    %c0_32 = arith.constant 0 : index
    %c0_33 = arith.constant 0 : index
    %c0_34 = arith.constant 0 : index
    %27 = vector.load %arg11[%c0_32, %c0_33, %c0_34] : memref<18x16x128xf32, #tpu.memory_space<vmem>>, vector<18x16x128xf32>
    %28 = tpu.iota {dimensions = array<i32: 1>} : vector<1x16x128xi32>
    %c0_i32_35 = arith.constant 0 : i32
    %29 = vector.broadcast %c0_i32_35 : i32 to vector<1x16x128xi32>
    %30 = arith.cmpi eq, %28, %29 : vector<1x16x128xi32>
    %c1_i32 = arith.constant 1 : i32
    %31 = tpu.dynamic_rotate %27 by %c1_i32 dim 1 : vector<18x16x128xf32>, i32 -> vector<18x16x128xf32>
    %cst_36 = arith.constant 0.000000e+00 : f32
    %32 = vector.shape_cast %30 : vector<1x16x128xi1> to vector<1x16x128xi1>
    %33 = vector.broadcast %32 : vector<1x16x128xi1> to vector<18x16x128xi1>
    %34 = vector.broadcast %cst_36 : f32 to vector<18x16x128xf32>
    %35 = arith.select %33, %34, %31 : vector<18x16x128xi1>, vector<18x16x128xf32>
    %36 = arith.truncf %35 : vector<18x16x128xf32> to vector<18x16x128xbf16>
    %37 = vector.extract_strided_slice %36 {offsets = [0, 0, 0], sizes = [16, 16, 128], strides = [1, 1, 1]} : vector<18x16x128xbf16> to vector<16x16x128xbf16>
    %38 = vector.shape_cast %37 : vector<16x16x128xbf16> to vector<256x128xbf16>
    %c0_37 = arith.constant 0 : index
    %c0_38 = arith.constant 0 : index
    %39 = vector.load %arg12[%c0_37, %c0_38] : memref<256x1152xbf16, #tpu.memory_space<vmem>>, vector<256x128xbf16>
    tpu.vector_store %arg12[%c0_37, %c0_38], %38 {strides = array<i32>} : memref<256x1152xbf16, #tpu.memory_space<vmem>>, vector<256x128xbf16>,
    %40 = vector.extract_strided_slice %36 {offsets = [1, 0, 0], sizes = [16, 16, 128], strides = [1, 1, 1]} : vector<18x16x128xbf16> to vector<16x16x128xbf16>
    %41 = vector.shape_cast %40 : vector<16x16x128xbf16> to vector<256x128xbf16>
    %c0_39 = arith.constant 0 : index
    %c384 = arith.constant 384 : index
    %42 = vector.load %arg12[%c0_39, %c384] : memref<256x1152xbf16, #tpu.memory_space<vmem>>, vector<256x128xbf16>
    tpu.vector_store %arg12[%c0_39, %c384], %41 {strides = array<i32>} : memref<256x1152xbf16, #tpu.memory_space<vmem>>, vector<256x128xbf16>,
    %43 = vector.extract_strided_slice %36 {offsets = [2, 0, 0], sizes = [16, 16, 128], strides = [1, 1, 1]} : vector<18x16x128xbf16> to vector<16x16x128xbf16>
    %44 = vector.shape_cast %43 : vector<16x16x128xbf16> to vector<256x128xbf16>
    %c0_40 = arith.constant 0 : index
    %c768 = arith.constant 768 : index
    %45 = vector.load %arg12[%c0_40, %c768] : memref<256x1152xbf16, #tpu.memory_space<vmem>>, vector<256x128xbf16>
    tpu.vector_store %arg12[%c0_40, %c768], %44 {strides = array<i32>} : memref<256x1152xbf16, #tpu.memory_space<vmem>>, vector<256x128xbf16>,
    %46 = arith.truncf %27 : vector<18x16x128xf32> to vector<18x16x128xbf16>
    %47 = vector.extract_strided_slice %46 {offsets = [0, 0, 0], sizes = [16, 16, 128], strides = [1, 1, 1]} : vector<18x16x128xbf16> to vector<16x16x128xbf16>
    %48 = vector.shape_cast %47 : vector<16x16x128xbf16> to vector<256x128xbf16>
    %c0_41 = arith.constant 0 : index
    %c128 = arith.constant 128 : index
    %49 = vector.load %arg12[%c0_41, %c128] : memref<256x1152xbf16, #tpu.memory_space<vmem>>, vector<256x128xbf16>
    tpu.vector_store %arg12[%c0_41, %c128], %48 {strides = array<i32>} : memref<256x1152xbf16, #tpu.memory_space<vmem>>, vector<256x128xbf16>,
    %50 = vector.extract_strided_slice %46 {offsets = [1, 0, 0], sizes = [16, 16, 128], strides = [1, 1, 1]} : vector<18x16x128xbf16> to vector<16x16x128xbf16>
    %51 = vector.shape_cast %50 : vector<16x16x128xbf16> to vector<256x128xbf16>
    %c0_42 = arith.constant 0 : index
    %c512 = arith.constant 512 : index
    %52 = vector.load %arg12[%c0_42, %c512] : memref<256x1152xbf16, #tpu.memory_space<vmem>>, vector<256x128xbf16>
    tpu.vector_store %arg12[%c0_42, %c512], %51 {strides = array<i32>} : memref<256x1152xbf16, #tpu.memory_space<vmem>>, vector<256x128xbf16>,
    %53 = vector.extract_strided_slice %46 {offsets = [2, 0, 0], sizes = [16, 16, 128], strides = [1, 1, 1]} : vector<18x16x128xbf16> to vector<16x16x128xbf16>
    %54 = vector.shape_cast %53 : vector<16x16x128xbf16> to vector<256x128xbf16>
    %c0_43 = arith.constant 0 : index
    %c896 = arith.constant 896 : index
    %55 = vector.load %arg12[%c0_43, %c896] : memref<256x1152xbf16, #tpu.memory_space<vmem>>, vector<256x128xbf16>
    tpu.vector_store %arg12[%c0_43, %c896], %54 {strides = array<i32>} : memref<256x1152xbf16, #tpu.memory_space<vmem>>, vector<256x128xbf16>,
    %c15_i32 = arith.constant 15 : i32
    %56 = vector.broadcast %c15_i32 : i32 to vector<1x16x128xi32>
    %57 = arith.cmpi eq, %28, %56 : vector<1x16x128xi32>
    %c15_i32_44 = arith.constant 15 : i32
    %58 = tpu.dynamic_rotate %27 by %c15_i32_44 dim 1 : vector<18x16x128xf32>, i32 -> vector<18x16x128xf32>
    %cst_45 = arith.constant 0.000000e+00 : f32
    %59 = vector.shape_cast %57 : vector<1x16x128xi1> to vector<1x16x128xi1>
    %60 = vector.broadcast %59 : vector<1x16x128xi1> to vector<18x16x128xi1>
    %61 = vector.broadcast %cst_45 : f32 to vector<18x16x128xf32>
    %62 = arith.select %60, %61, %58 : vector<18x16x128xi1>, vector<18x16x128xf32>
    %63 = arith.truncf %62 : vector<18x16x128xf32> to vector<18x16x128xbf16>
    %64 = vector.extract_strided_slice %63 {offsets = [0, 0, 0], sizes = [16, 16, 128], strides = [1, 1, 1]} : vector<18x16x128xbf16> to vector<16x16x128xbf16>
    %65 = vector.shape_cast %64 : vector<16x16x128xbf16> to vector<256x128xbf16>
    %c0_46 = arith.constant 0 : index
    %c256 = arith.constant 256 : index
    %66 = vector.load %arg12[%c0_46, %c256] : memref<256x1152xbf16, #tpu.memory_space<vmem>>, vector<256x128xbf16>
    tpu.vector_store %arg12[%c0_46, %c256], %65 {strides = array<i32>} : memref<256x1152xbf16, #tpu.memory_space<vmem>>, vector<256x128xbf16>,
    %67 = vector.extract_strided_slice %63 {offsets = [1, 0, 0], sizes = [16, 16, 128], strides = [1, 1, 1]} : vector<18x16x128xbf16> to vector<16x16x128xbf16>
    %68 = vector.shape_cast %67 : vector<16x16x128xbf16> to vector<256x128xbf16>
    %c0_47 = arith.constant 0 : index
    %c640 = arith.constant 640 : index
    %69 = vector.load %arg12[%c0_47, %c640] : memref<256x1152xbf16, #tpu.memory_space<vmem>>, vector<256x128xbf16>
    tpu.vector_store %arg12[%c0_47, %c640], %68 {strides = array<i32>} : memref<256x1152xbf16, #tpu.memory_space<vmem>>, vector<256x128xbf16>,
    %70 = vector.extract_strided_slice %63 {offsets = [2, 0, 0], sizes = [16, 16, 128], strides = [1, 1, 1]} : vector<18x16x128xbf16> to vector<16x16x128xbf16>
    %71 = vector.shape_cast %70 : vector<16x16x128xbf16> to vector<256x128xbf16>
    %c0_48 = arith.constant 0 : index
    %c1024 = arith.constant 1024 : index
    %72 = vector.load %arg12[%c0_48, %c1024] : memref<256x1152xbf16, #tpu.memory_space<vmem>>, vector<256x128xbf16>
    tpu.vector_store %arg12[%c0_48, %c1024], %71 {strides = array<i32>} : memref<256x1152xbf16, #tpu.memory_space<vmem>>, vector<256x128xbf16>,
    %c0_49 = arith.constant 0 : index
    %c0_50 = arith.constant 0 : index
    %73 = vector.load %arg12[%c0_49, %c0_50] : memref<256x1152xbf16, #tpu.memory_space<vmem>>, vector<256x1152xbf16>
    %c0_51 = arith.constant 0 : index
    %c0_52 = arith.constant 0 : index
    %74 = vector.load %arg7[%c0_51, %c0_52] : memref<1152x128xbf16, #tpu.memory_space<vmem>>, vector<1152x128xbf16>
    %cst_53 = arith.constant dense<0.000000e+00> : vector<256x128xf32>
    %75 = tpu.matmul %73, %74, %cst_53 {dimension_numbers = #tpu.dot_dimension_numbers<[1], [0], [0], [1], [0, 0, 1, 1], [], []>} : vector<256x1152xbf16>, vector<1152x128xbf16>, vector<256x128xf32> -> vector<256x128xf32>
    %c0_54 = arith.constant 0 : index
    %c0_55 = arith.constant 0 : index
    %76 = vector.load %arg8[%c0_54, %c0_55] : memref<1x128xf32, #tpu.memory_space<vmem>>, vector<1x128xf32>
    %77 = vector.broadcast %76 : vector<1x128xf32> to vector<256x128xf32>
    %78 = arith.addf %75, %77 : vector<256x128xf32>
    %cst_56 = arith.constant 1.000000e-01 : f32
    %79 = vector.broadcast %cst_56 : f32 to vector<256x128xf32>
    %80 = arith.mulf %79, %78 : vector<256x128xf32>
    %81 = arith.maximumf %78, %80 : vector<256x128xf32>
    %82 = vector.shape_cast %81 : vector<256x128xf32> to vector<16x16x128xf32>
    %c0_57 = arith.constant 0 : index
    %c0_58 = arith.constant 0 : index
    %c0_59 = arith.constant 0 : index
    %c0_60 = arith.constant 0 : index
    %83 = vector.load %arg2[%c0_57, %c0_58, %c0_59, %c0_60] : memref<1x16x16x128xbf16, #tpu.memory_space<vmem>>, vector<1x16x16x128xbf16>
    %84 = vector.shape_cast %83 : vector<1x16x16x128xbf16> to vector<16x16x128xbf16>
    %85 = arith.extf %84 : vector<16x16x128xbf16> to vector<16x16x128xf32>
    %86 = arith.addf %82, %85 : vector<16x16x128xf32>
    %87 = arith.truncf %86 : vector<16x16x128xf32> to vector<16x16x128xbf16>
    %c0_61 = arith.constant 0 : index
    %c0_62 = arith.constant 0 : index
    %c0_63 = arith.constant 0 : index
    %c0_64 = arith.constant 0 : index
    %88 = vector.load %arg9[%c0_61, %c0_62, %c0_63, %c0_64] : memref<1x16x16x128xbf16, #tpu.memory_space<vmem>>, vector<1x16x16x128xbf16>
    %89 = vector.shape_cast %88 : vector<1x16x16x128xbf16> to vector<16x16x128xbf16>
    %90 = vector.shape_cast %87 : vector<16x16x128xbf16> to vector<1x16x16x128xbf16>
    tpu.vector_store %arg9[%c0_61, %c0_62, %c0_63, %c0_64], %90 {strides = array<i32>} : memref<1x16x16x128xbf16, #tpu.memory_space<vmem>>, vector<1x16x16x128xbf16>,
    return
  }
  func.func @transform_0(%arg0: i32, %arg1: i32) -> (i32, i32, i32, i32) {
    %c0_i32 = arith.constant 0 : i32
    %c0_i32_0 = arith.constant 0 : i32
    %c0_i32_1 = arith.constant 0 : i32
    return %arg0, %arg1, %c0_i32, %c0_i32_0 : i32, i32, i32, i32
  }
  func.func @transform_1(%arg0: i32, %arg1: i32) -> (i32, i32, i32, i32) {
    %c16_i32 = arith.constant 16 : i32
    %0 = arith.muli %arg1, %c16_i32 : i32
    %c1_i32 = arith.constant 1 : i32
    %1 = arith.subi %0, %c1_i32 : i32
    %c0_i32 = arith.constant 0 : i32
    %2 = arith.maxsi %1, %c0_i32 : i32
    %c0_i32_0 = arith.constant 0 : i32
    %c0_i32_1 = arith.constant 0 : i32
    %c0_i32_2 = arith.constant 0 : i32
    return %arg0, %2, %c0_i32_0, %c0_i32_1 : i32, i32, i32, i32
  }
  func.func @transform_2(%arg0: i32, %arg1: i32) -> (i32, i32, i32, i32) {
    %c1_i32 = arith.constant 1 : i32
    %0 = arith.addi %arg1, %c1_i32 : i32
    %c16_i32 = arith.constant 16 : i32
    %1 = arith.muli %0, %c16_i32 : i32
    %c15_i32 = arith.constant 15 : i32
    %2 = arith.minsi %1, %c15_i32 : i32
    %c0_i32 = arith.constant 0 : i32
    %c0_i32_0 = arith.constant 0 : i32
    %c0_i32_1 = arith.constant 0 : i32
    return %arg0, %2, %c0_i32, %c0_i32_0 : i32, i32, i32, i32
  }
  func.func @transform_3(%arg0: i32, %arg1: i32) -> (i32, i32) {
    %c0_i32 = arith.constant 0 : i32
    %c0_i32_0 = arith.constant 0 : i32
    %c0_i32_1 = arith.constant 0 : i32
    return %c0_i32, %c0_i32_0 : i32, i32
  }
  func.func @transform_4(%arg0: i32, %arg1: i32) -> (i32, i32) {
    %c0_i32 = arith.constant 0 : i32
    %c0_i32_0 = arith.constant 0 : i32
    %c0_i32_1 = arith.constant 0 : i32
    return %c0_i32, %c0_i32_0 : i32, i32
  }
  func.func @transform_5(%arg0: i32, %arg1: i32) -> (i32, i32) {
    %c0_i32 = arith.constant 0 : i32
    %c0_i32_0 = arith.constant 0 : i32
    %c0_i32_1 = arith.constant 0 : i32
    return %c0_i32, %c0_i32_0 : i32, i32
  }
  func.func @transform_6(%arg0: i32, %arg1: i32) -> (i32, i32) {
    %c0_i32 = arith.constant 0 : i32
    %c0_i32_0 = arith.constant 0 : i32
    %c0_i32_1 = arith.constant 0 : i32
    return %c0_i32, %c0_i32_0 : i32, i32
  }
  func.func @transform_7(%arg0: i32, %arg1: i32) -> (i32, i32, i32, i32) {
    %c0_i32 = arith.constant 0 : i32
    %c0_i32_0 = arith.constant 0 : i32
    %c0_i32_1 = arith.constant 0 : i32
    return %arg0, %arg1, %c0_i32, %c0_i32_0 : i32, i32, i32, i32
  }
}

module attributes {stable_mosaic.version = 11 : i64} {
  func.func @_resblock_unit_kernel(%arg0: i32, %arg1: i32, %arg2: memref<1x16x16x128xbf16, #tpu.memory_space<vmem>>, %arg3: memref<1x1x16x128xbf16, #tpu.memory_space<vmem>>, %arg4: memref<1x1x16x128xbf16, #tpu.memory_space<vmem>>, %arg5: memref<128x128xbf16, #tpu.memory_space<vmem>>, %arg6: memref<1x128xf32, #tpu.memory_space<vmem>>, %arg7: memref<1152x128xbf16, #tpu.memory_space<vmem>>, %arg8: memref<1x128xf32, #tpu.memory_space<vmem>>, %arg9: memref<1x16x16x128xbf16, #tpu.memory_space<vmem>>, %arg10: memref<18x16x128xbf16, #tpu.memory_space<vmem>>, %arg11: memref<18x16x128xf32, #tpu.memory_space<vmem>>, %arg12: memref<256x1152xbf16, #tpu.memory_space<vmem>>) attributes {dimension_semantics = [#tpu.dimension_semantics<parallel>, #tpu.dimension_semantics<parallel>], iteration_bounds = array<i64: 2, 1>, scalar_prefetch = 0 : i64, scratch_operands = 3 : i64, tpu.core_type = #tpu.core_type<tc>, window_params = [{transform_indices = @transform_0, window_bounds = array<i64: 1, 16, 16, 128>}, {transform_indices = @transform_1, window_bounds = array<i64: 1, 1, 16, 128>}, {transform_indices = @transform_2, window_bounds = array<i64: 1, 1, 16, 128>}, {pipeline_mode = #tpu.pipeline_mode<synchronous>, transform_indices = @transform_3, window_bounds = array<i64: 128, 128>}, {pipeline_mode = #tpu.pipeline_mode<synchronous>, transform_indices = @transform_4, window_bounds = array<i64: 1, 128>}, {pipeline_mode = #tpu.pipeline_mode<synchronous>, transform_indices = @transform_5, window_bounds = array<i64: 1152, 128>}, {pipeline_mode = #tpu.pipeline_mode<synchronous>, transform_indices = @transform_6, window_bounds = array<i64: 1, 128>}, {transform_indices = @transform_7, window_bounds = array<i64: 1, 16, 16, 128>}]} {
    %c0 = arith.constant 0 : index
    %c0_0 = arith.constant 0 : index
    %c0_1 = arith.constant 0 : index
    %c0_2 = arith.constant 0 : index
    %0 = vector.load %arg3[%c0, %c0_0, %c0_1, %c0_2] : memref<1x1x16x128xbf16, #tpu.memory_space<vmem>>, vector<1x1x16x128xbf16>
    %1 = vector.shape_cast %0 : vector<1x1x16x128xbf16> to vector<1x16x128xbf16>
    %c0_3 = arith.constant 0 : index
    %c0_4 = arith.constant 0 : index
    %c0_5 = arith.constant 0 : index
    %2 = vector.load %arg10[%c0_3, %c0_4, %c0_5] : memref<18x16x128xbf16, #tpu.memory_space<vmem>>, vector<1x16x128xbf16>
    tpu.vector_store %arg10[%c0_3, %c0_4, %c0_5], %1 {strides = array<i32>} : memref<18x16x128xbf16, #tpu.memory_space<vmem>>, vector<1x16x128xbf16>,
    %c0_6 = arith.constant 0 : index
    %c0_7 = arith.constant 0 : index
    %c0_8 = arith.constant 0 : index
    %c0_9 = arith.constant 0 : index
    %3 = vector.load %arg2[%c0_6, %c0_7, %c0_8, %c0_9] : memref<1x16x16x128xbf16, #tpu.memory_space<vmem>>, vector<1x16x16x128xbf16>
    %4 = vector.shape_cast %3 : vector<1x16x16x128xbf16> to vector<16x16x128xbf16>
    %c1 = arith.constant 1 : index
    %c0_10 = arith.constant 0 : index
    %c0_11 = arith.constant 0 : index
    %5 = vector.load %arg10[%c1, %c0_10, %c0_11] : memref<18x16x128xbf16, #tpu.memory_space<vmem>>, vector<16x16x128xbf16>
    tpu.vector_store %arg10[%c1, %c0_10, %c0_11], %4 {strides = array<i32>} : memref<18x16x128xbf16, #tpu.memory_space<vmem>>, vector<16x16x128xbf16>,
    %c0_12 = arith.constant 0 : index
    %c0_13 = arith.constant 0 : index
    %c0_14 = arith.constant 0 : index
    %c0_15 = arith.constant 0 : index
    %6 = vector.load %arg4[%c0_12, %c0_13, %c0_14, %c0_15] : memref<1x1x16x128xbf16, #tpu.memory_space<vmem>>, vector<1x1x16x128xbf16>
    %7 = vector.shape_cast %6 : vector<1x1x16x128xbf16> to vector<1x16x128xbf16>
    %c17 = arith.constant 17 : index
    %c0_16 = arith.constant 0 : index
    %c0_17 = arith.constant 0 : index
    %8 = vector.load %arg10[%c17, %c0_16, %c0_17] : memref<18x16x128xbf16, #tpu.memory_space<vmem>>, vector<1x16x128xbf16>
    tpu.vector_store %arg10[%c17, %c0_16, %c0_17], %7 {strides = array<i32>} : memref<18x16x128xbf16, #tpu.memory_space<vmem>>, vector<1x16x128xbf16>,
    %c0_18 = arith.constant 0 : index
    %c0_19 = arith.constant 0 : index
    %c0_20 = arith.constant 0 : index
    %9 = vector.load %arg10[%c0_18, %c0_19, %c0_20] : memref<18x16x128xbf16, #tpu.memory_space<vmem>>, vector<18x16x128xbf16>
    %10 = vector.shape_cast %9 : vector<18x16x128xbf16> to vector<288x128xbf16>
    %c0_21 = arith.constant 0 : index
    %c0_22 = arith.constant 0 : index
    %11 = vector.load %arg5[%c0_21, %c0_22] : memref<128x128xbf16, #tpu.memory_space<vmem>>, vector<128x128xbf16>
    %cst = arith.constant dense<0.000000e+00> : vector<288x128xf32>
    %12 = tpu.matmul %10, %11, %cst {dimension_numbers = #tpu.dot_dimension_numbers<[1], [0], [0], [1], [0, 0, 1, 1], [], []>} : vector<288x128xbf16>, vector<128x128xbf16>, vector<288x128xf32> -> vector<288x128xf32>
    %c0_23 = arith.constant 0 : index
    %c0_24 = arith.constant 0 : index
    %13 = vector.load %arg6[%c0_23, %c0_24] : memref<1x128xf32, #tpu.memory_space<vmem>>, vector<1x128xf32>
    %14 = vector.broadcast %13 : vector<1x128xf32> to vector<288x128xf32>
    %15 = arith.addf %12, %14 : vector<288x128xf32>
    %cst_25 = arith.constant 1.000000e-01 : f32
    %16 = vector.broadcast %cst_25 : f32 to vector<288x128xf32>
    %17 = arith.mulf %16, %15 : vector<288x128xf32>
    %18 = arith.maximumf %15, %17 : vector<288x128xf32>
    %19 = vector.shape_cast %18 : vector<288x128xf32> to vector<18x16x128xf32>
    %c0_26 = arith.constant 0 : index
    %c0_27 = arith.constant 0 : index
    %c0_28 = arith.constant 0 : index
    %20 = vector.load %arg11[%c0_26, %c0_27, %c0_28] : memref<18x16x128xf32, #tpu.memory_space<vmem>>, vector<18x16x128xf32>
    tpu.vector_store %arg11[%c0_26, %c0_27, %c0_28], %19 {strides = array<i32>} : memref<18x16x128xf32, #tpu.memory_space<vmem>>, vector<18x16x128xf32>,
    %c0_i32 = arith.constant 0 : i32
    %21 = arith.cmpi eq, %arg1, %c0_i32 : i32
    %22 = arith.extui %21 : i1 to i32
    %c0_i32_29 = arith.constant 0 : i32
    %23 = arith.cmpi ne, %22, %c0_i32_29 : i32
    scf.if %23 {
      %cst_65 = arith.constant 0.000000e+00 : f32
      %91 = vector.broadcast %cst_65 : f32 to vector<1x16x128xf32>
      %c0_66 = arith.constant 0 : index
      %c0_67 = arith.constant 0 : index
      %c0_68 = arith.constant 0 : index
      %92 = vector.load %arg11[%c0_66, %c0_67, %c0_68] : memref<18x16x128xf32, #tpu.memory_space<vmem>>, vector<1x16x128xf32>
      tpu.vector_store %arg11[%c0_66, %c0_67, %c0_68], %91 {strides = array<i32>} : memref<18x16x128xf32, #tpu.memory_space<vmem>>, vector<1x16x128xf32>,
    } else {
    }
    %c0_i32_30 = arith.constant 0 : i32
    %24 = arith.cmpi eq, %arg1, %c0_i32_30 : i32
    %25 = arith.extui %24 : i1 to i32
    %c0_i32_31 = arith.constant 0 : i32
    %26 = arith.cmpi ne, %25, %c0_i32_31 : i32
    scf.if %26 {
      %cst_65 = arith.constant 0.000000e+00 : f32
      %91 = vector.broadcast %cst_65 : f32 to vector<1x16x128xf32>
      %c17_66 = arith.constant 17 : index
      %c0_67 = arith.constant 0 : index
      %c0_68 = arith.constant 0 : index
      %92 = vector.load %arg11[%c17_66, %c0_67, %c0_68] : memref<18x16x128xf32, #tpu.memory_space<vmem>>, vector<1x16x128xf32>
      tpu.vector_store %arg11[%c17_66, %c0_67, %c0_68], %91 {strides = array<i32>} : memref<18x16x128xf32, #tpu.memory_space<vmem>>, vector<1x16x128xf32>,
    } else {
    }
    %c0_32 = arith.constant 0 : index
    %c0_33 = arith.constant 0 : index
    %c0_34 = arith.constant 0 : index
    %27 = vector.load %arg11[%c0_32, %c0_33, %c0_34] : memref<18x16x128xf32, #tpu.memory_space<vmem>>, vector<18x16x128xf32>
    %28 = tpu.iota {dimensions = array<i32: 1>} : vector<1x16x128xi32>
    %c0_i32_35 = arith.constant 0 : i32
    %29 = vector.broadcast %c0_i32_35 : i32 to vector<1x16x128xi32>
    %30 = arith.cmpi eq, %28, %29 : vector<1x16x128xi32>
    %c1_i32 = arith.constant 1 : i32
    %31 = tpu.dynamic_rotate %27 by %c1_i32 dim 1 : vector<18x16x128xf32>, i32 -> vector<18x16x128xf32>
    %cst_36 = arith.constant 0.000000e+00 : f32
    %32 = vector.shape_cast %30 : vector<1x16x128xi1> to vector<1x16x128xi1>
    %33 = vector.broadcast %32 : vector<1x16x128xi1> to vector<18x16x128xi1>
    %34 = vector.broadcast %cst_36 : f32 to vector<18x16x128xf32>
    %35 = arith.select %33, %34, %31 : vector<18x16x128xi1>, vector<18x16x128xf32>
    %36 = arith.truncf %35 : vector<18x16x128xf32> to vector<18x16x128xbf16>
    %37 = vector.extract_strided_slice %36 {offsets = [0, 0, 0], sizes = [16, 16, 128], strides = [1, 1, 1]} : vector<18x16x128xbf16> to vector<16x16x128xbf16>
    %38 = vector.shape_cast %37 : vector<16x16x128xbf16> to vector<256x128xbf16>
    %c0_37 = arith.constant 0 : index
    %c0_38 = arith.constant 0 : index
    %39 = vector.load %arg12[%c0_37, %c0_38] : memref<256x1152xbf16, #tpu.memory_space<vmem>>, vector<256x128xbf16>
    tpu.vector_store %arg12[%c0_37, %c0_38], %38 {strides = array<i32>} : memref<256x1152xbf16, #tpu.memory_space<vmem>>, vector<256x128xbf16>,
    %40 = vector.extract_strided_slice %36 {offsets = [1, 0, 0], sizes = [16, 16, 128], strides = [1, 1, 1]} : vector<18x16x128xbf16> to vector<16x16x128xbf16>
    %41 = vector.shape_cast %40 : vector<16x16x128xbf16> to vector<256x128xbf16>
    %c0_39 = arith.constant 0 : index
    %c384 = arith.constant 384 : index
    %42 = vector.load %arg12[%c0_39, %c384] : memref<256x1152xbf16, #tpu.memory_space<vmem>>, vector<256x128xbf16>
    tpu.vector_store %arg12[%c0_39, %c384], %41 {strides = array<i32>} : memref<256x1152xbf16, #tpu.memory_space<vmem>>, vector<256x128xbf16>,
    %43 = vector.extract_strided_slice %36 {offsets = [2, 0, 0], sizes = [16, 16, 128], strides = [1, 1, 1]} : vector<18x16x128xbf16> to vector<16x16x128xbf16>
    %44 = vector.shape_cast %43 : vector<16x16x128xbf16> to vector<256x128xbf16>
    %c0_40 = arith.constant 0 : index
    %c768 = arith.constant 768 : index
    %45 = vector.load %arg12[%c0_40, %c768] : memref<256x1152xbf16, #tpu.memory_space<vmem>>, vector<256x128xbf16>
    tpu.vector_store %arg12[%c0_40, %c768], %44 {strides = array<i32>} : memref<256x1152xbf16, #tpu.memory_space<vmem>>, vector<256x128xbf16>,
    %46 = arith.truncf %27 : vector<18x16x128xf32> to vector<18x16x128xbf16>
    %47 = vector.extract_strided_slice %46 {offsets = [0, 0, 0], sizes = [16, 16, 128], strides = [1, 1, 1]} : vector<18x16x128xbf16> to vector<16x16x128xbf16>
    %48 = vector.shape_cast %47 : vector<16x16x128xbf16> to vector<256x128xbf16>
    %c0_41 = arith.constant 0 : index
    %c128 = arith.constant 128 : index
    %49 = vector.load %arg12[%c0_41, %c128] : memref<256x1152xbf16, #tpu.memory_space<vmem>>, vector<256x128xbf16>
    tpu.vector_store %arg12[%c0_41, %c128], %48 {strides = array<i32>} : memref<256x1152xbf16, #tpu.memory_space<vmem>>, vector<256x128xbf16>,
    %50 = vector.extract_strided_slice %46 {offsets = [1, 0, 0], sizes = [16, 16, 128], strides = [1, 1, 1]} : vector<18x16x128xbf16> to vector<16x16x128xbf16>
    %51 = vector.shape_cast %50 : vector<16x16x128xbf16> to vector<256x128xbf16>
    %c0_42 = arith.constant 0 : index
    %c512 = arith.constant 512 : index
    %52 = vector.load %arg12[%c0_42, %c512] : memref<256x1152xbf16, #tpu.memory_space<vmem>>, vector<256x128xbf16>
    tpu.vector_store %arg12[%c0_42, %c512], %51 {strides = array<i32>} : memref<256x1152xbf16, #tpu.memory_space<vmem>>, vector<256x128xbf16>,
    %53 = vector.extract_strided_slice %46 {offsets = [2, 0, 0], sizes = [16, 16, 128], strides = [1, 1, 1]} : vector<18x16x128xbf16> to vector<16x16x128xbf16>
    %54 = vector.shape_cast %53 : vector<16x16x128xbf16> to vector<256x128xbf16>
    %c0_43 = arith.constant 0 : index
    %c896 = arith.constant 896 : index
    %55 = vector.load %arg12[%c0_43, %c896] : memref<256x1152xbf16, #tpu.memory_space<vmem>>, vector<256x128xbf16>
    tpu.vector_store %arg12[%c0_43, %c896], %54 {strides = array<i32>} : memref<256x1152xbf16, #tpu.memory_space<vmem>>, vector<256x128xbf16>,
    %c15_i32 = arith.constant 15 : i32
    %56 = vector.broadcast %c15_i32 : i32 to vector<1x16x128xi32>
    %57 = arith.cmpi eq, %28, %56 : vector<1x16x128xi32>
    %c15_i32_44 = arith.constant 15 : i32
    %58 = tpu.dynamic_rotate %27 by %c15_i32_44 dim 1 : vector<18x16x128xf32>, i32 -> vector<18x16x128xf32>
    %cst_45 = arith.constant 0.000000e+00 : f32
    %59 = vector.shape_cast %57 : vector<1x16x128xi1> to vector<1x16x128xi1>
    %60 = vector.broadcast %59 : vector<1x16x128xi1> to vector<18x16x128xi1>
    %61 = vector.broadcast %cst_45 : f32 to vector<18x16x128xf32>
    %62 = arith.select %60, %61, %58 : vector<18x16x128xi1>, vector<18x16x128xf32>
    %63 = arith.truncf %62 : vector<18x16x128xf32> to vector<18x16x128xbf16>
    %64 = vector.extract_strided_slice %63 {offsets = [0, 0, 0], sizes = [16, 16, 128], strides = [1, 1, 1]} : vector<18x16x128xbf16> to vector<16x16x128xbf16>
    %65 = vector.shape_cast %64 : vector<16x16x128xbf16> to vector<256x128xbf16>
    %c0_46 = arith.constant 0 : index
    %c256 = arith.constant 256 : index
    %66 = vector.load %arg12[%c0_46, %c256] : memref<256x1152xbf16, #tpu.memory_space<vmem>>, vector<256x128xbf16>
    tpu.vector_store %arg12[%c0_46, %c256], %65 {strides = array<i32>} : memref<256x1152xbf16, #tpu.memory_space<vmem>>, vector<256x128xbf16>,
    %67 = vector.extract_strided_slice %63 {offsets = [1, 0, 0], sizes = [16, 16, 128], strides = [1, 1, 1]} : vector<18x16x128xbf16> to vector<16x16x128xbf16>
    %68 = vector.shape_cast %67 : vector<16x16x128xbf16> to vector<256x128xbf16>
    %c0_47 = arith.constant 0 : index
    %c640 = arith.constant 640 : index
    %69 = vector.load %arg12[%c0_47, %c640] : memref<256x1152xbf16, #tpu.memory_space<vmem>>, vector<256x128xbf16>
    tpu.vector_store %arg12[%c0_47, %c640], %68 {strides = array<i32>} : memref<256x1152xbf16, #tpu.memory_space<vmem>>, vector<256x128xbf16>,
    %70 = vector.extract_strided_slice %63 {offsets = [2, 0, 0], sizes = [16, 16, 128], strides = [1, 1, 1]} : vector<18x16x128xbf16> to vector<16x16x128xbf16>
    %71 = vector.shape_cast %70 : vector<16x16x128xbf16> to vector<256x128xbf16>
    %c0_48 = arith.constant 0 : index
    %c1024 = arith.constant 1024 : index
    %72 = vector.load %arg12[%c0_48, %c1024] : memref<256x1152xbf16, #tpu.memory_space<vmem>>, vector<256x128xbf16>
    tpu.vector_store %arg12[%c0_48, %c1024], %71 {strides = array<i32>} : memref<256x1152xbf16, #tpu.memory_space<vmem>>, vector<256x128xbf16>,
    %c0_49 = arith.constant 0 : index
    %c0_50 = arith.constant 0 : index
    %73 = vector.load %arg12[%c0_49, %c0_50] : memref<256x1152xbf16, #tpu.memory_space<vmem>>, vector<256x1152xbf16>
    %c0_51 = arith.constant 0 : index
    %c0_52 = arith.constant 0 : index
    %74 = vector.load %arg7[%c0_51, %c0_52] : memref<1152x128xbf16, #tpu.memory_space<vmem>>, vector<1152x128xbf16>
    %cst_53 = arith.constant dense<0.000000e+00> : vector<256x128xf32>
    %75 = tpu.matmul %73, %74, %cst_53 {dimension_numbers = #tpu.dot_dimension_numbers<[1], [0], [0], [1], [0, 0, 1, 1], [], []>} : vector<256x1152xbf16>, vector<1152x128xbf16>, vector<256x128xf32> -> vector<256x128xf32>
    %c0_54 = arith.constant 0 : index
    %c0_55 = arith.constant 0 : index
    %76 = vector.load %arg8[%c0_54, %c0_55] : memref<1x128xf32, #tpu.memory_space<vmem>>, vector<1x128xf32>
    %77 = vector.broadcast %76 : vector<1x128xf32> to vector<256x128xf32>
    %78 = arith.addf %75, %77 : vector<256x128xf32>
    %cst_56 = arith.constant 1.000000e-01 : f32
    %79 = vector.broadcast %cst_56 : f32 to vector<256x128xf32>
    %80 = arith.mulf %79, %78 : vector<256x128xf32>
    %81 = arith.maximumf %78, %80 : vector<256x128xf32>
    %82 = vector.shape_cast %81 : vector<256x128xf32> to vector<16x16x128xf32>
    %c0_57 = arith.constant 0 : index
    %c0_58 = arith.constant 0 : index
    %c0_59 = arith.constant 0 : index
    %c0_60 = arith.constant 0 : index
    %83 = vector.load %arg2[%c0_57, %c0_58, %c0_59, %c0_60] : memref<1x16x16x128xbf16, #tpu.memory_space<vmem>>, vector<1x16x16x128xbf16>
    %84 = vector.shape_cast %83 : vector<1x16x16x128xbf16> to vector<16x16x128xbf16>
    %85 = arith.extf %84 : vector<16x16x128xbf16> to vector<16x16x128xf32>
    %86 = arith.addf %82, %85 : vector<16x16x128xf32>
    %87 = arith.truncf %86 : vector<16x16x128xf32> to vector<16x16x128xbf16>
    %c0_61 = arith.constant 0 : index
    %c0_62 = arith.constant 0 : index
    %c0_63 = arith.constant 0 : index
    %c0_64 = arith.constant 0 : index
    %88 = vector.load %arg9[%c0_61, %c0_62, %c0_63, %c0_64] : memref<1x16x16x128xbf16, #tpu.memory_space<vmem>>, vector<1x16x16x128xbf16>
    %89 = vector.shape_cast %88 : vector<1x16x16x128xbf16> to vector<16x16x128xbf16>
    %90 = vector.shape_cast %87 : vector<16x16x128xbf16> to vector<1x16x16x128xbf16>
    tpu.vector_store %arg9[%c0_61, %c0_62, %c0_63, %c0_64], %90 {strides = array<i32>} : memref<1x16x16x128xbf16, #tpu.memory_space<vmem>>, vector<1x16x16x128xbf16>,
    return
  }
  func.func @transform_0(%arg0: i32, %arg1: i32) -> (i32, i32, i32, i32) {
    %c0_i32 = arith.constant 0 : i32
    %c0_i32_0 = arith.constant 0 : i32
    %c0_i32_1 = arith.constant 0 : i32
    return %arg0, %arg1, %c0_i32, %c0_i32_0 : i32, i32, i32, i32
  }
  func.func @transform_1(%arg0: i32, %arg1: i32) -> (i32, i32, i32, i32) {
    %c16_i32 = arith.constant 16 : i32
    %0 = arith.muli %arg1, %c16_i32 : i32
    %c1_i32 = arith.constant 1 : i32
    %1 = arith.subi %0, %c1_i32 : i32
    %c0_i32 = arith.constant 0 : i32
    %2 = arith.maxsi %1, %c0_i32 : i32
    %c0_i32_0 = arith.constant 0 : i32
    %c0_i32_1 = arith.constant 0 : i32
    %c0_i32_2 = arith.constant 0 : i32
    return %arg0, %2, %c0_i32_0, %c0_i32_1 : i32, i32, i32, i32
  }
  func.func @transform_2(%arg0: i32, %arg1: i32) -> (i32, i32, i32, i32) {
    %c1_i32 = arith.constant 1 : i32
    %0 = arith.addi %arg1, %c1_i32 : i32
    %c16_i32 = arith.constant 16 : i32
    %1 = arith.muli %0, %c16_i32 : i32
    %c15_i32 = arith.constant 15 : i32
    %2 = arith.minsi %1, %c15_i32 : i32
    %c0_i32 = arith.constant 0 : i32
    %c0_i32_0 = arith.constant 0 : i32
    %c0_i32_1 = arith.constant 0 : i32
    return %arg0, %2, %c0_i32, %c0_i32_0 : i32, i32, i32, i32
  }
  func.func @transform_3(%arg0: i32, %arg1: i32) -> (i32, i32) {
    %c0_i32 = arith.constant 0 : i32
    %c0_i32_0 = arith.constant 0 : i32
    %c0_i32_1 = arith.constant 0 : i32
    return %c0_i32, %c0_i32_0 : i32, i32
  }
  func.func @transform_4(%arg0: i32, %arg1: i32) -> (i32, i32) {
    %c0_i32 = arith.constant 0 : i32
    %c0_i32_0 = arith.constant 0 : i32
    %c0_i32_1 = arith.constant 0 : i32
    return %c0_i32, %c0_i32_0 : i32, i32
  }
  func.func @transform_5(%arg0: i32, %arg1: i32) -> (i32, i32) {
    %c0_i32 = arith.constant 0 : i32
    %c0_i32_0 = arith.constant 0 : i32
    %c0_i32_1 = arith.constant 0 : i32
    return %c0_i32, %c0_i32_0 : i32, i32
  }
  func.func @transform_6(%arg0: i32, %arg1: i32) -> (i32, i32) {
    %c0_i32 = arith.constant 0 : i32
    %c0_i32_0 = arith.constant 0 : i32
    %c0_i32_1 = arith.constant 0 : i32
    return %c0_i32, %c0_i32_0 : i32, i32
  }
  func.func @transform_7(%arg0: i32, %arg1: i32) -> (i32, i32, i32, i32) {
    %c0_i32 = arith.constant 0 : i32
    %c0_i32_0 = arith.constant 0 : i32
    %c0_i32_1 = arith.constant 0 : i32
    return %arg0, %arg1, %c0_i32, %c0_i32_0 : i32, i32, i32, i32
  }
}

</mosaic_0001>

<bundles_post_ra>
// kernel: tpu_custom_call.1
= control target key start
LH: loop header
LB: loop body
LE: loop exit
PB: predicated region body
PF: predicated region fallthrough
CT: control target
= control target key end

     0   :  { %s7171_s0 = inlined_call_operand.hbm [shape: bf16[2,16,16,128], index: 0, kind: input, shape index: {}]   ;;  %s7172_s1 = inlined_call_operand.hbm [shape: bf16[2,16,16,128], index: 1, kind: input, shape index: {}]   ;;  %s7173_s2 = inlined_call_operand.hbm [shape: bf16[2,16,16,128], index: 2, kind: input, shape index: {}]   ;;  %s7174_s3 = inlined_call_operand.hbm [shape: bf16[128,128], index: 3, kind: input, shape index: {}]   ;;  %s7175_s4 = inlined_call_operand.vmem [shape: f32[1,128], index: 4, kind: input, shape index: {}]   ;;  %s7176_s5 = inlined_call_operand.hbm [shape: bf16[1152,128], index: 5, kind: input, shape index: {}]   ;;  %s7177_s6 = inlined_call_operand.vmem [shape: f32[1,128], index: 6, kind: input, shape index: {}]   ;;  %s7178_s7 = inlined_call_operand.hbm [shape: bf16[2,16,16,128], index: 7, kind: output, shape index: {}]  }
   0x1   :  { %7190 = sst [smem:[#allocation36_spill]] %s7172_s1 }
   0x2   :  { %7191 = sst [smem:[#allocation37_spill]] %s7174_s3 }
   0x3   :  { %7192 = sst [smem:[#allocation38_spill]] %s7176_s5 }
   0x4   :  { %12 = vsyncpa [#allocation6], 0 }
   0x5   :  { %14 = vsyncpa [#allocation6 + $0x1], 0 }
   0x6   :  { %15 = vsyncpa [#allocation9], 0 }
   0x7   :  { %17 = vsyncpa [#allocation9 + $0x1], 0 }
   0x8   :  { %18 = vsyncpa [#allocation12], 0 }
   0x9   :  { %19 = vsyncpa [#allocation7], 0 }
   0xa   :  { %21 = vsyncpa [#allocation7 + $0x1], 0  ;;  %s6142_s24 = smov 0   ;;  %s6144_s25 = smov 0  }
   0xb   :  { %s6146_s26 = smov 0   ;;  %s6148_s27 = smov 0  }
   0xc   :  { %s6150_s28 = smov 0   ;;  %s6152_s29 = smov 0  }
   0xd LB: > { %7193 = sst [smem:[#allocation19_spill]] %s6072_s24  ;;  %s6173_s30 = sadd.s32 4294967295, %s6092_s29   ;;  %s6092_s29 = sphi %s6152_s29, %s27_s29   ;;  %s6088_s28 = sphi %s6150_s28, %s7238_s28   ;;  %s6084_s27 = sphi %s6148_s27, %s7237_s27   ;;  %s6080_s26 = sphi %s6146_s26, %s7236_s26   ;;  %s6076_s25 = sphi %s6144_s25, %s7240_s25   ;;  %s6072_s24 = sphi %s6142_s24, %s7239_s24  }
   0xe   : > { %7194 = sst [smem:[#allocation20_spill]] %s6080_s26  ;;  %s4317_s8 = sadd.s32 4294967294, %s6092_s29  }
   0xf   : > { %7195 = sst [smem:[#allocation21_spill]] %s6088_s28  ;;  %p61_p0 = scmp.ne.s32.totalorder %s6076_s25, %s6072_s24 }
  0x10   : > { %p62_p1 = scmp.eq.s32.totalorder %s6173_s30, 0  ;;  %p243_p2 = scmp.eq.s32.totalorder %s6173_s30, 1 }
  0x11   : > { %p249_p3 = scmp.eq.s32.totalorder %s4317_s8, 1  ;;  %p4318_p5 = scmp.ge.s32.totalorder %s6092_s29, 1 }
  0x12   : > { %p6182_p4 = por %p62_p1, %p61_p0  ;;  %p256_p7 = scmp.lt.s32.totalorder %s6092_s29, 3 }
  0x13   : > { %p6187_p6 = por %p249_p3, %p61_p0  ;;  %s7199_s3 = sld [smem:[#allocation37_spill]] }
  0x14   : > { %p6195_p8 = pnand %p4318_p5, %p256_p7  ;;  %s6094_s15 = smov [#allocation11]  }
  0x15   : > { %s7197_s10 = scalar_select %p6187_p6, 1, 0 }
  0x16   : > { %p5765_p9 = pneg %p6195_p8  ;;  %s269_s16 = sshll.u32 %s6094_s15, 4  ;;  %s270_s16 = int_to_ptr.vmem [resolvable:$true] %s269_s16 }
  0x17   : > { %7198 = sst [smem:[#allocation22_spill]] %s7197_s10  ;;  %s7179_s18 = smov 64  }
  0x18   : > { %p6203_p10 = pnand %p5765_p9, %p62_p1  ;;  %s7181_s19 = smov 4  }
  0x19   : > { %s267_s13 = sshll.u32 %s7199_s3, 4  ;;  %s39_s20 = sadd.s32 1, %s6088_s28  ;;  %s268_s13 = int_to_ptr.hbm [resolvable:$true] %s267_s13 }
  0x1a   : > { %5768 = dma.hbm_to_vmem [thread:$0]  (!%p6203_p10), %s268_s13, 1024, %s270_s16, [#allocation12], %s7179_s18, %s7179_s18, %s7181_s19  }
  0x1b   : > { %p41_p12 = scmp.ge.s32.totalorder %s39_s20, 2  ;;  %s48_s21 = sadd.s32 1, %s6080_s26 }
  0x1c   : > { %p55_p13 = scmp.ne.s32.totalorder %s6080_s26, %s6076_s25  ;;  %p56_p0 = scmp.eq.s32.totalorder %s6092_s29, 0 }
  0x1d   : > { %s7242_s20 = smov (%p41_p12, %s39_s20), 0  ;;  %p5788_p7 = scmp.lt.s32.totalorder %s6092_s29, 2 }
  0x1e   : > { %7202 = sst [smem:[#allocation23_spill]] %s7242_s20  ;;  %p57_p3 = por %p56_p0, %p55_p13 }
  0x1f   : > { %p6222_p5 = por %p243_p2, %p55_p13  ;;  %s43_s23 = ssub.s32 %s6088_s28, %s7242_s20 }
  0x20   : > { %p46_p9 = scmp.eq.s32.totalorder %s43_s23, 0  ;;  %s6230_s8 = sand.u32 1, %s6080_s26  }
  0x21   : > { %s7203_s22 = scalar_select %p6222_p5, 1, 0 }
  0x22   : > { %s6233_s11 = sshll.u32 %s6088_s28, 7  ;;  %p6235_p11 = pnand %p5788_p7, %p57_p3 }
  0x23   : > { %7204 = sst [smem:[#allocation24_spill]] %s7203_s22  ;;  %s328_s15 = sand.u32 1, %s6092_s29  }
  0x24   : > { %s6240_s13 = scalar_select %p46_p9, %s6080_s26, %s48_s21  }
  0x25   : > { %s4325_s16 = sshll.u32 %s6230_s8, 3  ;;  %s7207_s1 = sld [smem:[#allocation36_spill]] }
  0x26   : > { %7206 = sst [smem:[#allocation25_spill]] %s6240_s13  ;;  %s332_s20 = scalar_lea.vmem [#allocation8], %s4325_s16 }
  0x27   : > { %s346_s28 = sshll.u32 %s332_s20, 4  ;;  %s329_s10 = scalar_lea.sflag [#allocation9], %s328_s15  ;;  %s347_s28 = int_to_ptr.vmem [resolvable:$true] %s346_s28 }
  0x28   : > { %s7208_s24 = smov 4   ;;  %s7209_s22 = smov 64  }
  0x29   : > { %s7210_s5 = sld [smem:[#allocation38_spill]]  ;;  %s360_s19 = scalar_lea.vmem [#allocation10], %s4325_s16 }
  0x2a   : > { %s4322_s15 = sshll.u32 %s6230_s8, 7  ;;  %s315_s13 = scalar_lea.hbm %s7171_s0, %s6233_s11 }
  0x2b   : > { %s343_s23 = scalar_lea.hbm %s7207_s1, %s6233_s11  ;;  %s6097_s1 = smov [#allocation13]  }
  0x2c   : > { %s344_s3 = sshll.u32 %s343_s23, 4  ;;  %s374_s23 = sshll.u32 %s360_s19, 4  ;;  %s345_s3 = int_to_ptr.hbm [resolvable:$true] %s344_s3  ;;  %s375_s23 = int_to_ptr.vmem [resolvable:$true] %s374_s23 }
  0x2d   : > { %5778 = dma.hbm_to_vmem [thread:$0]  (!%p6235_p11), %s345_s3, 128, %s347_s28, %s329_s10, %s7209_s22, %s7209_s22, %s7208_s24  }
  0x2e   : > { %s286_s20 = sshll.u32 %s6097_s1, 4  ;;  %s316_s21 = sshll.u32 %s315_s13, 4  ;;  %s287_s20 = int_to_ptr.vmem [resolvable:$true] %s286_s20  ;;  %s317_s21 = int_to_ptr.hbm [resolvable:$true] %s316_s21 }
  0x2f   : > { %s284_s18 = sshll.u32 %s7210_s5, 4  ;;  %s307_s5 = scalar_lea.vmem [#allocation5], %s4322_s15  ;;  %s285_s18 = int_to_ptr.hbm [resolvable:$true] %s284_s18 }
  0x30   : > { %5771 = dma.hbm_to_vmem [thread:$0]  (!%p6203_p10), %s285_s18, 9216, %s287_s20, [#allocation12], %s7209_s22, %s7209_s22, %s7208_s24  }
  0x31   : > { %s318_s16 = sshll.u32 %s307_s5, 4  ;;  %s304_s19 = scalar_lea.sflag [#allocation6], %s6230_s8  ;;  %s319_s16 = int_to_ptr.vmem [resolvable:$true] %s318_s16 }
  0x32   : > { %5775 = dma.hbm_to_vmem [thread:$0]  (!%p6235_p11), %s317_s21, 2048, %s319_s16, %s304_s19, %s7209_s22, %s7209_s22, %s7208_s24  }
  0x33   : > { %s5314_s1 = sadd.s32 120, %s6233_s11  ;;  %386 = sbr.rel (%p6195_p8) target bundleno = 1200 (0x4b0), region = 48 }
  0x34   : > { %s371_s18 = scalar_lea.hbm %s7173_s2, %s5314_s1 }
  0x35   : > { %s372_s20 = sshll.u32 %s371_s18, 4  ;;  %s373_s20 = int_to_ptr.hbm [resolvable:$true] %s372_s20 }
  0x36   : > { %5781 = dma.hbm_to_vmem [thread:$0]  (!%p6235_p11), %s373_s20, 128, %s375_s23, %s329_s10, %s7209_s22, %s7209_s22, %s7208_s24  }
  0x38   : > { %s6284_s5 = sand.u32 1, %s6076_s25  }
  0x39   : > { %s4332_s8 = sshll.u32 %s6284_s5, 7  ;;  %s389_s26 = scalar_lea.sflag [#allocation6], %s6284_s5 }
  0x3a   : > { %s6290_s11 = scalar_lea.vmem [#allocation5], %s4332_s8 }
  0x3b   : > { %6055 = dma.done.wait (%p6182_p4), %s389_s26, 2048  }
  0x3c   : > { %6057 = vsyncadd (%p6182_p4), %s389_s26, 4294965248  ;;  %s398_s24 = sand.u32 1, %s6173_s30   ;;  %s4333_s10 = sshll.u32 %s6284_s5, 3 }
  0x3d   : > { %s399_s14 = scalar_lea.sflag [#allocation9], %s398_s24  ;;  %s402_s22 = scalar_lea.vmem [#allocation8], %s4333_s10 }
  0x3e   : > { %6059 = dma.done.wait (%p6182_p4), %s399_s14, 256  }
  0x3f   : > { %6061 = vsyncadd (%p6182_p4), %s399_s14, 4294967040  ;;  %s6302_s12 = scalar_lea.vmem [#allocation10], %s4333_s10 }
  0x40   : > { %6063 = dma.done.wait (%p62_p1), [#allocation12], 10240  }
  0x41   : > { %6065 = vsyncadd (%p62_p1), [#allocation12], 4294957056  ;;  %v5340_v0 = vld [vmem:[#allocation11 + $0x38] sm:$0xff]  ;;  %v5339_v1 = vld [vmem:[#allocation11 + $0x30] sm:$0xff]  ;;  %v1012_v29 = vlaneseq  ;;  %v6098_v34 = vmov 0.0   ;;  %s7022_s16 = scalar_lea.vmem [#allocation14], %s4332_s8 }
  0x42   : > { %760 = vmatpush.bf16.msra.mxu0 %v5340_v0  ;;  %v474_v2 = vld [vmem:[%s402_s22] sm:$0xff]   ;;  %v5336_v6 = vld [vmem:[#allocation11 + $0x18] sm:$0xff]  ;;  %v5335_v8 = vld [vmem:[#allocation11 + $0x10] sm:$0xff]  ;;  %v1017_v35 = vrot.slane %v6098_v34, 7  ;;  %s5557_s19 = sshll.u32 %s6084_s27, 7  ;;  %s4158_s8 = sshll.u32 %s7022_s16, 4  ;;  %s4159_s8 = int_to_ptr.vmem [resolvable:$true] %s4158_s8 }
  0x43   : > { %476 = vst [vmem:[#allocation2] sm:$0xff] %v474_v2   ;;  %v478_v3 = vld [vmem:[%s6290_s11] sm:$0xff]   ;;  %v5338_v4 = vld [vmem:[#allocation11 + $0x28] sm:$0xff]  ;;  %v482_v12 = vld [vmem:[%s6290_s11 + $0x10] sm:$0xff]   ;;  %v6317_v32 = vshrl.u32 %v1012_v29, 7  ;;  %s4157_s18 = scalar_lea.hbm %s7178_s7, %s5557_s19  ;;  %s4143_s27 = scalar_lea.sflag [#allocation7], %s6284_s5 }
  0x44   : > { %511 = vst [vmem:[#allocation2 + $0x8] sm:$0xff] %v478_v3   ;;  %v5337_v5 = vld [vmem:[#allocation11 + $0x20] sm:$0xff]  ;;  %v480_v7 = vld [vmem:[%s6290_s11 + $0x8] sm:$0xff]   ;;  %v484_v14 = vld [vmem:[%s6290_s11 + $0x18] sm:$0xff]   ;;  %v1131_v38 = vpack.c.bf16 %v1017_v35, %v1017_v35  ;;  %s4160_s26 = sshll.u32 %s4157_s18, 4  ;;  %s6022_s22 = scalar_lea.hbm %s7178_s7, 256  ;;  %s4161_s26 = int_to_ptr.hbm [resolvable:$true] %s4160_s26 }
  0x45   : > { %513 = vst [vmem:[#allocation2 + $0x10] sm:$0xff] %v480_v7   ;;  %v5334_v9 = vld [vmem:[#allocation11 + $0x8] sm:$0xff]  ;;  %v5333_v10 = vld [vmem:[#allocation11] sm:$0xff]  ;;  %v490_v20 = vld [vmem:[%s6290_s11 + $0x30] sm:$0xff]   ;;  %vm1015_vm0 = vcmp.eq.s32.totalorder %v6317_v32, 0  ;;  %v6333_v58 = vadd.s32 8, %v6317_v32 }
  0x46   : > { %761 = vmatpush.bf16.msra.mxu0 %v5339_v1  ;;  %515 = vst [vmem:[#allocation2 + $0x18] sm:$0xff] %v482_v12   ;;  %v486_v16 = vld [vmem:[%s6290_s11 + $0x20] sm:$0xff]   ;;  %v488_v18 = vld [vmem:[%s6290_s11 + $0x28] sm:$0xff]   ;;  %v492_v22 = vld [vmem:[%s6290_s11 + $0x38] sm:$0xff]   ;;  %v1094_v36 = vsel %vm1015_vm0, 0.0, %v1017_v35  ;;  %vm1053_vm1 = vcmp.lt.s32.totalorder %v6317_v32, 1 }
  0x47   : > { %517 = vst [vmem:[#allocation2 + $0x20] sm:$0xff] %v484_v14   ;;  %v5492_v23 = vld [vmem:[#allocation13 + $0x38] sm:$0xff]  ;;  %v5491_v25 = vld [vmem:[#allocation13 + $0x30] sm:$0xff]  ;;  %v5490_v26 = vld [vmem:[#allocation13 + $0x28] sm:$0xff]  ;;  %v1130_v37 = vpack.c.bf16 %v1094_v36, %v1094_v36  ;;  %vm1395_vm2 = vcmp.eq.s32.totalorder %v6333_v58, 15  ;;  %vm1432_vm3 = vcmp.lt.s32.totalorder %v6317_v32, 7 }
  0x48   : > { %519 = vst [vmem:[#allocation2 + $0x28] sm:$0xff] %v486_v16   ;;  %3117 = vmatpush.bf16.msra.mxu1 %v5492_v23  ;;  %5733 = vmatpush.bf16.msra.mxu3 %v5492_v23  ;;  %v5489_v27 = vld [vmem:[#allocation13 + $0x20] sm:$0xff]  ;;  %v5488_v31 = vld [vmem:[#allocation13 + $0x18] sm:$0xff]  ;;  %v5487_v33 = vld [vmem:[#allocation13 + $0x10] sm:$0xff] }
  0x49   : > { %521 = vst [vmem:[#allocation2 + $0x30] sm:$0xff] %v488_v18   ;;  %v494_v28 = vld [vmem:[%s6290_s11 + $0x40] sm:$0xff]   ;;  %v5486_v39 = vld [vmem:[#allocation13 + $0x8] sm:$0xff]  ;;  %v6327_v48 = vld [vmem:[%s7175_s4] ss:$0 sm:$0xff] }
  0x4a   : > { %762 = vmatpush.bf16.msra.mxu0 %v5338_v4  ;;  %v5315_v11 = vld [vmem:[#allocation2] sm:$0xff]  ;;  %523 = vst [vmem:[#allocation2 + $0x38] sm:$0xff] %v490_v20   ;;  %v496_v41 = vld [vmem:[%s6290_s11 + $0x48] sm:$0xff]   ;;  %v5485_v43 = vld [vmem:[#allocation13] sm:$0xff] }
  0x4b   : > { %v5316_v13 = vld [vmem:[#allocation2 + $0x8] sm:$0xff]  ;;  %525 = vst [vmem:[#allocation2 + $0x40] sm:$0xff] %v492_v22   ;;  %v498_v53 = vld [vmem:[%s6290_s11 + $0x50] sm:$0xff]  }
  0x4c   : > { %v5317_v15 = vld [vmem:[#allocation2 + $0x10] sm:$0xff]  ;;  %3118 = vmatpush.bf16.msra.mxu1 %v5491_v25  ;;  %5734 = vmatpush.bf16.msra.mxu3 %v5491_v25  ;;  %527 = vst [vmem:[#allocation2 + $0x48] sm:$0xff] %v494_v28   ;;  %v500_v23 = vld [vmem:[%s6290_s11 + $0x58] sm:$0xff]  }
  0x4d   : > { %v5318_v17 = vld [vmem:[#allocation2 + $0x18] sm:$0xff]  ;;  %1166 = vst [vmem:[#allocation4] sm:$0xf] %v1130_v37 }
  0x4e   : > { %763 = vmatpush.bf16.msra.mxu0 %v5337_v5  ;;  %v5319_v19 = vld [vmem:[#allocation2 + $0x20] sm:$0xff]  ;;  %1167 = vst [vmem:[#allocation4 + $0x24] sm:$0xf] %v1131_v38 }
  0x4f   : > { %v5320_v21 = vld [vmem:[#allocation2 + $0x28] sm:$0xff]  ;;  %1260 = vst [vmem:[#allocation4 + $0x450] sm:$0xf] %v1130_v37 }
  0x50   : > { %v5321_v24 = vld [vmem:[#allocation2 + $0x30] sm:$0xff]  ;;  %3119 = vmatpush.bf16.msra.mxu1 %v5490_v26  ;;  %5735 = vmatpush.bf16.msra.mxu3 %v5490_v26  ;;  %1261 = vst [vmem:[#allocation4 + $0x474] sm:$0xf] %v1131_v38 }
  0x51   : > { %v5322_v30 = vld [vmem:[#allocation2 + $0x38] sm:$0xff]  ;;  %529 = vst [vmem:[#allocation2 + $0x50] sm:$0xff] %v496_v41  }
  0x52   : > { %764 = vmatpush.bf16.msra.mxu0 %v5336_v6  ;;  %v5323_v40 = vld [vmem:[#allocation2 + $0x40] sm:$0xff]  ;;  %531 = vst [vmem:[#allocation2 + $0x58] sm:$0xff] %v498_v53  }
  0x53   : > { %v5324_v49 = vld [vmem:[#allocation2 + $0x48] sm:$0xff]  ;;  %533 = vst [vmem:[#allocation2 + $0x60] sm:$0xff] %v500_v23  }
  0x54   : > { %3120 = vmatpush.bf16.msra.mxu1 %v5489_v27  ;;  %5736 = vmatpush.bf16.msra.mxu3 %v5489_v27  ;;  %v4444_v44 = vld [vmem:[#allocation4] sm:$0xf] }
  0x55   : > { %v5345_v45 = vld [vmem:[#allocation4 + $0x20] sm:$0xf0] }
  0x56   : > { %765 = vmatpush.bf16.msra.mxu0 %v5335_v8  ;;  %v4445_v46 = vor.u32 %v5345_v45, %v4444_v44 }
  0x58   : > { %3121 = vmatpush.bf16.msra.mxu1 %v5488_v31  ;;  %5737 = vmatpush.bf16.msra.mxu3 %v5488_v31  ;;  %v5325_v2 = vld [vmem:[#allocation2 + $0x50] sm:$0xff] }
  0x59   : > { %v5326_v31 = vld [vmem:[#allocation2 + $0x58] sm:$0xff] }
  0x5a   : > { %766 = vmatpush.bf16.msra.mxu0 %v5334_v9 }
  0x5c   : > { %3122 = vmatpush.bf16.msra.mxu1 %v5487_v33  ;;  %5738 = vmatpush.bf16.msra.mxu3 %v5487_v33 }
  0x5e   : > { %767 = vmatpush.bf16.msra.mxu0 %v5333_v10 }
  0x60   : > { %3123 = vmatpush.bf16.msra.mxu1 %v5486_v39  ;;  %5739 = vmatpush.bf16.msra.mxu3 %v5486_v39 }
  0x61   : > { %768 = vmatmul.bf16.vlgmr.msra.gmra.mxu0 %v5315_v11 }
  0x64   : > { %3124 = vmatpush.bf16.msra.mxu1 %v5485_v43  ;;  %5740 = vmatpush.bf16.msra.mxu3 %v5485_v43 }
  0x67   : > { %3125 = vmatmul.bf16.vlgmr.msra.gmra.mxu1 %v4445_v46 }
  0x71   : > { %773 = vmatmul.bf16.gmra.mxu0 %v5316_v13 }
  0x81   : > { %778 = vmatmul.bf16.gmra.mxu0 %v5317_v15 }
  0x91   : > { %783 = vmatmul.bf16.gmra.mxu0 %v5318_v17 }
  0xa1   : > { %788 = vmatmul.bf16.gmra.mxu0 %v5319_v19 }
  0xb1   : > { %793 = vmatmul.bf16.gmra.mxu0 %v5320_v21 }
  0xc1   : > { %798 = vmatmul.bf16.gmra.mxu0 %v5321_v24 }
  0xd1   : > { %803 = vmatmul.bf16.gmra.mxu0 %v5322_v30 }
  0xde   : > { %v769_v42 = vpop.f32.mrf.mxu0 }
  0xe1   : > { %808 = vmatmul.bf16.gmra.mxu0 %v5323_v40 }
  0xe6   : > { %v771_v47 = vpop.f32.mrf.mxu0 }
  0xee   : > { %v774_v50 = vpop.f32.mrf.mxu0 }
  0xef   : > { %v775_v51 = vadd.f32 %v6327_v48, %v774_v50 }
  0xf1   : > { %v861_v52 = vmul.f32 0.1, %v775_v51  ;;  %813 = vmatmul.bf16.gmra.mxu0 %v5324_v49 }
  0xf3   : > { %v897_v54 = vmax.f32 %v775_v51, %v861_v52 }
  0xf5   : > { %v1264_v55 = vpack.c.bf16 %v897_v54, %v897_v54  ;;  %v1018_v61 = vrot.slane %v897_v54, 7  ;;  %v1397_v62 = vrot.slane %v897_v54, 1 }
  0xf6   : > { %v776_v56 = vpop.f32.mrf.mxu0 }
  0xf7   : > { %1300 = vst [vmem:[#allocation4 + $0x4c] sm:$0xf] %v1264_v55  ;;  %v777_v57 = vadd.f32 %v6327_v48, %v776_v56 }
  0xf8   : > { %1330 = vst [vmem:[#allocation4 + $0x10] sm:$0xf] %v1264_v55 }
  0xf9   : > { %v862_v59 = vmul.f32 0.1, %v777_v57 }
  0xfb   : > { %v898_v60 = vmax.f32 %v777_v57, %v862_v59 }
  0xfd   : > { %v1036_v63 = vrot.slane %v898_v60, 7  ;;  %v1265_v0 = vpack.c.bf16 %v898_v60, %v898_v60  ;;  %v1415_v1 = vrot.slane %v898_v60, 1 }
  0xfe   : > { %v779_v3 = vpop.f32.mrf.mxu0 }
  0xff   : > { %v1055_v4 = vsel %vm1053_vm1, %v1018_v61, %v1036_v63  ;;  %v1073_v5 = vsel %vm1053_vm1, %v1036_v63, %v1018_v61  ;;  %1301 = vst [vmem:[#allocation4 + $0x70] sm:$0xf] %v1265_v0  ;;  %v1434_v6 = vsel %vm1432_vm3, %v1397_v62, %v1415_v1  ;;  %v1452_v7 = vsel %vm1432_vm3, %v1415_v1, %v1397_v62  ;;  %v5327_v62 = vld [vmem:[#allocation2 + $0x60] sm:$0xff] }
 0x100   : > { %v1096_v8 = vsel %vm1015_vm0, 0.0, %v1073_v5  ;;  %v1133_v9 = vpack.c.bf16 %v1055_v4, %v1055_v4  ;;  %1331 = vst [vmem:[#allocation4 + $0x34] sm:$0xf] %v1265_v0  ;;  %v1476_v10 = vsel %vm1395_vm2, 0.0, %v1452_v7  ;;  %v780_v12 = vadd.f32 %v6327_v48, %v779_v3 }
 0x101   : > { %v1132_v11 = vpack.c.bf16 %v1096_v8, %v1096_v8  ;;  %818 = vmatmul.bf16.gmra.mxu0 %v5325_v2  ;;  %v1511_v13 = vpack.c.bf16 %v1434_v6, %v1434_v6  ;;  %v1512_v14 = vpack.c.bf16 %v1476_v10, %v1476_v10 }
 0x102   : > { %1169 = vst [vmem:[#allocation4 + $0x6c] sm:$0xf] %v1133_v9  ;;  %v863_v15 = vmul.f32 0.1, %v780_v12 }
 0x103   : > { %1168 = vst [vmem:[#allocation4 + $0x48] sm:$0xf] %v1132_v11 }
 0x104   : > { %1198 = vst [vmem:[#allocation4 + $0xc] sm:$0xf] %v1132_v11  ;;  %v899_v16 = vmax.f32 %v780_v12, %v863_v15 }
 0x105   : > { %1199 = vst [vmem:[#allocation4 + $0x30] sm:$0xf] %v1133_v9 }
 0x106   : > { %1547 = vst [vmem:[#allocation4 + $0x50] sm:$0xf] %v1511_v13  ;;  %v781_v17 = vpop.f32.mrf.mxu0  ;;  %v1266_v18 = vpack.c.bf16 %v899_v16, %v899_v16  ;;  %v1019_v26 = vrot.slane %v899_v16, 7  ;;  %v1398_v27 = vrot.slane %v899_v16, 1 }
 0x107   : > { %1548 = vst [vmem:[#allocation4 + $0x74] sm:$0xf] %v1512_v14  ;;  %v782_v19 = vadd.f32 %v6327_v48, %v781_v17 }
 0x108   : > { %1577 = vst [vmem:[#allocation4 + $0x14] sm:$0xf] %v1511_v13 }
 0x109   : > { %1578 = vst [vmem:[#allocation4 + $0x38] sm:$0xf] %v1512_v14  ;;  %v864_v20 = vmul.f32 0.1, %v782_v19  ;;  %v5354_v21 = vld [vmem:[#allocation4 + $0x68] sm:$0xf0] }
 0x10a   : > { %1302 = vst [vmem:[#allocation4 + $0x94] sm:$0xf] %v1266_v18  ;;  %v4480_v22 = vld [vmem:[#allocation4 + $0x48] sm:$0xf] }
 0x10b   : > { %1332 = vst [vmem:[#allocation4 + $0x58] sm:$0xf] %v1266_v18  ;;  %v900_v24 = vmax.f32 %v782_v19, %v864_v20  ;;  %v4481_v25 = vor.u32 %v5354_v21, %v4480_v22 }
 0x10c   : > { %1362 = vst [vmem:[#allocation4 + $0x1c] sm:$0xf] %v1266_v18 }
 0x10d   : > { %v1037_v28 = vrot.slane %v900_v24, 7  ;;  %v1267_v29 = vpack.c.bf16 %v900_v24, %v900_v24  ;;  %v1416_v30 = vrot.slane %v900_v24, 1  ;;  %3130 = vmatmul.bf16.gmra.mxu1 %v4481_v25 }
 0x10e   : > { %v784_v33 = vpop.f32.mrf.mxu0 }
 0x10f   : > { %v1056_v35 = vsel %vm1053_vm1, %v1019_v26, %v1037_v28  ;;  %v1074_v36 = vsel %vm1053_vm1, %v1037_v28, %v1019_v26  ;;  %1303 = vst [vmem:[#allocation4 + $0xb8] sm:$0xf] %v1267_v29  ;;  %v1453_v37 = vsel %vm1432_vm3, %v1416_v30, %v1398_v27  ;;  %v1435_v41 = vsel %vm1432_vm3, %v1398_v27, %v1416_v30 }
 0x110   : > { %v1098_v38 = vsel %vm1015_vm0, 0.0, %v1074_v36  ;;  %v1135_v39 = vpack.c.bf16 %v1056_v35, %v1056_v35  ;;  %1333 = vst [vmem:[#allocation4 + $0x7c] sm:$0xf] %v1267_v29  ;;  %v785_v42 = vadd.f32 %v6327_v48, %v784_v33  ;;  %v1478_v43 = vsel %vm1395_vm2, 0.0, %v1453_v37 }
 0x111   : > { %v1134_v40 = vpack.c.bf16 %v1098_v38, %v1098_v38  ;;  %1363 = vst [vmem:[#allocation4 + $0x40] sm:$0xf] %v1267_v29  ;;  %823 = vmatmul.bf16.gmra.mxu0 %v5326_v31  ;;  %v1513_v45 = vpack.c.bf16 %v1435_v41, %v1435_v41  ;;  %v1514_v46 = vpack.c.bf16 %v1478_v43, %v1478_v43 }
 0x112   : > { %1171 = vst [vmem:[#allocation4 + $0xb4] sm:$0xf] %v1135_v39  ;;  %v865_v44 = vmul.f32 0.1, %v785_v42 }
 0x113   : > { %1170 = vst [vmem:[#allocation4 + $0x90] sm:$0xf] %v1134_v40 }
 0x114   : > { %1200 = vst [vmem:[#allocation4 + $0x54] sm:$0xf] %v1134_v40  ;;  %v901_v47 = vmax.f32 %v785_v42, %v865_v44 }
 0x115   : > { %1201 = vst [vmem:[#allocation4 + $0x78] sm:$0xf] %v1135_v39 }
 0x116   : > { %1230 = vst [vmem:[#allocation4 + $0x18] sm:$0xf] %v1134_v40  ;;  %v786_v49 = vpop.f32.mrf.mxu0  ;;  %v1268_v53 = vpack.c.bf16 %v901_v47, %v901_v47  ;;  %v1020_v57 = vrot.slane %v901_v47, 7  ;;  %v1399_v0 = vrot.slane %v901_v47, 1 }
 0x117   : > { %1231 = vst [vmem:[#allocation4 + $0x3c] sm:$0xf] %v1135_v39  ;;  %v787_v50 = vadd.f32 %v6327_v48, %v786_v49 }
 0x118   : > { %1549 = vst [vmem:[#allocation4 + $0x98] sm:$0xf] %v1513_v45 }
 0x119   : > { %1550 = vst [vmem:[#allocation4 + $0xbc] sm:$0xf] %v1514_v46  ;;  %v866_v51 = vmul.f32 0.1, %v787_v50  ;;  %v5363_v52 = vld [vmem:[#allocation4 + $0xb0] sm:$0xf0] }
 0x11a   : > { %1579 = vst [vmem:[#allocation4 + $0x5c] sm:$0xf] %v1513_v45  ;;  %v4516_v54 = vld [vmem:[#allocation4 + $0x90] sm:$0xf] }
 0x11b   : > { %1580 = vst [vmem:[#allocation4 + $0x80] sm:$0xf] %v1514_v46  ;;  %v902_v55 = vmax.f32 %v787_v50, %v866_v51  ;;  %v4517_v56 = vor.u32 %v5363_v52, %v4516_v54 }
 0x11c   : > { %1609 = vst [vmem:[#allocation4 + $0x20] sm:$0xf] %v1513_v45 }
 0x11d   : > { %1610 = vst [vmem:[#allocation4 + $0x44] sm:$0xf] %v1514_v46  ;;  %v1038_v59 = vrot.slane %v902_v55, 7  ;;  %v1269_v60 = vpack.c.bf16 %v902_v55, %v902_v55  ;;  %v1417_v61 = vrot.slane %v902_v55, 1  ;;  %3135 = vmatmul.bf16.gmra.mxu1 %v4517_v56 }
 0x11e   : > { %1304 = vst [vmem:[#allocation4 + $0xdc] sm:$0xf] %v1268_v53  ;;  %v789_v63 = vpop.f32.mrf.mxu0 }
 0x11f   : > { %1334 = vst [vmem:[#allocation4 + $0xa0] sm:$0xf] %v1268_v53  ;;  %v1057_v1 = vsel %vm1053_vm1, %v1020_v57, %v1038_v59  ;;  %v1075_v2 = vsel %vm1053_vm1, %v1038_v59, %v1020_v57  ;;  %v1454_v6 = vsel %vm1432_vm3, %v1417_v61, %v1399_v0  ;;  %v790_v7 = vadd.f32 %v6327_v48, %v789_v63 }
 0x120   : > { %1364 = vst [vmem:[#allocation4 + $0x64] sm:$0xf] %v1268_v53  ;;  %v1100_v3 = vsel %vm1015_vm0, 0.0, %v1075_v2  ;;  %v1137_v4 = vpack.c.bf16 %v1057_v1, %v1057_v1  ;;  %v1436_v8 = vsel %vm1432_vm3, %v1399_v0, %v1417_v61  ;;  %v1480_v9 = vsel %vm1395_vm2, 0.0, %v1454_v6 }
 0x121   : > { %v1136_v5 = vpack.c.bf16 %v1100_v3, %v1100_v3  ;;  %1305 = vst [vmem:[#allocation4 + $0x100] sm:$0xf] %v1269_v60  ;;  %828 = vmatmul.bf16.gmra.mxu0 %v5327_v62  ;;  %v867_v10 = vmul.f32 0.1, %v790_v7  ;;  %v1515_v11 = vpack.c.bf16 %v1436_v8, %v1436_v8  ;;  %v1516_v13 = vpack.c.bf16 %v1480_v9, %v1480_v9 }
 0x122   : > { %1173 = vst [vmem:[#allocation4 + $0xfc] sm:$0xf] %v1137_v4 }
 0x123   : > { %1172 = vst [vmem:[#allocation4 + $0xd8] sm:$0xf] %v1136_v5  ;;  %v903_v15 = vmax.f32 %v790_v7, %v867_v10 }
 0x124   : > { %1202 = vst [vmem:[#allocation4 + $0x9c] sm:$0xf] %v1136_v5 }
 0x125   : > { %1203 = vst [vmem:[#allocation4 + $0xc0] sm:$0xf] %v1137_v4  ;;  %v1270_v21 = vpack.c.bf16 %v903_v15, %v903_v15  ;;  %v1021_v22 = vrot.slane %v903_v15, 7  ;;  %v1400_v30 = vrot.slane %v903_v15, 1 }
 0x126   : > { %1232 = vst [vmem:[#allocation4 + $0x60] sm:$0xf] %v1136_v5  ;;  %v791_v12 = vpop.f32.mrf.mxu0  ;;  %v5500_v5 = vld [vmem:[#allocation13 + $0x78] sm:$0xff] }
 0x127   : > { %1233 = vst [vmem:[#allocation4 + $0x84] sm:$0xf] %v1137_v4  ;;  %v792_v14 = vadd.f32 %v6327_v48, %v791_v12  ;;  %5741 = vmatpush.bf16.msra.mxu2 %v5500_v5  ;;  %3206 = vmatpush.bf16.msrb.mxu0 %v5500_v5 }
 0x128   : > { %1335 = vst [vmem:[#allocation4 + $0xc4] sm:$0xf] %v1269_v60 }
 0x129   : > { %1365 = vst [vmem:[#allocation4 + $0x88] sm:$0xf] %v1269_v60  ;;  %v868_v16 = vmul.f32 0.1, %v792_v14  ;;  %v5372_v17 = vld [vmem:[#allocation4 + $0xf8] sm:$0xf0] }
 0x12a   : > { %1551 = vst [vmem:[#allocation4 + $0xe0] sm:$0xf] %v1515_v11  ;;  %v4552_v18 = vld [vmem:[#allocation4 + $0xd8] sm:$0xf]  ;;  %v502_v60 = vld [vmem:[%s6290_s11 + $0x60] sm:$0xff]  }
 0x12b   : > { %1552 = vst [vmem:[#allocation4 + $0x104] sm:$0xf] %v1516_v13  ;;  %v904_v19 = vmax.f32 %v792_v14, %v868_v16  ;;  %v4553_v20 = vor.u32 %v5372_v17, %v4552_v18 }
 0x12c   : > { %1581 = vst [vmem:[#allocation4 + $0xa4] sm:$0xf] %v1515_v11 }
 0x12d   : > { %1582 = vst [vmem:[#allocation4 + $0xc8] sm:$0xf] %v1516_v13  ;;  %v1039_v23 = vrot.slane %v904_v19, 7  ;;  %3140 = vmatmul.bf16.gmra.mxu1 %v4553_v20  ;;  %v1418_v27 = vrot.slane %v904_v19, 1  ;;  %v1271_v36 = vpack.c.bf16 %v904_v19, %v904_v19 }
 0x12e   : > { %1611 = vst [vmem:[#allocation4 + $0x68] sm:$0xf] %v1515_v11  ;;  %v794_v24 = vpop.f32.mrf.mxu0  ;;  %v5499_v11 = vld [vmem:[#allocation13 + $0x70] sm:$0xff] }
 0x12f   : > { %1612 = vst [vmem:[#allocation4 + $0x8c] sm:$0xf] %v1516_v13  ;;  %v1058_v25 = vsel %vm1053_vm1, %v1021_v22, %v1039_v23  ;;  %v1076_v26 = vsel %vm1053_vm1, %v1039_v23, %v1021_v22  ;;  %v795_v33 = vadd.f32 %v6327_v48, %v794_v24  ;;  %v1455_v35 = vsel %vm1432_vm3, %v1418_v27, %v1400_v30 }
 0x130   : > { %1306 = vst [vmem:[#allocation4 + $0x124] sm:$0xf] %v1270_v21  ;;  %v1102_v28 = vsel %vm1015_vm0, 0.0, %v1076_v26  ;;  %v1139_v29 = vpack.c.bf16 %v1058_v25, %v1058_v25  ;;  %v1437_v37 = vsel %vm1432_vm3, %v1400_v30, %v1418_v27  ;;  %v1482_v39 = vsel %vm1395_vm2, 0.0, %v1455_v35  ;;  %5742 = vmatpush.bf16.msra.mxu2 %v5499_v11  ;;  %3207 = vmatpush.bf16.msrb.mxu0 %v5499_v11  ;;  %v5498_v26 = vld [vmem:[#allocation13 + $0x68] sm:$0xff] }
 0x131   : > { %1336 = vst [vmem:[#allocation4 + $0xe8] sm:$0xf] %v1270_v21  ;;  %v1138_v31 = vpack.c.bf16 %v1102_v28, %v1102_v28  ;;  %v869_v38 = vmul.f32 0.1, %v795_v33  ;;  %v1517_v42 = vpack.c.bf16 %v1437_v37, %v1437_v37  ;;  %v1518_v43 = vpack.c.bf16 %v1482_v39, %v1482_v39  ;;  %v504_v28 = vld [vmem:[%s6290_s11 + $0x68] sm:$0xff]   ;;  %v5497_v37 = vld [vmem:[#allocation13 + $0x60] sm:$0xff] }
 0x132   : > { %1366 = vst [vmem:[#allocation4 + $0xac] sm:$0xf] %v1270_v21 }
 0x133   : > { %1174 = vst [vmem:[#allocation4 + $0x120] sm:$0xf] %v1138_v31  ;;  %v905_v44 = vmax.f32 %v795_v33, %v869_v38 }
 0x134   : > { %1175 = vst [vmem:[#allocation4 + $0x144] sm:$0xf] %v1139_v29  ;;  %5743 = vmatpush.bf16.msra.mxu2 %v5498_v26  ;;  %3208 = vmatpush.bf16.msrb.mxu0 %v5498_v26 }
 0x135   : > { %1204 = vst [vmem:[#allocation4 + $0xe4] sm:$0xf] %v1138_v31  ;;  %v1022_v51 = vrot.slane %v905_v44, 7  ;;  %v1272_v53 = vpack.c.bf16 %v905_v44, %v905_v44  ;;  %v1401_v0 = vrot.slane %v905_v44, 1 }
 0x136   : > { %1205 = vst [vmem:[#allocation4 + $0x108] sm:$0xf] %v1139_v29  ;;  %v796_v40 = vpop.f32.mrf.mxu0 }
 0x137   : > { %1234 = vst [vmem:[#allocation4 + $0xa8] sm:$0xf] %v1138_v31  ;;  %v797_v41 = vadd.f32 %v6327_v48, %v796_v40 }
 0x138   : > { %1235 = vst [vmem:[#allocation4 + $0xcc] sm:$0xf] %v1139_v29  ;;  %5744 = vmatpush.bf16.msra.mxu2 %v5497_v37  ;;  %3209 = vmatpush.bf16.msrb.mxu0 %v5497_v37 }
 0x139   : > { %1307 = vst [vmem:[#allocation4 + $0x148] sm:$0xf] %v1271_v36  ;;  %v870_v45 = vmul.f32 0.1, %v797_v41 }
 0x13a   : > { %1337 = vst [vmem:[#allocation4 + $0x10c] sm:$0xf] %v1271_v36  ;;  %v4588_v46 = vld [vmem:[#allocation4 + $0x120] sm:$0xf] }
 0x13b   : > { %1367 = vst [vmem:[#allocation4 + $0xd0] sm:$0xf] %v1271_v36  ;;  %v906_v47 = vmax.f32 %v797_v41, %v870_v45  ;;  %v5381_v49 = vld [vmem:[#allocation4 + $0x140] sm:$0xf0]  ;;  %v5496_v41 = vld [vmem:[#allocation13 + $0x58] sm:$0xff] }
 0x13c   : > { %1553 = vst [vmem:[#allocation4 + $0x128] sm:$0xf] %v1517_v42  ;;  %v4589_v50 = vor.u32 %v5381_v49, %v4588_v46  ;;  %5745 = vmatpush.bf16.msra.mxu2 %v5496_v41  ;;  %3210 = vmatpush.bf16.msrb.mxu0 %v5496_v41 }
 0x13d   : > { %1554 = vst [vmem:[#allocation4 + $0x14c] sm:$0xf] %v1518_v43  ;;  %v1040_v52 = vrot.slane %v906_v47, 7  ;;  %v1419_v62 = vrot.slane %v906_v47, 1  ;;  %v1273_v6 = vpack.c.bf16 %v906_v47, %v906_v47  ;;  %v5495_v47 = vld [vmem:[#allocation13 + $0x50] sm:$0xff] }
 0x13e   : > { %1583 = vst [vmem:[#allocation4 + $0xec] sm:$0xf] %v1517_v42  ;;  %3145 = vmatmul.bf16.gmra.mxu1 %v4589_v50  ;;  %v799_v54 = vpop.f32.mrf.mxu0 }
 0x13f   : > { %1584 = vst [vmem:[#allocation4 + $0x110] sm:$0xf] %v1518_v43  ;;  %v1077_v55 = vsel %vm1053_vm1, %v1040_v52, %v1022_v51  ;;  %v1059_v56 = vsel %vm1053_vm1, %v1022_v51, %v1040_v52  ;;  %v800_v59 = vadd.f32 %v6327_v48, %v799_v54  ;;  %v1456_v2 = vsel %vm1432_vm3, %v1419_v62, %v1401_v0 }
 0x140   : > { %1613 = vst [vmem:[#allocation4 + $0xb0] sm:$0xf] %v1517_v42  ;;  %v1104_v57 = vsel %vm1015_vm0, 0.0, %v1077_v55  ;;  %v1141_v63 = vpack.c.bf16 %v1059_v56, %v1059_v56  ;;  %v1438_v7 = vsel %vm1432_vm3, %v1401_v0, %v1419_v62  ;;  %v1484_v8 = vsel %vm1395_vm2, 0.0, %v1456_v2  ;;  %5746 = vmatpush.bf16.msra.mxu2 %v5495_v47  ;;  %3211 = vmatpush.bf16.msrb.mxu0 %v5495_v47  ;;  %v506_v2 = vld [vmem:[%s6290_s11 + $0x70] sm:$0xff]   ;;  %v5514_v47 = vld [vmem:[#allocation13 + $0xe8] sm:$0xff] }
 0x141   : > { %1614 = vst [vmem:[#allocation4 + $0xd4] sm:$0xf] %v1518_v43  ;;  %v1140_v61 = vpack.c.bf16 %v1104_v57, %v1104_v57  ;;  %v871_v1 = vmul.f32 0.1, %v800_v59  ;;  %v1519_v12 = vpack.c.bf16 %v1438_v7, %v1438_v7  ;;  %v1520_v15 = vpack.c.bf16 %v1484_v8, %v1484_v8 }
 0x142   : > { %1308 = vst [vmem:[#allocation4 + $0x16c] sm:$0xf] %v1272_v53 }
 0x143   : > { %1338 = vst [vmem:[#allocation4 + $0x130] sm:$0xf] %v1272_v53  ;;  %v907_v9 = vmax.f32 %v800_v59, %v871_v1 }
 0x144   : > { %1368 = vst [vmem:[#allocation4 + $0xf4] sm:$0xf] %v1272_v53 }
 0x145   : > { %535 = vst [vmem:[#allocation2 + $0x68] sm:$0xff] %v502_v60   ;;  %v1023_v16 = vrot.slane %v907_v9, 7  ;;  %v1274_v22 = vpack.c.bf16 %v907_v9, %v907_v9  ;;  %v1402_v35 = vrot.slane %v907_v9, 1  ;;  %v5493_v9 = vld [vmem:[#allocation13 + $0x40] sm:$0xff] }
 0x146   : > { %1176 = vst [vmem:[#allocation4 + $0x168] sm:$0xf] %v1140_v61  ;;  %v801_v3 = vpop.f32.mrf.mxu0 }
 0x147   : > { %1177 = vst [vmem:[#allocation4 + $0x18c] sm:$0xf] %v1141_v63  ;;  %v802_v4 = vadd.f32 %v6327_v48, %v801_v3 }
 0x148   : > { %1206 = vst [vmem:[#allocation4 + $0x12c] sm:$0xf] %v1140_v61 }
 0x149   : > { %1207 = vst [vmem:[#allocation4 + $0x150] sm:$0xf] %v1141_v63  ;;  %v872_v10 = vmul.f32 0.1, %v802_v4 }
 0x14a   : > { %1236 = vst [vmem:[#allocation4 + $0xf0] sm:$0xf] %v1140_v61 }
 0x14b   : > { %1237 = vst [vmem:[#allocation4 + $0x114] sm:$0xf] %v1141_v63  ;;  %v908_v13 = vmax.f32 %v802_v4, %v872_v10  ;;  %v5494_v63 = vld [vmem:[#allocation13 + $0x48] sm:$0xff] }
 0x14c   : > { %v5328_v14 = vld [vmem:[#allocation2 + $0x68] sm:$0xff]  ;;  %1309 = vst [vmem:[#allocation4 + $0x190] sm:$0xf] %v1273_v6  ;;  %5747 = vmatpush.bf16.msra.mxu2 %v5494_v63  ;;  %3212 = vmatpush.bf16.msrb.mxu0 %v5494_v63  ;;  %v6470_v63 = vpop.f32.mrf.mxu1 }
 0x14d   : > { %1339 = vst [vmem:[#allocation4 + $0x154] sm:$0xf] %v1273_v6  ;;  %v1041_v17 = vrot.slane %v908_v13, 7  ;;  %833 = vmatmul.bf16.gmra.mxu0 %v5328_v14  ;;  %v4624_v18 = vld [vmem:[#allocation4 + $0x168] sm:$0xf]  ;;  %v1420_v30 = vrot.slane %v908_v13, 1  ;;  %v1275_v42 = vpack.c.bf16 %v908_v13, %v908_v13 }
 0x14e   : > { %1369 = vst [vmem:[#allocation4 + $0x118] sm:$0xf] %v1273_v6  ;;  %v5390_v19 = vld [vmem:[#allocation4 + $0x188] sm:$0xf0]  ;;  %v804_v20 = vpop.f32.mrf.mxu0 }
 0x14f   : > { %1555 = vst [vmem:[#allocation4 + $0x170] sm:$0xf] %v1519_v12  ;;  %v1078_v21 = vsel %vm1053_vm1, %v1041_v17, %v1023_v16  ;;  %v4625_v23 = vor.u32 %v5390_v19, %v4624_v18  ;;  %v1060_v25 = vsel %vm1053_vm1, %v1023_v16, %v1041_v17  ;;  %v805_v27 = vadd.f32 %v6327_v48, %v804_v20  ;;  %v5516_v18 = vld [vmem:[#allocation13 + $0xf8] sm:$0xff] }
 0x150   : > { %1556 = vst [vmem:[#allocation4 + $0x194] sm:$0xf] %v1520_v15  ;;  %v1106_v24 = vsel %vm1015_vm0, 0.0, %v1078_v21  ;;  %v1143_v31 = vpack.c.bf16 %v1060_v25, %v1060_v25  ;;  %v1457_v39 = vsel %vm1432_vm3, %v1420_v30, %v1402_v35  ;;  %v1439_v43 = vsel %vm1432_vm3, %v1402_v35, %v1420_v30  ;;  %5748 = vmatpush.bf16.msra.mxu2 %v5493_v9  ;;  %v5515_v35 = vld [vmem:[#allocation13 + $0xf0] sm:$0xff] }
 0x151   : > { %1585 = vst [vmem:[#allocation4 + $0x134] sm:$0xf] %v1519_v12  ;;  %3150 = vmatmul.bf16.gmra.mxu1 %v4625_v23  ;;  %v1142_v29 = vpack.c.bf16 %v1106_v24, %v1106_v24  ;;  %v873_v38 = vmul.f32 0.1, %v805_v27  ;;  %v1486_v45 = vsel %vm1395_vm2, 0.0, %v1457_v39  ;;  %v1521_v49 = vpack.c.bf16 %v1439_v43, %v1439_v43  ;;  %3213 = vmatpush.bf16.msrb.mxu0 %v5493_v9 }
 0x152   : > { %1586 = vst [vmem:[#allocation4 + $0x158] sm:$0xf] %v1520_v15  ;;  %v1522_v53 = vpack.c.bf16 %v1486_v45, %v1486_v45  ;;  %3384 = vmatpush.bf16.msrb.mxu1 %v5516_v18  ;;  %v5523_v18 = vld [vmem:[#allocation13 + $0x130] sm:$0xff] }
 0x153   : > { %1615 = vst [vmem:[#allocation4 + $0xf8] sm:$0xf] %v1519_v12  ;;  %v909_v46 = vmax.f32 %v805_v27, %v873_v38  ;;  %v5524_v38 = vld [vmem:[#allocation13 + $0x138] sm:$0xff] }
 0x154   : > { %1616 = vst [vmem:[#allocation4 + $0x11c] sm:$0xf] %v1520_v15  ;;  %3473 = vmatpush.bf16.msrb.mxu2 %v5524_v38 }
 0x155   : > { %1310 = vst [vmem:[#allocation4 + $0x1b4] sm:$0xf] %v1274_v22  ;;  %v1024_v54 = vrot.slane %v909_v46, 7  ;;  %v1276_v60 = vpack.c.bf16 %v909_v46, %v909_v46  ;;  %v1403_v7 = vrot.slane %v909_v46, 1 }
 0x156   : > { %1340 = vst [vmem:[#allocation4 + $0x178] sm:$0xf] %v1274_v22  ;;  %v806_v33 = vpop.f32.mrf.mxu0  ;;  %3385 = vmatpush.bf16.msrb.mxu1 %v5515_v35 }
 0x157   : > { %1370 = vst [vmem:[#allocation4 + $0x13c] sm:$0xf] %v1274_v22  ;;  %v807_v36 = vadd.f32 %v6327_v48, %v806_v33 }
 0x158   : > { %537 = vst [vmem:[#allocation2 + $0x70] sm:$0xff] %v504_v28   ;;  %3474 = vmatpush.bf16.msrb.mxu2 %v5523_v18 }
 0x159   : > { %1178 = vst [vmem:[#allocation4 + $0x1b0] sm:$0xf] %v1142_v29  ;;  %v874_v40 = vmul.f32 0.1, %v807_v36 }
 0x15a   : > { %1179 = vst [vmem:[#allocation4 + $0x1d4] sm:$0xf] %v1143_v31  ;;  %3386 = vmatpush.bf16.msrb.mxu1 %v5514_v47 }
 0x15b   : > { %1208 = vst [vmem:[#allocation4 + $0x174] sm:$0xf] %v1142_v29  ;;  %v6423_v44 = vmax.f32 %v807_v36, %v874_v40  ;;  %v508_v40 = vld [vmem:[%s6290_s11 + $0x78] sm:$0xff]  }
 0x15c   : > { %1209 = vst [vmem:[#allocation4 + $0x198] sm:$0xf] %v1143_v31 }
 0x15d   : > { %1238 = vst [vmem:[#allocation4 + $0x138] sm:$0xf] %v1142_v29  ;;  %v1042_v50 = vrot.slane %v6423_v44, 7  ;;  %v1421_v4 = vrot.slane %v6423_v44, 1  ;;  %v1277_v13 = vpack.c.bf16 %v6423_v44, %v6423_v44 }
 0x15e   : > { %1239 = vst [vmem:[#allocation4 + $0x15c] sm:$0xf] %v1143_v31  ;;  %v809_v51 = vpop.f32.mrf.mxu0 }
 0x15f   : > { %v5329_v52 = vld [vmem:[#allocation2 + $0x70] sm:$0xff]  ;;  %1311 = vst [vmem:[#allocation4 + $0x1d8] sm:$0xf] %v1275_v42  ;;  %v1079_v57 = vsel %vm1053_vm1, %v1042_v50, %v1024_v54  ;;  %v1061_v62 = vsel %vm1053_vm1, %v1024_v54, %v1042_v50  ;;  %v810_v0 = vadd.f32 %v6327_v48, %v809_v51  ;;  %v1458_v11 = vsel %vm1432_vm3, %v1421_v4, %v1403_v7 }
 0x160   : > { %1341 = vst [vmem:[#allocation4 + $0x19c] sm:$0xf] %v1275_v42  ;;  %v4660_v55 = vld [vmem:[#allocation4 + $0x1b0] sm:$0xf]  ;;  %838 = vmatmul.bf16.gmra.mxu0 %v5329_v52  ;;  %v1108_v61 = vsel %vm1015_vm0, 0.0, %v1079_v57  ;;  %v1145_v6 = vpack.c.bf16 %v1061_v62, %v1061_v62  ;;  %v1440_v14 = vsel %vm1432_vm3, %v1403_v7, %v1421_v4  ;;  %v1488_v15 = vsel %vm1395_vm2, 0.0, %v1458_v11 }
 0x161   : > { %1371 = vst [vmem:[#allocation4 + $0x160] sm:$0xf] %v1275_v42  ;;  %v5399_v56 = vld [vmem:[#allocation4 + $0x1d0] sm:$0xf0]  ;;  %v1144_v3 = vpack.c.bf16 %v1108_v61, %v1108_v61  ;;  %v875_v10 = vmul.f32 0.1, %v810_v0  ;;  %v1523_v19 = vpack.c.bf16 %v1440_v14, %v1440_v14  ;;  %v1524_v22 = vpack.c.bf16 %v1488_v15, %v1488_v15 }
 0x162   : > { %1557 = vst [vmem:[#allocation4 + $0x1b8] sm:$0xf] %v1521_v49  ;;  %v4661_v59 = vor.u32 %v5399_v56, %v4660_v55  ;;  %v5513_v52 = vld [vmem:[#allocation13 + $0xe0] sm:$0xff]  ;;  %v5511_v15 = vld [vmem:[#allocation13 + $0xd0] sm:$0xff] }
 0x163   : > { %1558 = vst [vmem:[#allocation4 + $0x1dc] sm:$0xf] %v1522_v53  ;;  %v911_v16 = vmax.f32 %v810_v0, %v875_v10  ;;  %3387 = vmatpush.bf16.msrb.mxu1 %v5513_v52 }
 0x164   : > { %1587 = vst [vmem:[#allocation4 + $0x17c] sm:$0xf] %v1521_v49  ;;  %3155 = vmatmul.bf16.gmra.mxu1 %v4661_v59 }
 0x165   : > { %1588 = vst [vmem:[#allocation4 + $0x1a0] sm:$0xf] %v1522_v53  ;;  %v1025_v23 = vrot.slane %v911_v16, 7  ;;  %v1278_v28 = vpack.c.bf16 %v911_v16, %v911_v16  ;;  %v1404_v45 = vrot.slane %v911_v16, 1 }
 0x166   : > { %1617 = vst [vmem:[#allocation4 + $0x140] sm:$0xf] %v1521_v49  ;;  %v811_v1 = vpop.f32.mrf.mxu0 }
 0x167   : > { %1618 = vst [vmem:[#allocation4 + $0x164] sm:$0xf] %v1522_v53  ;;  %v812_v5 = vadd.f32 %v6327_v48, %v811_v1 }
 0x168   : > { %1312 = vst [vmem:[#allocation4 + $0x1fc] sm:$0xf] %v1276_v60 }
 0x169   : > { %1342 = vst [vmem:[#allocation4 + $0x1c0] sm:$0xf] %v1276_v60  ;;  %v876_v8 = vmul.f32 0.1, %v812_v5 }
 0x16a   : > { %1372 = vst [vmem:[#allocation4 + $0x184] sm:$0xf] %v1276_v60  ;;  %v5512_v60 = vld [vmem:[#allocation13 + $0xd8] sm:$0xff] }
 0x16b   : > { %539 = vst [vmem:[#allocation2 + $0x78] sm:$0xff] %v506_v2   ;;  %v6440_v12 = vmax.f32 %v812_v5, %v876_v8  ;;  %3388 = vmatpush.bf16.msrb.mxu1 %v5512_v60 }
 0x16c   : > { %1180 = vst [vmem:[#allocation4 + $0x1f8] sm:$0xf] %v1144_v3 }
 0x16d   : > { %1181 = vst [vmem:[#allocation4 + $0x21c] sm:$0xf] %v1145_v6  ;;  %v1043_v20 = vrot.slane %v6440_v12, 7  ;;  %v1422_v42 = vrot.slane %v6440_v12, 1  ;;  %v1279_v53 = vpack.c.bf16 %v6440_v12, %v6440_v12  ;;  %v543_v12 = vld [vmem:[%s6302_s12] sm:$0xff]  }
 0x16e   : > { %1210 = vst [vmem:[#allocation4 + $0x1bc] sm:$0xf] %v1144_v3  ;;  %v814_v17 = vpop.f32.mrf.mxu0 }
 0x16f   : > { %1211 = vst [vmem:[#allocation4 + $0x1e0] sm:$0xf] %v1145_v6  ;;  %v1080_v26 = vsel %vm1053_vm1, %v1043_v20, %v1025_v23  ;;  %v5404_v30 = vld [vmem:[#allocation4 + $0x1fc] sm:$0xf]  ;;  %v1062_v31 = vsel %vm1053_vm1, %v1025_v23, %v1043_v20  ;;  %v815_v37 = vadd.f32 %v6327_v48, %v814_v17  ;;  %v1459_v50 = vsel %vm1432_vm3, %v1422_v42, %v1404_v45  ;;  %v6480_v17 = vpop.f32.mrf.mxu1 }
 0x170   : > { %1240 = vst [vmem:[#allocation4 + $0x180] sm:$0xf] %v1144_v3  ;;  %v1110_v29 = vsel %vm1015_vm0, 0.0, %v1080_v26  ;;  %v1147_v44 = vpack.c.bf16 %v1062_v31, %v1062_v31  ;;  %v1441_v54 = vsel %vm1432_vm3, %v1404_v45, %v1422_v42  ;;  %v1490_v55 = vsel %vm1395_vm2, 0.0, %v1459_v50  ;;  %3389 = vmatpush.bf16.msrb.mxu1 %v5511_v15  ;;  %v5508_v31 = vld [vmem:[#allocation13 + $0xb8] sm:$0xff] }
 0x171   : > { %1241 = vst [vmem:[#allocation4 + $0x1a4] sm:$0xf] %v1145_v6  ;;  %v1146_v41 = vpack.c.bf16 %v1110_v29, %v1110_v29  ;;  %v877_v49 = vmul.f32 0.1, %v815_v37  ;;  %v1525_v57 = vpack.c.bf16 %v1441_v54, %v1441_v54  ;;  %v1526_v62 = vpack.c.bf16 %v1490_v55, %v1490_v55  ;;  %3295 = vmatpush.bf16.msrb.mxu3 %v5508_v31 }
 0x172   : > { %v5330_v21 = vld [vmem:[#allocation2 + $0x78] sm:$0xff]  ;;  %1313 = vst [vmem:[#allocation4 + $0x220] sm:$0xf] %v1277_v13 }
 0x173   : > { %1343 = vst [vmem:[#allocation4 + $0x1e4] sm:$0xf] %v1277_v13  ;;  %v4696_v24 = vld [vmem:[#allocation4 + $0x1f8] sm:$0xf]  ;;  %843 = vmatmul.bf16.gmra.mxu0 %v5330_v21  ;;  %v913_v56 = vmax.f32 %v815_v37, %v877_v49  ;;  %v4454_v37 = vld [vmem:[#allocation4 + $0x2c] sm:$0xf0] }
 0x174   : > { %1373 = vst [vmem:[#allocation4 + $0x1a8] sm:$0xf] %v1277_v13  ;;  %v5408_v25 = vld [vmem:[#allocation4 + $0x218] sm:$0xf0] }
 0x175   : > { %1559 = vst [vmem:[#allocation4 + $0x200] sm:$0xf] %v1523_v19  ;;  %v4697_v27 = vor.u32 %v5408_v25, %v4696_v24  ;;  %v1026_v1 = vrot.slane %v913_v56, 7  ;;  %v1280_v6 = vpack.c.bf16 %v913_v56, %v913_v56  ;;  %v1405_v20 = vrot.slane %v913_v56, 1  ;;  %v5510_v25 = vld [vmem:[#allocation13 + $0xc8] sm:$0xff] }
 0x176   : > { %1560 = vst [vmem:[#allocation4 + $0x224] sm:$0xf] %v1524_v22  ;;  %v816_v39 = vpop.f32.mrf.mxu0  ;;  %3390 = vmatpush.bf16.msrb.mxu1 %v5510_v25  ;;  %v6504_v56 = vld [vmem:[%s7175_s4] ss:$0 sm:$0xff] }
 0x177   : > { %1589 = vst [vmem:[#allocation4 + $0x1c4] sm:$0xf] %v1523_v19  ;;  %3160 = vmatmul.bf16.gmra.mxu1 %v4697_v27  ;;  %v817_v43 = vadd.f32 %v6327_v48, %v816_v39 }
 0x178   : > { %1590 = vst [vmem:[#allocation4 + $0x1e8] sm:$0xf] %v1524_v22 }
 0x179   : > { %1619 = vst [vmem:[#allocation4 + $0x188] sm:$0xf] %v1523_v19  ;;  %v4698_v33 = vld [vmem:[#allocation4 + $0x21c] sm:$0xf0]  ;;  %v878_v46 = vmul.f32 0.1, %v817_v43 }
 0x17a   : > { %1620 = vst [vmem:[#allocation4 + $0x1ac] sm:$0xf] %v1524_v22  ;;  %v4701_v36 = vor.u32 %v5404_v30, %v4698_v33  ;;  %v5509_v30 = vld [vmem:[#allocation13 + $0xc0] sm:$0xff] }
 0x17b   : > { %1314 = vst [vmem:[#allocation4 + $0x244] sm:$0xf] %v1278_v28  ;;  %v6461_v51 = vmax.f32 %v817_v43, %v878_v46  ;;  %3391 = vmatpush.bf16.msrb.mxu1 %v5509_v30 }
 0x17c   : > { %1344 = vst [vmem:[#allocation4 + $0x208] sm:$0xf] %v1278_v28  ;;  %3249 = vmatmul.bf16.vlgmr.msra.gmra.mxu2 %v4701_v36  ;;  %v5342_v36 = vld [vmem:[#allocation4 + $0xc] sm:$0xf] }
 0x17d   : > { %1374 = vst [vmem:[#allocation4 + $0x1cc] sm:$0xf] %v1278_v28  ;;  %v1044_v59 = vrot.slane %v6461_v51, 7  ;;  %v1423_v14 = vrot.slane %v6461_v51, 1  ;;  %v1281_v26 = vpack.c.bf16 %v6461_v51, %v6461_v51  ;;  %v4457_v45 = vor.u32 %v5342_v36, %v4454_v37 }
 0x17e   : > { %541 = vst [vmem:[#allocation2 + $0x80] sm:$0xff] %v508_v40   ;;  %v819_v0 = vpop.f32.mrf.mxu0 }
 0x17f   : > { %1182 = vst [vmem:[#allocation4 + $0x240] sm:$0xf] %v1146_v41  ;;  %v1081_v4 = vsel %vm1053_vm1, %v1044_v59, %v1026_v1  ;;  %v1063_v8 = vsel %vm1053_vm1, %v1026_v1, %v1044_v59  ;;  %v820_v21 = vadd.f32 %v6327_v48, %v819_v0  ;;  %v1460_v23 = vsel %vm1432_vm3, %v1423_v14, %v1405_v20 }
 0x180   : > { %1183 = vst [vmem:[#allocation4 + $0x264] sm:$0xf] %v1147_v44  ;;  %v1112_v7 = vsel %vm1015_vm0, 0.0, %v1081_v4  ;;  %v1149_v16 = vpack.c.bf16 %v1063_v8, %v1063_v8  ;;  %v1442_v27 = vsel %vm1432_vm3, %v1405_v20, %v1423_v14  ;;  %v5351_v4 = vld [vmem:[#allocation4 + $0x54] sm:$0xf] }
 0x181   : > { %1212 = vst [vmem:[#allocation4 + $0x204] sm:$0xf] %v1146_v41  ;;  %v1148_v13 = vpack.c.bf16 %v1112_v7, %v1112_v7  ;;  %v879_v28 = vmul.f32 0.1, %v820_v21  ;;  %v1527_v33 = vpack.c.bf16 %v1442_v27, %v1442_v27 }
 0x182   : > { %1213 = vst [vmem:[#allocation4 + $0x228] sm:$0xf] %v1147_v44  ;;  %v5413_v9 = vld [vmem:[#allocation4 + $0x244] sm:$0xf] }
 0x183   : > { %1242 = vst [vmem:[#allocation4 + $0x1c8] sm:$0xf] %v1146_v41  ;;  %v915_v41 = vmax.f32 %v820_v21, %v879_v28 }
 0x184   : > { %1243 = vst [vmem:[#allocation4 + $0x1ec] sm:$0xf] %v1147_v44 }
 0x185   : > { %v5331_v61 = vld [vmem:[#allocation2 + $0x80] sm:$0xff]  ;;  %1315 = vst [vmem:[#allocation4 + $0x268] sm:$0xf] %v1279_v53  ;;  %v1027_v47 = vrot.slane %v915_v41, 7  ;;  %v1282_v49 = vpack.c.bf16 %v915_v41, %v915_v41 }
 0x186   : > { %1345 = vst [vmem:[#allocation4 + $0x22c] sm:$0xf] %v1279_v53  ;;  %v4732_v2 = vld [vmem:[#allocation4 + $0x240] sm:$0xf]  ;;  %848 = vmatmul.bf16.gmra.mxu0 %v5331_v61  ;;  %v821_v19 = vpop.f32.mrf.mxu0 }
 0x187   : > { %1375 = vst [vmem:[#allocation4 + $0x1f0] sm:$0xf] %v1279_v53  ;;  %v5417_v3 = vld [vmem:[#allocation4 + $0x260] sm:$0xf0]  ;;  %v822_v22 = vadd.f32 %v6327_v48, %v821_v19  ;;  %v1492_v48 = vsel %vm1395_vm2, 0.0, %v1460_v23 }
 0x188   : > { %1561 = vst [vmem:[#allocation4 + $0x248] sm:$0xf] %v1525_v57  ;;  %v4733_v5 = vor.u32 %v5417_v3, %v4732_v2  ;;  %v1528_v40 = vpack.c.bf16 %v1492_v48, %v1492_v48 }
 0x189   : > { %1562 = vst [vmem:[#allocation4 + $0x26c] sm:$0xf] %v1526_v62  ;;  %v880_v24 = vmul.f32 0.1, %v822_v22 }
 0x18a   : > { %1591 = vst [vmem:[#allocation4 + $0x20c] sm:$0xf] %v1525_v57  ;;  %3165 = vmatmul.bf16.gmra.mxu1 %v4733_v5  ;;  %v6494_v35 = vpop.f32.mrf.mxu1  ;;  %v4490_v5 = vld [vmem:[#allocation4 + $0x74] sm:$0xf0] }
 0x18b   : > { %1592 = vst [vmem:[#allocation4 + $0x230] sm:$0xf] %v1526_v62  ;;  %v6492_v29 = vmax.f32 %v822_v22, %v880_v24  ;;  %v4493_v14 = vor.u32 %v5351_v4, %v4490_v5 }
 0x18c   : > { %1621 = vst [vmem:[#allocation4 + $0x1d0] sm:$0xf] %v1525_v57  ;;  %v4734_v10 = vld [vmem:[#allocation4 + $0x264] sm:$0xf0] }
 0x18d   : > { %1622 = vst [vmem:[#allocation4 + $0x1f4] sm:$0xf] %v1526_v62  ;;  %v4737_v11 = vor.u32 %v5413_v9, %v4734_v10  ;;  %v1045_v43 = vrot.slane %v6492_v29, 7  ;;  %v6099_v62 = vmov 0.0|0.0   ;;  %v1424_v1 = vrot.slane %v6492_v29, 1  ;;  %v5522_v10 = vld [vmem:[#allocation13 + $0x128] sm:$0xff] }
 0x18e   : > { %1316 = vst [vmem:[#allocation4 + $0x28c] sm:$0xf] %v1280_v6  ;;  %v824_v38 = vpop.f32.mrf.mxu0  ;;  %v1283_v15 = vpack.c.bf16 %v6492_v29, %v6492_v29  ;;  %3475 = vmatpush.bf16.msrb.mxu2 %v5522_v10 }
 0x18f   : > { %1346 = vst [vmem:[#allocation4 + $0x250] sm:$0xf] %v1280_v6  ;;  %3254 = vmatmul.bf16.gmra.mxu2 %v4737_v11  ;;  %v1082_v50 = vsel %vm1053_vm1, %v1045_v43, %v1027_v47  ;;  %v1064_v60 = vsel %vm1053_vm1, %v1027_v47, %v1045_v43  ;;  %v825_v61 = vadd.f32 %v6504_v56, %v824_v38  ;;  %v5360_v47 = vld [vmem:[#allocation4 + $0x9c] sm:$0xf] }
 0x190   : > { %1376 = vst [vmem:[#allocation4 + $0x214] sm:$0xf] %v1280_v6  ;;  %v1114_v59 = vsel %vm1015_vm0, 0.0, %v1082_v50  ;;  %v1151_v3 = vpack.c.bf16 %v1064_v60, %v1064_v60  ;;  %v1406_v6 = vrot.slane %v915_v41, 1  ;;  %v5521_v60 = vld [vmem:[#allocation13 + $0x120] sm:$0xff] }
 0x191   : > { %546 = vst [vmem:[#allocation2 + $0x88] sm:$0xff] %v543_v12   ;;  %v1150_v0 = vpack.c.bf16 %v1114_v59, %v1114_v59  ;;  %v881_v7 = vmul.f32 0.1, %v825_v61  ;;  %v5507_v12 = vld [vmem:[#allocation13 + $0xb0] sm:$0xff]  ;;  %v5506_v59 = vld [vmem:[#allocation13 + $0xa8] sm:$0xff] }
 0x192   : > { %1184 = vst [vmem:[#allocation4 + $0x288] sm:$0xf] %v1148_v13  ;;  %v6499_v53 = vpop.f32.mrf.mxu1  ;;  %v1461_v8 = vsel %vm1432_vm3, %v1424_v1, %v1406_v6  ;;  %3296 = vmatpush.bf16.msrb.mxu3 %v5507_v12  ;;  %3476 = vmatpush.bf16.msrb.mxu2 %v5521_v60 }
 0x193   : > { %1185 = vst [vmem:[#allocation4 + $0x2ac] sm:$0xf] %v1149_v16  ;;  %v6523_v18 = vmax.f32 %v825_v61, %v881_v7  ;;  %v1494_v20 = vsel %vm1395_vm2, 0.0, %v1461_v8 }
 0x194   : > { %1214 = vst [vmem:[#allocation4 + $0x24c] sm:$0xf] %v1148_v13  ;;  %v1530_v25 = vpack.c.bf16 %v1494_v20, %v1494_v20 }
 0x195   : > { %1215 = vst [vmem:[#allocation4 + $0x270] sm:$0xf] %v1149_v16  ;;  %v5422_v51 = vld [vmem:[#allocation4 + $0x28c] sm:$0xf]  ;;  %v1284_v36 = vpack.c.bf16 %v6523_v18, %v6523_v18  ;;  %v1407_v50 = vrot.slane %v6523_v18, 1 }
 0x196   : > { %1244 = vst [vmem:[#allocation4 + $0x210] sm:$0xf] %v1148_v13  ;;  %v826_v54 = vpop.f32.mrf.mxu0  ;;  %3297 = vmatpush.bf16.msrb.mxu3 %v5506_v59 }
 0x197   : > { %1245 = vst [vmem:[#allocation4 + $0x234] sm:$0xf] %v1149_v16  ;;  %v827_v57 = vadd.f32 %v6504_v56, %v826_v54  ;;  %v1443_v16 = vsel %vm1432_vm3, %v1406_v6, %v1424_v1  ;;  %v4482_v54 = vld [vmem:[#allocation4 + $0x6c] sm:$0xf0] }
 0x198   : > { %v5332_v39 = vld [vmem:[#allocation2 + $0x88] sm:$0xff]  ;;  %1317 = vst [vmem:[#allocation4 + $0x2b0] sm:$0xf] %v1281_v26  ;;  %v1529_v24 = vpack.c.bf16 %v1443_v16, %v1443_v16 }
 0x199   : > { %1347 = vst [vmem:[#allocation4 + $0x274] sm:$0xf] %v1281_v26  ;;  %v4768_v42 = vld [vmem:[#allocation4 + $0x288] sm:$0xf]  ;;  %853 = vmatmul.bf16.gmra.mxu0 %v5332_v39  ;;  %v882_v2 = vmul.f32 0.1, %v827_v57 }
 0x19a   : > { %1377 = vst [vmem:[#allocation4 + $0x238] sm:$0xf] %v1281_v26  ;;  %v5426_v44 = vld [vmem:[#allocation4 + $0x2a8] sm:$0xf0]  ;;  %3392 = vmatmul.bf16.vlgmr.msrb.gmra.mxu1 %v4457_v45  ;;  %v6517_v11 = vpop.f32.mrf.mxu1  ;;  %v1028_v26 = vrot.slane %v6523_v18, 7 }
 0x19b   : > { %1563 = vst [vmem:[#allocation4 + $0x290] sm:$0xf] %v1527_v33  ;;  %v4769_v46 = vor.u32 %v5426_v44, %v4768_v42  ;;  %v6515_v9 = vmax.f32 %v827_v57, %v882_v2  ;;  %v5414_v32 = vld [vmem:[#allocation4 + $0x24c] sm:$0xf] }
 0x19c   : > { %1564 = vst [vmem:[#allocation4 + $0x2b4] sm:$0xf] %v1528_v40 }
 0x19d   : > { %1593 = vst [vmem:[#allocation4 + $0x254] sm:$0xf] %v1527_v33  ;;  %3170 = vmatmul.bf16.vlgmr.msra.gmra.mxu3 %v4769_v46  ;;  %v1046_v22 = vrot.slane %v6515_v9, 7  ;;  %v1425_v43 = vrot.slane %v6515_v9, 1 }
 0x19e   : > { %1594 = vst [vmem:[#allocation4 + $0x278] sm:$0xf] %v1528_v40  ;;  %v829_v13 = vpop.f32.mrf.mxu0 }
 0x19f   : > { %1623 = vst [vmem:[#allocation4 + $0x218] sm:$0xf] %v1527_v33  ;;  %v4770_v52 = vld [vmem:[#allocation4 + $0x2ac] sm:$0xf0]  ;;  %v1083_v28 = vsel %vm1053_vm1, %v1046_v22, %v1028_v26  ;;  %v1065_v38 = vsel %vm1053_vm1, %v1028_v26, %v1046_v22  ;;  %v830_v39 = vadd.f32 %v6504_v56, %v829_v13  ;;  %v1444_v1 = vsel %vm1432_vm3, %v1407_v50, %v1425_v43  ;;  %v4562_v26 = vld [vmem:[#allocation4 + $0x104] sm:$0xf0] }
 0x1a0   : > { %1624 = vst [vmem:[#allocation4 + $0x23c] sm:$0xf] %v1528_v40  ;;  %v4773_v55 = vor.u32 %v5422_v51, %v4770_v52  ;;  %v1116_v37 = vsel %vm1015_vm0, 0.0, %v1083_v28  ;;  %v1153_v46 = vpack.c.bf16 %v1065_v38, %v1065_v38  ;;  %v1531_v6 = vpack.c.bf16 %v1444_v1, %v1444_v1  ;;  %v5505_v38 = vld [vmem:[#allocation13 + $0xa0] sm:$0xff] }
 0x1a1   : > { %1318 = vst [vmem:[#allocation4 + $0x2d4] sm:$0xf] %v1282_v49  ;;  %v1152_v42 = vpack.c.bf16 %v1116_v37, %v1116_v37  ;;  %v883_v51 = vmul.f32 0.1, %v830_v39  ;;  %3298 = vmatpush.bf16.msrb.mxu3 %v5505_v38 }
 0x1a2   : > { %1348 = vst [vmem:[#allocation4 + $0x298] sm:$0xf] %v1282_v49  ;;  %3259 = vmatmul.bf16.gmra.mxu2 %v4773_v55  ;;  %v6531_v29 = vpop.f32.mrf.mxu1  ;;  %v1462_v55 = vsel %vm1432_vm3, %v1425_v43, %v1407_v50 }
 0x1a3   : > { %1378 = vst [vmem:[#allocation4 + $0x25c] sm:$0xf] %v1282_v49  ;;  %v4526_v49 = vld [vmem:[#allocation4 + $0xbc] sm:$0xf0]  ;;  %v919_v2 = vmax.f32 %v830_v39, %v883_v51  ;;  %v1496_v4 = vsel %vm1395_vm2, 0.0, %v1462_v55  ;;  %v5520_v39 = vld [vmem:[#allocation13 + $0x118] sm:$0xff] }
 0x1a4   : > { %1298 = vst [vmem:[#allocation4 + $0x4] sm:$0xf] %v6099_v62  ;;  %v4529_v61 = vor.u32 %v5360_v47, %v4526_v49  ;;  %v1532_v7 = vpack.c.bf16 %v1496_v4, %v1496_v4  ;;  %3477 = vmatpush.bf16.msrb.mxu2 %v5520_v39 }
 0x1a5   : > { %1299 = vst [vmem:[#allocation4 + $0x28] sm:$0xf] %v6099_v62  ;;  %v1029_v8 = vrot.slane %v919_v2, 7  ;;  %v1408_v28 = vrot.slane %v919_v2, 1 }
 0x1a6   : > { %1392 = vst [vmem:[#allocation4 + $0x454] sm:$0xf] %v6099_v62  ;;  %v831_v30 = vpop.f32.mrf.mxu0 }
 0x1a7   : > { %1393 = vst [vmem:[#allocation4 + $0x478] sm:$0xf] %v6099_v62  ;;  %v832_v33 = vadd.f32 %v6504_v56, %v831_v30  ;;  %v5350_v62 = vld [vmem:[#allocation4 + $0x4c] sm:$0xf] }
 0x1a8   : > { %1186 = vst [vmem:[#allocation4 + $0x2d0] sm:$0xf] %v1150_v0  ;;  %v5431_v40 = vld [vmem:[#allocation4 + $0x2d4] sm:$0xf] }
 0x1a9   : > { %1187 = vst [vmem:[#allocation4 + $0x2f4] sm:$0xf] %v1151_v3  ;;  %v884_v45 = vmul.f32 0.1, %v832_v33 }
 0x1aa   : > { %1216 = vst [vmem:[#allocation4 + $0x294] sm:$0xf] %v1150_v0  ;;  %3397 = vmatmul.bf16.gmra.mxu1 %v4493_v14  ;;  %v6543_v52 = vpop.f32.mrf.mxu1 }
 0x1ab   : > { %v5341_v19 = vld [vmem:[#allocation4 + $0x4] sm:$0xf]  ;;  %1217 = vst [vmem:[#allocation4 + $0x2b8] sm:$0xf] %v1151_v3  ;;  %v6547_v57 = vmax.f32 %v832_v33, %v884_v45  ;;  %v5359_v33 = vld [vmem:[#allocation4 + $0x94] sm:$0xf] }
 0x1ac   : > { %v4446_v21 = vld [vmem:[#allocation4 + $0x24] sm:$0xf0]  ;;  %1246 = vst [vmem:[#allocation4 + $0x258] sm:$0xf] %v1150_v0  ;;  %v1285_v0 = vpack.c.bf16 %v6515_v9, %v6515_v9  ;;  %v5504_v45 = vld [vmem:[#allocation13 + $0x98] sm:$0xff] }
 0x1ad   : > { %v4449_v23 = vor.u32 %v5341_v19, %v4446_v21  ;;  %1247 = vst [vmem:[#allocation4 + $0x27c] sm:$0xf] %v1151_v3  ;;  %v4485_v3 = vor.u32 %v5350_v62, %v4482_v54  ;;  %v1047_v5 = vrot.slane %v6547_v57, 7  ;;  %v5369_v19 = vld [vmem:[#allocation4 + $0xe4] sm:$0xf]  ;;  %3299 = vmatpush.bf16.msrb.mxu3 %v5504_v45 }
 0x1ae   : > { %1319 = vst [vmem:[#allocation4 + $0x2f8] sm:$0xf] %v1283_v15  ;;  %v5378_v62 = vld [vmem:[#allocation4 + $0x12c] sm:$0xf] }
 0x1af   : > { %3214 = vmatmul.bf16.vlgmr.msrb.gmra.mxu0 %v4449_v23  ;;  %1349 = vst [vmem:[#allocation4 + $0x2bc] sm:$0xf] %v1283_v15  ;;  %v4804_v27 = vld [vmem:[#allocation4 + $0x2d0] sm:$0xf]  ;;  %v1084_v12 = vsel %vm1053_vm1, %v1047_v5, %v1029_v8  ;;  %v1066_v18 = vsel %vm1053_vm1, %v1029_v8, %v1047_v5  ;;  %v1426_v23 = vrot.slane %v6547_v57, 1 }
 0x1b0   : > { %1379 = vst [vmem:[#allocation4 + $0x280] sm:$0xf] %v1283_v15  ;;  %v5435_v48 = vld [vmem:[#allocation4 + $0x2f0] sm:$0xf0]  ;;  %v1286_v15 = vpack.c.bf16 %v919_v2, %v919_v2  ;;  %v1118_v16 = vsel %vm1015_vm0, 0.0, %v1084_v12 }
 0x1b1   : > { %1565 = vst [vmem:[#allocation4 + $0x2d8] sm:$0xf] %v1529_v24  ;;  %v4805_v31 = vor.u32 %v5435_v48, %v4804_v27  ;;  %v1154_v22 = vpack.c.bf16 %v1118_v16, %v1118_v16  ;;  %v1155_v27 = vpack.c.bf16 %v1066_v18, %v1066_v18  ;;  %v4518_v48 = vld [vmem:[#allocation4 + $0xb4] sm:$0xf0] }
 0x1b2   : > { %1566 = vst [vmem:[#allocation4 + $0x2fc] sm:$0xf] %v1530_v25  ;;  %v6556_v9 = vpop.f32.mrf.mxu1 }
 0x1b3   : > { %1595 = vst [vmem:[#allocation4 + $0x29c] sm:$0xf] %v1529_v24  ;;  %3175 = vmatmul.bf16.gmra.mxu3 %v4805_v31  ;;  %v4565_v31 = vor.u32 %v5369_v19, %v4562_v26  ;;  %v5519_v26 = vld [vmem:[#allocation13 + $0x110] sm:$0xff] }
 0x1b4   : > { %1596 = vst [vmem:[#allocation4 + $0x2c0] sm:$0xf] %v1530_v25  ;;  %3478 = vmatpush.bf16.msrb.mxu2 %v5519_v26  ;;  %v5502_v26 = vld [vmem:[#allocation13 + $0x88] sm:$0xff] }
 0x1b5   : > { %1625 = vst [vmem:[#allocation4 + $0x260] sm:$0xf] %v1529_v24  ;;  %v4806_v41 = vld [vmem:[#allocation4 + $0x2f4] sm:$0xf0] }
 0x1b6   : > { %1626 = vst [vmem:[#allocation4 + $0x284] sm:$0xf] %v1530_v25  ;;  %v4809_v44 = vor.u32 %v5431_v40, %v4806_v41  ;;  %v4521_v40 = vor.u32 %v5359_v33, %v4518_v48  ;;  %v1287_v41 = vpack.c.bf16 %v6547_v57, %v6547_v57 }
 0x1b7   : > { %1320 = vst [vmem:[#allocation4 + $0x31c] sm:$0xf] %v1284_v36 }
 0x1b8   : > { %1350 = vst [vmem:[#allocation4 + $0x2e0] sm:$0xf] %v1284_v36  ;;  %3264 = vmatmul.bf16.gmra.mxu2 %v4809_v44 }
 0x1b9   : > { %1380 = vst [vmem:[#allocation4 + $0x2a4] sm:$0xf] %v1284_v36  ;;  %v1463_v36 = vsel %vm1432_vm3, %v1426_v23, %v1408_v28 }
 0x1ba   : > { %1188 = vst [vmem:[#allocation4 + $0x318] sm:$0xf] %v1152_v42  ;;  %3402 = vmatmul.bf16.gmra.mxu1 %v4529_v61  ;;  %v1498_v43 = vsel %vm1395_vm2, 0.0, %v1463_v36  ;;  %v5503_v36 = vld [vmem:[#allocation13 + $0x90] sm:$0xff] }
 0x1bb   : > { %1189 = vst [vmem:[#allocation4 + $0x33c] sm:$0xf] %v1153_v46  ;;  %v6565_v25 = vpop.f32.mrf.mxu1  ;;  %v1534_v49 = vpack.c.bf16 %v1498_v43, %v1498_v43  ;;  %3300 = vmatpush.bf16.msrb.mxu3 %v5503_v36  ;;  %v5534_v36 = vld [vmem:[#allocation13 + $0x188] sm:$0xff] }
 0x1bc   : > { %1218 = vst [vmem:[#allocation4 + $0x2dc] sm:$0xf] %v1152_v42 }
 0x1bd   : > { %1219 = vst [vmem:[#allocation4 + $0x300] sm:$0xf] %v1153_v46 }
 0x1be   : > { %1248 = vst [vmem:[#allocation4 + $0x2a0] sm:$0xf] %v1152_v42  ;;  %v5440_v20 = vld [vmem:[#allocation4 + $0x31c] sm:$0xf]  ;;  %v1445_v42 = vsel %vm1432_vm3, %v1408_v28, %v1426_v23 }
 0x1bf   : > { %3219 = vmatmul.bf16.gmra.mxu0 %v4485_v3  ;;  %1249 = vst [vmem:[#allocation4 + $0x2c4] sm:$0xf] %v1153_v46  ;;  %v1533_v47 = vpack.c.bf16 %v1445_v42, %v1445_v42  ;;  %v4598_v3 = vld [vmem:[#allocation4 + $0x14c] sm:$0xf0]  ;;  %3301 = vmatpush.bf16.msrb.mxu3 %v5502_v26 }
 0x1c0   : > { %1321 = vst [vmem:[#allocation4 + $0x340] sm:$0xf] %v1285_v0 }
 0x1c1   : > { %1351 = vst [vmem:[#allocation4 + $0x304] sm:$0xf] %v1285_v0  ;;  %v4840_v10 = vld [vmem:[#allocation4 + $0x318] sm:$0xf] }
 0x1c2   : > { %1381 = vst [vmem:[#allocation4 + $0x2c8] sm:$0xf] %v1285_v0  ;;  %v5444_v13 = vld [vmem:[#allocation4 + $0x338] sm:$0xf0] }
 0x1c3   : > { %1567 = vst [vmem:[#allocation4 + $0x320] sm:$0xf] %v1531_v6  ;;  %v4841_v14 = vor.u32 %v5444_v13, %v4840_v10  ;;  %v6576_v46 = vpop.f32.mrf.mxu1  ;;  %v4601_v13 = vor.u32 %v5378_v62, %v4598_v3  ;;  %v5537_v62 = vld [vmem:[#allocation13 + $0x1a0] sm:$0xff] }
 0x1c4   : > { %1568 = vst [vmem:[#allocation4 + $0x344] sm:$0xf] %v1532_v7 }
 0x1c5   : > { %1597 = vst [vmem:[#allocation4 + $0x2e4] sm:$0xf] %v1531_v6  ;;  %3180 = vmatmul.bf16.gmra.mxu3 %v4841_v14 }
 0x1c6   : > { %1598 = vst [vmem:[#allocation4 + $0x308] sm:$0xf] %v1532_v7 }
 0x1c7   : > { %1627 = vst [vmem:[#allocation4 + $0x2a8] sm:$0xf] %v1531_v6  ;;  %v4842_v21 = vld [vmem:[#allocation4 + $0x33c] sm:$0xf0] }
 0x1c8   : > { %1628 = vst [vmem:[#allocation4 + $0x2cc] sm:$0xf] %v1532_v7  ;;  %v4845_v24 = vor.u32 %v5440_v20, %v4842_v21  ;;  %v4554_v6 = vld [vmem:[#allocation4 + $0xfc] sm:$0xf0] }
 0x1c9   : > { %1322 = vst [vmem:[#allocation4 + $0x364] sm:$0xf] %v1286_v15 }
 0x1ca   : > { %1352 = vst [vmem:[#allocation4 + $0x328] sm:$0xf] %v1286_v15  ;;  %3269 = vmatmul.bf16.gmra.mxu2 %v4845_v24  ;;  %v834_v30 = vpop.f32.mrf.mxu0  ;;  %3407 = vmatmul.bf16.gmra.mxu1 %v4565_v31 }
 0x1cb   : > { %1382 = vst [vmem:[#allocation4 + $0x2ec] sm:$0xf] %v1286_v15  ;;  %v835_v37 = vadd.f32 %v6504_v56, %v834_v30  ;;  %v5368_v15 = vld [vmem:[#allocation4 + $0xdc] sm:$0xf] }
 0x1cc   : > { %1190 = vst [vmem:[#allocation4 + $0x360] sm:$0xf] %v1154_v22  ;;  %v4557_v19 = vor.u32 %v5368_v15, %v4554_v6 }
 0x1cd   : > { %1191 = vst [vmem:[#allocation4 + $0x384] sm:$0xf] %v1155_v27  ;;  %v885_v44 = vmul.f32 0.1, %v835_v37 }
 0x1ce   : > { %1220 = vst [vmem:[#allocation4 + $0x324] sm:$0xf] %v1154_v22  ;;  %v6579_v2 = vpop.f32.mrf.mxu1 }
 0x1cf   : > { %3224 = vmatmul.bf16.gmra.mxu0 %v4521_v40  ;;  %1221 = vst [vmem:[#allocation4 + $0x348] sm:$0xf] %v1155_v27  ;;  %v921_v50 = vmax.f32 %v835_v37, %v885_v44  ;;  %v5539_v37 = vld [vmem:[#allocation13 + $0x1b0] sm:$0xff]  ;;  %v5538_v44 = vld [vmem:[#allocation13 + $0x1a8] sm:$0xff] }
 0x1d0   : > { %1250 = vst [vmem:[#allocation4 + $0x2e8] sm:$0xf] %v1154_v22  ;;  %v5449_v1 = vld [vmem:[#allocation4 + $0x364] sm:$0xf] }
 0x1d1   : > { %1251 = vst [vmem:[#allocation4 + $0x30c] sm:$0xf] %v1155_v27  ;;  %v1288_v61 = vpack.c.bf16 %v921_v50, %v921_v50  ;;  %v1030_v4 = vrot.slane %v921_v50, 7  ;;  %v1409_v14 = vrot.slane %v921_v50, 1  ;;  %v5540_v27 = vld [vmem:[#allocation13 + $0x1b8] sm:$0xff] }
 0x1d2   : > { %1323 = vst [vmem:[#allocation4 + $0x388] sm:$0xf] %v1287_v41  ;;  %v836_v51 = vpop.f32.mrf.mxu0  ;;  %3651 = vmatpush.bf16.msra.mxu0 %v5540_v27  ;;  %v5535_v27 = vld [vmem:[#allocation13 + $0x190] sm:$0xff] }
 0x1d3   : > { %1353 = vst [vmem:[#allocation4 + $0x34c] sm:$0xf] %v1287_v41  ;;  %v4876_v54 = vld [vmem:[#allocation4 + $0x360] sm:$0xf]  ;;  %v837_v55 = vadd.f32 %v6504_v56, %v836_v51 }
 0x1d4   : > { %1383 = vst [vmem:[#allocation4 + $0x310] sm:$0xf] %v1287_v41  ;;  %v5453_v57 = vld [vmem:[#allocation4 + $0x380] sm:$0xf0] }
 0x1d5   : > { %1569 = vst [vmem:[#allocation4 + $0x368] sm:$0xf] %v1533_v47  ;;  %v4877_v59 = vor.u32 %v5453_v57, %v4876_v54  ;;  %v886_v60 = vmul.f32 0.1, %v837_v55 }
 0x1d6   : > { %1570 = vst [vmem:[#allocation4 + $0x38c] sm:$0xf] %v1534_v49  ;;  %v6592_v30 = vpop.f32.mrf.mxu1  ;;  %3652 = vmatpush.bf16.msra.mxu0 %v5539_v37 }
 0x1d7   : > { %1599 = vst [vmem:[#allocation4 + $0x32c] sm:$0xf] %v1533_v47  ;;  %3185 = vmatmul.bf16.gmra.mxu3 %v4877_v59  ;;  %v922_v0 = vmax.f32 %v837_v55, %v886_v60  ;;  %v5387_v55 = vld [vmem:[#allocation4 + $0x174] sm:$0xf]  ;;  %v4590_v59 = vld [vmem:[#allocation4 + $0x144] sm:$0xf0] }
 0x1d8   : > { %1600 = vst [vmem:[#allocation4 + $0x350] sm:$0xf] %v1534_v49 }
 0x1d9   : > { %1629 = vst [vmem:[#allocation4 + $0x2f0] sm:$0xf] %v1533_v47  ;;  %v4878_v5 = vld [vmem:[#allocation4 + $0x384] sm:$0xf0]  ;;  %v1048_v7 = vrot.slane %v922_v0, 7  ;;  %v1289_v8 = vpack.c.bf16 %v922_v0, %v922_v0  ;;  %v1427_v10 = vrot.slane %v922_v0, 1 }
 0x1da   : > { %1630 = vst [vmem:[#allocation4 + $0x314] sm:$0xf] %v1534_v49  ;;  %v4881_v12 = vor.u32 %v5449_v1, %v4878_v5  ;;  %3412 = vmatmul.bf16.gmra.mxu1 %v4601_v13  ;;  %v4634_v49 = vld [vmem:[#allocation4 + $0x194] sm:$0xf0]  ;;  %3653 = vmatpush.bf16.msra.mxu0 %v5538_v44  ;;  %v5377_v0 = vld [vmem:[#allocation4 + $0x124] sm:$0xf] }
 0x1db   : > { %1324 = vst [vmem:[#allocation4 + $0x3ac] sm:$0xf] %v1288_v61  ;;  %v1067_v16 = vsel %vm1053_vm1, %v1030_v4, %v1048_v7  ;;  %v1085_v18 = vsel %vm1053_vm1, %v1048_v7, %v1030_v4  ;;  %v1464_v23 = vsel %vm1432_vm3, %v1427_v10, %v1409_v14  ;;  %v1446_v48 = vsel %vm1432_vm3, %v1409_v14, %v1427_v10  ;;  %v6619_v44 = vld [vmem:[%s7177_s6] ss:$0 sm:$0xff] }
 0x1dc   : > { %1354 = vst [vmem:[#allocation4 + $0x370] sm:$0xf] %v1288_v61  ;;  %v1120_v20 = vsel %vm1015_vm0, 0.0, %v1085_v18  ;;  %v1157_v21 = vpack.c.bf16 %v1067_v16, %v1067_v16  ;;  %3274 = vmatmul.bf16.gmra.mxu2 %v4881_v12  ;;  %v1500_v31 = vsel %vm1395_vm2, 0.0, %v1464_v23  ;;  %v1535_v38 = vpack.c.bf16 %v1446_v48, %v1446_v48  ;;  %v5536_v12 = vld [vmem:[#allocation13 + $0x198] sm:$0xff] }
 0x1dd   : > { %1384 = vst [vmem:[#allocation4 + $0x334] sm:$0xf] %v1288_v61  ;;  %v1156_v22 = vpack.c.bf16 %v1120_v20, %v1120_v20  ;;  %v839_v24 = vpop.f32.mrf.mxu0  ;;  %v1536_v39 = vpack.c.bf16 %v1500_v31, %v1500_v31  ;;  %v4637_v3 = vor.u32 %v5387_v55, %v4634_v49  ;;  %v4593_v4 = vor.u32 %v5377_v0, %v4590_v59  ;;  %v5533_v55 = vld [vmem:[#allocation13 + $0x180] sm:$0xff] }
 0x1de   : > { %1325 = vst [vmem:[#allocation4 + $0x3d0] sm:$0xf] %v1289_v8  ;;  %v840_v28 = vadd.f32 %v6504_v56, %v839_v24  ;;  %3654 = vmatpush.bf16.msra.mxu0 %v5537_v62  ;;  %v5518_v24 = vld [vmem:[#allocation13 + $0x108] sm:$0xff] }
 0x1df   : > { %3229 = vmatmul.bf16.gmra.mxu0 %v4557_v19  ;;  %1193 = vst [vmem:[#allocation4 + $0x3cc] sm:$0xf] %v1157_v21  ;;  %3479 = vmatpush.bf16.msrb.mxu2 %v5518_v24 }
 0x1e0   : > { %1192 = vst [vmem:[#allocation4 + $0x3a8] sm:$0xf] %v1156_v22  ;;  %v887_v33 = vmul.f32 0.1, %v840_v28 }
 0x1e1   : > { %1222 = vst [vmem:[#allocation4 + $0x36c] sm:$0xf] %v1156_v22  ;;  %v6597_v54 = vpop.f32.mrf.mxu1 }
 0x1e2   : > { %1223 = vst [vmem:[#allocation4 + $0x390] sm:$0xf] %v1157_v21  ;;  %v923_v40 = vmax.f32 %v840_v28, %v887_v33  ;;  %v5458_v50 = vld [vmem:[#allocation4 + $0x3ac] sm:$0xf]  ;;  %3655 = vmatpush.bf16.msra.mxu0 %v5536_v12 }
 0x1e3   : > { %1252 = vst [vmem:[#allocation4 + $0x330] sm:$0xf] %v1156_v22 }
 0x1e4   : > { %1253 = vst [vmem:[#allocation4 + $0x354] sm:$0xf] %v1157_v21  ;;  %v1290_v57 = vpack.c.bf16 %v923_v40, %v923_v40  ;;  %v1031_v5 = vrot.slane %v923_v40, 7  ;;  %v1410_v10 = vrot.slane %v923_v40, 1  ;;  %v4626_v40 = vld [vmem:[#allocation4 + $0x18c] sm:$0xf0] }
 0x1e5   : > { %1355 = vst [vmem:[#allocation4 + $0x394] sm:$0xf] %v1289_v8  ;;  %v4914_v41 = vld [vmem:[#allocation4 + $0x3cc] sm:$0xf0]  ;;  %v841_v42 = vpop.f32.mrf.mxu0 }
 0x1e6   : > { %1385 = vst [vmem:[#allocation4 + $0x358] sm:$0xf] %v1289_v8  ;;  %v5462_v43 = vld [vmem:[#allocation4 + $0x3c8] sm:$0xf0]  ;;  %v842_v45 = vadd.f32 %v6504_v56, %v841_v42  ;;  %v4917_v61 = vor.u32 %v5458_v50, %v4914_v41  ;;  %3656 = vmatpush.bf16.msra.mxu0 %v5535_v27 }
 0x1e7   : > { %1571 = vst [vmem:[#allocation4 + $0x3b0] sm:$0xf] %v1535_v38  ;;  %v4912_v47 = vld [vmem:[#allocation4 + $0x3a8] sm:$0xf] }
 0x1e8   : > { %1572 = vst [vmem:[#allocation4 + $0x3d4] sm:$0xf] %v1536_v39  ;;  %v4913_v51 = vor.u32 %v5462_v43, %v4912_v47  ;;  %v888_v60 = vmul.f32 0.1, %v842_v45  ;;  %v5396_v43 = vld [vmem:[#allocation4 + $0x1bc] sm:$0xf] }
 0x1e9   : > { %1601 = vst [vmem:[#allocation4 + $0x374] sm:$0xf] %v1535_v38  ;;  %v6607_v19 = vpop.f32.mrf.mxu1 }
 0x1ea   : > { %1602 = vst [vmem:[#allocation4 + $0x398] sm:$0xf] %v1536_v39  ;;  %3190 = vmatmul.bf16.gmra.mxu3 %v4913_v51  ;;  %v924_v1 = vmax.f32 %v842_v45, %v888_v60  ;;  %3417 = vmatmul.bf16.gmra.mxu1 %v4637_v3  ;;  %v5386_v60 = vld [vmem:[#allocation4 + $0x16c] sm:$0xf] }
 0x1eb   : > { %1631 = vst [vmem:[#allocation4 + $0x338] sm:$0xf] %v1535_v38  ;;  %3657 = vmatpush.bf16.msra.mxu0 %v5534_v36 }
 0x1ec   : > { %1632 = vst [vmem:[#allocation4 + $0x35c] sm:$0xf] %v1536_v39  ;;  %v1049_v6 = vrot.slane %v924_v1, 7  ;;  %v1291_v7 = vpack.c.bf16 %v924_v1, %v924_v1  ;;  %v1428_v8 = vrot.slane %v924_v1, 1  ;;  %3279 = vmatmul.bf16.gmra.mxu2 %v4917_v61  ;;  %v4670_v39 = vld [vmem:[#allocation4 + $0x1dc] sm:$0xf0]  ;;  %v4629_v1 = vor.u32 %v5386_v60, %v4626_v40 }
 0x1ed   : > { %1326 = vst [vmem:[#allocation4 + $0x3f4] sm:$0xf] %v1290_v57  ;;  %v4673_v0 = vor.u32 %v5396_v43, %v4670_v39  ;;  %v5405_v40 = vld [vmem:[#allocation4 + $0x204] sm:$0xf] }
 0x1ee   : > { %1356 = vst [vmem:[#allocation4 + $0x3b8] sm:$0xf] %v1290_v57  ;;  %v1068_v13 = vsel %vm1053_vm1, %v1031_v5, %v1049_v6  ;;  %v1086_v14 = vsel %vm1053_vm1, %v1049_v6, %v1031_v5  ;;  %v1465_v18 = vsel %vm1432_vm3, %v1428_v8, %v1410_v10  ;;  %v1447_v22 = vsel %vm1432_vm3, %v1410_v10, %v1428_v8  ;;  %v5517_v8 = vld [vmem:[#allocation13 + $0x100] sm:$0xff] }
 0x1ef   : > { %1386 = vst [vmem:[#allocation4 + $0x37c] sm:$0xf] %v1290_v57  ;;  %3234 = vmatmul.bf16.gmra.mxu0 %v4593_v4  ;;  %v1122_v15 = vsel %vm1015_vm0, 0.0, %v1086_v14  ;;  %v1159_v16 = vpack.c.bf16 %v1068_v13, %v1068_v13  ;;  %v1502_v28 = vsel %vm1395_vm2, 0.0, %v1465_v18  ;;  %v1537_v31 = vpack.c.bf16 %v1447_v22, %v1447_v22  ;;  %3480 = vmatpush.bf16.msrb.mxu2 %v5517_v8 }
 0x1f0   : > { %1327 = vst [vmem:[#allocation4 + $0x418] sm:$0xf] %v1291_v7  ;;  %v1158_v20 = vpack.c.bf16 %v1122_v15, %v1122_v15  ;;  %v844_v21 = vpop.f32.mrf.mxu0  ;;  %v1538_v33 = vpack.c.bf16 %v1502_v28, %v1502_v28  ;;  %3658 = vmatpush.bf16.msra.mxu0 %v5533_v55 }
 0x1f1   : > { %1357 = vst [vmem:[#allocation4 + $0x3dc] sm:$0xf] %v1291_v7  ;;  %v845_v23 = vadd.f32 %v6504_v56, %v844_v21 }
 0x1f2   : > { %1195 = vst [vmem:[#allocation4 + $0x414] sm:$0xf] %v1159_v16 }
 0x1f3   : > { %1194 = vst [vmem:[#allocation4 + $0x3f0] sm:$0xf] %v1158_v20  ;;  %v889_v48 = vmul.f32 0.1, %v845_v23 }
 0x1f4   : > { %1224 = vst [vmem:[#allocation4 + $0x3b4] sm:$0xf] %v1158_v20  ;;  %v5467_v41 = vld [vmem:[#allocation4 + $0x3f4] sm:$0xf]  ;;  %v3161_v42 = vpop.f32.mrf.mxu1 }
 0x1f5   : > { %1225 = vst [vmem:[#allocation4 + $0x3d8] sm:$0xf] %v1159_v16  ;;  %v6614_v37 = vmax.f32 %v845_v23, %v889_v48  ;;  %v3162_v62 = vadd.f32 %v6619_v44, %v3161_v42 }
 0x1f6   : > { %1254 = vst [vmem:[#allocation4 + $0x378] sm:$0xf] %v1158_v20 }
 0x1f7   : > { %1255 = vst [vmem:[#allocation4 + $0x39c] sm:$0xf] %v1159_v16  ;;  %v4950_v38 = vld [vmem:[#allocation4 + $0x414] sm:$0xf0]  ;;  %v1292_v57 = vpack.c.bf16 %v6614_v37, %v6614_v37  ;;  %v1032_v4 = vrot.slane %v6614_v37, 7  ;;  %v1411_v5 = vrot.slane %v6614_v37, 1 }
 0x1f8   : > { %1387 = vst [vmem:[#allocation4 + $0x3a0] sm:$0xf] %v1291_v7  ;;  %v846_v45 = vpop.f32.mrf.mxu0  ;;  %v4953_v47 = vor.u32 %v5467_v41, %v4950_v38  ;;  %v5501_v7 = vld [vmem:[#allocation13 + $0x80] sm:$0xff]  ;;  %v5532_v16 = vld [vmem:[#allocation13 + $0x178] sm:$0xff]  ;;  %v4706_v41 = vld [vmem:[#allocation4 + $0x224] sm:$0xf0] }
 0x1f9   : > { %1573 = vst [vmem:[#allocation4 + $0x3f8] sm:$0xf] %v1537_v31  ;;  %v5471_v49 = vld [vmem:[#allocation4 + $0x410] sm:$0xf0]  ;;  %v847_v50 = vadd.f32 %v6504_v56, %v846_v45  ;;  %3302 = vmatpush.bf16.msrb.mxu3 %v5501_v7  ;;  %v4662_v45 = vld [vmem:[#allocation4 + $0x1d4] sm:$0xf0]  ;;  %v4709_v55 = vor.u32 %v5405_v40, %v4706_v41 }
 0x1fa   : > { %1574 = vst [vmem:[#allocation4 + $0x41c] sm:$0xf] %v1538_v33  ;;  %v4948_v51 = vld [vmem:[#allocation4 + $0x3f0] sm:$0xf]  ;;  %3422 = vmatmul.bf16.gmra.mxu1 %v4673_v0  ;;  %v5347_v40 = vld [vmem:[#allocation4 + $0x30] sm:$0xf0] }
 0x1fb   : > { %1603 = vst [vmem:[#allocation4 + $0x3bc] sm:$0xf] %v1537_v31  ;;  %v4949_v59 = vor.u32 %v5471_v49, %v4948_v51  ;;  %v890_v61 = vmul.f32 0.1, %v847_v50 }
 0x1fc   : > { %1604 = vst [vmem:[#allocation4 + $0x3e0] sm:$0xf] %v1538_v33  ;;  %3284 = vmatmul.bf16.gmra.mxu2 %v4953_v47  ;;  %v6629_v15 = vpop.f32.mrf.mxu1 }
 0x1fd   : > { %1633 = vst [vmem:[#allocation4 + $0x380] sm:$0xf] %v1537_v31  ;;  %3195 = vmatmul.bf16.gmra.mxu3 %v4949_v59  ;;  %v926_v3 = vmax.f32 %v847_v50, %v890_v61  ;;  %v1396_v31 = vrot.slane %v6098_v34, 1  ;;  %v5395_v34 = vld [vmem:[#allocation4 + $0x1b4] sm:$0xf] }
 0x1fe   : > { %1634 = vst [vmem:[#allocation4 + $0x3a4] sm:$0xf] %v1538_v33  ;;  %3562 = vmatpush.bf16.msra.mxu3 %v5532_v16  ;;  %v4665_v59 = vor.u32 %v5395_v34, %v4662_v45  ;;  %v5348_v45 = vld [vmem:[#allocation4 + $0x38] sm:$0xf0] }
 0x1ff   : > { %1328 = vst [vmem:[#allocation4 + $0x43c] sm:$0xf] %v1292_v57  ;;  %3239 = vmatmul.bf16.gmra.mxu0 %v4629_v1  ;;  %v3250_v6 = vpop.f32.mrf.mxu2  ;;  %v1050_v10 = vrot.slane %v926_v3, 7  ;;  %v1293_v12 = vpack.c.bf16 %v926_v3, %v926_v3  ;;  %v1429_v13 = vrot.slane %v926_v3, 1 }
 0x200   : > { %1358 = vst [vmem:[#allocation4 + $0x400] sm:$0xf] %v1292_v57  ;;  %v6627_v14 = vadd.f32 %v3250_v6, %v3162_v62  ;;  %v1474_v62 = vsel %vm1395_vm2, 0.0, %v1396_v31 }
 0x201   : > { %1388 = vst [vmem:[#allocation4 + $0x3c4] sm:$0xf] %v1292_v57  ;;  %v1069_v18 = vsel %vm1053_vm1, %v1032_v4, %v1050_v10  ;;  %v1087_v20 = vsel %vm1053_vm1, %v1050_v10, %v1032_v4  ;;  %v1466_v21 = vsel %vm1432_vm3, %v1429_v13, %v1411_v5  ;;  %v1448_v26 = vsel %vm1432_vm3, %v1411_v5, %v1429_v13  ;;  %v5556_v5 = vld [vmem:[#allocation13 + $0x238] sm:$0xff] }
 0x202   : > { %1329 = vst [vmem:[#allocation4 + $0x460] sm:$0xf] %v1293_v12  ;;  %v1124_v22 = vsel %vm1015_vm0, 0.0, %v1087_v20  ;;  %v1161_v23 = vpack.c.bf16 %v1069_v18, %v1069_v18  ;;  %v1504_v28 = vsel %vm1395_vm2, 0.0, %v1466_v21  ;;  %v1539_v33 = vpack.c.bf16 %v1448_v26, %v1448_v26  ;;  %3829 = vmatpush.bf16.msra.mxu2 %v5556_v5  ;;  %v5548_v26 = vld [vmem:[#allocation13 + $0x1f8] sm:$0xff] }
 0x203   : > { %1359 = vst [vmem:[#allocation4 + $0x424] sm:$0xf] %v1293_v12  ;;  %v1160_v24 = vpack.c.bf16 %v1124_v22, %v1124_v22  ;;  %v849_v27 = vpop.f32.mrf.mxu0  ;;  %v1540_v37 = vpack.c.bf16 %v1504_v28, %v1504_v28  ;;  %v1509_v4 = vpack.c.bf16 %v1396_v31, %v1396_v31  ;;  %v1510_v6 = vpack.c.bf16 %v1474_v62, %v1474_v62  ;;  %v5423_v5 = vld [vmem:[#allocation4 + $0x294] sm:$0xf] }
 0x204   : > { %1389 = vst [vmem:[#allocation4 + $0x3e8] sm:$0xf] %v1293_v12  ;;  %v850_v48 = vadd.f32 %v6504_v56, %v849_v27  ;;  %3740 = vmatpush.bf16.msra.mxu1 %v5548_v26 }
 0x205   : > { %1197 = vst [vmem:[#allocation4 + $0x45c] sm:$0xf] %v1161_v23 }
 0x206   : > { %1196 = vst [vmem:[#allocation4 + $0x438] sm:$0xf] %v1160_v24  ;;  %v891_v36 = vmul.f32 0.1, %v850_v48  ;;  %v5476_v42 = vld [vmem:[#allocation4 + $0x43c] sm:$0xf] }
 0x207   : > { %1226 = vst [vmem:[#allocation4 + $0x3fc] sm:$0xf] %v1160_v24  ;;  %v6645_v38 = vpop.f32.mrf.mxu2  ;;  %v3166_v39 = vpop.f32.mrf.mxu1 }
 0x208   : > { %1227 = vst [vmem:[#allocation4 + $0x420] sm:$0xf] %v1161_v23  ;;  %v927_v49 = vmax.f32 %v850_v48, %v891_v36  ;;  %v3167_v3 = vadd.f32 %v6619_v44, %v3166_v39  ;;  %v4460_v39 = vld [vmem:[#allocation4 + $0x10] sm:$0xf] }
 0x209   : > { %1256 = vst [vmem:[#allocation4 + $0x3c0] sm:$0xf] %v1160_v24  ;;  %v4986_v43 = vld [vmem:[#allocation4 + $0x45c] sm:$0xf0]  ;;  %v4461_v58 = vor.u32 %v5347_v40, %v4460_v39  ;;  %v5365_v40 = vld [vmem:[#allocation4 + $0xc0] sm:$0xf0] }
 0x20a   : > { %1257 = vst [vmem:[#allocation4 + $0x3e4] sm:$0xf] %v1161_v23  ;;  %v4989_v47 = vor.u32 %v5476_v42, %v4986_v43  ;;  %v1294_v57 = vpack.c.bf16 %v927_v49, %v927_v49  ;;  %3427 = vmatmul.bf16.gmra.mxu1 %v4709_v55  ;;  %v1412_v8 = vrot.slane %v927_v49, 1  ;;  %v4742_v43 = vld [vmem:[#allocation4 + $0x26c] sm:$0xf0] }
 0x20b   : > { %1575 = vst [vmem:[#allocation4 + $0x440] sm:$0xf] %v1539_v33  ;;  %v851_v50 = vpop.f32.mrf.mxu0 }
 0x20c   : > { %1576 = vst [vmem:[#allocation4 + $0x464] sm:$0xf] %v1540_v37  ;;  %v5480_v51 = vld [vmem:[#allocation4 + $0x458] sm:$0xf0]  ;;  %v852_v60 = vadd.f32 %v6504_v56, %v851_v50  ;;  %3289 = vmatmul.bf16.gmra.mxu2 %v4989_v47  ;;  %v1033_v56 = vrot.slane %v927_v49, 7 }
 0x20d   : > { %1605 = vst [vmem:[#allocation4 + $0x404] sm:$0xf] %v1539_v33  ;;  %v4984_v61 = vld [vmem:[#allocation4 + $0x438] sm:$0xf] }
 0x20e   : > { %1606 = vst [vmem:[#allocation4 + $0x428] sm:$0xf] %v1540_v37  ;;  %v4985_v0 = vor.u32 %v5480_v51, %v4984_v61  ;;  %v892_v1 = vmul.f32 0.1, %v852_v60  ;;  %v4745_v51 = vor.u32 %v5414_v32, %v4742_v43  ;;  %v5432_v32 = vld [vmem:[#allocation4 + $0x2dc] sm:$0xf] }
 0x20f   : > { %1635 = vst [vmem:[#allocation4 + $0x3c8] sm:$0xf] %v1539_v33  ;;  %3244 = vmatmul.bf16.gmra.mxu0 %v4665_v59  ;;  %v6651_v7 = vpop.f32.mrf.mxu1  ;;  %v4814_v43 = vld [vmem:[#allocation4 + $0x2fc] sm:$0xf0] }
 0x210   : > { %1636 = vst [vmem:[#allocation4 + $0x3ec] sm:$0xf] %v1540_v37  ;;  %3200 = vmatmul.bf16.gmra.mxu3 %v4985_v0  ;;  %v928_v10 = vmax.f32 %v852_v60, %v892_v1  ;;  %v4468_v37 = vld [vmem:[#allocation4 + $0x18] sm:$0xf]  ;;  %v5531_v0 = vld [vmem:[#allocation13 + $0x170] sm:$0xff] }
 0x211   : > { %1360 = vst [vmem:[#allocation4 + $0x448] sm:$0xf] %v1294_v57  ;;  %v4469_v55 = vor.u32 %v5348_v45, %v4468_v37  ;;  %3563 = vmatpush.bf16.msra.mxu3 %v5531_v0  ;;  %v5547_v37 = vld [vmem:[#allocation13 + $0x1f0] sm:$0xff]  ;;  %v4540_v45 = vld [vmem:[#allocation4 + $0xa8] sm:$0xf] }
 0x212   : > { %1390 = vst [vmem:[#allocation4 + $0x40c] sm:$0xf] %v1294_v57  ;;  %v3255_v12 = vpop.f32.mrf.mxu2  ;;  %v1051_v13 = vrot.slane %v928_v10, 7  ;;  %v1295_v16 = vpack.c.bf16 %v928_v10, %v928_v10  ;;  %v1430_v18 = vrot.slane %v928_v10, 1  ;;  %v5357_v10 = vld [vmem:[#allocation4 + $0x80] sm:$0xf0]  ;;  %3741 = vmatpush.bf16.msra.mxu1 %v5547_v37 }
 0x213   : > { %v6653_v20 = vadd.f32 %v3255_v12, %v3167_v3  ;;  %1545 = vst [vmem:[#allocation4 + $0x8] sm:$0xf] %v1509_v4  ;;  %v5356_v3 = vld [vmem:[#allocation4 + $0x78] sm:$0xf0]  ;;  %v4496_v12 = vld [vmem:[#allocation4 + $0x58] sm:$0xf] }
 0x214   : > { %1546 = vst [vmem:[#allocation4 + $0x2c] sm:$0xf] %v1510_v6  ;;  %v1070_v21 = vsel %vm1053_vm1, %v1033_v56, %v1051_v13  ;;  %v1088_v22 = vsel %vm1053_vm1, %v1051_v13, %v1033_v56  ;;  %v1449_v23 = vsel %vm1432_vm3, %v1412_v8, %v1430_v18  ;;  %v1467_v24 = vsel %vm1432_vm3, %v1430_v18, %v1412_v8  ;;  %v4778_v56 = vld [vmem:[#allocation4 + $0x2b4] sm:$0xf0]  ;;  %v4504_v8 = vld [vmem:[#allocation4 + $0x60] sm:$0xf] }
 0x215   : > { %1361 = vst [vmem:[#allocation4 + $0x46c] sm:$0xf] %v1295_v16  ;;  %v1126_v27 = vsel %vm1015_vm0, 0.0, %v1088_v22  ;;  %v1163_v28 = vpack.c.bf16 %v1070_v21, %v1070_v21  ;;  %v1506_v48 = vsel %vm1395_vm2, 0.0, %v1467_v24  ;;  %v1541_v36 = vpack.c.bf16 %v1449_v23, %v1449_v23  ;;  %v5355_v18 = vld [vmem:[#allocation4 + $0x70] sm:$0xf0] }
 0x216   : > { %1391 = vst [vmem:[#allocation4 + $0x430] sm:$0xf] %v1295_v16  ;;  %v1162_v31 = vpack.c.bf16 %v1126_v27, %v1126_v27  ;;  %v854_v33 = vpop.f32.mrf.mxu0  ;;  %v1542_v41 = vpack.c.bf16 %v1506_v48, %v1506_v48  ;;  %v4497_v13 = vor.u32 %v5356_v3, %v4496_v12  ;;  %v4488_v16 = vld [vmem:[#allocation4 + $0x50] sm:$0xf]  ;;  %v4781_v23 = vor.u32 %v5423_v5, %v4778_v56 }
 0x217   : > { %1639 = vst [vmem:[#allocation4 + $0x458] sm:$0xf] %v1509_v4  ;;  %v6667_v42 = vpop.f32.mrf.mxu1  ;;  %v4505_v26 = vor.u32 %v5357_v10, %v4504_v8  ;;  %v4489_v27 = vor.u32 %v5355_v18, %v4488_v16  ;;  %v5374_v16 = vld [vmem:[#allocation4 + $0x108] sm:$0xf0] }
 0x218   : > { %1229 = vst [vmem:[#allocation4 + $0x468] sm:$0xf] %v1163_v28 }
 0x219   : > { %1228 = vst [vmem:[#allocation4 + $0x444] sm:$0xf] %v1162_v31 }
 0x21a   : > { %1258 = vst [vmem:[#allocation4 + $0x408] sm:$0xf] %v1162_v31  ;;  %v4452_v47 = vld [vmem:[#allocation4 + $0x8] sm:$0xf]  ;;  %v6669_v34 = vpop.f32.mrf.mxu2  ;;  %3432 = vmatmul.bf16.gmra.mxu1 %v4745_v51 }
 0x21b   : > { %1259 = vst [vmem:[#allocation4 + $0x42c] sm:$0xf] %v1163_v28  ;;  %v5346_v49 = vld [vmem:[#allocation4 + $0x28] sm:$0xf0]  ;;  %v5555_v28 = vld [vmem:[#allocation13 + $0x230] sm:$0xff] }
 0x21c   : > { %1607 = vst [vmem:[#allocation4 + $0x44c] sm:$0xf] %v1541_v36  ;;  %v4453_v50 = vor.u32 %v5346_v49, %v4452_v47  ;;  %3481 = vmatmul.bf16.vlgmr.msrb.gmra.mxu2 %v4461_v58  ;;  %v5366_v47 = vld [vmem:[#allocation4 + $0xc8] sm:$0xf0]  ;;  %v4532_v58 = vld [vmem:[#allocation4 + $0xa0] sm:$0xf] }
 0x21d   : > { %1608 = vst [vmem:[#allocation4 + $0x470] sm:$0xf] %v1542_v41  ;;  %3830 = vmatpush.bf16.msra.mxu2 %v5555_v28  ;;  %v4541_v3 = vor.u32 %v5366_v47, %v4540_v45  ;;  %v4568_v28 = vld [vmem:[#allocation4 + $0xe8] sm:$0xf] }
 0x21e   : > { %1637 = vst [vmem:[#allocation4 + $0x410] sm:$0xf] %v1541_v36  ;;  %v856_v57 = vpop.f32.mrf.mxu0  ;;  %v4569_v37 = vor.u32 %v5374_v16, %v4568_v28  ;;  %v4886_v16 = vld [vmem:[#allocation4 + $0x38c] sm:$0xf0] }
 0x21f   : > { %1638 = vst [vmem:[#allocation4 + $0x434] sm:$0xf] %v1542_v41  ;;  %3659 = vmatmul.bf16.vlgmr.msra.gmra.mxu0 %v4469_v55  ;;  %v6671_v60 = vpop.f32.mrf.mxu1  ;;  %v4524_v55 = vld [vmem:[#allocation4 + $0x98] sm:$0xf]  ;;  %v5364_v57 = vld [vmem:[#allocation4 + $0xb8] sm:$0xf0] }
 0x220   : > { %3303 = vmatmul.bf16.vlgmr.msrb.gmra.mxu3 %v4453_v50  ;;  %1640 = vst [vmem:[#allocation4 + $0x47c] sm:$0xf] %v1510_v6  ;;  %v3171_v59 = vpop.f32.mrf.mxu3  ;;  %v3127_v6 = vadd.f32 %v6619_v44, %v6470_v63  ;;  %v3129_v63 = vadd.f32 %v6619_v44, %v6480_v17  ;;  %v3132_v50 = vadd.f32 %v6619_v44, %v6494_v35 }
 0x221   : > { %v3172_v61 = vadd.f32 %v6619_v44, %v3171_v59  ;;  %v4533_v17 = vor.u32 %v5365_v40, %v4532_v58  ;;  %v4525_v5 = vor.u32 %v5364_v57, %v4524_v55  ;;  %v3134_v35 = vadd.f32 %v6619_v44, %v6499_v53  ;;  %v5373_v40 = vld [vmem:[#allocation4 + $0x100] sm:$0xf0] }
 0x222   : > { %v3137_v53 = vadd.f32 %v6619_v44, %v6517_v11  ;;  %v3139_v57 = vadd.f32 %v6619_v44, %v6531_v29  ;;  %v4596_v29 = vld [vmem:[#allocation4 + $0x128] sm:$0xf] }
 0x225   : > { %v3260_v62 = vpop.f32.mrf.mxu2 }
 0x226   : > { %v6674_v1 = vadd.f32 %v3260_v62, %v3172_v61  ;;  %v4817_v61 = vor.u32 %v5432_v32, %v4814_v43 }
 0x227   : > { %v6676_v4 = vpop.f32.mrf.mxu1 }
 0x228   : > { %v6680_v22 = vpop.f32.mrf.mxu3 }
 0x22a   : > { %3437 = vmatmul.bf16.gmra.mxu1 %v4781_v23  ;;  %v4850_v23 = vld [vmem:[#allocation4 + $0x344] sm:$0xf0] }
 0x22c   : > { %v3215_v21 = vpop.f32.mrf.mxu0  ;;  %3486 = vmatmul.bf16.gmra.mxu2 %v4497_v13  ;;  %v5530_v13 = vld [vmem:[#allocation13 + $0x168] sm:$0xff] }
 0x22d   : > { %v6682_v24 = vadd.f32 %v3215_v21, %v3127_v6  ;;  %v6684_v48 = vpop.f32.mrf.mxu2  ;;  %3564 = vmatpush.bf16.msra.mxu3 %v5530_v13  ;;  %v5441_v21 = vld [vmem:[#allocation4 + $0x324] sm:$0xf]  ;;  %v5450_v13 = vld [vmem:[#allocation4 + $0x36c] sm:$0xf] }
 0x22e   : > { %v4853_v32 = vor.u32 %v5441_v21, %v4850_v23  ;;  %v5384_v21 = vld [vmem:[#allocation4 + $0x158] sm:$0xf0]  ;;  %v4604_v23 = vld [vmem:[#allocation4 + $0x130] sm:$0xf] }
 0x22f   : > { %3664 = vmatmul.bf16.gmra.mxu0 %v4505_v26  ;;  %v6686_v31 = vpop.f32.mrf.mxu1  ;;  %v4576_v26 = vld [vmem:[#allocation4 + $0xf0] sm:$0xf] }
 0x230   : > { %3308 = vmatmul.bf16.gmra.mxu3 %v4489_v27  ;;  %v5375_v27 = vld [vmem:[#allocation4 + $0x110] sm:$0xf0] }
 0x231   : > { %v4577_v45 = vor.u32 %v5375_v27, %v4576_v26  ;;  %v3142_v27 = vadd.f32 %v6619_v44, %v6543_v52 }
 0x234   : > { %v3217_v33 = vpop.f32.mrf.mxu0 }
 0x235   : > { %v6690_v36 = vadd.f32 %v3217_v33, %v3129_v63 }
 0x236   : > { %v3176_v39 = vpop.f32.mrf.mxu3 }
 0x237   : > { %v3177_v41 = vadd.f32 %v6619_v44, %v3176_v39  ;;  %v6693_v49 = vpop.f32.mrf.mxu1  ;;  %v4560_v39 = vld [vmem:[#allocation4 + $0xe0] sm:$0xf] }
 0x238   : > { %v4561_v58 = vor.u32 %v5373_v40, %v4560_v39  ;;  %v4889_v39 = vor.u32 %v5450_v13, %v4886_v16  ;;  %v5459_v13 = vld [vmem:[#allocation4 + $0x3b4] sm:$0xf]  ;;  %v4922_v16 = vld [vmem:[#allocation4 + $0x3d4] sm:$0xf0] }
 0x23a   : > { %3442 = vmatmul.bf16.gmra.mxu1 %v4817_v61 }
 0x23b   : > { %v3265_v51 = vpop.f32.mrf.mxu2 }
 0x23c   : > { %v3220_v59 = vpop.f32.mrf.mxu0  ;;  %v6697_v62 = vadd.f32 %v3265_v51, %v3177_v41  ;;  %3491 = vmatmul.bf16.gmra.mxu2 %v4533_v17  ;;  %v5554_v17 = vld [vmem:[#allocation13 + $0x228] sm:$0xff] }
 0x23d   : > { %v6699_v0 = vadd.f32 %v3220_v59, %v3132_v50  ;;  %3831 = vmatpush.bf16.msra.mxu2 %v5554_v17  ;;  %v3144_v17 = vadd.f32 %v6619_v44, %v6556_v9  ;;  %v3147_v9 = vadd.f32 %v6619_v44, %v6565_v25 }
 0x23e   : > { %v6701_v56 = vpop.f32.mrf.mxu3 }
 0x23f   : > { %3669 = vmatmul.bf16.gmra.mxu0 %v4541_v3  ;;  %v6703_v8 = vpop.f32.mrf.mxu1 }
 0x240   : > { %3313 = vmatmul.bf16.gmra.mxu3 %v4525_v5  ;;  %v5546_v5 = vld [vmem:[#allocation13 + $0x1e8] sm:$0xff] }
 0x241   : > { %3742 = vmatpush.bf16.msra.mxu1 %v5546_v5 }
 0x243   : > { %v6707_v10 = vpop.f32.mrf.mxu2 }
 0x244   : > { %v3222_v12 = vpop.f32.mrf.mxu0 }
 0x245   : > { %v6709_v6 = vadd.f32 %v3222_v12, %v3134_v35  ;;  %v5383_v12 = vld [vmem:[#allocation4 + $0x150] sm:$0xf0] }
 0x246   : > { %v4605_v28 = vor.u32 %v5383_v12, %v4604_v23  ;;  %v5392_v12 = vld [vmem:[#allocation4 + $0x198] sm:$0xf0]  ;;  %v5393_v23 = vld [vmem:[#allocation4 + $0x1a0] sm:$0xf0] }
 0x247   : > { %v6712_v33 = vpop.f32.mrf.mxu1 }
 0x248   : > { %v3181_v18 = vpop.f32.mrf.mxu3 }
 0x249   : > { %v3182_v63 = vadd.f32 %v6619_v44, %v3181_v18  ;;  %v4612_v18 = vld [vmem:[#allocation4 + $0x138] sm:$0xf] }
 0x24a   : > { %3447 = vmatmul.bf16.gmra.mxu1 %v4853_v32 }
 0x24c   : > { %v3225_v41 = vpop.f32.mrf.mxu0  ;;  %3496 = vmatmul.bf16.gmra.mxu2 %v4569_v37 }
 0x24d   : > { %v6716_v43 = vadd.f32 %v3225_v41, %v3137_v53  ;;  %v3270_v47 = vpop.f32.mrf.mxu2  ;;  %v4613_v41 = vor.u32 %v5384_v21, %v4612_v18  ;;  %v4648_v21 = vld [vmem:[#allocation4 + $0x180] sm:$0xf] }
 0x24e   : > { %v6718_v50 = vadd.f32 %v3270_v47, %v3182_v63  ;;  %v5382_v63 = vld [vmem:[#allocation4 + $0x148] sm:$0xf0] }
 0x24f   : > { %3674 = vmatmul.bf16.gmra.mxu0 %v4577_v45  ;;  %v6721_v55 = vpop.f32.mrf.mxu1  ;;  %v4597_v45 = vor.u32 %v5382_v63, %v4596_v29  ;;  %v5391_v29 = vld [vmem:[#allocation4 + $0x190] sm:$0xf0] }
 0x250   : > { %3318 = vmatmul.bf16.gmra.mxu3 %v4561_v58  ;;  %v3183_v51 = vpop.f32.mrf.mxu3 }
 0x251   : > { %v3184_v11 = vadd.f32 %v6619_v44, %v3183_v51 }
 0x254   : > { %v3227_v59 = vpop.f32.mrf.mxu0 }
 0x255   : > { %v6725_v61 = vadd.f32 %v3227_v59, %v3139_v57  ;;  %v3272_v3 = vpop.f32.mrf.mxu2  ;;  %v5529_v59 = vld [vmem:[#allocation13 + $0x160] sm:$0xff] }
 0x256   : > { %v6727_v35 = vadd.f32 %v3272_v3, %v3184_v11  ;;  %3565 = vmatpush.bf16.msra.mxu3 %v5529_v59 }
 0x257   : > { %v6731_v37 = vpop.f32.mrf.mxu1 }
 0x25a   : > { %v3186_v26 = vpop.f32.mrf.mxu3  ;;  %3452 = vmatmul.bf16.gmra.mxu1 %v4889_v39 }
 0x25b   : > { %v3187_v32 = vadd.f32 %v6619_v44, %v3186_v26  ;;  %v4640_v26 = vld [vmem:[#allocation4 + $0x178] sm:$0xf] }
 0x25c   : > { %v3230_v53 = vpop.f32.mrf.mxu0  ;;  %3501 = vmatmul.bf16.gmra.mxu2 %v4605_v28  ;;  %v4632_v28 = vld [vmem:[#allocation4 + $0x170] sm:$0xf] }
 0x25d   : > { %v6733_v40 = vadd.f32 %v3230_v53, %v3142_v27  ;;  %v4641_v27 = vor.u32 %v5392_v12, %v4640_v26  ;;  %v4925_v53 = vor.u32 %v5459_v13, %v4922_v16  ;;  %v5545_v13 = vld [vmem:[#allocation13 + $0x1e0] sm:$0xff]  ;;  %v5468_v26 = vld [vmem:[#allocation4 + $0x3fc] sm:$0xf] }
 0x25e   : > { %3743 = vmatpush.bf16.msra.mxu1 %v5545_v13 }
 0x25f   : > { %3679 = vmatmul.bf16.gmra.mxu0 %v4613_v41  ;;  %v3275_v47 = vpop.f32.mrf.mxu2  ;;  %v6743_v3 = vpop.f32.mrf.mxu1  ;;  %v4649_v41 = vor.u32 %v5393_v23, %v4648_v21  ;;  %v5401_v23 = vld [vmem:[#allocation4 + $0x1e0] sm:$0xf0] }
 0x260   : > { %3323 = vmatmul.bf16.gmra.mxu3 %v4597_v45  ;;  %v6736_v58 = vadd.f32 %v3275_v47, %v3187_v32  ;;  %v4633_v45 = vor.u32 %v5391_v29, %v4632_v28  ;;  %v4684_v28 = vld [vmem:[#allocation4 + $0x1c8] sm:$0xf]  ;;  %v5402_v29 = vld [vmem:[#allocation4 + $0x1e8] sm:$0xf0] }
 0x262   : > { %7211 = vst [vmem:[#allocation26_spill] sm:$0xff] %v6736_v58  ;;  %v3188_v52 = vpop.f32.mrf.mxu3 }
 0x263   : > { %v3189_v57 = vadd.f32 %v6619_v44, %v3188_v52  ;;  %v5553_v52 = vld [vmem:[#allocation13 + $0x220] sm:$0xff] }
 0x264   : > { %v3232_v51 = vpop.f32.mrf.mxu0  ;;  %3832 = vmatpush.bf16.msra.mxu2 %v5553_v52 }
 0x265   : > { %v6740_v11 = vadd.f32 %v3232_v51, %v3144_v17 }
 0x267   : > { %v3277_v5 = vpop.f32.mrf.mxu2  ;;  %v6752_v51 = vpop.f32.mrf.mxu1 }
 0x268   : > { %v6745_v18 = vadd.f32 %v3277_v5, %v3189_v57  ;;  %v3149_v57 = vadd.f32 %v6619_v44, %v6576_v46  ;;  %v3152_v46 = vadd.f32 %v6619_v44, %v6579_v2  ;;  %v3154_v2 = vadd.f32 %v6619_v44, %v6592_v30 }
 0x26a   : > { %7212 = vst [vmem:[#allocation27_spill] sm:$0xff] %v6745_v18  ;;  %3457 = vmatmul.bf16.gmra.mxu1 %v4925_v53 }
 0x26c   : > { %v3235_v63 = vpop.f32.mrf.mxu0  ;;  %3506 = vmatmul.bf16.gmra.mxu2 %v4641_v27 }
 0x26d   : > { %v6749_v39 = vadd.f32 %v3235_v63, %v3147_v9  ;;  %v3191_v32 = vpop.f32.mrf.mxu3  ;;  %v4958_v9 = vld [vmem:[#allocation4 + $0x41c] sm:$0xf0] }
 0x26e   : > { %v3192_v47 = vadd.f32 %v6619_v44, %v3191_v32  ;;  %v4676_v63 = vld [vmem:[#allocation4 + $0x1c0] sm:$0xf]  ;;  %v4668_v32 = vld [vmem:[#allocation4 + $0x1b8] sm:$0xf]  ;;  %v4961_v52 = vor.u32 %v5468_v26, %v4958_v9 }
 0x26f   : > { %3684 = vmatmul.bf16.gmra.mxu0 %v4649_v41  ;;  %v3280_v17 = vpop.f32.mrf.mxu2  ;;  %v6763_v53 = vpop.f32.mrf.mxu1  ;;  %v4677_v41 = vor.u32 %v5401_v23, %v4676_v63  ;;  %v5528_v26 = vld [vmem:[#allocation13 + $0x158] sm:$0xff] }
 0x270   : > { %3328 = vmatmul.bf16.gmra.mxu3 %v4633_v45  ;;  %v6754_v25 = vadd.f32 %v3280_v17, %v3192_v47  ;;  %v5400_v45 = vld [vmem:[#allocation4 + $0x1d8] sm:$0xf0] }
 0x271   : > { %3566 = vmatpush.bf16.msra.mxu3 %v5528_v26 }
 0x272   : > { %7213 = vst [vmem:[#allocation28_spill] sm:$0xff] %v6754_v25 }
 0x274   : > { %v3237_v59 = vpop.f32.mrf.mxu0 }
 0x275   : > { %v6758_v5 = vadd.f32 %v3237_v59, %v3149_v57  ;;  %v3193_v12 = vpop.f32.mrf.mxu3  ;;  %v4685_v57 = vor.u32 %v5402_v29, %v4684_v28  ;;  %v4669_v59 = vor.u32 %v5400_v45, %v4668_v32  ;;  %v5477_v28 = vld [vmem:[#allocation4 + $0x444] sm:$0xf]  ;;  %v4994_v29 = vld [vmem:[#allocation4 + $0x464] sm:$0xf0]  ;;  %v5410_v32 = vld [vmem:[#allocation4 + $0x228] sm:$0xf0] }
 0x276   : > { %v3194_v16 = vadd.f32 %v6619_v44, %v3193_v12  ;;  %v4997_v30 = vor.u32 %v5477_v28, %v4994_v29  ;;  %v5543_v28 = vld [vmem:[#allocation13 + $0x1d0] sm:$0xff]  ;;  %v5552_v29 = vld [vmem:[#allocation13 + $0x218] sm:$0xff] }
 0x277   : > { %v3282_v21 = vpop.f32.mrf.mxu2  ;;  %v6774_v63 = vpop.f32.mrf.mxu1  ;;  %3833 = vmatpush.bf16.msra.mxu2 %v5552_v29  ;;  %v5418_v29 = vld [vmem:[#allocation4 + $0x268] sm:$0xf0] }
 0x278   : > { %v6761_v27 = vadd.f32 %v3282_v21, %v3194_v16 }
 0x27a   : > { %7214 = vst [vmem:[#allocation29_spill] sm:$0xff] %v6761_v27  ;;  %3462 = vmatmul.bf16.gmra.mxu1 %v4961_v52  ;;  %v4720_v52 = vld [vmem:[#allocation4 + $0x210] sm:$0xf] }
 0x27c   : > { %v3240_v47 = vpop.f32.mrf.mxu0  ;;  %3511 = vmatmul.bf16.gmra.mxu2 %v4677_v41 }
 0x27d   : > { %v6767_v17 = vadd.f32 %v3240_v47, %v3152_v46  ;;  %v4712_v47 = vld [vmem:[#allocation4 + $0x208] sm:$0xf] }
 0x27f   : > { %3689 = vmatmul.bf16.gmra.mxu0 %v4685_v57  ;;  %v3285_v12 = vpop.f32.mrf.mxu2  ;;  %v5411_v57 = vld [vmem:[#allocation4 + $0x230] sm:$0xf0]  ;;  %v6785_v25 = vpop.f32.mrf.mxu1 }
 0x280   : > { %3333 = vmatmul.bf16.gmra.mxu3 %v4669_v59  ;;  %v3196_v13 = vpop.f32.mrf.mxu3  ;;  %v5544_v59 = vld [vmem:[#allocation13 + $0x1d8] sm:$0xff]  ;;  %v4721_v27 = vor.u32 %v5411_v57, %v4720_v52  ;;  %v5541_v52 = vld [vmem:[#allocation13 + $0x1c0] sm:$0xff] }
 0x281   : > { %v3197_v16 = vadd.f32 %v6619_v44, %v3196_v13  ;;  %v4713_v13 = vor.u32 %v5410_v32, %v4712_v47  ;;  %3744 = vmatpush.bf16.msra.mxu1 %v5544_v59  ;;  %v5419_v59 = vld [vmem:[#allocation4 + $0x270] sm:$0xf0] }
 0x283   : > { %v6772_v21 = vadd.f32 %v3285_v12, %v3197_v16  ;;  %v3157_v12 = vadd.f32 %v6619_v44, %v6597_v54  ;;  %v4704_v16 = vld [vmem:[#allocation4 + $0x200] sm:$0xf]  ;;  %v5542_v54 = vld [vmem:[#allocation13 + $0x1c8] sm:$0xff] }
 0x284   : > { %v3242_v23 = vpop.f32.mrf.mxu0 }
 0x285   : > { %7215 = vst [vmem:[#allocation30_spill] sm:$0xff] %v6772_v21  ;;  %v6776_v9 = vadd.f32 %v3242_v23, %v3154_v2  ;;  %v5409_v2 = vld [vmem:[#allocation4 + $0x220] sm:$0xf0]  ;;  %3745 = vmatpush.bf16.msra.mxu1 %v5543_v28  ;;  %v4740_v28 = vld [vmem:[#allocation4 + $0x248] sm:$0xf] }
 0x287   : > { %v3287_v46 = vpop.f32.mrf.mxu2 }
 0x288   : > { %v3198_v41 = vpop.f32.mrf.mxu3 }
 0x289   : > { %v3199_v45 = vadd.f32 %v6619_v44, %v3198_v41  ;;  %v4705_v41 = vor.u32 %v5409_v2, %v4704_v16  ;;  %3746 = vmatpush.bf16.msra.mxu1 %v5542_v54  ;;  %v4756_v16 = vld [vmem:[#allocation4 + $0x258] sm:$0xf]  ;;  %v5420_v2 = vld [vmem:[#allocation4 + $0x278] sm:$0xf0] }
 0x28a   : > { %3467 = vmatmul.bf16.gmra.mxu1 %v4997_v30 }
 0x28b   : > { %v6781_v23 = vadd.f32 %v3287_v46, %v3199_v45  ;;  %v3159_v46 = vadd.f32 %v6619_v44, %v6607_v19 }
 0x28c   : > { %v3245_v26 = vpop.f32.mrf.mxu0  ;;  %3516 = vmatmul.bf16.gmra.mxu2 %v4713_v13  ;;  %v4470_v13 = vld [vmem:[#allocation4 + $0x3c] sm:$0xf0] }
 0x28d   : > { %7216 = vst [vmem:[#allocation31_spill] sm:$0xff] %v6781_v23  ;;  %v6783_v21 = vadd.f32 %v3245_v26, %v3157_v12  ;;  %v6794_v12 = vpop.f32.mrf.mxu1  ;;  %3747 = vmatpush.bf16.msra.mxu1 %v5541_v52  ;;  %v4748_v26 = vld [vmem:[#allocation4 + $0x250] sm:$0xf] }
 0x28f   : > { %3694 = vmatmul.bf16.gmra.mxu0 %v4721_v27  ;;  %v3290_v18 = vpop.f32.mrf.mxu2 }
 0x290   : > { %3338 = vmatmul.bf16.gmra.mxu3 %v4705_v41  ;;  %v4749_v41 = vor.u32 %v5419_v59, %v4748_v26  ;;  %v5527_v26 = vld [vmem:[#allocation13 + $0x150] sm:$0xff] }
 0x291   : > { %3567 = vmatpush.bf16.msra.mxu3 %v5527_v26 }
 0x293   : > { %v3201_v32 = vpop.f32.mrf.mxu3 }
 0x294   : > { %v3247_v45 = vpop.f32.mrf.mxu0  ;;  %v3202_v47 = vadd.f32 %v6619_v44, %v3201_v32  ;;  %v5344_v32 = vld [vmem:[#allocation4 + $0x1c] sm:$0xf] }
 0x295   : > { %v6790_v57 = vadd.f32 %v3247_v45, %v3159_v46  ;;  %v4473_v46 = vor.u32 %v5344_v32, %v4470_v13  ;;  %v4757_v45 = vor.u32 %v5420_v2, %v4756_v16  ;;  %v5428_v13 = vld [vmem:[#allocation4 + $0x2b8] sm:$0xf0]  ;;  %v4506_v2 = vld [vmem:[#allocation4 + $0x84] sm:$0xf0]  ;;  %v4776_v32 = vld [vmem:[#allocation4 + $0x290] sm:$0xf] }
 0x296   : > { %v6792_v30 = vadd.f32 %v3290_v18, %v3202_v47  ;;  %v4741_v18 = vor.u32 %v5418_v29, %v4740_v28 }
 0x297   : > { %v3292_v27 = vpop.f32.mrf.mxu2 }
 0x298   : > { %7217 = vst [vmem:[#allocation32_spill] sm:$0xff] %v6792_v30  ;;  %v6799_v30 = vpop.f32.mrf.mxu1 }
 0x29a   : > { %3748 = vmatmul.bf16.vlgmr.msra.gmra.mxu1 %v4473_v46  ;;  %v5353_v46 = vld [vmem:[#allocation4 + $0x64] sm:$0xf] }
 0x29b   : > { %v3203_v19 = vpop.f32.mrf.mxu3 }
 0x29c   : > { %v3204_v54 = vadd.f32 %v6619_v44, %v3203_v19  ;;  %3521 = vmatmul.bf16.gmra.mxu2 %v4749_v41  ;;  %v4792_v19 = vld [vmem:[#allocation4 + $0x2a0] sm:$0xf]  ;;  %v4784_v41 = vld [vmem:[#allocation4 + $0x298] sm:$0xf] }
 0x29d   : > { %v4785_v29 = vor.u32 %v5428_v13, %v4784_v41 }
 0x29e   : > { %v6797_v47 = vadd.f32 %v3292_v27, %v3204_v54  ;;  %v5429_v27 = vld [vmem:[#allocation4 + $0x2c0] sm:$0xf0]  ;;  %v5427_v54 = vld [vmem:[#allocation4 + $0x2b0] sm:$0xf0] }
 0x29f   : > { %3699 = vmatmul.bf16.gmra.mxu0 %v4757_v45  ;;  %v3482_v52 = vpop.f32.mrf.mxu2 }
 0x2a0   : > { %3343 = vmatmul.bf16.gmra.mxu3 %v4741_v18 }
 0x2a3   : > { %v3304_v23 = vpop.f32.mrf.mxu3 }
 0x2a4   : > { %v3305_v59 = vadd.f32 %v3304_v23, %v6682_v24  ;;  %v6806_v24 = vpop.f32.mrf.mxu1  ;;  %v4509_v23 = vor.u32 %v5353_v46, %v4506_v2 }
 0x2a6   : > { %v3394_v58 = vadd.f32 %v6667_v42, %v3305_v59  ;;  %v4793_v42 = vor.u32 %v5429_v27, %v4792_v19  ;;  %v5437_v19 = vld [vmem:[#allocation4 + $0x300] sm:$0xf0] }
 0x2a7   : > { %v3484_v44 = vpop.f32.mrf.mxu2 }
 0x2a8   : > { %v6803_v16 = vadd.f32 %v3482_v52, %v3394_v58  ;;  %v4777_v58 = vor.u32 %v5427_v54, %v4776_v32  ;;  %v5551_v52 = vld [vmem:[#allocation13 + $0x210] sm:$0xff]  ;;  %v5438_v32 = vld [vmem:[#allocation4 + $0x308] sm:$0xf0]  ;;  %v4820_v54 = vld [vmem:[#allocation4 + $0x2e0] sm:$0xf] }
 0x2a9   : > { %3834 = vmatpush.bf16.msra.mxu2 %v5551_v52 }
 0x2aa   : > { %3753 = vmatmul.bf16.gmra.mxu1 %v4509_v23  ;;  %v5436_v23 = vld [vmem:[#allocation4 + $0x2f8] sm:$0xf0] }
 0x2ab   : > { %v3306_v28 = vpop.f32.mrf.mxu3 }
 0x2ac   : > { %v3307_v45 = vadd.f32 %v3306_v28, %v6690_v36  ;;  %3526 = vmatmul.bf16.gmra.mxu2 %v4785_v29  ;;  %v6813_v28 = vpop.f32.mrf.mxu1  ;;  %v4828_v29 = vld [vmem:[#allocation4 + $0x2e8] sm:$0xf] }
 0x2ae   : > { %v3396_v18 = vadd.f32 %v6671_v60, %v3307_v45  ;;  %v4542_v60 = vld [vmem:[#allocation4 + $0xcc] sm:$0xf0]  ;;  %v4821_v45 = vor.u32 %v5437_v19, %v4820_v54  ;;  %v5526_v54 = vld [vmem:[#allocation13 + $0x148] sm:$0xff] }
 0x2af   : > { %3704 = vmatmul.bf16.gmra.mxu0 %v4793_v42  ;;  %v3487_v59 = vpop.f32.mrf.mxu2  ;;  %v5362_v42 = vld [vmem:[#allocation4 + $0xac] sm:$0xf]  ;;  %3568 = vmatpush.bf16.msra.mxu3 %v5526_v54 }
 0x2b0   : > { %3348 = vmatmul.bf16.gmra.mxu3 %v4777_v58  ;;  %v6809_v26 = vadd.f32 %v3484_v44, %v3396_v18  ;;  %v4812_v44 = vld [vmem:[#allocation4 + $0x2d8] sm:$0xf]  ;;  %v4829_v58 = vor.u32 %v5438_v32, %v4828_v29  ;;  %v5446_v29 = vld [vmem:[#allocation4 + $0x348] sm:$0xf0] }
 0x2b1   : > { %v4813_v52 = vor.u32 %v5436_v23, %v4812_v44  ;;  %v4856_v23 = vld [vmem:[#allocation4 + $0x328] sm:$0xf] }
 0x2b3   : > { %v3309_v13 = vpop.f32.mrf.mxu3 }
 0x2b4   : > { %v3310_v41 = vadd.f32 %v3309_v13, %v6699_v0  ;;  %v4545_v0 = vor.u32 %v5362_v42, %v4542_v60 }
 0x2b6   : > { %v3399_v36 = vadd.f32 %v6676_v4, %v3310_v41 }
 0x2b7   : > { %v3489_v2 = vpop.f32.mrf.mxu2 }
 0x2b8   : > { %v6815_v27 = vadd.f32 %v3487_v59, %v3399_v36  ;;  %v6819_v59 = vpop.f32.mrf.mxu1 }
 0x2ba   : > { %3758 = vmatmul.bf16.gmra.mxu1 %v4545_v0  ;;  %v5445_v0 = vld [vmem:[#allocation4 + $0x340] sm:$0xf0] }
 0x2bb   : > { %v3311_v46 = vpop.f32.mrf.mxu3 }
 0x2bc   : > { %v3312_v18 = vadd.f32 %v3311_v46, %v6709_v6  ;;  %3531 = vmatmul.bf16.gmra.mxu2 %v4821_v45  ;;  %v4864_v46 = vld [vmem:[#allocation4 + $0x330] sm:$0xf]  ;;  %v5447_v45 = vld [vmem:[#allocation4 + $0x350] sm:$0xf0] }
 0x2be   : > { %v3401_v4 = vadd.f32 %v6686_v31, %v3312_v18  ;;  %v4578_v31 = vld [vmem:[#allocation4 + $0x114] sm:$0xf0]  ;;  %v4848_v18 = vld [vmem:[#allocation4 + $0x320] sm:$0xf] }
 0x2bf   : > { %3709 = vmatmul.bf16.gmra.mxu0 %v4829_v58  ;;  %v3492_v13 = vpop.f32.mrf.mxu2  ;;  %v5371_v58 = vld [vmem:[#allocation4 + $0xf4] sm:$0xf] }
 0x2c0   : > { %3353 = vmatmul.bf16.gmra.mxu3 %v4813_v52  ;;  %v6821_v41 = vadd.f32 %v3489_v2, %v3401_v4  ;;  %v6827_v44 = vpop.f32.mrf.mxu1  ;;  %v4857_v2 = vor.u32 %v5446_v29, %v4856_v23  ;;  %v4581_v4 = vor.u32 %v5371_v58, %v4578_v31  ;;  %v4865_v52 = vor.u32 %v5447_v45, %v4864_v46  ;;  %v4892_v58 = vld [vmem:[#allocation4 + $0x370] sm:$0xf] }
 0x2c3   : > { %v3314_v36 = vpop.f32.mrf.mxu3 }
 0x2c4   : > { %v3315_v19 = vadd.f32 %v3314_v36, %v6716_v43  ;;  %v4849_v36 = vor.u32 %v5445_v0, %v4848_v18  ;;  %v4900_v18 = vld [vmem:[#allocation4 + $0x378] sm:$0xf]  ;;  %v5456_v0 = vld [vmem:[#allocation4 + $0x398] sm:$0xf0] }
 0x2c6   : > { %v3404_v6 = vadd.f32 %v6693_v49, %v3315_v19  ;;  %v6830_v49 = vpop.f32.mrf.mxu0  ;;  %v5550_v19 = vld [vmem:[#allocation13 + $0x208] sm:$0xff] }
 0x2c7   : > { %v3494_v60 = vpop.f32.mrf.mxu2  ;;  %3835 = vmatpush.bf16.msra.mxu2 %v5550_v19  ;;  %v4901_v19 = vor.u32 %v5456_v0, %v4900_v18 }
 0x2c8   : > { %v6825_v32 = vadd.f32 %v3492_v13, %v3404_v6  ;;  %v6835_v23 = vpop.f32.mrf.mxu1 }
 0x2ca   : > { %3763 = vmatmul.bf16.gmra.mxu1 %v4581_v4  ;;  %v4884_v4 = vld [vmem:[#allocation4 + $0x368] sm:$0xf] }
 0x2cb   : > { %v3316_v42 = vpop.f32.mrf.mxu3 }
 0x2cc   : > { %v3317_v43 = vadd.f32 %v3316_v42, %v6725_v61  ;;  %3536 = vmatmul.bf16.gmra.mxu2 %v4857_v2  ;;  %v4614_v2 = vld [vmem:[#allocation4 + $0x15c] sm:$0xf0] }
 0x2ce   : > { %v3406_v13 = vadd.f32 %v6703_v8, %v3317_v43  ;;  %v6839_v46 = vpop.f32.mrf.mxu0  ;;  %v5455_v8 = vld [vmem:[#allocation4 + $0x390] sm:$0xf0] }
 0x2cf   : > { %3714 = vmatmul.bf16.gmra.mxu0 %v4865_v52  ;;  %v3497_v54 = vpop.f32.mrf.mxu2  ;;  %v4893_v43 = vor.u32 %v5455_v8, %v4892_v58  ;;  %v5454_v52 = vld [vmem:[#allocation4 + $0x388] sm:$0xf0] }
 0x2d0   : > { %3358 = vmatmul.bf16.gmra.mxu3 %v4849_v36  ;;  %v6833_v6 = vadd.f32 %v3494_v60, %v3406_v13  ;;  %v5380_v13 = vld [vmem:[#allocation4 + $0x13c] sm:$0xf] }
 0x2d3   : > { %v3319_v29 = vpop.f32.mrf.mxu3 }
 0x2d4   : > { %v3320_v61 = vadd.f32 %v3319_v29, %v6733_v40  ;;  %v4617_v40 = vor.u32 %v5380_v13, %v4614_v2 }
 0x2d6   : > { %v3409_v31 = vadd.f32 %v6712_v33, %v3320_v61  ;;  %v6844_v33 = vpop.f32.mrf.mxu1  ;;  %v6849_v8 = vpop.f32.mrf.mxu0 }
 0x2d7   : > { %v3499_v45 = vpop.f32.mrf.mxu2 }
 0x2d8   : > { %v6841_v42 = vadd.f32 %v3497_v54, %v3409_v31  ;;  %v4885_v54 = vor.u32 %v5454_v52, %v4884_v4  ;;  %v4936_v4 = vld [vmem:[#allocation4 + $0x3c0] sm:$0xf]  ;;  %v5465_v52 = vld [vmem:[#allocation4 + $0x3e0] sm:$0xf0] }
 0x2da   : > { %7218 = vst [vmem:[#allocation33_spill] sm:$0xff] %v6841_v42  ;;  %3768 = vmatmul.bf16.gmra.mxu1 %v4617_v40 }
 0x2db   : > { %v3321_v60 = vpop.f32.mrf.mxu3 }
 0x2dc   : > { %v3322_v36 = vadd.f32 %v3321_v60, %v6740_v11  ;;  %3541 = vmatmul.bf16.gmra.mxu2 %v4893_v43  ;;  %v5525_v11 = vld [vmem:[#allocation13 + $0x140] sm:$0xff]  ;;  %v4650_v43 = vld [vmem:[#allocation4 + $0x1a4] sm:$0xf0] }
 0x2dd   : > { %3569 = vmatpush.bf16.msra.mxu3 %v5525_v11 }
 0x2de   : > { %v3411_v29 = vadd.f32 %v6721_v55, %v3322_v36  ;;  %v6853_v18 = vpop.f32.mrf.mxu1  ;;  %v5464_v55 = vld [vmem:[#allocation4 + $0x3d8] sm:$0xf0]  ;;  %v6857_v13 = vpop.f32.mrf.mxu0 }
 0x2df   : > { %3719 = vmatmul.bf16.gmra.mxu0 %v4901_v19  ;;  %v3502_v61 = vpop.f32.mrf.mxu2  ;;  %v4920_v19 = vld [vmem:[#allocation4 + $0x3b0] sm:$0xf] }
 0x2e0   : > { %3363 = vmatmul.bf16.gmra.mxu3 %v4885_v54  ;;  %v6847_v31 = vadd.f32 %v3499_v45, %v3411_v29  ;;  %v4928_v45 = vld [vmem:[#allocation4 + $0x3b8] sm:$0xf]  ;;  %v5389_v29 = vld [vmem:[#allocation4 + $0x184] sm:$0xf] }
 0x2e1   : > { %v4929_v40 = vor.u32 %v5464_v55, %v4928_v45  ;;  %v5549_v54 = vld [vmem:[#allocation13 + $0x200] sm:$0xff] }
 0x2e2   : > { %7219 = vst [vmem:[#allocation34_spill] sm:$0xff] %v6847_v31  ;;  %3836 = vmatpush.bf16.msra.mxu2 %v5549_v54 }
 0x2e3   : > { %v3324_v58 = vpop.f32.mrf.mxu3 }
 0x2e4   : > { %v3325_v42 = vadd.f32 %v3324_v58, %v6749_v39  ;;  %v5463_v39 = vld [vmem:[#allocation4 + $0x3d0] sm:$0xf0]  ;;  %v4937_v58 = vor.u32 %v5465_v52, %v4936_v4  ;;  %v5473_v52 = vld [vmem:[#allocation4 + $0x420] sm:$0xf0] }
 0x2e5   : > { %v4921_v11 = vor.u32 %v5463_v39, %v4920_v19  ;;  %v4686_v19 = vld [vmem:[#allocation4 + $0x1ec] sm:$0xf0]  ;;  %v4964_v39 = vld [vmem:[#allocation4 + $0x400] sm:$0xf] }
 0x2e6   : > { %v3414_v2 = vadd.f32 %v6731_v37, %v3325_v42  ;;  %v4653_v42 = vor.u32 %v5389_v29, %v4650_v43  ;;  %v6863_v55 = vpop.f32.mrf.mxu1 }
 0x2e7   : > { %v3504_v0 = vpop.f32.mrf.mxu2 }
 0x2e8   : > { %v6855_v60 = vadd.f32 %v3502_v61, %v3414_v2 }
 0x2ea   : > { %7220 = vst [vmem:[#allocation35_spill] sm:$0xff] %v6855_v60  ;;  %3773 = vmatmul.bf16.gmra.mxu1 %v4653_v42  ;;  %v5472_v42 = vld [vmem:[#allocation4 + $0x418] sm:$0xf0] }
 0x2eb   : > { %v3326_v36 = vpop.f32.mrf.mxu3 }
 0x2ec   : > { %v3327_v37 = vadd.f32 %v3326_v36, %v6758_v5  ;;  %3546 = vmatmul.bf16.gmra.mxu2 %v4929_v40  ;;  %v6866_v5 = vpop.f32.mrf.mxu0  ;;  %v5474_v36 = vld [vmem:[#allocation4 + $0x428] sm:$0xf0] }
 0x2ee   : > { %v3416_v61 = vadd.f32 %v6743_v3, %v3327_v37  ;;  %v4972_v3 = vld [vmem:[#allocation4 + $0x408] sm:$0xf]  ;;  %v4956_v37 = vld [vmem:[#allocation4 + $0x3f8] sm:$0xf] }
 0x2ef   : > { %3724 = vmatmul.bf16.gmra.mxu0 %v4937_v58  ;;  %v3507_v2 = vpop.f32.mrf.mxu2  ;;  %v4973_v54 = vor.u32 %v5474_v36, %v4972_v3  ;;  %v5398_v58 = vld [vmem:[#allocation4 + $0x1cc] sm:$0xf] }
 0x2f0   : > { %3368 = vmatmul.bf16.gmra.mxu3 %v4921_v11  ;;  %v6861_v60 = vadd.f32 %v3504_v0, %v3416_v61  ;;  %v4965_v0 = vor.u32 %v5473_v52, %v4964_v39  ;;  %v6871_v61 = vpop.f32.mrf.mxu1  ;;  %v4689_v11 = vor.u32 %v5398_v58, %v4686_v19  ;;  %v5000_v19 = vld [vmem:[#allocation4 + $0x448] sm:$0xf]  ;;  %v5482_v39 = vld [vmem:[#allocation4 + $0x468] sm:$0xf0]  ;;  %v5481_v58 = vld [vmem:[#allocation4 + $0x460] sm:$0xf0] }
 0x2f3   : > { %v3329_v45 = vpop.f32.mrf.mxu3 }
 0x2f4   : > { %v3330_v31 = vadd.f32 %v3329_v45, %v6767_v17 }
 0x2f6   : > { %v3419_v43 = vadd.f32 %v6752_v51, %v3330_v31  ;;  %v4957_v31 = vor.u32 %v5472_v42, %v4956_v37  ;;  %v4722_v37 = vld [vmem:[#allocation4 + $0x234] sm:$0xf0] }
 0x2f7   : > { %v3509_v4 = vpop.f32.mrf.mxu2 }
 0x2f8   : > { %v6869_v40 = vadd.f32 %v3507_v2, %v3419_v43  ;;  %v6875_v2 = vpop.f32.mrf.mxu0  ;;  %v6880_v36 = vpop.f32.mrf.mxu1 }
 0x2fa   : > { %3778 = vmatmul.bf16.gmra.mxu1 %v4689_v11 }
 0x2fb   : > { %v3331_v29 = vpop.f32.mrf.mxu3 }
 0x2fc   : > { %v3332_v17 = vadd.f32 %v3331_v29, %v6776_v9  ;;  %3551 = vmatmul.bf16.gmra.mxu2 %v4965_v0  ;;  %v5001_v0 = vor.u32 %v5482_v39, %v5000_v19  ;;  %v4476_v39 = vld [vmem:[#allocation4 + $0x20] sm:$0xf] }
 0x2fe   : > { %v3421_v51 = vadd.f32 %v6763_v53, %v3332_v17  ;;  %v5407_v17 = vld [vmem:[#allocation4 + $0x214] sm:$0xf] }
 0x2ff   : > { %3729 = vmatmul.bf16.gmra.mxu0 %v4973_v54  ;;  %v3512_v45 = vpop.f32.mrf.mxu2  ;;  %v4992_v54 = vld [vmem:[#allocation4 + $0x440] sm:$0xf]  ;;  %v4725_v11 = vor.u32 %v5407_v17, %v4722_v37  ;;  %v5343_v17 = vld [vmem:[#allocation4 + $0x14] sm:$0xf] }
 0x300   : > { %3373 = vmatmul.bf16.gmra.mxu3 %v4957_v31  ;;  %v6877_v43 = vadd.f32 %v3509_v4, %v3421_v51  ;;  %v4993_v51 = vor.u32 %v5481_v58, %v4992_v54 }
 0x303   : > { %v3334_v52 = vpop.f32.mrf.mxu3 }
 0x304   : > { %v3335_v3 = vadd.f32 %v3334_v52, %v6783_v21 }
 0x306   : > { %v3424_v9 = vadd.f32 %v6774_v63, %v3335_v3  ;;  %v6887_v63 = vpop.f32.mrf.mxu1 }
 0x307   : > { %v3514_v29 = vpop.f32.mrf.mxu2 }
 0x308   : > { %v6883_v53 = vadd.f32 %v3512_v45, %v3424_v9  ;;  %v6895_v9 = vld [vmem:[%s7177_s6] ss:$0 sm:$0xff] }
 0x30a   : > { %3783 = vmatmul.bf16.gmra.mxu1 %v4725_v11  ;;  %v5416_v11 = vld [vmem:[#allocation4 + $0x25c] sm:$0xf] }
 0x30b   : > { %v3336_v42 = vpop.f32.mrf.mxu3 }
 0x30c   : > { %v3337_v4 = vadd.f32 %v3336_v42, %v6790_v57  ;;  %3556 = vmatmul.bf16.gmra.mxu2 %v5001_v0  ;;  %v3164_v57 = vadd.f32 %v6895_v9, %v6629_v15  ;;  %v5349_v0 = vld [vmem:[#allocation4 + $0x40] sm:$0xf0] }
 0x30d   : > { %v4477_v58 = vor.u32 %v5349_v0, %v4476_v39 }
 0x30e   : > { %v3426_v21 = vadd.f32 %v6785_v25, %v3337_v4  ;;  %v3253_v42 = vadd.f32 %v6645_v38, %v3164_v57  ;;  %v6903_v54 = vpop.f32.mrf.mxu1  ;;  %v4462_v4 = vld [vmem:[#allocation4 + $0x34] sm:$0xf0] }
 0x30f   : > { %v3517_v31 = vpop.f32.mrf.mxu2 }
 0x310   : > { %3378 = vmatmul.bf16.gmra.mxu3 %v4993_v51  ;;  %v6889_v45 = vadd.f32 %v3514_v29, %v3426_v21  ;;  %v4758_v29 = vld [vmem:[#allocation4 + $0x27c] sm:$0xf0] }
 0x311   : > { %v4761_v51 = vor.u32 %v5416_v11, %v4758_v29  ;;  %v4512_v29 = vld [vmem:[#allocation4 + $0x68] sm:$0xf]  ;;  %v4498_v11 = vld [vmem:[#allocation4 + $0x7c] sm:$0xf0] }
 0x313   : > { %v3339_v52 = vpop.f32.mrf.mxu3 }
 0x314   : > { %v3340_v3 = vadd.f32 %v3339_v52, %v6627_v14 }
 0x316   : > { %v3429_v25 = vadd.f32 %v6794_v12, %v3340_v3  ;;  %v4465_v12 = vor.u32 %v5343_v17, %v4462_v4  ;;  %v6908_v38 = vpop.f32.mrf.mxu1  ;;  %v5352_v4 = vld [vmem:[#allocation4 + $0x5c] sm:$0xf] }
 0x317   : > { %v3519_v19 = vpop.f32.mrf.mxu2 }
 0x318   : > { %v6900_v37 = vadd.f32 %v3517_v31, %v3429_v25  ;;  %v3169_v25 = vadd.f32 %v6895_v9, %v6651_v7 }
 0x31a   : > { %3788 = vmatmul.bf16.gmra.mxu1 %v4761_v51 }
 0x31b   : > { %v3341_v14 = vpop.f32.mrf.mxu3 }
 0x31c   : > { %v3342_v21 = vadd.f32 %v3341_v14, %v3253_v42  ;;  %3837 = vmatmul.bf16.vlgmr.msra.gmra.mxu2 %v4477_v58  ;;  %v5358_v42 = vld [vmem:[#allocation4 + $0x88] sm:$0xf0]  ;;  %v4794_v14 = vld [vmem:[#allocation4 + $0x2c4] sm:$0xf0]  ;;  %v3258_v58 = vadd.f32 %v6669_v34, %v3169_v25 }
 0x31d   : > { %v4513_v17 = vor.u32 %v5358_v42, %v4512_v29  ;;  %v4548_v42 = vld [vmem:[#allocation4 + $0xb0] sm:$0xf] }
 0x31e   : > { %v3431_v15 = vadd.f32 %v6799_v30, %v3342_v21  ;;  %v5425_v21 = vld [vmem:[#allocation4 + $0x2a4] sm:$0xf] }
 0x31f   : > { %v3522_v52 = vpop.f32.mrf.mxu2 }
 0x320   : > { %3570 = vmatmul.bf16.vlgmr.msra.gmra.mxu3 %v4465_v12  ;;  %v6906_v31 = vadd.f32 %v3519_v19, %v3431_v15  ;;  %v6917_v15 = vpop.f32.mrf.mxu1 }
 0x323   : > { %v3344_v3 = vpop.f32.mrf.mxu3 }
 0x324   : > { %v3345_v57 = vadd.f32 %v3344_v3, %v6653_v20  ;;  %v4797_v20 = vor.u32 %v5425_v21, %v4794_v14  ;;  %v5367_v14 = vld [vmem:[#allocation4 + $0xd0] sm:$0xf0] }
 0x326   : > { %v3434_v39 = vadd.f32 %v6806_v24, %v3345_v57  ;;  %v4501_v24 = vor.u32 %v5352_v4, %v4498_v11  ;;  %v3174_v57 = vadd.f32 %v6895_v9, %v6680_v22  ;;  %v5361_v4 = vld [vmem:[#allocation4 + $0xa4] sm:$0xf]  ;;  %v4534_v11 = vld [vmem:[#allocation4 + $0xc4] sm:$0xf0] }
 0x327   : > { %v3524_v0 = vpop.f32.mrf.mxu2 }
 0x328   : > { %v6914_v30 = vadd.f32 %v3522_v52, %v3434_v39  ;;  %v6926_v39 = vpop.f32.mrf.mxu1 }
 0x32a   : > { %3793 = vmatmul.bf16.gmra.mxu1 %v4797_v20 }
 0x32b   : > { %v3346_v19 = vpop.f32.mrf.mxu3 }
 0x32c   : > { %v3347_v51 = vadd.f32 %v3346_v19, %v3258_v58  ;;  %3842 = vmatmul.bf16.gmra.mxu2 %v4513_v17  ;;  %v4830_v58 = vld [vmem:[#allocation4 + $0x30c] sm:$0xf0]  ;;  %v3263_v19 = vadd.f32 %v6684_v48, %v3174_v57  ;;  %v4549_v17 = vor.u32 %v5367_v14, %v4548_v42  ;;  %v5376_v42 = vld [vmem:[#allocation4 + $0x118] sm:$0xf0]  ;;  %v4866_v14 = vld [vmem:[#allocation4 + $0x354] sm:$0xf0] }
 0x32e   : > { %v3436_v7 = vadd.f32 %v6813_v28, %v3347_v51 }
 0x32f   : > { %v3527_v12 = vpop.f32.mrf.mxu2 }
 0x330   : > { %3575 = vmatmul.bf16.gmra.mxu3 %v4501_v24  ;;  %v6920_v52 = vadd.f32 %v3524_v0, %v3436_v7  ;;  %v6934_v24 = vpop.f32.mrf.mxu1 }
 0x333   : > { %v3349_v3 = vpop.f32.mrf.mxu3 }
 0x334   : > { %v3350_v34 = vadd.f32 %v3349_v3, %v6674_v1  ;;  %v5434_v1 = vld [vmem:[#allocation4 + $0x2ec] sm:$0xf]  ;;  %v3179_v3 = vadd.f32 %v6895_v9, %v6701_v56 }
 0x335   : > { %v4833_v51 = vor.u32 %v5434_v1, %v4830_v58 }
 0x336   : > { %v3439_v25 = vadd.f32 %v6819_v59, %v3350_v34  ;;  %v4537_v59 = vor.u32 %v5361_v4, %v4534_v11  ;;  %v3268_v58 = vadd.f32 %v6707_v10, %v3179_v3  ;;  %v5443_v4 = vld [vmem:[#allocation4 + $0x334] sm:$0xf] }
 0x337   : > { %v3529_v29 = vpop.f32.mrf.mxu2  ;;  %v4869_v1 = vor.u32 %v5443_v4, %v4866_v14  ;;  %v4606_v14 = vld [vmem:[#allocation4 + $0x154] sm:$0xf0] }
 0x338   : > { %v6928_v28 = vadd.f32 %v3527_v12, %v3439_v25  ;;  %v4584_v25 = vld [vmem:[#allocation4 + $0xf8] sm:$0xf]  ;;  %v6943_v11 = vpop.f32.mrf.mxu1 }
 0x33a   : > { %3798 = vmatmul.bf16.gmra.mxu1 %v4833_v51 }
 0x33b   : > { %v3351_v0 = vpop.f32.mrf.mxu3 }
 0x33c   : > { %v3352_v21 = vadd.f32 %v3351_v0, %v3263_v19  ;;  %3847 = vmatmul.bf16.gmra.mxu2 %v4549_v17  ;;  %v4585_v19 = vor.u32 %v5376_v42, %v4584_v25  ;;  %v5370_v0 = vld [vmem:[#allocation4 + $0xec] sm:$0xf]  ;;  %v4570_v17 = vld [vmem:[#allocation4 + $0x10c] sm:$0xf0]  ;;  %v5379_v42 = vld [vmem:[#allocation4 + $0x134] sm:$0xf] }
 0x33e   : > { %v3441_v22 = vadd.f32 %v6827_v44, %v3352_v21 }
 0x33f   : > { %v3532_v20 = vpop.f32.mrf.mxu2 }
 0x340   : > { %3580 = vmatmul.bf16.gmra.mxu3 %v4537_v59  ;;  %v6932_v7 = vadd.f32 %v3529_v29, %v3441_v22  ;;  %v6949_v22 = vpop.f32.mrf.mxu1 }
 0x343   : > { %v3354_v12 = vpop.f32.mrf.mxu3 }
 0x344   : > { %v3355_v48 = vadd.f32 %v3354_v12, %v6697_v62  ;;  %v4620_v12 = vld [vmem:[#allocation4 + $0x140] sm:$0xf] }
 0x346   : > { %v3444_v34 = vadd.f32 %v6835_v23, %v3355_v48  ;;  %v4573_v23 = vor.u32 %v5370_v0, %v4570_v17  ;;  %v5385_v48 = vld [vmem:[#allocation4 + $0x160] sm:$0xf0] }
 0x347   : > { %v3534_v57 = vpop.f32.mrf.mxu2  ;;  %v4621_v25 = vor.u32 %v5385_v48, %v4620_v12  ;;  %v5388_v48 = vld [vmem:[#allocation4 + $0x17c] sm:$0xf] }
 0x348   : > { %v6940_v44 = vadd.f32 %v3532_v20, %v3444_v34  ;;  %v4902_v34 = vld [vmem:[#allocation4 + $0x39c] sm:$0xf0] }
 0x34a   : > { %3803 = vmatmul.bf16.gmra.mxu1 %v4869_v1 }
 0x34b   : > { %v3356_v29 = vpop.f32.mrf.mxu3 }
 0x34c   : > { %v3357_v62 = vadd.f32 %v3356_v29, %v3268_v58  ;;  %3852 = vmatmul.bf16.gmra.mxu2 %v4585_v19  ;;  %v5452_v58 = vld [vmem:[#allocation4 + $0x37c] sm:$0xf]  ;;  %v4609_v19 = vor.u32 %v5379_v42, %v4606_v14 }
 0x34d   : > { %v4905_v29 = vor.u32 %v5452_v58, %v4902_v34  ;;  %v4642_v34 = vld [vmem:[#allocation4 + $0x19c] sm:$0xf0] }
 0x34e   : > { %v3446_v56 = vadd.f32 %v6844_v33, %v3357_v62  ;;  %v7221_v62 = vld [vmem:[#allocation26_spill] sm:$0xff] }
 0x34f   : > { %v3537_v9 = vpop.f32.mrf.mxu2 }
 0x350   : > { %3585 = vmatmul.bf16.gmra.mxu3 %v4573_v23  ;;  %v6946_v21 = vadd.f32 %v3534_v57, %v3446_v56 }
 0x353   : > { %v3359_v51 = vpop.f32.mrf.mxu3 }
 0x354   : > { %v3360_v10 = vadd.f32 %v3359_v51, %v6718_v50 }
 0x356   : > { %v3449_v59 = vadd.f32 %v6853_v18, %v3360_v10  ;;  %v6956_v18 = vpop.f32.mrf.mxu1  ;;  %v4938_v10 = vld [vmem:[#allocation4 + $0x3e4] sm:$0xf0] }
 0x357   : > { %v3539_v20 = vpop.f32.mrf.mxu2 }
 0x358   : > { %v6952_v3 = vadd.f32 %v3537_v9, %v3449_v59  ;;  %v4656_v9 = vld [vmem:[#allocation4 + $0x188] sm:$0xf] }
 0x35a   : > { %3808 = vmatmul.bf16.gmra.mxu1 %v4905_v29 }
 0x35b   : > { %v3361_v33 = vpop.f32.mrf.mxu3 }
 0x35c   : > { %v3362_v57 = vadd.f32 %v3361_v33, %v6727_v35  ;;  %3857 = vmatmul.bf16.gmra.mxu2 %v4621_v25  ;;  %v5394_v35 = vld [vmem:[#allocation4 + $0x1a8] sm:$0xf0]  ;;  %v5461_v33 = vld [vmem:[#allocation4 + $0x3c4] sm:$0xf] }
 0x35d   : > { %v4657_v12 = vor.u32 %v5394_v35, %v4656_v9  ;;  %v4941_v42 = vor.u32 %v5461_v33, %v4938_v10  ;;  %v5470_v35 = vld [vmem:[#allocation4 + $0x40c] sm:$0xf] }
 0x35e   : > { %v3451_v50 = vadd.f32 %v6863_v55, %v3362_v57  ;;  %v6964_v55 = vpop.f32.mrf.mxu1 }
 0x35f   : > { %v3542_v0 = vpop.f32.mrf.mxu2 }
 0x360   : > { %3590 = vmatmul.bf16.gmra.mxu3 %v4609_v19  ;;  %v6958_v17 = vadd.f32 %v3539_v20, %v3451_v50  ;;  %v7222_v20 = vld [vmem:[#allocation27_spill] sm:$0xff]  ;;  %v7223_v19 = vld [vmem:[#allocation28_spill] sm:$0xff] }
 0x363   : > { %v3364_v4 = vpop.f32.mrf.mxu3 }
 0x364   : > { %v3365_v1 = vadd.f32 %v3364_v4, %v7221_v62 }
 0x366   : > { %v3454_v56 = vadd.f32 %v6871_v61, %v3365_v1  ;;  %v4645_v61 = vor.u32 %v5388_v48, %v4642_v34  ;;  %v6970_v50 = vpop.f32.mrf.mxu1  ;;  %v4692_v1 = vld [vmem:[#allocation4 + $0x1d0] sm:$0xf]  ;;  %v4678_v48 = vld [vmem:[#allocation4 + $0x1e4] sm:$0xf0] }
 0x367   : > { %v3544_v23 = vpop.f32.mrf.mxu2 }
 0x368   : > { %v6962_v51 = vadd.f32 %v3542_v0, %v3454_v56  ;;  %v5403_v56 = vld [vmem:[#allocation4 + $0x1f0] sm:$0xf0] }
 0x36a   : > { %3813 = vmatmul.bf16.gmra.mxu1 %v4941_v42 }
 0x36b   : > { %v3366_v59 = vpop.f32.mrf.mxu3 }
 0x36c   : > { %v3367_v25 = vadd.f32 %v3366_v59, %v7222_v20  ;;  %3862 = vmatmul.bf16.gmra.mxu2 %v4657_v12  ;;  %v4693_v59 = vor.u32 %v5403_v56, %v4692_v1  ;;  %v5397_v12 = vld [vmem:[#allocation4 + $0x1c4] sm:$0xf]  ;;  %v5412_v1 = vld [vmem:[#allocation4 + $0x238] sm:$0xf0] }
 0x36e   : > { %v3456_v14 = vadd.f32 %v6880_v36, %v3367_v25  ;;  %v4974_v36 = vld [vmem:[#allocation4 + $0x42c] sm:$0xf0]  ;;  %v6977_v20 = vpop.f32.mrf.mxu1 }
 0x36f   : > { %v3547_v58 = vpop.f32.mrf.mxu2  ;;  %v4977_v33 = vor.u32 %v5470_v35, %v4974_v36 }
 0x370   : > { %3595 = vmatmul.bf16.gmra.mxu3 %v4645_v61  ;;  %v6968_v57 = vadd.f32 %v3544_v23, %v3456_v14  ;;  %v7224_v23 = vld [vmem:[#allocation29_spill] sm:$0xff] }
 0x373   : > { %v3369_v29 = vpop.f32.mrf.mxu3 }
 0x374   : > { %v3370_v0 = vadd.f32 %v3369_v29, %v7223_v19 }
 0x376   : > { %v3459_v4 = vadd.f32 %v6887_v63, %v3370_v0  ;;  %v4681_v63 = vor.u32 %v5397_v12, %v4678_v48 }
 0x377   : > { %v3549_v62 = vpop.f32.mrf.mxu2 }
 0x378   : > { %v6974_v9 = vadd.f32 %v3547_v58, %v3459_v4  ;;  %v7225_v58 = vld [vmem:[#allocation30_spill] sm:$0xff]  ;;  %v4728_v4 = vld [vmem:[#allocation4 + $0x218] sm:$0xf] }
 0x379   : > { %v4729_v36 = vor.u32 %v5412_v1, %v4728_v4  ;;  %v5415_v1 = vld [vmem:[#allocation4 + $0x254] sm:$0xf] }
 0x37a   : > { %3818 = vmatmul.bf16.gmra.mxu1 %v4977_v33  ;;  %v7227_v33 = vld [vmem:[#allocation32_spill] sm:$0xff] }
 0x37b   : > { %v3371_v10 = vpop.f32.mrf.mxu3 }
 0x37c   : > { %v3372_v34 = vadd.f32 %v3371_v10, %v7224_v23  ;;  %3867 = vmatmul.bf16.gmra.mxu2 %v4693_v59  ;;  %v5406_v10 = vld [vmem:[#allocation4 + $0x20c] sm:$0xf] }
 0x37d   : > { %v7226_v59 = vld [vmem:[#allocation31_spill] sm:$0xff] }
 0x37e   : > { %v3461_v25 = vadd.f32 %v6903_v54, %v3372_v34  ;;  %v4714_v54 = vld [vmem:[#allocation4 + $0x22c] sm:$0xf0] }
 0x37f   : > { %v3552_v42 = vpop.f32.mrf.mxu2  ;;  %v4717_v48 = vor.u32 %v5406_v10, %v4714_v54 }
 0x380   : > { %3600 = vmatmul.bf16.gmra.mxu3 %v4681_v63  ;;  %v6980_v14 = vadd.f32 %v3549_v62, %v3461_v25 }
 0x383   : > { %v3374_v61 = vpop.f32.mrf.mxu3 }
 0x384   : > { %v3375_v29 = vadd.f32 %v3374_v61, %v7225_v58  ;;  %v4764_v61 = vld [vmem:[#allocation4 + $0x260] sm:$0xf]  ;;  %v5421_v58 = vld [vmem:[#allocation4 + $0x280] sm:$0xf0] }
 0x385   : > { %v4765_v4 = vor.u32 %v5421_v58, %v4764_v61 }
 0x386   : > { %v3464_v19 = vadd.f32 %v6908_v38, %v3375_v29 }
 0x387   : > { %v3554_v0 = vpop.f32.mrf.mxu2 }
 0x388   : > { %v6984_v56 = vadd.f32 %v3552_v42, %v3464_v19 }
 0x38b   : > { %v3376_v35 = vpop.f32.mrf.mxu3 }
 0x38c   : > { %v3377_v12 = vadd.f32 %v3376_v35, %v7226_v59  ;;  %3872 = vmatmul.bf16.gmra.mxu2 %v4729_v36  ;;  %v4750_v35 = vld [vmem:[#allocation4 + $0x274] sm:$0xf0] }
 0x38d   : > { %v4753_v36 = vor.u32 %v5415_v1, %v4750_v35  ;;  %v5559_v1 = vld [vmem:[%s6290_s11] sm:$0xff]  }
 0x38e   : > { %v3466_v62 = vadd.f32 %v6917_v15, %v3377_v12  ;;  %v6999_v12 = vpop.f32.mrf.mxu0 }
 0x38f   : > { %v3557_v23 = vpop.f32.mrf.mxu2 }
 0x390   : > { %3605 = vmatmul.bf16.gmra.mxu3 %v4717_v48  ;;  %v6988_v34 = vadd.f32 %v3554_v0, %v3466_v62  ;;  %v7002_v48 = vpop.f32.mrf.mxu1 }
 0x393   : > { %v3379_v38 = vpop.f32.mrf.mxu3 }
 0x394   : > { %v3380_v25 = vadd.f32 %v3379_v38, %v7227_v33  ;;  %v4800_v38 = vld [vmem:[#allocation4 + $0x2a8] sm:$0xf] }
 0x396   : > { %v3469_v63 = vadd.f32 %v6926_v39, %v3380_v25 }
 0x397   : > { %v3559_v42 = vpop.f32.mrf.mxu2 }
 0x398   : > { %v6992_v29 = vadd.f32 %v3557_v23, %v3469_v63  ;;  %v5424_v63 = vld [vmem:[#allocation4 + $0x29c] sm:$0xf] }
 0x39b   : > { %v3381_v19 = vpop.f32.mrf.mxu3 }
 0x39c   : > { %v3382_v15 = vadd.f32 %v3381_v19, %v6797_v47  ;;  %3877 = vmatmul.bf16.gmra.mxu2 %v4765_v4 }
 0x39e   : > { %v3471_v0 = vadd.f32 %v6934_v24, %v3382_v15  ;;  %v5430_v24 = vld [vmem:[#allocation4 + $0x2c8] sm:$0xf0]  ;;  %v7011_v15 = vpop.f32.mrf.mxu1 }
 0x39f   : > { %v3838_v10 = vpop.f32.mrf.mxu2  ;;  %v4801_v25 = vor.u32 %v5430_v24, %v4800_v38 }
 0x3a0   : > { %3610 = vmatmul.bf16.gmra.mxu3 %v4753_v36  ;;  %v6996_v54 = vadd.f32 %v3559_v42, %v3471_v0  ;;  %v4786_v42 = vld [vmem:[#allocation4 + $0x2bc] sm:$0xf0]  ;;  %v5560_v36 = vunpack.c.l.bf16 %v5559_v1 }
 0x3a1   : > { %v4789_v19 = vor.u32 %v5424_v63, %v4786_v42  ;;  %v5439_v63 = vld [vmem:[#allocation4 + $0x310] sm:$0xf0] }
 0x3a3   : > { %v3571_v39 = vpop.f32.mrf.mxu3 }
 0x3a4   : > { %v3572_v59 = vadd.f32 %v3571_v39, %v6803_v16 }
 0x3a6   : > { %v3661_v62 = vadd.f32 %v6830_v49, %v3572_v59  ;;  %v7007_v49 = vpop.f32.mrf.mxu0 }
 0x3a7   : > { %v3840_v23 = vpop.f32.mrf.mxu2 }
 0x3a8   : > { %v3750_v47 = vadd.f32 %v6943_v11, %v3661_v62 }
 0x3aa   : > { %v3839_v61 = vadd.f32 %v3838_v10, %v3750_v47 }
 0x3ab   : > { %v3573_v33 = vpop.f32.mrf.mxu3 }
 0x3ac   : > { %v3574_v58 = vadd.f32 %v3573_v33, %v6809_v26  ;;  %3882 = vmatmul.bf16.gmra.mxu2 %v4801_v25  ;;  %v3918_v4 = vmul.f32 0.1, %v3839_v61  ;;  %v5561_v26 = vunpack.c.h.bf16 %v5559_v1  ;;  %v4836_v25 = vld [vmem:[#allocation4 + $0x2f0] sm:$0xf] }
 0x3ae   : > { %v3663_v16 = vadd.f32 %v6839_v46, %v3574_v58  ;;  %v3950_v10 = vmax.f32 %v3839_v61, %v3918_v4  ;;  %v7018_v61 = vpop.f32.mrf.mxu1 }
 0x3af   : > { %v3843_v35 = vpop.f32.mrf.mxu2 }
 0x3b0   : > { %v3752_v11 = vadd.f32 %v6949_v22, %v3663_v16  ;;  %3615 = vmatmul.bf16.gmra.mxu3 %v4789_v19  ;;  %v4046_v38 = vadd.f32 %v5560_v36, %v3950_v10  ;;  %v4837_v16 = vor.u32 %v5439_v63, %v4836_v25  ;;  %v4822_v19 = vld [vmem:[#allocation4 + $0x304] sm:$0xf0]  ;;  %v4872_v63 = vld [vmem:[#allocation4 + $0x338] sm:$0xf] }
 0x3b2   : > { %v3841_v0 = vadd.f32 %v3840_v23, %v3752_v11  ;;  %v7016_v23 = vpop.f32.mrf.mxu0 }
 0x3b3   : > { %v3576_v39 = vpop.f32.mrf.mxu3 }
 0x3b4   : > { %v3919_v59 = vmul.f32 0.1, %v3841_v0  ;;  %v3577_v62 = vadd.f32 %v3576_v39, %v6815_v27  ;;  %v5433_v27 = vld [vmem:[#allocation4 + $0x2e4] sm:$0xf] }
 0x3b5   : > { %v4825_v1 = vor.u32 %v5433_v27, %v4822_v19  ;;  %v5442_v19 = vld [vmem:[#allocation4 + $0x32c] sm:$0xf] }
 0x3b6   : > { %v3951_v46 = vmax.f32 %v3841_v0, %v3919_v59  ;;  %v3666_v47 = vadd.f32 %v6849_v8, %v3577_v62  ;;  %v5703_v0 = vld [vmem:[%s6290_s11 + $0x8] sm:$0xff]  }
 0x3b7   : > { %v3845_v33 = vpop.f32.mrf.mxu2  ;;  %v5564_v59 = vunpack.c.l.bf16 %v5703_v0 }
 0x3b8   : > { %v4047_v24 = vadd.f32 %v5561_v26, %v3951_v46  ;;  %v3755_v22 = vadd.f32 %v6956_v18, %v3666_v47 }
 0x3ba   : > { %v5625_v42 = vpack.c.bf16 %v4047_v24, %v4046_v38  ;;  %v3844_v8 = vadd.f32 %v3843_v35, %v3755_v22  ;;  %v7029_v62 = vpop.f32.mrf.mxu0  ;;  %v5565_v35 = vunpack.c.h.bf16 %v5703_v0  ;;  %v7032_v38 = vpop.f32.mrf.mxu1  ;;  %v5704_v0 = vld [vmem:[%s6290_s11 + $0x10] sm:$0xff]  }
 0x3bb   : > { %v3578_v58 = vpop.f32.mrf.mxu3 }
 0x3bc   : > { %5626 = vst [vmem:[%s7022_s16] sm:$0xff] %v5625_v42   ;;  %v3579_v18 = vadd.f32 %v3578_v58, %v6821_v41  ;;  %3887 = vmatmul.bf16.gmra.mxu2 %v4837_v16  ;;  %v3920_v11 = vmul.f32 0.1, %v3844_v8  ;;  %v5448_v42 = vld [vmem:[#allocation4 + $0x358] sm:$0xf0] }
 0x3bd   : > { %v4873_v27 = vor.u32 %v5448_v42, %v4872_v63  ;;  %v5457_v63 = vld [vmem:[#allocation4 + $0x3a0] sm:$0xf0] }
 0x3be   : > { %v3668_v4 = vadd.f32 %v6857_v13, %v3579_v18  ;;  %v3952_v46 = vmax.f32 %v3844_v8, %v3920_v11  ;;  %v4858_v8 = vld [vmem:[#allocation4 + $0x34c] sm:$0xf0] }
 0x3bf   : > { %v3848_v39 = vpop.f32.mrf.mxu2 }
 0x3c0   : > { %v3757_v36 = vadd.f32 %v6964_v55, %v3668_v4  ;;  %3620 = vmatmul.bf16.gmra.mxu3 %v4825_v1  ;;  %v4048_v22 = vadd.f32 %v5564_v59, %v3952_v46  ;;  %v4861_v1 = vor.u32 %v5442_v19, %v4858_v8  ;;  %v5451_v19 = vld [vmem:[#allocation4 + $0x374] sm:$0xf]  ;;  %v4894_v8 = vld [vmem:[#allocation4 + $0x394] sm:$0xf0] }
 0x3c2   : > { %v3846_v10 = vadd.f32 %v3845_v33, %v3757_v36  ;;  %v7038_v4 = vpop.f32.mrf.mxu0 }
 0x3c3   : > { %v3581_v26 = vpop.f32.mrf.mxu3 }
 0x3c4   : > { %v3921_v47 = vmul.f32 0.1, %v3846_v10  ;;  %v3582_v41 = vadd.f32 %v3581_v26, %v6825_v32  ;;  %v5568_v26 = vunpack.c.l.bf16 %v5704_v0 }
 0x3c6   : > { %v3953_v13 = vmax.f32 %v3846_v10, %v3921_v47  ;;  %v3671_v24 = vadd.f32 %v6866_v5, %v3582_v41 }
 0x3c7   : > { %v3850_v33 = vpop.f32.mrf.mxu2 }
 0x3c8   : > { %v4049_v55 = vadd.f32 %v5565_v35, %v3953_v13  ;;  %v3760_v25 = vadd.f32 %v6970_v50, %v3671_v24  ;;  %v7041_v50 = vpop.f32.mrf.mxu1  ;;  %v7228_v35 = vld [vmem:[#allocation33_spill] sm:$0xff] }
 0x3ca   : > { %v5630_v58 = vpack.c.bf16 %v4049_v55, %v4048_v22  ;;  %v3849_v32 = vadd.f32 %v3848_v39, %v3760_v25  ;;  %v7047_v24 = vpop.f32.mrf.mxu0 }
 0x3cb   : > { %v3583_v16 = vpop.f32.mrf.mxu3 }
 0x3cc   : > { %5718 = vst [vmem:[%s7022_s16 + $0x8] sm:$0xff] %v5630_v58   ;;  %v3584_v18 = vadd.f32 %v3583_v16, %v6833_v6  ;;  %3892 = vmatmul.bf16.gmra.mxu2 %v4873_v27  ;;  %v3922_v11 = vmul.f32 0.1, %v3849_v32  ;;  %v5569_v6 = vunpack.c.h.bf16 %v5704_v0 }
 0x3ce   : > { %v3673_v5 = vadd.f32 %v6875_v2, %v3584_v18  ;;  %v3954_v39 = vmax.f32 %v3849_v32, %v3922_v11  ;;  %v5705_v11 = vld [vmem:[%s6290_s11 + $0x18] sm:$0xff]  }
 0x3cf   : > { %v3853_v10 = vpop.f32.mrf.mxu2 }
 0x3d0   : > { %v3762_v36 = vadd.f32 %v6977_v20, %v3673_v5  ;;  %3625 = vmatmul.bf16.gmra.mxu3 %v4861_v1  ;;  %v4050_v22 = vadd.f32 %v5568_v26, %v3954_v39  ;;  %v7050_v42 = vpop.f32.mrf.mxu1  ;;  %v4897_v1 = vor.u32 %v5451_v19, %v4894_v8  ;;  %v5572_v39 = vunpack.c.l.bf16 %v5705_v11  ;;  %v4930_v19 = vld [vmem:[#allocation4 + $0x3dc] sm:$0xf0] }
 0x3d2   : > { %v3851_v59 = vadd.f32 %v3850_v33, %v3762_v36  ;;  %v4908_v33 = vld [vmem:[#allocation4 + $0x380] sm:$0xf] }
 0x3d3   : > { %v3586_v46 = vpop.f32.mrf.mxu3  ;;  %v4909_v27 = vor.u32 %v5457_v63, %v4908_v33  ;;  %v4944_v33 = vld [vmem:[#allocation4 + $0x3c8] sm:$0xf] }
 0x3d4   : > { %v3923_v47 = vmul.f32 0.1, %v3851_v59  ;;  %v3587_v41 = vadd.f32 %v3586_v46, %v7228_v35  ;;  %v5573_v35 = vunpack.c.h.bf16 %v5705_v11 }
 0x3d6   : > { %v3955_v13 = vmax.f32 %v3851_v59, %v3923_v47  ;;  %v3676_v2 = vadd.f32 %v6999_v12, %v3587_v41  ;;  %v7229_v12 = vld [vmem:[#allocation34_spill] sm:$0xff]  ;;  %v7057_v59 = vpop.f32.mrf.mxu0  ;;  %v7230_v41 = vld [vmem:[#allocation35_spill] sm:$0xff] }
 0x3d7   : > { %v3855_v25 = vpop.f32.mrf.mxu2 }
 0x3d8   : > { %v4051_v55 = vadd.f32 %v5569_v6, %v3955_v13  ;;  %v3765_v20 = vadd.f32 %v7002_v48, %v3676_v2  ;;  %v7059_v46 = vpop.f32.mrf.mxu1 }
 0x3da   : > { %v5635_v58 = vpack.c.bf16 %v4051_v55, %v4050_v22  ;;  %v3854_v32 = vadd.f32 %v3853_v10, %v3765_v20 }
 0x3db   : > { %v3588_v16 = vpop.f32.mrf.mxu3 }
 0x3dc   : > { %5719 = vst [vmem:[%s7022_s16 + $0x10] sm:$0xff] %v5635_v58   ;;  %v3589_v18 = vadd.f32 %v3588_v16, %v7229_v12  ;;  %3897 = vmatmul.bf16.gmra.mxu2 %v4909_v27  ;;  %v3924_v48 = vmul.f32 0.1, %v3854_v32  ;;  %v5460_v27 = vld [vmem:[#allocation4 + $0x3bc] sm:$0xf] }
 0x3de   : > { %v3678_v5 = vadd.f32 %v7007_v49, %v3589_v18  ;;  %v3956_v10 = vmax.f32 %v3854_v32, %v3924_v48  ;;  %v7064_v8 = vpop.f32.mrf.mxu0  ;;  %v4933_v18 = vor.u32 %v5460_v27, %v4930_v19  ;;  %v4966_v27 = vld [vmem:[#allocation4 + $0x424] sm:$0xf0] }
 0x3df   : > { %v3858_v36 = vpop.f32.mrf.mxu2 }
 0x3e0   : > { %v3767_v0 = vadd.f32 %v7011_v15, %v3678_v5  ;;  %3630 = vmatmul.bf16.gmra.mxu3 %v4897_v1  ;;  %v4052_v22 = vadd.f32 %v5572_v39, %v3956_v10  ;;  %v5706_v1 = vld [vmem:[%s6290_s11 + $0x20] sm:$0xff]  }
 0x3e2   : > { %v3856_v26 = vadd.f32 %v3855_v25, %v3767_v0  ;;  %v5466_v25 = vld [vmem:[#allocation4 + $0x3e8] sm:$0xf0] }
 0x3e3   : > { %v3591_v47 = vpop.f32.mrf.mxu3  ;;  %v4945_v16 = vor.u32 %v5466_v25, %v4944_v33 }
 0x3e4   : > { %v3925_v6 = vmul.f32 0.1, %v3856_v26  ;;  %v3592_v49 = vadd.f32 %v3591_v47, %v7230_v41 }
 0x3e6   : > { %v3957_v13 = vmax.f32 %v3856_v26, %v3925_v6  ;;  %v3681_v2 = vadd.f32 %v7016_v23, %v3592_v49  ;;  %v7068_v23 = vpop.f32.mrf.mxu1  ;;  %v5576_v26 = vunpack.c.l.bf16 %v5706_v1  ;;  %v7074_v6 = vpop.f32.mrf.mxu0  ;;  %v4980_v49 = vld [vmem:[#allocation4 + $0x410] sm:$0xf] }
 0x3e7   : > { %v3860_v20 = vpop.f32.mrf.mxu2 }
 0x3e8   : > { %v4053_v15 = vadd.f32 %v5573_v35, %v3957_v13  ;;  %v3770_v55 = vadd.f32 %v7018_v61, %v3681_v2 }
 0x3ea   : > { %v5640_v63 = vpack.c.bf16 %v4053_v15, %v4052_v22  ;;  %v3859_v32 = vadd.f32 %v3858_v36, %v3770_v55  ;;  %v5577_v36 = vunpack.c.h.bf16 %v5706_v1  ;;  %v5475_v15 = vld [vmem:[#allocation4 + $0x430] sm:$0xf0]  ;;  %v5008_v55 = vld [vmem:[#allocation4 + $0x450] sm:$0xf]  ;;  %v5707_v1 = vld [vmem:[%s6290_s11 + $0x28] sm:$0xff]  }
 0x3eb   : > { %v3593_v58 = vpop.f32.mrf.mxu3 }
 0x3ec   : > { %5720 = vst [vmem:[%s7022_s16 + $0x18] sm:$0xff] %v5640_v63   ;;  %v3594_v12 = vadd.f32 %v3593_v58, %v6861_v60  ;;  %3902 = vmatmul.bf16.gmra.mxu2 %v4945_v16  ;;  %v3926_v5 = vmul.f32 0.1, %v3859_v32  ;;  %v5010_v63 = vld [vmem:[#allocation4 + $0x474] sm:$0xf0]  ;;  %v4981_v16 = vor.u32 %v5475_v15, %v4980_v49 }
 0x3ed   : > { %v5484_v49 = vld [vmem:[#allocation4 + $0x478] sm:$0xf0] }
 0x3ee   : > { %v3683_v61 = vadd.f32 %v7029_v62, %v3594_v12  ;;  %v3958_v47 = vmax.f32 %v3859_v32, %v3926_v5  ;;  %v7077_v41 = vpop.f32.mrf.mxu1 }
 0x3ef   : > { %v3863_v11 = vpop.f32.mrf.mxu2 }
 0x3f0   : > { %v3772_v48 = vadd.f32 %v7032_v38, %v3683_v61  ;;  %3635 = vmatmul.bf16.gmra.mxu3 %v4933_v18  ;;  %v4054_v13 = vadd.f32 %v5576_v26, %v3958_v47  ;;  %v3697_v18 = vpop.f32.mrf.mxu0  ;;  %v5580_v47 = vunpack.c.l.bf16 %v5707_v1 }
 0x3f2   : > { %v3861_v0 = vadd.f32 %v3860_v20, %v3772_v48  ;;  %v5483_v20 = vld [vmem:[#allocation4 + $0x470] sm:$0xf0] }
 0x3f3   : > { %v3596_v39 = vpop.f32.mrf.mxu3  ;;  %v5009_v33 = vor.u32 %v5483_v20, %v5008_v55 }
 0x3f4   : > { %v3927_v10 = vmul.f32 0.1, %v3861_v0  ;;  %v3597_v60 = vadd.f32 %v3596_v39, %v6869_v40  ;;  %v5479_v40 = vld [vmem:[#allocation4 + $0x454] sm:$0xf] }
 0x3f5   : > { %3734 = vmatmul.bf16.gmra.mxu0 %v5009_v33  ;;  %v5013_v19 = vor.u32 %v5479_v40, %v5010_v63  ;;  %v5002_v40 = vld [vmem:[#allocation4 + $0x46c] sm:$0xf0] }
 0x3f6   : > { %v3959_v35 = vmax.f32 %v3861_v0, %v3927_v10  ;;  %v3686_v62 = vadd.f32 %v7038_v4, %v3597_v60  ;;  %v5469_v4 = vld [vmem:[#allocation4 + $0x404] sm:$0xf]  ;;  %v3786_v26 = vpop.f32.mrf.mxu1  ;;  %v5581_v60 = vunpack.c.h.bf16 %v5707_v1 }
 0x3f7   : > { %v3865_v22 = vpop.f32.mrf.mxu2  ;;  %3823 = vmatmul.bf16.gmra.mxu1 %v5013_v19  ;;  %v4969_v61 = vor.u32 %v5469_v4, %v4966_v27  ;;  %v5708_v4 = vld [vmem:[%s6290_s11 + $0x30] sm:$0xff]  }
 0x3f8   : > { %v4055_v38 = vadd.f32 %v5577_v36, %v3959_v35  ;;  %v3775_v2 = vadd.f32 %v7041_v50, %v3686_v62  ;;  %v5016_v62 = vld [vmem:[#allocation4 + $0x458] sm:$0xf]  ;;  %v3700_v15 = vpop.f32.mrf.mxu0  ;;  %v5585_v1 = vunpack.c.h.bf16 %v5708_v4 }
 0x3fa   : > { %v5645_v25 = vpack.c.bf16 %v4055_v38, %v4054_v13  ;;  %v3864_v32 = vadd.f32 %v3863_v11, %v3775_v2 }
 0x3fb   : > { %v3598_v58 = vpop.f32.mrf.mxu3 }
 0x3fc   : > { %5721 = vst [vmem:[%s7022_s16 + $0x20] sm:$0xff] %v5645_v25   ;;  %v3599_v12 = vadd.f32 %v3598_v58, %v6877_v43  ;;  %3907 = vmatmul.bf16.gmra.mxu2 %v4981_v16  ;;  %v3928_v5 = vmul.f32 0.1, %v3864_v32  ;;  %v5478_v25 = vld [vmem:[#allocation4 + $0x44c] sm:$0xf] }
 0x3fd   : > { %v5005_v58 = vor.u32 %v5478_v25, %v5002_v40 }
 0x3fe   : > { %v3688_v50 = vadd.f32 %v7047_v24, %v3599_v12  ;;  %v3960_v36 = vmax.f32 %v3864_v32, %v3928_v5  ;;  %v3789_v20 = vpop.f32.mrf.mxu1  ;;  %v5584_v32 = vunpack.c.l.bf16 %v5708_v4 }
 0x3ff   : > { %v3868_v0 = vpop.f32.mrf.mxu2 }
 0x400   : > { %v3777_v48 = vadd.f32 %v7050_v42, %v3688_v50  ;;  %3640 = vmatmul.bf16.gmra.mxu3 %v4969_v61  ;;  %v4056_v13 = vadd.f32 %v5580_v47, %v3960_v36  ;;  %v3702_v50 = vpop.f32.mrf.mxu0 }
 0x402   : > { %v3866_v39 = vadd.f32 %v3865_v22, %v3777_v48  ;;  %v5017_v22 = vor.u32 %v5484_v49, %v5016_v62  ;;  %v5709_v49 = vld [vmem:[%s6290_s11 + $0x38] sm:$0xff]  }
 0x403   : > { %v3601_v10 = vpop.f32.mrf.mxu3 }
 0x404   : > { %v3929_v11 = vmul.f32 0.1, %v3866_v39  ;;  %v3602_v43 = vadd.f32 %v3601_v10, %v6883_v53 }
 0x406   : > { %v3961_v35 = vmax.f32 %v3866_v39, %v3929_v11  ;;  %v3691_v24 = vadd.f32 %v7057_v59, %v3602_v43  ;;  %v3791_v48 = vpop.f32.mrf.mxu1 }
 0x407   : > { %v3870_v2 = vpop.f32.mrf.mxu2 }
 0x408   : > { %v4057_v38 = vadd.f32 %v5581_v60, %v3961_v35  ;;  %v3780_v42 = vadd.f32 %v7059_v46, %v3691_v24  ;;  %v3705_v35 = vpop.f32.mrf.mxu0 }
 0x40a   : > { %v5650_v55 = vpack.c.bf16 %v4057_v38, %v4056_v13  ;;  %v3869_v53 = vadd.f32 %v3868_v0, %v3780_v42 }
 0x40b   : > { %v3603_v33 = vpop.f32.mrf.mxu3 }
 0x40c   : > { %5722 = vst [vmem:[%s7022_s16 + $0x28] sm:$0xff] %v5650_v55   ;;  %v3604_v63 = vadd.f32 %v3603_v33, %v6889_v45  ;;  %3912 = vmatmul.bf16.gmra.mxu2 %v5017_v22  ;;  %v3930_v16 = vmul.f32 0.1, %v3869_v53  ;;  %v5589_v55 = vunpack.c.h.bf16 %v5709_v49 }
 0x40e   : > { %v3693_v59 = vadd.f32 %v7064_v8, %v3604_v63  ;;  %v3962_v61 = vmax.f32 %v3869_v53, %v3930_v16  ;;  %v3794_v62 = vpop.f32.mrf.mxu1 }
 0x40f   : > { %v3873_v27 = vpop.f32.mrf.mxu2 }
 0x410   : > { %v3782_v46 = vadd.f32 %v7068_v23, %v3693_v59  ;;  %3645 = vmatmul.bf16.gmra.mxu3 %v5005_v58  ;;  %v4058_v39 = vadd.f32 %v5584_v32, %v3962_v61  ;;  %v5710_v32 = vld [vmem:[%s6290_s11 + $0x40] sm:$0xff]  }
 0x412   : > { %v3871_v19 = vadd.f32 %v3870_v2, %v3782_v46 }
 0x413   : > { %v3606_v12 = vpop.f32.mrf.mxu3 }
 0x414   : > { %v3931_v5 = vmul.f32 0.1, %v3871_v19  ;;  %v3607_v45 = vadd.f32 %v3606_v12, %v6900_v37 }
 0x416   : > { %v3963_v8 = vmax.f32 %v3871_v19, %v3931_v5  ;;  %v3696_v0 = vadd.f32 %v7074_v6, %v3607_v45  ;;  %v5588_v6 = vunpack.c.l.bf16 %v5709_v49  ;;  %v3796_v58 = vpop.f32.mrf.mxu1 }
 0x417   : > { %v3875_v10 = vpop.f32.mrf.mxu2 }
 0x418   : > { %v4059_v47 = vadd.f32 %v5585_v1, %v3963_v8  ;;  %v3785_v23 = vadd.f32 %v7077_v41, %v3696_v0  ;;  %v5592_v1 = vunpack.c.l.bf16 %v5710_v32  ;;  %v5593_v0 = vunpack.c.h.bf16 %v5710_v32 }
 0x41a   : > { %v5655_v36 = vpack.c.bf16 %v4059_v47, %v4058_v39  ;;  %v3874_v60 = vadd.f32 %v3873_v27, %v3785_v23 }
 0x41b   : > { %v3608_v11 = vpop.f32.mrf.mxu3 }
 0x41c   : > { %5723 = vst [vmem:[%s7022_s16 + $0x30] sm:$0xff] %v5655_v36   ;;  %v3609_v43 = vadd.f32 %v3608_v11, %v6906_v31  ;;  %v3932_v37 = vmul.f32 0.1, %v3874_v60  ;;  %v3707_v31 = vpop.f32.mrf.mxu0 }
 0x41e   : > { %v3698_v24 = vadd.f32 %v3697_v18, %v3609_v43  ;;  %v3964_v22 = vmax.f32 %v3874_v60, %v3932_v37 }
 0x41f   : > { %v3878_v38 = vpop.f32.mrf.mxu2 }
 0x420   : > { %v3787_v13 = vadd.f32 %v3786_v26, %v3698_v24  ;;  %v4060_v53 = vadd.f32 %v5588_v6, %v3964_v22 }
 0x422   : > { %v3876_v42 = vadd.f32 %v3875_v10, %v3787_v13 }
 0x423   : > { %v3611_v2 = vpop.f32.mrf.mxu3 }
 0x424   : > { %v3933_v41 = vmul.f32 0.1, %v3876_v42  ;;  %v3612_v33 = vadd.f32 %v3611_v2, %v6914_v30  ;;  %v3710_v61 = vpop.f32.mrf.mxu0 }
 0x426   : > { %v3965_v25 = vmax.f32 %v3876_v42, %v3933_v41  ;;  %v3701_v40 = vadd.f32 %v3700_v15, %v3612_v33  ;;  %v3799_v15 = vpop.f32.mrf.mxu1 }
 0x427   : > { %v3880_v59 = vpop.f32.mrf.mxu2 }
 0x428   : > { %v4061_v18 = vadd.f32 %v5589_v55, %v3965_v25  ;;  %v3790_v63 = vadd.f32 %v3789_v20, %v3701_v40 }
 0x42a   : > { %v5660_v26 = vpack.c.bf16 %v4061_v18, %v4060_v53  ;;  %v3879_v4 = vadd.f32 %v3878_v38, %v3790_v63  ;;  %v5711_v38 = vld [vmem:[%s6290_s11 + $0x48] sm:$0xff]  }
 0x42b   : > { %v3613_v16 = vpop.f32.mrf.mxu3  ;;  %v5596_v2 = vunpack.c.l.bf16 %v5711_v38  ;;  %v5597_v41 = vunpack.c.h.bf16 %v5711_v38 }
 0x42c   : > { %5724 = vst [vmem:[%s7022_s16 + $0x38] sm:$0xff] %v5660_v26   ;;  %v3614_v46 = vadd.f32 %v3613_v16, %v6920_v52  ;;  %v3934_v19 = vmul.f32 0.1, %v3879_v4  ;;  %v3712_v60 = vpop.f32.mrf.mxu0 }
 0x42e   : > { %v3703_v27 = vadd.f32 %v3702_v50, %v3614_v46  ;;  %v3966_v20 = vmax.f32 %v3879_v4, %v3934_v19  ;;  %v3801_v37 = vpop.f32.mrf.mxu1  ;;  %v5712_v19 = vld [vmem:[%s6290_s11 + $0x50] sm:$0xff]  }
 0x42f   : > { %v3883_v30 = vpop.f32.mrf.mxu2 }
 0x430   : > { %v3792_v12 = vadd.f32 %v3791_v48, %v3703_v27  ;;  %v4062_v52 = vadd.f32 %v5592_v1, %v3966_v20 }
 0x432   : > { %v3881_v5 = vadd.f32 %v3880_v59, %v3792_v12 }
 0x433   : > { %v3616_v45 = vpop.f32.mrf.mxu3 }
 0x434   : > { %v3935_v8 = vmul.f32 0.1, %v3881_v5  ;;  %v3617_v39 = vadd.f32 %v3616_v45, %v6928_v28  ;;  %v3715_v33 = vpop.f32.mrf.mxu0  ;;  %v5601_v45 = vunpack.c.h.bf16 %v5712_v19 }
 0x436   : > { %v3967_v47 = vmax.f32 %v3881_v5, %v3935_v8  ;;  %v3706_v23 = vadd.f32 %v3705_v35, %v3617_v39 }
 0x437   : > { %v3885_v36 = vpop.f32.mrf.mxu2 }
 0x438   : > { %v4063_v50 = vadd.f32 %v5593_v0, %v3967_v47  ;;  %v3795_v10 = vadd.f32 %v3794_v62, %v3706_v23 }
 0x43a   : > { %v5665_v48 = vpack.c.bf16 %v4063_v50, %v4062_v52  ;;  %v3884_v43 = vadd.f32 %v3883_v30, %v3795_v10 }
 0x43b   : > { %v3618_v11 = vpop.f32.mrf.mxu3 }
 0x43c   : > { %5725 = vst [vmem:[%s7022_s16 + $0x40] sm:$0xff] %v5665_v48   ;;  %v3619_v24 = vadd.f32 %v3618_v11, %v6932_v7  ;;  %v3936_v13 = vmul.f32 0.1, %v3884_v43  ;;  %v3804_v7 = vpop.f32.mrf.mxu1  ;;  %v3717_v46 = vpop.f32.mrf.mxu0 }
 0x43e   : > { %v3708_v49 = vadd.f32 %v3707_v31, %v3619_v24  ;;  %v3968_v22 = vmax.f32 %v3884_v43, %v3936_v13  ;;  %v5713_v24 = vld [vmem:[%s6290_s11 + $0x58] sm:$0xff]  }
 0x43f   : > { %v3888_v28 = vpop.f32.mrf.mxu2  ;;  %v5604_v13 = vunpack.c.l.bf16 %v5713_v24 }
 0x440   : > { %v3797_v42 = vadd.f32 %v3796_v58, %v3708_v49  ;;  %v4064_v53 = vadd.f32 %v5596_v2, %v3968_v22 }
 0x442   : > { %v3886_v6 = vadd.f32 %v3885_v36, %v3797_v42 }
 0x443   : > { %v3621_v35 = vpop.f32.mrf.mxu3 }
 0x444   : > { %v3937_v62 = vmul.f32 0.1, %v3886_v6  ;;  %v3622_v55 = vadd.f32 %v3621_v35, %v6940_v44  ;;  %v3806_v12 = vpop.f32.mrf.mxu1  ;;  %v3720_v52 = vpop.f32.mrf.mxu0 }
 0x446   : > { %v3969_v25 = vmax.f32 %v3886_v6, %v3937_v62  ;;  %v3711_v40 = vadd.f32 %v3710_v61, %v3622_v55  ;;  %v5600_v61 = vunpack.c.l.bf16 %v5712_v19  ;;  %v5605_v6 = vunpack.c.h.bf16 %v5713_v24 }
 0x447   : > { %v3890_v63 = vpop.f32.mrf.mxu2 }
 0x448   : > { %v4065_v31 = vadd.f32 %v5597_v41, %v3969_v25  ;;  %v3800_v18 = vadd.f32 %v3799_v15, %v3711_v40 }
 0x44a   : > { %v5670_v59 = vpack.c.bf16 %v4065_v31, %v4064_v53  ;;  %v3889_v26 = vadd.f32 %v3888_v28, %v3800_v18 }
 0x44b   : > { %v3623_v58 = vpop.f32.mrf.mxu3 }
 0x44c   : > { %5726 = vst [vmem:[%s7022_s16 + $0x48] sm:$0xff] %v5670_v59   ;;  %v3624_v16 = vadd.f32 %v3623_v58, %v6946_v21  ;;  %v3938_v27 = vmul.f32 0.1, %v3889_v26  ;;  %v3809_v10 = vpop.f32.mrf.mxu1  ;;  %v3722_v35 = vpop.f32.mrf.mxu0 }
 0x44e   : > { %v3713_v4 = vadd.f32 %v3712_v60, %v3624_v16  ;;  %v3970_v1 = vmax.f32 %v3889_v26, %v3938_v27 }
 0x44f   : > { %v3893_v32 = vpop.f32.mrf.mxu2 }
 0x450   : > { %v3802_v44 = vadd.f32 %v3801_v37, %v3713_v4  ;;  %v4066_v21 = vadd.f32 %v5600_v61, %v3970_v1 }
 0x452   : > { %v3891_v30 = vadd.f32 %v3890_v63, %v3802_v44 }
 0x453   : > { %v3626_v5 = vpop.f32.mrf.mxu3 }
 0x454   : > { %v3939_v15 = vmul.f32 0.1, %v3891_v30  ;;  %v3627_v20 = vadd.f32 %v3626_v5, %v6952_v3  ;;  %v3811_v22 = vpop.f32.mrf.mxu1  ;;  %v3725_v63 = vpop.f32.mrf.mxu0 }
 0x456   : > { %v3971_v8 = vmax.f32 %v3891_v30, %v3939_v15  ;;  %v3716_v0 = vadd.f32 %v3715_v33, %v3627_v20 }
 0x457   : > { %v3895_v23 = vpop.f32.mrf.mxu2 }
 0x458   : > { %v4067_v39 = vadd.f32 %v5601_v45, %v3971_v8  ;;  %v3805_v47 = vadd.f32 %v3804_v7, %v3716_v0 }
 0x45a   : > { %v5675_v50 = vpack.c.bf16 %v4067_v39, %v4066_v21  ;;  %v3894_v48 = vadd.f32 %v3893_v32, %v3805_v47 }
 0x45b   : > { %v3628_v36 = vpop.f32.mrf.mxu3 }
 0x45c   : > { %5727 = vst [vmem:[%s7022_s16 + $0x50] sm:$0xff] %v5675_v50   ;;  %v3629_v11 = vadd.f32 %v3628_v36, %v6958_v17  ;;  %v3940_v43 = vmul.f32 0.1, %v3894_v48  ;;  %v3814_v59 = vpop.f32.mrf.mxu1  ;;  %v3727_v15 = vpop.f32.mrf.mxu0 }
 0x45e   : > { %v3718_v60 = vadd.f32 %v3717_v46, %v3629_v11  ;;  %v3972_v42 = vmax.f32 %v3894_v48, %v3940_v43 }
 0x45f   : > { %v3898_v3 = vpop.f32.mrf.mxu2 }
 0x460   : > { %v3807_v37 = vadd.f32 %v3806_v12, %v3718_v60  ;;  %v4068_v17 = vadd.f32 %v5604_v13, %v3972_v42 }
 0x462   : > { %v3896_v49 = vadd.f32 %v3895_v23, %v3807_v37 }
 0x463   : > { %v3631_v38 = vpop.f32.mrf.mxu3 }
 0x464   : > { %v3941_v28 = vmul.f32 0.1, %v3896_v49  ;;  %v3632_v2 = vadd.f32 %v3631_v38, %v6962_v51  ;;  %v5714_v51 = vld [vmem:[%s6290_s11 + $0x60] sm:$0xff]   ;;  %v3816_v45 = vpop.f32.mrf.mxu1 }
 0x465   : > { %v5608_v46 = vunpack.c.l.bf16 %v5714_v51  ;;  %v5609_v32 = vunpack.c.h.bf16 %v5714_v51 }
 0x466   : > { %v3973_v62 = vmax.f32 %v3896_v49, %v3941_v28  ;;  %v3721_v41 = vadd.f32 %v3720_v52, %v3632_v2  ;;  %v5715_v52 = vld [vmem:[%s6290_s11 + $0x68] sm:$0xff]  }
 0x467   : > { %v3900_v25 = vpop.f32.mrf.mxu2  ;;  %v5612_v48 = vunpack.c.l.bf16 %v5715_v52  ;;  %v5613_v24 = vunpack.c.h.bf16 %v5715_v52 }
 0x468   : > { %v4069_v55 = vadd.f32 %v5605_v6, %v3973_v62  ;;  %v3810_v33 = vadd.f32 %v3809_v10, %v3721_v41 }
 0x46a   : > { %v5680_v40 = vpack.c.bf16 %v4069_v55, %v4068_v17  ;;  %v3899_v53 = vadd.f32 %v3898_v3, %v3810_v33  ;;  %v5716_v33 = vld [vmem:[%s6290_s11 + $0x70] sm:$0xff]  }
 0x46b   : > { %v3633_v7 = vpop.f32.mrf.mxu3 }
 0x46c   : > { %5728 = vst [vmem:[%s7022_s16 + $0x58] sm:$0xff] %v5680_v40   ;;  %v3634_v31 = vadd.f32 %v3633_v7, %v6968_v57  ;;  %v3942_v58 = vmul.f32 0.1, %v3899_v53  ;;  %v3819_v36 = vpop.f32.mrf.mxu1  ;;  %v5616_v40 = vunpack.c.l.bf16 %v5716_v33 }
 0x46e   : > { %v3723_v18 = vadd.f32 %v3722_v35, %v3634_v31  ;;  %v3974_v19 = vmax.f32 %v3899_v53, %v3942_v58 }
 0x46f   : > { %v3903_v16 = vpop.f32.mrf.mxu2 }
 0x470   : > { %v3812_v26 = vadd.f32 %v3811_v22, %v3723_v18  ;;  %v4070_v57 = vadd.f32 %v5608_v46, %v3974_v19 }
 0x472   : > { %v3901_v4 = vadd.f32 %v3900_v25, %v3812_v26 }
 0x473   : > { %v3636_v27 = vpop.f32.mrf.mxu3 }
 0x474   : > { %v3943_v44 = vmul.f32 0.1, %v3901_v4  ;;  %v3637_v12 = vadd.f32 %v3636_v27, %v6974_v9  ;;  %v3730_v9 = vpop.f32.mrf.mxu0  ;;  %v3821_v62 = vpop.f32.mrf.mxu1 }
 0x476   : > { %v3975_v30 = vmax.f32 %v3901_v4, %v3943_v44  ;;  %v3726_v61 = vadd.f32 %v3725_v63, %v3637_v12  ;;  %v5617_v63 = vunpack.c.h.bf16 %v5716_v33 }
 0x477   : > { %v3905_v8 = vpop.f32.mrf.mxu2 }
 0x478   : > { %v4071_v5 = vadd.f32 %v5609_v32, %v3975_v30  ;;  %v3815_v1 = vadd.f32 %v3814_v59, %v3726_v61 }
 0x47a   : > { %v5685_v20 = vpack.c.bf16 %v4071_v5, %v4070_v57  ;;  %v3904_v21 = vadd.f32 %v3903_v16, %v3815_v1  ;;  %v5717_v5 = vld [vmem:[%s6290_s11 + $0x78] sm:$0xff]   ;;  %s6016_s11 = sshra.s32 %s4161_s26, 4  ;;  %s6017_s11 = int_to_ptr.hbm [resolvable:$true] %s6016_s11 }
 0x47b   : > { %v3638_v0 = vpop.f32.mrf.mxu3  ;;  %s6018_s24 = scalar_lea.hbm %s6017_s11, 128  ;;  %p6023_p8 = scmp.lt.s32.totalorder %s6017_s11, %s7178_s7 }
 0x47c   : > { %5729 = vst [vmem:[%s7022_s16 + $0x60] sm:$0xff] %v5685_v20   ;;  %v3639_v39 = vadd.f32 %v3638_v0, %v6980_v14  ;;  %v3944_v23 = vmul.f32 0.1, %v3904_v21  ;;  %v3732_v6 = vpop.f32.mrf.mxu0  ;;  %v3824_v58 = vpop.f32.mrf.mxu1  ;;  %v5620_v20 = vunpack.c.l.bf16 %v5717_v5  ;;  %p6019_p1 = scmp.ne.s32.totalorder %s6017_s11, %s6018_s24  ;;  %p6024_p10 = scmp.lt.s32.totalorder %s6022_s22, %s6018_s24 }
 0x47e   : > { %v3728_v47 = vadd.f32 %v3727_v15, %v3639_v39  ;;  %v3976_v60 = vmax.f32 %v3904_v21, %v3944_v23  ;;  %p6020_p2 = pnand %p6019_p1, %p6222_p5  ;;  %p6025_p11 = por %p6024_p10, %p6023_p8 }
 0x47f   : > { %v3908_v3 = vpop.f32.mrf.mxu2 }
 0x480   : > { %v3817_v50 = vadd.f32 %v3816_v45, %v3728_v47  ;;  %v4072_v14 = vadd.f32 %v5612_v48, %v3976_v60  ;;  %p6021_p4 = pneg %p6020_p2 }
 0x482   : > { %v3906_v10 = vadd.f32 %v3905_v8, %v3817_v50  ;;  %p6026_p12 = pnand %p6025_p11, %p6021_p4 }
 0x483   : > { %v3641_v11 = vpop.f32.mrf.mxu3 }
 0x484   : > { %v3945_v43 = vmul.f32 0.1, %v3906_v10  ;;  %v3642_v37 = vadd.f32 %v3641_v11, %v6984_v56  ;;  %v3735_v7 = vpop.f32.mrf.mxu0  ;;  %v3826_v61 = vpop.f32.mrf.mxu1 }
 0x486   : > { %v3977_v49 = vmax.f32 %v3906_v10, %v3945_v43  ;;  %v3731_v13 = vadd.f32 %v3730_v9, %v3642_v37 }
 0x487   : > { %v3910_v17 = vpop.f32.mrf.mxu2 }
 0x488   : > { %v4073_v38 = vadd.f32 %v5613_v24, %v3977_v49  ;;  %v3820_v42 = vadd.f32 %v3819_v36, %v3731_v13 }
 0x48a   : > { %v5690_v28 = vpack.c.bf16 %v4073_v38, %v4072_v14  ;;  %v3909_v35 = vadd.f32 %v3908_v3, %v3820_v42 }
 0x48b   : > { %v3643_v2 = vpop.f32.mrf.mxu3 }
 0x48c   : > { %5730 = vst [vmem:[%s7022_s16 + $0x68] sm:$0xff] %v5690_v28   ;;  %v3644_v22 = vadd.f32 %v3643_v2, %v6988_v34  ;;  %v3946_v55 = vmul.f32 0.1, %v3909_v35  ;;  %v3737_v12 = vpop.f32.mrf.mxu0 }
 0x48e   : > { %v3733_v41 = vadd.f32 %v3732_v6, %v3644_v22  ;;  %v3978_v31 = vmax.f32 %v3909_v35, %v3946_v55 }
 0x48f   : > { %v3913_v26 = vpop.f32.mrf.mxu2 }
 0x490   : > { %v3822_v56 = vadd.f32 %v3821_v62, %v3733_v41  ;;  %v4074_v16 = vadd.f32 %v5616_v40, %v3978_v31 }
 0x492   : > { %v3911_v25 = vadd.f32 %v3910_v17, %v3822_v56 }
 0x493   : > { %v3646_v53 = vpop.f32.mrf.mxu3 }
 0x494   : > { %v3947_v18 = vmul.f32 0.1, %v3911_v25  ;;  %v3647_v59 = vadd.f32 %v3646_v53, %v6992_v29 }
 0x496   : > { %v3979_v51 = vmax.f32 %v3911_v25, %v3947_v18  ;;  %v3736_v34 = vadd.f32 %v3735_v7, %v3647_v59 }
 0x497   : > { %v3915_v1 = vpop.f32.mrf.mxu2 }
 0x498   : > { %v4075_v4 = vadd.f32 %v5617_v63, %v3979_v51  ;;  %v3825_v46 = vadd.f32 %v3824_v58, %v3736_v34 }
 0x49a   : > { %v5695_v27 = vpack.c.bf16 %v4075_v4, %v4074_v16  ;;  %v3914_v44 = vadd.f32 %v3913_v26, %v3825_v46 }
 0x49b   : > { %v3648_v19 = vpop.f32.mrf.mxu3 }
 0x49c   : > { %5731 = vst [vmem:[%s7022_s16 + $0x70] sm:$0xff] %v5695_v27   ;;  %v3649_v32 = vadd.f32 %v3648_v19, %v6996_v54  ;;  %v3948_v29 = vmul.f32 0.1, %v3914_v44  ;;  %v5621_v54 = vunpack.c.h.bf16 %v5717_v5 }
 0x49e   : > { %v3738_v30 = vadd.f32 %v3737_v12, %v3649_v32  ;;  %v3980_v45 = vmax.f32 %v3914_v44, %v3948_v29 }
 0x4a0   : > { %v3827_v57 = vadd.f32 %v3826_v61, %v3738_v30  ;;  %v4076_v21 = vadd.f32 %v5620_v20, %v3980_v45 }
 0x4a2   : > { %v3916_v15 = vadd.f32 %v3915_v1, %v3827_v57 }
 0x4a4   : > { %v3949_v8 = vmul.f32 0.1, %v3916_v15 }
 0x4a6   : > { %v3981_v0 = vmax.f32 %v3916_v15, %v3949_v8 }
 0x4a8   : > { %v4077_v39 = vadd.f32 %v5621_v54, %v3981_v0 }
 0x4aa   : > { %v5700_v47 = vpack.c.bf16 %v4077_v39, %v4076_v21 }
 0x4ac   : > { %5732 = vst [vmem:[%s7022_s16 + $0x78] sm:$0xff] %v5700_v47  }
 0x4ad   : > { %6029 = shalt.err (!%p6026_p12)
}
 0x4ae   : > { %s6100_s5 = smov 64   ;;  %s6101_s9 = smov 4  }
 0x4af   : > { %5763 = dma.vmem_to_hbm [thread:$0]  (%p6222_p5), %s4159_s8, 2048, %s4161_s26, %s4143_s27, %s6100_s5, %s6100_s5, %s6101_s9  }
 0x4b0 PF: > { %s7232_s23 = sld [smem:[#allocation19_spill]]  ;;  %p7234_p13 = scmp.ge.s32.totalorder %s6092_s29, 2 }
 0x4b2   : > { %p5783_p0 = pnand %p7234_p13, %p6187_p6 }
 0x4b4   : > { %p5784_p3 = pneg %p5783_p0 }
 0x4b6   : > { %s4175_s3 = sand.u32 1, %s7232_s23  }
 0x4b7   : > { %s4176_s28 = scalar_lea.sflag [#allocation7], %s4175_s3 }
 0x4b8   : > { %6067 = dma.done.wait (%p5784_p3), %s4176_s28, 2048  }
 0x4b9   : > { %6069 = vsyncadd (%p5784_p3), %s4176_s28, 4294965248  ;;  %s27_s29 = sadd.s32 1, %s6092_s29   ;;  %s7235_s13 = sld [smem:[#allocation20_spill]] }
 0x4ba   : > { %p24_p7 = scmp.ge.s32.totalorder %s27_s29, 4   ;;  %s7236_s26 = sld [smem:[#allocation25_spill]] }
 0x4bb   : > { %s7237_s27 = sld [smem:[#allocation21_spill]]  ;;  %s7239_s24 = smov %s6076_s25 }
 0x4bc   : > { %s7238_s28 = sld [smem:[#allocation23_spill]]  ;;  %26 = sbr.rel (!%p24_p7) target bundleno = 13 (0xd), region = 132 }
 0x4bf   : > { %s7240_s25 = smov %s7235_s13 }
 0x4c1   :  { %4182 = vsyncpa [#allocation6], 1 }
 0x4c2   :  { %4184 = vsyncpa [#allocation6 + $0x1], 1 }
 0x4c3   :  { %4185 = vsyncpa [#allocation9], 1 }
 0x4c4   :  { %4187 = vsyncpa [#allocation9 + $0x1], 1 }
 0x4c5   :  { %4188 = vsyncpa [#allocation12], 1 }
 0x4c6   :  { %4189 = vsyncpa [#allocation7], 1 }
 0x4c7   :  { %4191 = vsyncpa [#allocation7 + $0x1], 1 }

// kernel: tpu_custom_call.1
= control target key start
LH: loop header
LB: loop body
LE: loop exit
PB: predicated region body
PF: predicated region fallthrough
CT: control target
= control target key end

     0   :  { %s7171_s0 = inlined_call_operand.hbm [shape: bf16[2,16,16,128], index: 0, kind: input, shape index: {}]   ;;  %s7172_s1 = inlined_call_operand.hbm [shape: bf16[2,16,16,128], index: 1, kind: input, shape index: {}]   ;;  %s7173_s2 = inlined_call_operand.hbm [shape: bf16[2,16,16,128], index: 2, kind: input, shape index: {}]   ;;  %s7174_s3 = inlined_call_operand.hbm [shape: bf16[128,128], index: 3, kind: input, shape index: {}]   ;;  %s7175_s4 = inlined_call_operand.vmem [shape: f32[1,128], index: 4, kind: input, shape index: {}]   ;;  %s7176_s5 = inlined_call_operand.hbm [shape: bf16[1152,128], index: 5, kind: input, shape index: {}]   ;;  %s7177_s6 = inlined_call_operand.vmem [shape: f32[1,128], index: 6, kind: input, shape index: {}]   ;;  %s7178_s7 = inlined_call_operand.hbm [shape: bf16[2,16,16,128], index: 7, kind: output, shape index: {}]  }
   0x1   :  { %7190 = sst [smem:[#allocation36_spill]] %s7172_s1 }
   0x2   :  { %7191 = sst [smem:[#allocation37_spill]] %s7174_s3 }
   0x3   :  { %7192 = sst [smem:[#allocation38_spill]] %s7176_s5 }
   0x4   :  { %12 = vsyncpa [#allocation6], 0 }
   0x5   :  { %14 = vsyncpa [#allocation6 + $0x1], 0 }
   0x6   :  { %15 = vsyncpa [#allocation9], 0 }
   0x7   :  { %17 = vsyncpa [#allocation9 + $0x1], 0 }
   0x8   :  { %18 = vsyncpa [#allocation12], 0 }
   0x9   :  { %19 = vsyncpa [#allocation7], 0 }
   0xa   :  { %21 = vsyncpa [#allocation7 + $0x1], 0  ;;  %s6142_s24 = smov 0   ;;  %s6144_s25 = smov 0  }
   0xb   :  { %s6146_s26 = smov 0   ;;  %s6148_s27 = smov 0  }
   0xc   :  { %s6150_s28 = smov 0   ;;  %s6152_s29 = smov 0  }
   0xd LB: > { %7193 = sst [smem:[#allocation19_spill]] %s6072_s24  ;;  %s6173_s30 = sadd.s32 4294967295, %s6092_s29   ;;  %s6092_s29 = sphi %s6152_s29, %s27_s29   ;;  %s6088_s28 = sphi %s6150_s28, %s7238_s28   ;;  %s6084_s27 = sphi %s6148_s27, %s7237_s27   ;;  %s6080_s26 = sphi %s6146_s26, %s7236_s26   ;;  %s6076_s25 = sphi %s6144_s25, %s7240_s25   ;;  %s6072_s24 = sphi %s6142_s24, %s7239_s24  }
   0xe   : > { %7194 = sst [smem:[#allocation20_spill]] %s6080_s26  ;;  %s4317_s8 = sadd.s32 4294967294, %s6092_s29  }
   0xf   : > { %7195 = sst [smem:[#allocation21_spill]] %s6088_s28  ;;  %p61_p0 = scmp.ne.s32.totalorder %s6076_s25, %s6072_s24 }
  0x10   : > { %p62_p1 = scmp.eq.s32.totalorder %s6173_s30, 0  ;;  %p243_p2 = scmp.eq.s32.totalorder %s6173_s30, 1 }
  0x11   : > { %p249_p3 = scmp.eq.s32.totalorder %s4317_s8, 1  ;;  %p4318_p5 = scmp.ge.s32.totalorder %s6092_s29, 1 }
  0x12   : > { %p6182_p4 = por %p62_p1, %p61_p0  ;;  %p256_p7 = scmp.lt.s32.totalorder %s6092_s29, 3 }
  0x13   : > { %p6187_p6 = por %p249_p3, %p61_p0  ;;  %s7199_s3 = sld [smem:[#allocation37_spill]] }
  0x14   : > { %p6195_p8 = pnand %p4318_p5, %p256_p7  ;;  %s6094_s15 = smov [#allocation11]  }
  0x15   : > { %s7197_s10 = scalar_select %p6187_p6, 1, 0 }
  0x16   : > { %p5765_p9 = pneg %p6195_p8  ;;  %s269_s16 = sshll.u32 %s6094_s15, 4  ;;  %s270_s16 = int_to_ptr.vmem [resolvable:$true] %s269_s16 }
  0x17   : > { %7198 = sst [smem:[#allocation22_spill]] %s7197_s10  ;;  %s7179_s18 = smov 64  }
  0x18   : > { %p6203_p10 = pnand %p5765_p9, %p62_p1  ;;  %s7181_s19 = smov 4  }
  0x19   : > { %s267_s13 = sshll.u32 %s7199_s3, 4  ;;  %s39_s20 = sadd.s32 1, %s6088_s28  ;;  %s268_s13 = int_to_ptr.hbm [resolvable:$true] %s267_s13 }
  0x1a   : > { %5768 = dma.hbm_to_vmem [thread:$0]  (!%p6203_p10), %s268_s13, 1024, %s270_s16, [#allocation12], %s7179_s18, %s7179_s18, %s7181_s19  }
  0x1b   : > { %p41_p12 = scmp.ge.s32.totalorder %s39_s20, 2  ;;  %s48_s21 = sadd.s32 1, %s6080_s26 }
  0x1c   : > { %p55_p13 = scmp.ne.s32.totalorder %s6080_s26, %s6076_s25  ;;  %p56_p0 = scmp.eq.s32.totalorder %s6092_s29, 0 }
  0x1d   : > { %s7242_s20 = smov (%p41_p12, %s39_s20), 0  ;;  %p5788_p7 = scmp.lt.s32.totalorder %s6092_s29, 2 }
  0x1e   : > { %7202 = sst [smem:[#allocation23_spill]] %s7242_s20  ;;  %p57_p3 = por %p56_p0, %p55_p13 }
  0x1f   : > { %p6222_p5 = por %p243_p2, %p55_p13  ;;  %s43_s23 = ssub.s32 %s6088_s28, %s7242_s20 }
  0x20   : > { %p46_p9 = scmp.eq.s32.totalorder %s43_s23, 0  ;;  %s6230_s8 = sand.u32 1, %s6080_s26  }
  0x21   : > { %s7203_s22 = scalar_select %p6222_p5, 1, 0 }
  0x22   : > { %s6233_s11 = sshll.u32 %s6088_s28, 7  ;;  %p6235_p11 = pnand %p5788_p7, %p57_p3 }
  0x23   : > { %7204 = sst [smem:[#allocation24_spill]] %s7203_s22  ;;  %s328_s15 = sand.u32 1, %s6092_s29  }
  0x24   : > { %s6240_s13 = scalar_select %p46_p9, %s6080_s26, %s48_s21  }
  0x25   : > { %s4325_s16 = sshll.u32 %s6230_s8, 3  ;;  %s7207_s1 = sld [smem:[#allocation36_spill]] }
  0x26   : > { %7206 = sst [smem:[#allocation25_spill]] %s6240_s13  ;;  %s332_s20 = scalar_lea.vmem [#allocation8], %s4325_s16 }
  0x27   : > { %s346_s28 = sshll.u32 %s332_s20, 4  ;;  %s329_s10 = scalar_lea.sflag [#allocation9], %s328_s15  ;;  %s347_s28 = int_to_ptr.vmem [resolvable:$true] %s346_s28 }
  0x28   : > { %s7208_s24 = smov 4   ;;  %s7209_s22 = smov 64  }
  0x29   : > { %s7210_s5 = sld [smem:[#allocation38_spill]]  ;;  %s360_s19 = scalar_lea.vmem [#allocation10], %s4325_s16 }
  0x2a   : > { %s4322_s15 = sshll.u32 %s6230_s8, 7  ;;  %s315_s13 = scalar_lea.hbm %s7171_s0, %s6233_s11 }
  0x2b   : > { %s343_s23 = scalar_lea.hbm %s7207_s1, %s6233_s11  ;;  %s6097_s1 = smov [#allocation13]  }
  0x2c   : > { %s344_s3 = sshll.u32 %s343_s23, 4  ;;  %s374_s23 = sshll.u32 %s360_s19, 4  ;;  %s345_s3 = int_to_ptr.hbm [resolvable:$true] %s344_s3  ;;  %s375_s23 = int_to_ptr.vmem [resolvable:$true] %s374_s23 }
  0x2d   : > { %5778 = dma.hbm_to_vmem [thread:$0]  (!%p6235_p11), %s345_s3, 128, %s347_s28, %s329_s10, %s7209_s22, %s7209_s22, %s7208_s24  }
  0x2e   : > { %s286_s20 = sshll.u32 %s6097_s1, 4  ;;  %s316_s21 = sshll.u32 %s315_s13, 4  ;;  %s287_s20 = int_to_ptr.vmem [resolvable:$true] %s286_s20  ;;  %s317_s21 = int_to_ptr.hbm [resolvable:$true] %s316_s21 }
  0x2f   : > { %s284_s18 = sshll.u32 %s7210_s5, 4  ;;  %s307_s5 = scalar_lea.vmem [#allocation5], %s4322_s15  ;;  %s285_s18 = int_to_ptr.hbm [resolvable:$true] %s284_s18 }
  0x30   : > { %5771 = dma.hbm_to_vmem [thread:$0]  (!%p6203_p10), %s285_s18, 9216, %s287_s20, [#allocation12], %s7209_s22, %s7209_s22, %s7208_s24  }
  0x31   : > { %s318_s16 = sshll.u32 %s307_s5, 4  ;;  %s304_s19 = scalar_lea.sflag [#allocation6], %s6230_s8  ;;  %s319_s16 = int_to_ptr.vmem [resolvable:$true] %s318_s16 }
  0x32   : > { %5775 = dma.hbm_to_vmem [thread:$0]  (!%p6235_p11), %s317_s21, 2048, %s319_s16, %s304_s19, %s7209_s22, %s7209_s22, %s7208_s24  }
  0x33   : > { %s5314_s1 = sadd.s32 120, %s6233_s11  ;;  %386 = sbr.rel (%p6195_p8) target bundleno = 1200 (0x4b0), region = 48 }
  0x34   : > { %s371_s18 = scalar_lea.hbm %s7173_s2, %s5314_s1 }
  0x35   : > { %s372_s20 = sshll.u32 %s371_s18, 4  ;;  %s373_s20 = int_to_ptr.hbm [resolvable:$true] %s372_s20 }
  0x36   : > { %5781 = dma.hbm_to_vmem [thread:$0]  (!%p6235_p11), %s373_s20, 128, %s375_s23, %s329_s10, %s7209_s22, %s7209_s22, %s7208_s24  }
  0x38   : > { %s6284_s5 = sand.u32 1, %s6076_s25  }
  0x39   : > { %s4332_s8 = sshll.u32 %s6284_s5, 7  ;;  %s389_s26 = scalar_lea.sflag [#allocation6], %s6284_s5 }
  0x3a   : > { %s6290_s11 = scalar_lea.vmem [#allocation5], %s4332_s8 }
  0x3b   : > { %6055 = dma.done.wait (%p6182_p4), %s389_s26, 2048  }
  0x3c   : > { %6057 = vsyncadd (%p6182_p4), %s389_s26, 4294965248  ;;  %s398_s24 = sand.u32 1, %s6173_s30   ;;  %s4333_s10 = sshll.u32 %s6284_s5, 3 }
  0x3d   : > { %s399_s14 = scalar_lea.sflag [#allocation9], %s398_s24  ;;  %s402_s22 = scalar_lea.vmem [#allocation8], %s4333_s10 }
  0x3e   : > { %6059 = dma.done.wait (%p6182_p4), %s399_s14, 256  }
  0x3f   : > { %6061 = vsyncadd (%p6182_p4), %s399_s14, 4294967040  ;;  %s6302_s12 = scalar_lea.vmem [#allocation10], %s4333_s10 }
  0x40   : > { %6063 = dma.done.wait (%p62_p1), [#allocation12], 10240  }
  0x41   : > { %6065 = vsyncadd (%p62_p1), [#allocation12], 4294957056  ;;  %v5340_v0 = vld [vmem:[#allocation11 + $0x38] sm:$0xff]  ;;  %v5339_v1 = vld [vmem:[#allocation11 + $0x30] sm:$0xff]  ;;  %v1012_v29 = vlaneseq  ;;  %v6098_v34 = vmov 0.0   ;;  %s7022_s16 = scalar_lea.vmem [#allocation14], %s4332_s8 }
  0x42   : > { %760 = vmatpush.bf16.msra.mxu0 %v5340_v0  ;;  %v474_v2 = vld [vmem:[%s402_s22] sm:$0xff]   ;;  %v5336_v6 = vld [vmem:[#allocation11 + $0x18] sm:$0xff]  ;;  %v5335_v8 = vld [vmem:[#allocation11 + $0x10] sm:$0xff]  ;;  %v1017_v35 = vrot.slane %v6098_v34, 7  ;;  %s5557_s19 = sshll.u32 %s6084_s27, 7  ;;  %s4158_s8 = sshll.u32 %s7022_s16, 4  ;;  %s4159_s8 = int_to_ptr.vmem [resolvable:$true] %s4158_s8 }
  0x43   : > { %476 = vst [vmem:[#allocation2] sm:$0xff] %v474_v2   ;;  %v478_v3 = vld [vmem:[%s6290_s11] sm:$0xff]   ;;  %v5338_v4 = vld [vmem:[#allocation11 + $0x28] sm:$0xff]  ;;  %v482_v12 = vld [vmem:[%s6290_s11 + $0x10] sm:$0xff]   ;;  %v6317_v32 = vshrl.u32 %v1012_v29, 7  ;;  %s4157_s18 = scalar_lea.hbm %s7178_s7, %s5557_s19  ;;  %s4143_s27 = scalar_lea.sflag [#allocation7], %s6284_s5 }
  0x44   : > { %511 = vst [vmem:[#allocation2 + $0x8] sm:$0xff] %v478_v3   ;;  %v5337_v5 = vld [vmem:[#allocation11 + $0x20] sm:$0xff]  ;;  %v480_v7 = vld [vmem:[%s6290_s11 + $0x8] sm:$0xff]   ;;  %v484_v14 = vld [vmem:[%s6290_s11 + $0x18] sm:$0xff]   ;;  %v1131_v38 = vpack.c.bf16 %v1017_v35, %v1017_v35  ;;  %s4160_s26 = sshll.u32 %s4157_s18, 4  ;;  %s6022_s22 = scalar_lea.hbm %s7178_s7, 256  ;;  %s4161_s26 = int_to_ptr.hbm [resolvable:$true] %s4160_s26 }
  0x45   : > { %513 = vst [vmem:[#allocation2 + $0x10] sm:$0xff] %v480_v7   ;;  %v5334_v9 = vld [vmem:[#allocation11 + $0x8] sm:$0xff]  ;;  %v5333_v10 = vld [vmem:[#allocation11] sm:$0xff]  ;;  %v490_v20 = vld [vmem:[%s6290_s11 + $0x30] sm:$0xff]   ;;  %vm1015_vm0 = vcmp.eq.s32.totalorder %v6317_v32, 0  ;;  %v6333_v58 = vadd.s32 8, %v6317_v32 }
  0x46   : > { %761 = vmatpush.bf16.msra.mxu0 %v5339_v1  ;;  %515 = vst [vmem:[#allocation2 + $0x18] sm:$0xff] %v482_v12   ;;  %v486_v16 = vld [vmem:[%s6290_s11 + $0x20] sm:$0xff]   ;;  %v488_v18 = vld [vmem:[%s6290_s11 + $0x28] sm:$0xff]   ;;  %v492_v22 = vld [vmem:[%s6290_s11 + $0x38] sm:$0xff]   ;;  %v1094_v36 = vsel %vm1015_vm0, 0.0, %v1017_v35  ;;  %vm1053_vm1 = vcmp.lt.s32.totalorder %v6317_v32, 1 }
  0x47   : > { %517 = vst [vmem:[#allocation2 + $0x20] sm:$0xff] %v484_v14   ;;  %v5492_v23 = vld [vmem:[#allocation13 + $0x38] sm:$0xff]  ;;  %v5491_v25 = vld [vmem:[#allocation13 + $0x30] sm:$0xff]  ;;  %v5490_v26 = vld [vmem:[#allocation13 + $0x28] sm:$0xff]  ;;  %v1130_v37 = vpack.c.bf16 %v1094_v36, %v1094_v36  ;;  %vm1395_vm2 = vcmp.eq.s32.totalorder %v6333_v58, 15  ;;  %vm1432_vm3 = vcmp.lt.s32.totalorder %v6317_v32, 7 }
  0x48   : > { %519 = vst [vmem:[#allocation2 + $0x28] sm:$0xff] %v486_v16   ;;  %3117 = vmatpush.bf16.msra.mxu1 %v5492_v23  ;;  %5733 = vmatpush.bf16.msra.mxu3 %v5492_v23  ;;  %v5489_v27 = vld [vmem:[#allocation13 + $0x20] sm:$0xff]  ;;  %v5488_v31 = vld [vmem:[#allocation13 + $0x18] sm:$0xff]  ;;  %v5487_v33 = vld [vmem:[#allocation13 + $0x10] sm:$0xff] }
  0x49   : > { %521 = vst [vmem:[#allocation2 + $0x30] sm:$0xff] %v488_v18   ;;  %v494_v28 = vld [vmem:[%s6290_s11 + $0x40] sm:$0xff]   ;;  %v5486_v39 = vld [vmem:[#allocation13 + $0x8] sm:$0xff]  ;;  %v6327_v48 = vld [vmem:[%s7175_s4] ss:$0 sm:$0xff] }
  0x4a   : > { %762 = vmatpush.bf16.msra.mxu0 %v5338_v4  ;;  %v5315_v11 = vld [vmem:[#allocation2] sm:$0xff]  ;;  %523 = vst [vmem:[#allocation2 + $0x38] sm:$0xff] %v490_v20   ;;  %v496_v41 = vld [vmem:[%s6290_s11 + $0x48] sm:$0xff]   ;;  %v5485_v43 = vld [vmem:[#allocation13] sm:$0xff] }
  0x4b   : > { %v5316_v13 = vld [vmem:[#allocation2 + $0x8] sm:$0xff]  ;;  %525 = vst [vmem:[#allocation2 + $0x40] sm:$0xff] %v492_v22   ;;  %v498_v53 = vld [vmem:[%s6290_s11 + $0x50] sm:$0xff]  }
  0x4c   : > { %v5317_v15 = vld [vmem:[#allocation2 + $0x10] sm:$0xff]  ;;  %3118 = vmatpush.bf16.msra.mxu1 %v5491_v25  ;;  %5734 = vmatpush.bf16.msra.mxu3 %v5491_v25  ;;  %527 = vst [vmem:[#allocation2 + $0x48] sm:$0xff] %v494_v28   ;;  %v500_v23 = vld [vmem:[%s6290_s11 + $0x58] sm:$0xff]  }
  0x4d   : > { %v5318_v17 = vld [vmem:[#allocation2 + $0x18] sm:$0xff]  ;;  %1166 = vst [vmem:[#allocation4] sm:$0xf] %v1130_v37 }
  0x4e   : > { %763 = vmatpush.bf16.msra.mxu0 %v5337_v5  ;;  %v5319_v19 = vld [vmem:[#allocation2 + $0x20] sm:$0xff]  ;;  %1167 = vst [vmem:[#allocation4 + $0x24] sm:$0xf] %v1131_v38 }
  0x4f   : > { %v5320_v21 = vld [vmem:[#allocation2 + $0x28] sm:$0xff]  ;;  %1260 = vst [vmem:[#allocation4 + $0x450] sm:$0xf] %v1130_v37 }
  0x50   : > { %v5321_v24 = vld [vmem:[#allocation2 + $0x30] sm:$0xff]  ;;  %3119 = vmatpush.bf16.msra.mxu1 %v5490_v26  ;;  %5735 = vmatpush.bf16.msra.mxu3 %v5490_v26  ;;  %1261 = vst [vmem:[#allocation4 + $0x474] sm:$0xf] %v1131_v38 }
  0x51   : > { %v5322_v30 = vld [vmem:[#allocation2 + $0x38] sm:$0xff]  ;;  %529 = vst [vmem:[#allocation2 + $0x50] sm:$0xff] %v496_v41  }
  0x52   : > { %764 = vmatpush.bf16.msra.mxu0 %v5336_v6  ;;  %v5323_v40 = vld [vmem:[#allocation2 + $0x40] sm:$0xff]  ;;  %531 = vst [vmem:[#allocation2 + $0x58] sm:$0xff] %v498_v53  }
  0x53   : > { %v5324_v49 = vld [vmem:[#allocation2 + $0x48] sm:$0xff]  ;;  %533 = vst [vmem:[#allocation2 + $0x60] sm:$0xff] %v500_v23  }
  0x54   : > { %3120 = vmatpush.bf16.msra.mxu1 %v5489_v27  ;;  %5736 = vmatpush.bf16.msra.mxu3 %v5489_v27  ;;  %v4444_v44 = vld [vmem:[#allocation4] sm:$0xf] }
  0x55   : > { %v5345_v45 = vld [vmem:[#allocation4 + $0x20] sm:$0xf0] }
  0x56   : > { %765 = vmatpush.bf16.msra.mxu0 %v5335_v8  ;;  %v4445_v46 = vor.u32 %v5345_v45, %v4444_v44 }
  0x58   : > { %3121 = vmatpush.bf16.msra.mxu1 %v5488_v31  ;;  %5737 = vmatpush.bf16.msra.mxu3 %v5488_v31  ;;  %v5325_v2 = vld [vmem:[#allocation2 + $0x50] sm:$0xff] }
  0x59   : > { %v5326_v31 = vld [vmem:[#allocation2 + $0x58] sm:$0xff] }
  0x5a   : > { %766 = vmatpush.bf16.msra.mxu0 %v5334_v9 }
  0x5c   : > { %3122 = vmatpush.bf16.msra.mxu1 %v5487_v33  ;;  %5738 = vmatpush.bf16.msra.mxu3 %v5487_v33 }
  0x5e   : > { %767 = vmatpush.bf16.msra.mxu0 %v5333_v10 }
  0x60   : > { %3123 = vmatpush.bf16.msra.mxu1 %v5486_v39  ;;  %5739 = vmatpush.bf16.msra.mxu3 %v5486_v39 }
  0x61   : > { %768 = vmatmul.bf16.vlgmr.msra.gmra.mxu0 %v5315_v11 }
  0x64   : > { %3124 = vmatpush.bf16.msra.mxu1 %v5485_v43  ;;  %5740 = vmatpush.bf16.msra.mxu3 %v5485_v43 }
  0x67   : > { %3125 = vmatmul.bf16.vlgmr.msra.gmra.mxu1 %v4445_v46 }
  0x71   : > { %773 = vmatmul.bf16.gmra.mxu0 %v5316_v13 }
  0x81   : > { %778 = vmatmul.bf16.gmra.mxu0 %v5317_v15 }
  0x91   : > { %783 = vmatmul.bf16.gmra.mxu0 %v5318_v17 }
  0xa1   : > { %788 = vmatmul.bf16.gmra.mxu0 %v5319_v19 }
  0xb1   : > { %793 = vmatmul.bf16.gmra.mxu0 %v5320_v21 }
  0xc1   : > { %798 = vmatmul.bf16.gmra.mxu0 %v5321_v24 }
  0xd1   : > { %803 = vmatmul.bf16.gmra.mxu0 %v5322_v30 }
  0xde   : > { %v769_v42 = vpop.f32.mrf.mxu0 }
  0xe1   : > { %808 = vmatmul.bf16.gmra.mxu0 %v5323_v40 }
  0xe6   : > { %v771_v47 = vpop.f32.mrf.mxu0 }
  0xee   : > { %v774_v50 = vpop.f32.mrf.mxu0 }
  0xef   : > { %v775_v51 = vadd.f32 %v6327_v48, %v774_v50 }
  0xf1   : > { %v861_v52 = vmul.f32 0.1, %v775_v51  ;;  %813 = vmatmul.bf16.gmra.mxu0 %v5324_v49 }
  0xf3   : > { %v897_v54 = vmax.f32 %v775_v51, %v861_v52 }
  0xf5   : > { %v1264_v55 = vpack.c.bf16 %v897_v54, %v897_v54  ;;  %v1018_v61 = vrot.slane %v897_v54, 7  ;;  %v1397_v62 = vrot.slane %v897_v54, 1 }
  0xf6   : > { %v776_v56 = vpop.f32.mrf.mxu0 }
  0xf7   : > { %1300 = vst [vmem:[#allocation4 + $0x4c] sm:$0xf] %v1264_v55  ;;  %v777_v57 = vadd.f32 %v6327_v48, %v776_v56 }
  0xf8   : > { %1330 = vst [vmem:[#allocation4 + $0x10] sm:$0xf] %v1264_v55 }
  0xf9   : > { %v862_v59 = vmul.f32 0.1, %v777_v57 }
  0xfb   : > { %v898_v60 = vmax.f32 %v777_v57, %v862_v59 }
  0xfd   : > { %v1036_v63 = vrot.slane %v898_v60, 7  ;;  %v1265_v0 = vpack.c.bf16 %v898_v60, %v898_v60  ;;  %v1415_v1 = vrot.slane %v898_v60, 1 }
  0xfe   : > { %v779_v3 = vpop.f32.mrf.mxu0 }
  0xff   : > { %v1055_v4 = vsel %vm1053_vm1, %v1018_v61, %v1036_v63  ;;  %v1073_v5 = vsel %vm1053_vm1, %v1036_v63, %v1018_v61  ;;  %1301 = vst [vmem:[#allocation4 + $0x70] sm:$0xf] %v1265_v0  ;;  %v1434_v6 = vsel %vm1432_vm3, %v1397_v62, %v1415_v1  ;;  %v1452_v7 = vsel %vm1432_vm3, %v1415_v1, %v1397_v62  ;;  %v5327_v62 = vld [vmem:[#allocation2 + $0x60] sm:$0xff] }
 0x100   : > { %v1096_v8 = vsel %vm1015_vm0, 0.0, %v1073_v5  ;;  %v1133_v9 = vpack.c.bf16 %v1055_v4, %v1055_v4  ;;  %1331 = vst [vmem:[#allocation4 + $0x34] sm:$0xf] %v1265_v0  ;;  %v1476_v10 = vsel %vm1395_vm2, 0.0, %v1452_v7  ;;  %v780_v12 = vadd.f32 %v6327_v48, %v779_v3 }
 0x101   : > { %v1132_v11 = vpack.c.bf16 %v1096_v8, %v1096_v8  ;;  %818 = vmatmul.bf16.gmra.mxu0 %v5325_v2  ;;  %v1511_v13 = vpack.c.bf16 %v1434_v6, %v1434_v6  ;;  %v1512_v14 = vpack.c.bf16 %v1476_v10, %v1476_v10 }
 0x102   : > { %1169 = vst [vmem:[#allocation4 + $0x6c] sm:$0xf] %v1133_v9  ;;  %v863_v15 = vmul.f32 0.1, %v780_v12 }
 0x103   : > { %1168 = vst [vmem:[#allocation4 + $0x48] sm:$0xf] %v1132_v11 }
 0x104   : > { %1198 = vst [vmem:[#allocation4 + $0xc] sm:$0xf] %v1132_v11  ;;  %v899_v16 = vmax.f32 %v780_v12, %v863_v15 }
 0x105   : > { %1199 = vst [vmem:[#allocation4 + $0x30] sm:$0xf] %v1133_v9 }
 0x106   : > { %1547 = vst [vmem:[#allocation4 + $0x50] sm:$0xf] %v1511_v13  ;;  %v781_v17 = vpop.f32.mrf.mxu0  ;;  %v1266_v18 = vpack.c.bf16 %v899_v16, %v899_v16  ;;  %v1019_v26 = vrot.slane %v899_v16, 7  ;;  %v1398_v27 = vrot.slane %v899_v16, 1 }
 0x107   : > { %1548 = vst [vmem:[#allocation4 + $0x74] sm:$0xf] %v1512_v14  ;;  %v782_v19 = vadd.f32 %v6327_v48, %v781_v17 }
 0x108   : > { %1577 = vst [vmem:[#allocation4 + $0x14] sm:$0xf] %v1511_v13 }
 0x109   : > { %1578 = vst [vmem:[#allocation4 + $0x38] sm:$0xf] %v1512_v14  ;;  %v864_v20 = vmul.f32 0.1, %v782_v19  ;;  %v5354_v21 = vld [vmem:[#allocation4 + $0x68] sm:$0xf0] }
 0x10a   : > { %1302 = vst [vmem:[#allocation4 + $0x94] sm:$0xf] %v1266_v18  ;;  %v4480_v22 = vld [vmem:[#allocation4 + $0x48] sm:$0xf] }
 0x10b   : > { %1332 = vst [vmem:[#allocation4 + $0x58] sm:$0xf] %v1266_v18  ;;  %v900_v24 = vmax.f32 %v782_v19, %v864_v20  ;;  %v4481_v25 = vor.u32 %v5354_v21, %v4480_v22 }
 0x10c   : > { %1362 = vst [vmem:[#allocation4 + $0x1c] sm:$0xf] %v1266_v18 }
 0x10d   : > { %v1037_v28 = vrot.slane %v900_v24, 7  ;;  %v1267_v29 = vpack.c.bf16 %v900_v24, %v900_v24  ;;  %v1416_v30 = vrot.slane %v900_v24, 1  ;;  %3130 = vmatmul.bf16.gmra.mxu1 %v4481_v25 }
 0x10e   : > { %v784_v33 = vpop.f32.mrf.mxu0 }
 0x10f   : > { %v1056_v35 = vsel %vm1053_vm1, %v1019_v26, %v1037_v28  ;;  %v1074_v36 = vsel %vm1053_vm1, %v1037_v28, %v1019_v26  ;;  %1303 = vst [vmem:[#allocation4 + $0xb8] sm:$0xf] %v1267_v29  ;;  %v1453_v37 = vsel %vm1432_vm3, %v1416_v30, %v1398_v27  ;;  %v1435_v41 = vsel %vm1432_vm3, %v1398_v27, %v1416_v30 }
 0x110   : > { %v1098_v38 = vsel %vm1015_vm0, 0.0, %v1074_v36  ;;  %v1135_v39 = vpack.c.bf16 %v1056_v35, %v1056_v35  ;;  %1333 = vst [vmem:[#allocation4 + $0x7c] sm:$0xf] %v1267_v29  ;;  %v785_v42 = vadd.f32 %v6327_v48, %v784_v33  ;;  %v1478_v43 = vsel %vm1395_vm2, 0.0, %v1453_v37 }
 0x111   : > { %v1134_v40 = vpack.c.bf16 %v1098_v38, %v1098_v38  ;;  %1363 = vst [vmem:[#allocation4 + $0x40] sm:$0xf] %v1267_v29  ;;  %823 = vmatmul.bf16.gmra.mxu0 %v5326_v31  ;;  %v1513_v45 = vpack.c.bf16 %v1435_v41, %v1435_v41  ;;  %v1514_v46 = vpack.c.bf16 %v1478_v43, %v1478_v43 }
 0x112   : > { %1171 = vst [vmem:[#allocation4 + $0xb4] sm:$0xf] %v1135_v39  ;;  %v865_v44 = vmul.f32 0.1, %v785_v42 }
 0x113   : > { %1170 = vst [vmem:[#allocation4 + $0x90] sm:$0xf] %v1134_v40 }
 0x114   : > { %1200 = vst [vmem:[#allocation4 + $0x54] sm:$0xf] %v1134_v40  ;;  %v901_v47 = vmax.f32 %v785_v42, %v865_v44 }
 0x115   : > { %1201 = vst [vmem:[#allocation4 + $0x78] sm:$0xf] %v1135_v39 }
 0x116   : > { %1230 = vst [vmem:[#allocation4 + $0x18] sm:$0xf] %v1134_v40  ;;  %v786_v49 = vpop.f32.mrf.mxu0  ;;  %v1268_v53 = vpack.c.bf16 %v901_v47, %v901_v47  ;;  %v1020_v57 = vrot.slane %v901_v47, 7  ;;  %v1399_v0 = vrot.slane %v901_v47, 1 }
 0x117   : > { %1231 = vst [vmem:[#allocation4 + $0x3c] sm:$0xf] %v1135_v39  ;;  %v787_v50 = vadd.f32 %v6327_v48, %v786_v49 }
 0x118   : > { %1549 = vst [vmem:[#allocation4 + $0x98] sm:$0xf] %v1513_v45 }
 0x119   : > { %1550 = vst [vmem:[#allocation4 + $0xbc] sm:$0xf] %v1514_v46  ;;  %v866_v51 = vmul.f32 0.1, %v787_v50  ;;  %v5363_v52 = vld [vmem:[#allocation4 + $0xb0] sm:$0xf0] }
 0x11a   : > { %1579 = vst [vmem:[#allocation4 + $0x5c] sm:$0xf] %v1513_v45  ;;  %v4516_v54 = vld [vmem:[#allocation4 + $0x90] sm:$0xf] }
 0x11b   : > { %1580 = vst [vmem:[#allocation4 + $0x80] sm:$0xf] %v1514_v46  ;;  %v902_v55 = vmax.f32 %v787_v50, %v866_v51  ;;  %v4517_v56 = vor.u32 %v5363_v52, %v4516_v54 }
 0x11c   : > { %1609 = vst [vmem:[#allocation4 + $0x20] sm:$0xf] %v1513_v45 }
 0x11d   : > { %1610 = vst [vmem:[#allocation4 + $0x44] sm:$0xf] %v1514_v46  ;;  %v1038_v59 = vrot.slane %v902_v55, 7  ;;  %v1269_v60 = vpack.c.bf16 %v902_v55, %v902_v55  ;;  %v1417_v61 = vrot.slane %v902_v55, 1  ;;  %3135 = vmatmul.bf16.gmra.mxu1 %v4517_v56 }
 0x11e   : > { %1304 = vst [vmem:[#allocation4 + $0xdc] sm:$0xf] %v1268_v53  ;;  %v789_v63 = vpop.f32.mrf.mxu0 }
 0x11f   : > { %1334 = vst [vmem:[#allocation4 + $0xa0] sm:$0xf] %v1268_v53  ;;  %v1057_v1 = vsel %vm1053_vm1, %v1020_v57, %v1038_v59  ;;  %v1075_v2 = vsel %vm1053_vm1, %v1038_v59, %v1020_v57  ;;  %v1454_v6 = vsel %vm1432_vm3, %v1417_v61, %v1399_v0  ;;  %v790_v7 = vadd.f32 %v6327_v48, %v789_v63 }
 0x120   : > { %1364 = vst [vmem:[#allocation4 + $0x64] sm:$0xf] %v1268_v53  ;;  %v1100_v3 = vsel %vm1015_vm0, 0.0, %v1075_v2  ;;  %v1137_v4 = vpack.c.bf16 %v1057_v1, %v1057_v1  ;;  %v1436_v8 = vsel %vm1432_vm3, %v1399_v0, %v1417_v61  ;;  %v1480_v9 = vsel %vm1395_vm2, 0.0, %v1454_v6 }
 0x121   : > { %v1136_v5 = vpack.c.bf16 %v1100_v3, %v1100_v3  ;;  %1305 = vst [vmem:[#allocation4 + $0x100] sm:$0xf] %v1269_v60  ;;  %828 = vmatmul.bf16.gmra.mxu0 %v5327_v62  ;;  %v867_v10 = vmul.f32 0.1, %v790_v7  ;;  %v1515_v11 = vpack.c.bf16 %v1436_v8, %v1436_v8  ;;  %v1516_v13 = vpack.c.bf16 %v1480_v9, %v1480_v9 }
 0x122   : > { %1173 = vst [vmem:[#allocation4 + $0xfc] sm:$0xf] %v1137_v4 }
 0x123   : > { %1172 = vst [vmem:[#allocation4 + $0xd8] sm:$0xf] %v1136_v5  ;;  %v903_v15 = vmax.f32 %v790_v7, %v867_v10 }
 0x124   : > { %1202 = vst [vmem:[#allocation4 + $0x9c] sm:$0xf] %v1136_v5 }
 0x125   : > { %1203 = vst [vmem:[#allocation4 + $0xc0] sm:$0xf] %v1137_v4  ;;  %v1270_v21 = vpack.c.bf16 %v903_v15, %v903_v15  ;;  %v1021_v22 = vrot.slane %v903_v15, 7  ;;  %v1400_v30 = vrot.slane %v903_v15, 1 }
 0x126   : > { %1232 = vst [vmem:[#allocation4 + $0x60] sm:$0xf] %v1136_v5  ;;  %v791_v12 = vpop.f32.mrf.mxu0  ;;  %v5500_v5 = vld [vmem:[#allocation13 + $0x78] sm:$0xff] }
 0x127   : > { %1233 = vst [vmem:[#allocation4 + $0x84] sm:$0xf] %v1137_v4  ;;  %v792_v14 = vadd.f32 %v6327_v48, %v791_v12  ;;  %5741 = vmatpush.bf16.msra.mxu2 %v5500_v5  ;;  %3206 = vmatpush.bf16.msrb.mxu0 %v5500_v5 }
 0x128   : > { %1335 = vst [vmem:[#allocation4 + $0xc4] sm:$0xf] %v1269_v60 }
 0x129   : > { %1365 = vst [vmem:[#allocation4 + $0x88] sm:$0xf] %v1269_v60  ;;  %v868_v16 = vmul.f32 0.1, %v792_v14  ;;  %v5372_v17 = vld [vmem:[#allocation4 + $0xf8] sm:$0xf0] }
 0x12a   : > { %1551 = vst [vmem:[#allocation4 + $0xe0] sm:$0xf] %v1515_v11  ;;  %v4552_v18 = vld [vmem:[#allocation4 + $0xd8] sm:$0xf]  ;;  %v502_v60 = vld [vmem:[%s6290_s11 + $0x60] sm:$0xff]  }
 0x12b   : > { %1552 = vst [vmem:[#allocation4 + $0x104] sm:$0xf] %v1516_v13  ;;  %v904_v19 = vmax.f32 %v792_v14, %v868_v16  ;;  %v4553_v20 = vor.u32 %v5372_v17, %v4552_v18 }
 0x12c   : > { %1581 = vst [vmem:[#allocation4 + $0xa4] sm:$0xf] %v1515_v11 }
 0x12d   : > { %1582 = vst [vmem:[#allocation4 + $0xc8] sm:$0xf] %v1516_v13  ;;  %v1039_v23 = vrot.slane %v904_v19, 7  ;;  %3140 = vmatmul.bf16.gmra.mxu1 %v4553_v20  ;;  %v1418_v27 = vrot.slane %v904_v19, 1  ;;  %v1271_v36 = vpack.c.bf16 %v904_v19, %v904_v19 }
 0x12e   : > { %1611 = vst [vmem:[#allocation4 + $0x68] sm:$0xf] %v1515_v11  ;;  %v794_v24 = vpop.f32.mrf.mxu0  ;;  %v5499_v11 = vld [vmem:[#allocation13 + $0x70] sm:$0xff] }
 0x12f   : > { %1612 = vst [vmem:[#allocation4 + $0x8c] sm:$0xf] %v1516_v13  ;;  %v1058_v25 = vsel %vm1053_vm1, %v1021_v22, %v1039_v23  ;;  %v1076_v26 = vsel %vm1053_vm1, %v1039_v23, %v1021_v22  ;;  %v795_v33 = vadd.f32 %v6327_v48, %v794_v24  ;;  %v1455_v35 = vsel %vm1432_vm3, %v1418_v27, %v1400_v30 }
 0x130   : > { %1306 = vst [vmem:[#allocation4 + $0x124] sm:$0xf] %v1270_v21  ;;  %v1102_v28 = vsel %vm1015_vm0, 0.0, %v1076_v26  ;;  %v1139_v29 = vpack.c.bf16 %v1058_v25, %v1058_v25  ;;  %v1437_v37 = vsel %vm1432_vm3, %v1400_v30, %v1418_v27  ;;  %v1482_v39 = vsel %vm1395_vm2, 0.0, %v1455_v35  ;;  %5742 = vmatpush.bf16.msra.mxu2 %v5499_v11  ;;  %3207 = vmatpush.bf16.msrb.mxu0 %v5499_v11  ;;  %v5498_v26 = vld [vmem:[#allocation13 + $0x68] sm:$0xff] }
 0x131   : > { %1336 = vst [vmem:[#allocation4 + $0xe8] sm:$0xf] %v1270_v21  ;;  %v1138_v31 = vpack.c.bf16 %v1102_v28, %v1102_v28  ;;  %v869_v38 = vmul.f32 0.1, %v795_v33  ;;  %v1517_v42 = vpack.c.bf16 %v1437_v37, %v1437_v37  ;;  %v1518_v43 = vpack.c.bf16 %v1482_v39, %v1482_v39  ;;  %v504_v28 = vld [vmem:[%s6290_s11 + $0x68] sm:$0xff]   ;;  %v5497_v37 = vld [vmem:[#allocation13 + $0x60] sm:$0xff] }
 0x132   : > { %1366 = vst [vmem:[#allocation4 + $0xac] sm:$0xf] %v1270_v21 }
 0x133   : > { %1174 = vst [vmem:[#allocation4 + $0x120] sm:$0xf] %v1138_v31  ;;  %v905_v44 = vmax.f32 %v795_v33, %v869_v38 }
 0x134   : > { %1175 = vst [vmem:[#allocation4 + $0x144] sm:$0xf] %v1139_v29  ;;  %5743 = vmatpush.bf16.msra.mxu2 %v5498_v26  ;;  %3208 = vmatpush.bf16.msrb.mxu0 %v5498_v26 }
 0x135   : > { %1204 = vst [vmem:[#allocation4 + $0xe4] sm:$0xf] %v1138_v31  ;;  %v1022_v51 = vrot.slane %v905_v44, 7  ;;  %v1272_v53 = vpack.c.bf16 %v905_v44, %v905_v44  ;;  %v1401_v0 = vrot.slane %v905_v44, 1 }
 0x136   : > { %1205 = vst [vmem:[#allocation4 + $0x108] sm:$0xf] %v1139_v29  ;;  %v796_v40 = vpop.f32.mrf.mxu0 }
 0x137   : > { %1234 = vst [vmem:[#allocation4 + $0xa8] sm:$0xf] %v1138_v31  ;;  %v797_v41 = vadd.f32 %v6327_v48, %v796_v40 }
 0x138   : > { %1235 = vst [vmem:[#allocation4 + $0xcc] sm:$0xf] %v1139_v29  ;;  %5744 = vmatpush.bf16.msra.mxu2 %v5497_v37  ;;  %3209 = vmatpush.bf16.msrb.mxu0 %v5497_v37 }
 0x139   : > { %1307 = vst [vmem:[#allocation4 + $0x148] sm:$0xf] %v1271_v36  ;;  %v870_v45 = vmul.f32 0.1, %v797_v41 }
 0x13a   : > { %1337 = vst [vmem:[#allocation4 + $0x10c] sm:$0xf] %v1271_v36  ;;  %v4588_v46 = vld [vmem:[#allocation4 + $0x120] sm:$0xf] }
 0x13b   : > { %1367 = vst [vmem:[#allocation4 + $0xd0] sm:$0xf] %v1271_v36  ;;  %v906_v47 = vmax.f32 %v797_v41, %v870_v45  ;;  %v5381_v49 = vld [vmem:[#allocation4 + $0x140] sm:$0xf0]  ;;  %v5496_v41 = vld [vmem:[#allocation13 + $0x58] sm:$0xff] }
 0x13c   : > { %1553 = vst [vmem:[#allocation4 + $0x128] sm:$0xf] %v1517_v42  ;;  %v4589_v50 = vor.u32 %v5381_v49, %v4588_v46  ;;  %5745 = vmatpush.bf16.msra.mxu2 %v5496_v41  ;;  %3210 = vmatpush.bf16.msrb.mxu0 %v5496_v41 }
 0x13d   : > { %1554 = vst [vmem:[#allocation4 + $0x14c] sm:$0xf] %v1518_v43  ;;  %v1040_v52 = vrot.slane %v906_v47, 7  ;;  %v1419_v62 = vrot.slane %v906_v47, 1  ;;  %v1273_v6 = vpack.c.bf16 %v906_v47, %v906_v47  ;;  %v5495_v47 = vld [vmem:[#allocation13 + $0x50] sm:$0xff] }
 0x13e   : > { %1583 = vst [vmem:[#allocation4 + $0xec] sm:$0xf] %v1517_v42  ;;  %3145 = vmatmul.bf16.gmra.mxu1 %v4589_v50  ;;  %v799_v54 = vpop.f32.mrf.mxu0 }
 0x13f   : > { %1584 = vst [vmem:[#allocation4 + $0x110] sm:$0xf] %v1518_v43  ;;  %v1077_v55 = vsel %vm1053_vm1, %v1040_v52, %v1022_v51  ;;  %v1059_v56 = vsel %vm1053_vm1, %v1022_v51, %v1040_v52  ;;  %v800_v59 = vadd.f32 %v6327_v48, %v799_v54  ;;  %v1456_v2 = vsel %vm1432_vm3, %v1419_v62, %v1401_v0 }
 0x140   : > { %1613 = vst [vmem:[#allocation4 + $0xb0] sm:$0xf] %v1517_v42  ;;  %v1104_v57 = vsel %vm1015_vm0, 0.0, %v1077_v55  ;;  %v1141_v63 = vpack.c.bf16 %v1059_v56, %v1059_v56  ;;  %v1438_v7 = vsel %vm1432_vm3, %v1401_v0, %v1419_v62  ;;  %v1484_v8 = vsel %vm1395_vm2, 0.0, %v1456_v2  ;;  %5746 = vmatpush.bf16.msra.mxu2 %v5495_v47  ;;  %3211 = vmatpush.bf16.msrb.mxu0 %v5495_v47  ;;  %v506_v2 = vld [vmem:[%s6290_s11 + $0x70] sm:$0xff]   ;;  %v5514_v47 = vld [vmem:[#allocation13 + $0xe8] sm:$0xff] }
 0x141   : > { %1614 = vst [vmem:[#allocation4 + $0xd4] sm:$0xf] %v1518_v43  ;;  %v1140_v61 = vpack.c.bf16 %v1104_v57, %v1104_v57  ;;  %v871_v1 = vmul.f32 0.1, %v800_v59  ;;  %v1519_v12 = vpack.c.bf16 %v1438_v7, %v1438_v7  ;;  %v1520_v15 = vpack.c.bf16 %v1484_v8, %v1484_v8 }
 0x142   : > { %1308 = vst [vmem:[#allocation4 + $0x16c] sm:$0xf] %v1272_v53 }
 0x143   : > { %1338 = vst [vmem:[#allocation4 + $0x130] sm:$0xf] %v1272_v53  ;;  %v907_v9 = vmax.f32 %v800_v59, %v871_v1 }
 0x144   : > { %1368 = vst [vmem:[#allocation4 + $0xf4] sm:$0xf] %v1272_v53 }
 0x145   : > { %535 = vst [vmem:[#allocation2 + $0x68] sm:$0xff] %v502_v60   ;;  %v1023_v16 = vrot.slane %v907_v9, 7  ;;  %v1274_v22 = vpack.c.bf16 %v907_v9, %v907_v9  ;;  %v1402_v35 = vrot.slane %v907_v9, 1  ;;  %v5493_v9 = vld [vmem:[#allocation13 + $0x40] sm:$0xff] }
 0x146   : > { %1176 = vst [vmem:[#allocation4 + $0x168] sm:$0xf] %v1140_v61  ;;  %v801_v3 = vpop.f32.mrf.mxu0 }
 0x147   : > { %1177 = vst [vmem:[#allocation4 + $0x18c] sm:$0xf] %v1141_v63  ;;  %v802_v4 = vadd.f32 %v6327_v48, %v801_v3 }
 0x148   : > { %1206 = vst [vmem:[#allocation4 + $0x12c] sm:$0xf] %v1140_v61 }
 0x149   : > { %1207 = vst [vmem:[#allocation4 + $0x150] sm:$0xf] %v1141_v63  ;;  %v872_v10 = vmul.f32 0.1, %v802_v4 }
 0x14a   : > { %1236 = vst [vmem:[#allocation4 + $0xf0] sm:$0xf] %v1140_v61 }
 0x14b   : > { %1237 = vst [vmem:[#allocation4 + $0x114] sm:$0xf] %v1141_v63  ;;  %v908_v13 = vmax.f32 %v802_v4, %v872_v10  ;;  %v5494_v63 = vld [vmem:[#allocation13 + $0x48] sm:$0xff] }
 0x14c   : > { %v5328_v14 = vld [vmem:[#allocation2 + $0x68] sm:$0xff]  ;;  %1309 = vst [vmem:[#allocation4 + $0x190] sm:$0xf] %v1273_v6  ;;  %5747 = vmatpush.bf16.msra.mxu2 %v5494_v63  ;;  %3212 = vmatpush.bf16.msrb.mxu0 %v5494_v63  ;;  %v6470_v63 = vpop.f32.mrf.mxu1 }
 0x14d   : > { %1339 = vst [vmem:[#allocation4 + $0x154] sm:$0xf] %v1273_v6  ;;  %v1041_v17 = vrot.slane %v908_v13, 7  ;;  %833 = vmatmul.bf16.gmra.mxu0 %v5328_v14  ;;  %v4624_v18 = vld [vmem:[#allocation4 + $0x168] sm:$0xf]  ;;  %v1420_v30 = vrot.slane %v908_v13, 1  ;;  %v1275_v42 = vpack.c.bf16 %v908_v13, %v908_v13 }
 0x14e   : > { %1369 = vst [vmem:[#allocation4 + $0x118] sm:$0xf] %v1273_v6  ;;  %v5390_v19 = vld [vmem:[#allocation4 + $0x188] sm:$0xf0]  ;;  %v804_v20 = vpop.f32.mrf.mxu0 }
 0x14f   : > { %1555 = vst [vmem:[#allocation4 + $0x170] sm:$0xf] %v1519_v12  ;;  %v1078_v21 = vsel %vm1053_vm1, %v1041_v17, %v1023_v16  ;;  %v4625_v23 = vor.u32 %v5390_v19, %v4624_v18  ;;  %v1060_v25 = vsel %vm1053_vm1, %v1023_v16, %v1041_v17  ;;  %v805_v27 = vadd.f32 %v6327_v48, %v804_v20  ;;  %v5516_v18 = vld [vmem:[#allocation13 + $0xf8] sm:$0xff] }
 0x150   : > { %1556 = vst [vmem:[#allocation4 + $0x194] sm:$0xf] %v1520_v15  ;;  %v1106_v24 = vsel %vm1015_vm0, 0.0, %v1078_v21  ;;  %v1143_v31 = vpack.c.bf16 %v1060_v25, %v1060_v25  ;;  %v1457_v39 = vsel %vm1432_vm3, %v1420_v30, %v1402_v35  ;;  %v1439_v43 = vsel %vm1432_vm3, %v1402_v35, %v1420_v30  ;;  %5748 = vmatpush.bf16.msra.mxu2 %v5493_v9  ;;  %v5515_v35 = vld [vmem:[#allocation13 + $0xf0] sm:$0xff] }
 0x151   : > { %1585 = vst [vmem:[#allocation4 + $0x134] sm:$0xf] %v1519_v12  ;;  %3150 = vmatmul.bf16.gmra.mxu1 %v4625_v23  ;;  %v1142_v29 = vpack.c.bf16 %v1106_v24, %v1106_v24  ;;  %v873_v38 = vmul.f32 0.1, %v805_v27  ;;  %v1486_v45 = vsel %vm1395_vm2, 0.0, %v1457_v39  ;;  %v1521_v49 = vpack.c.bf16 %v1439_v43, %v1439_v43  ;;  %3213 = vmatpush.bf16.msrb.mxu0 %v5493_v9 }
 0x152   : > { %1586 = vst [vmem:[#allocation4 + $0x158] sm:$0xf] %v1520_v15  ;;  %v1522_v53 = vpack.c.bf16 %v1486_v45, %v1486_v45  ;;  %3384 = vmatpush.bf16.msrb.mxu1 %v5516_v18  ;;  %v5523_v18 = vld [vmem:[#allocation13 + $0x130] sm:$0xff] }
 0x153   : > { %1615 = vst [vmem:[#allocation4 + $0xf8] sm:$0xf] %v1519_v12  ;;  %v909_v46 = vmax.f32 %v805_v27, %v873_v38  ;;  %v5524_v38 = vld [vmem:[#allocation13 + $0x138] sm:$0xff] }
 0x154   : > { %1616 = vst [vmem:[#allocation4 + $0x11c] sm:$0xf] %v1520_v15  ;;  %3473 = vmatpush.bf16.msrb.mxu2 %v5524_v38 }
 0x155   : > { %1310 = vst [vmem:[#allocation4 + $0x1b4] sm:$0xf] %v1274_v22  ;;  %v1024_v54 = vrot.slane %v909_v46, 7  ;;  %v1276_v60 = vpack.c.bf16 %v909_v46, %v909_v46  ;;  %v1403_v7 = vrot.slane %v909_v46, 1 }
 0x156   : > { %1340 = vst [vmem:[#allocation4 + $0x178] sm:$0xf] %v1274_v22  ;;  %v806_v33 = vpop.f32.mrf.mxu0  ;;  %3385 = vmatpush.bf16.msrb.mxu1 %v5515_v35 }
 0x157   : > { %1370 = vst [vmem:[#allocation4 + $0x13c] sm:$0xf] %v1274_v22  ;;  %v807_v36 = vadd.f32 %v6327_v48, %v806_v33 }
 0x158   : > { %537 = vst [vmem:[#allocation2 + $0x70] sm:$0xff] %v504_v28   ;;  %3474 = vmatpush.bf16.msrb.mxu2 %v5523_v18 }
 0x159   : > { %1178 = vst [vmem:[#allocation4 + $0x1b0] sm:$0xf] %v1142_v29  ;;  %v874_v40 = vmul.f32 0.1, %v807_v36 }
 0x15a   : > { %1179 = vst [vmem:[#allocation4 + $0x1d4] sm:$0xf] %v1143_v31  ;;  %3386 = vmatpush.bf16.msrb.mxu1 %v5514_v47 }
 0x15b   : > { %1208 = vst [vmem:[#allocation4 + $0x174] sm:$0xf] %v1142_v29  ;;  %v6423_v44 = vmax.f32 %v807_v36, %v874_v40  ;;  %v508_v40 = vld [vmem:[%s6290_s11 + $0x78] sm:$0xff]  }
 0x15c   : > { %1209 = vst [vmem:[#allocation4 + $0x198] sm:$0xf] %v1143_v31 }
 0x15d   : > { %1238 = vst [vmem:[#allocation4 + $0x138] sm:$0xf] %v1142_v29  ;;  %v1042_v50 = vrot.slane %v6423_v44, 7  ;;  %v1421_v4 = vrot.slane %v6423_v44, 1  ;;  %v1277_v13 = vpack.c.bf16 %v6423_v44, %v6423_v44 }
 0x15e   : > { %1239 = vst [vmem:[#allocation4 + $0x15c] sm:$0xf] %v1143_v31  ;;  %v809_v51 = vpop.f32.mrf.mxu0 }
 0x15f   : > { %v5329_v52 = vld [vmem:[#allocation2 + $0x70] sm:$0xff]  ;;  %1311 = vst [vmem:[#allocation4 + $0x1d8] sm:$0xf] %v1275_v42  ;;  %v1079_v57 = vsel %vm1053_vm1, %v1042_v50, %v1024_v54  ;;  %v1061_v62 = vsel %vm1053_vm1, %v1024_v54, %v1042_v50  ;;  %v810_v0 = vadd.f32 %v6327_v48, %v809_v51  ;;  %v1458_v11 = vsel %vm1432_vm3, %v1421_v4, %v1403_v7 }
 0x160   : > { %1341 = vst [vmem:[#allocation4 + $0x19c] sm:$0xf] %v1275_v42  ;;  %v4660_v55 = vld [vmem:[#allocation4 + $0x1b0] sm:$0xf]  ;;  %838 = vmatmul.bf16.gmra.mxu0 %v5329_v52  ;;  %v1108_v61 = vsel %vm1015_vm0, 0.0, %v1079_v57  ;;  %v1145_v6 = vpack.c.bf16 %v1061_v62, %v1061_v62  ;;  %v1440_v14 = vsel %vm1432_vm3, %v1403_v7, %v1421_v4  ;;  %v1488_v15 = vsel %vm1395_vm2, 0.0, %v1458_v11 }
 0x161   : > { %1371 = vst [vmem:[#allocation4 + $0x160] sm:$0xf] %v1275_v42  ;;  %v5399_v56 = vld [vmem:[#allocation4 + $0x1d0] sm:$0xf0]  ;;  %v1144_v3 = vpack.c.bf16 %v1108_v61, %v1108_v61  ;;  %v875_v10 = vmul.f32 0.1, %v810_v0  ;;  %v1523_v19 = vpack.c.bf16 %v1440_v14, %v1440_v14  ;;  %v1524_v22 = vpack.c.bf16 %v1488_v15, %v1488_v15 }
 0x162   : > { %1557 = vst [vmem:[#allocation4 + $0x1b8] sm:$0xf] %v1521_v49  ;;  %v4661_v59 = vor.u32 %v5399_v56, %v4660_v55  ;;  %v5513_v52 = vld [vmem:[#allocation13 + $0xe0] sm:$0xff]  ;;  %v5511_v15 = vld [vmem:[#allocation13 + $0xd0] sm:$0xff] }
 0x163   : > { %1558 = vst [vmem:[#allocation4 + $0x1dc] sm:$0xf] %v1522_v53  ;;  %v911_v16 = vmax.f32 %v810_v0, %v875_v10  ;;  %3387 = vmatpush.bf16.msrb.mxu1 %v5513_v52 }
 0x164   : > { %1587 = vst [vmem:[#allocation4 + $0x17c] sm:$0xf] %v1521_v49  ;;  %3155 = vmatmul.bf16.gmra.mxu1 %v4661_v59 }
 0x165   : > { %1588 = vst [vmem:[#allocation4 + $0x1a0] sm:$0xf] %v1522_v53  ;;  %v1025_v23 = vrot.slane %v911_v16, 7  ;;  %v1278_v28 = vpack.c.bf16 %v911_v16, %v911_v16  ;;  %v1404_v45 = vrot.slane %v911_v16, 1 }
 0x166   : > { %1617 = vst [vmem:[#allocation4 + $0x140] sm:$0xf] %v1521_v49  ;;  %v811_v1 = vpop.f32.mrf.mxu0 }
 0x167   : > { %1618 = vst [vmem:[#allocation4 + $0x164] sm:$0xf] %v1522_v53  ;;  %v812_v5 = vadd.f32 %v6327_v48, %v811_v1 }
 0x168   : > { %1312 = vst [vmem:[#allocation4 + $0x1fc] sm:$0xf] %v1276_v60 }
 0x169   : > { %1342 = vst [vmem:[#allocation4 + $0x1c0] sm:$0xf] %v1276_v60  ;;  %v876_v8 = vmul.f32 0.1, %v812_v5 }
 0x16a   : > { %1372 = vst [vmem:[#allocation4 + $0x184] sm:$0xf] %v1276_v60  ;;  %v5512_v60 = vld [vmem:[#allocation13 + $0xd8] sm:$0xff] }
 0x16b   : > { %539 = vst [vmem:[#allocation2 + $0x78] sm:$0xff] %v506_v2   ;;  %v6440_v12 = vmax.f32 %v812_v5, %v876_v8  ;;  %3388 = vmatpush.bf16.msrb.mxu1 %v5512_v60 }
 0x16c   : > { %1180 = vst [vmem:[#allocation4 + $0x1f8] sm:$0xf] %v1144_v3 }
 0x16d   : > { %1181 = vst [vmem:[#allocation4 + $0x21c] sm:$0xf] %v1145_v6  ;;  %v1043_v20 = vrot.slane %v6440_v12, 7  ;;  %v1422_v42 = vrot.slane %v6440_v12, 1  ;;  %v1279_v53 = vpack.c.bf16 %v6440_v12, %v6440_v12  ;;  %v543_v12 = vld [vmem:[%s6302_s12] sm:$0xff]  }
 0x16e   : > { %1210 = vst [vmem:[#allocation4 + $0x1bc] sm:$0xf] %v1144_v3  ;;  %v814_v17 = vpop.f32.mrf.mxu0 }
 0x16f   : > { %1211 = vst [vmem:[#allocation4 + $0x1e0] sm:$0xf] %v1145_v6  ;;  %v1080_v26 = vsel %vm1053_vm1, %v1043_v20, %v1025_v23  ;;  %v5404_v30 = vld [vmem:[#allocation4 + $0x1fc] sm:$0xf]  ;;  %v1062_v31 = vsel %vm1053_vm1, %v1025_v23, %v1043_v20  ;;  %v815_v37 = vadd.f32 %v6327_v48, %v814_v17  ;;  %v1459_v50 = vsel %vm1432_vm3, %v1422_v42, %v1404_v45  ;;  %v6480_v17 = vpop.f32.mrf.mxu1 }
 0x170   : > { %1240 = vst [vmem:[#allocation4 + $0x180] sm:$0xf] %v1144_v3  ;;  %v1110_v29 = vsel %vm1015_vm0, 0.0, %v1080_v26  ;;  %v1147_v44 = vpack.c.bf16 %v1062_v31, %v1062_v31  ;;  %v1441_v54 = vsel %vm1432_vm3, %v1404_v45, %v1422_v42  ;;  %v1490_v55 = vsel %vm1395_vm2, 0.0, %v1459_v50  ;;  %3389 = vmatpush.bf16.msrb.mxu1 %v5511_v15  ;;  %v5508_v31 = vld [vmem:[#allocation13 + $0xb8] sm:$0xff] }
 0x171   : > { %1241 = vst [vmem:[#allocation4 + $0x1a4] sm:$0xf] %v1145_v6  ;;  %v1146_v41 = vpack.c.bf16 %v1110_v29, %v1110_v29  ;;  %v877_v49 = vmul.f32 0.1, %v815_v37  ;;  %v1525_v57 = vpack.c.bf16 %v1441_v54, %v1441_v54  ;;  %v1526_v62 = vpack.c.bf16 %v1490_v55, %v1490_v55  ;;  %3295 = vmatpush.bf16.msrb.mxu3 %v5508_v31 }
 0x172   : > { %v5330_v21 = vld [vmem:[#allocation2 + $0x78] sm:$0xff]  ;;  %1313 = vst [vmem:[#allocation4 + $0x220] sm:$0xf] %v1277_v13 }
 0x173   : > { %1343 = vst [vmem:[#allocation4 + $0x1e4] sm:$0xf] %v1277_v13  ;;  %v4696_v24 = vld [vmem:[#allocation4 + $0x1f8] sm:$0xf]  ;;  %843 = vmatmul.bf16.gmra.mxu0 %v5330_v21  ;;  %v913_v56 = vmax.f32 %v815_v37, %v877_v49  ;;  %v4454_v37 = vld [vmem:[#allocation4 + $0x2c] sm:$0xf0] }
 0x174   : > { %1373 = vst [vmem:[#allocation4 + $0x1a8] sm:$0xf] %v1277_v13  ;;  %v5408_v25 = vld [vmem:[#allocation4 + $0x218] sm:$0xf0] }
 0x175   : > { %1559 = vst [vmem:[#allocation4 + $0x200] sm:$0xf] %v1523_v19  ;;  %v4697_v27 = vor.u32 %v5408_v25, %v4696_v24  ;;  %v1026_v1 = vrot.slane %v913_v56, 7  ;;  %v1280_v6 = vpack.c.bf16 %v913_v56, %v913_v56  ;;  %v1405_v20 = vrot.slane %v913_v56, 1  ;;  %v5510_v25 = vld [vmem:[#allocation13 + $0xc8] sm:$0xff] }
 0x176   : > { %1560 = vst [vmem:[#allocation4 + $0x224] sm:$0xf] %v1524_v22  ;;  %v816_v39 = vpop.f32.mrf.mxu0  ;;  %3390 = vmatpush.bf16.msrb.mxu1 %v5510_v25  ;;  %v6504_v56 = vld [vmem:[%s7175_s4] ss:$0 sm:$0xff] }
 0x177   : > { %1589 = vst [vmem:[#allocation4 + $0x1c4] sm:$0xf] %v1523_v19  ;;  %3160 = vmatmul.bf16.gmra.mxu1 %v4697_v27  ;;  %v817_v43 = vadd.f32 %v6327_v48, %v816_v39 }
 0x178   : > { %1590 = vst [vmem:[#allocation4 + $0x1e8] sm:$0xf] %v1524_v22 }
 0x179   : > { %1619 = vst [vmem:[#allocation4 + $0x188] sm:$0xf] %v1523_v19  ;;  %v4698_v33 = vld [vmem:[#allocation4 + $0x21c] sm:$0xf0]  ;;  %v878_v46 = vmul.f32 0.1, %v817_v43 }
 0x17a   : > { %1620 = vst [vmem:[#allocation4 + $0x1ac] sm:$0xf] %v1524_v22  ;;  %v4701_v36 = vor.u32 %v5404_v30, %v4698_v33  ;;  %v5509_v30 = vld [vmem:[#allocation13 + $0xc0] sm:$0xff] }
 0x17b   : > { %1314 = vst [vmem:[#allocation4 + $0x244] sm:$0xf] %v1278_v28  ;;  %v6461_v51 = vmax.f32 %v817_v43, %v878_v46  ;;  %3391 = vmatpush.bf16.msrb.mxu1 %v5509_v30 }
 0x17c   : > { %1344 = vst [vmem:[#allocation4 + $0x208] sm:$0xf] %v1278_v28  ;;  %3249 = vmatmul.bf16.vlgmr.msra.gmra.mxu2 %v4701_v36  ;;  %v5342_v36 = vld [vmem:[#allocation4 + $0xc] sm:$0xf] }
 0x17d   : > { %1374 = vst [vmem:[#allocation4 + $0x1cc] sm:$0xf] %v1278_v28  ;;  %v1044_v59 = vrot.slane %v6461_v51, 7  ;;  %v1423_v14 = vrot.slane %v6461_v51, 1  ;;  %v1281_v26 = vpack.c.bf16 %v6461_v51, %v6461_v51  ;;  %v4457_v45 = vor.u32 %v5342_v36, %v4454_v37 }
 0x17e   : > { %541 = vst [vmem:[#allocation2 + $0x80] sm:$0xff] %v508_v40   ;;  %v819_v0 = vpop.f32.mrf.mxu0 }
 0x17f   : > { %1182 = vst [vmem:[#allocation4 + $0x240] sm:$0xf] %v1146_v41  ;;  %v1081_v4 = vsel %vm1053_vm1, %v1044_v59, %v1026_v1  ;;  %v1063_v8 = vsel %vm1053_vm1, %v1026_v1, %v1044_v59  ;;  %v820_v21 = vadd.f32 %v6327_v48, %v819_v0  ;;  %v1460_v23 = vsel %vm1432_vm3, %v1423_v14, %v1405_v20 }
 0x180   : > { %1183 = vst [vmem:[#allocation4 + $0x264] sm:$0xf] %v1147_v44  ;;  %v1112_v7 = vsel %vm1015_vm0, 0.0, %v1081_v4  ;;  %v1149_v16 = vpack.c.bf16 %v1063_v8, %v1063_v8  ;;  %v1442_v27 = vsel %vm1432_vm3, %v1405_v20, %v1423_v14  ;;  %v5351_v4 = vld [vmem:[#allocation4 + $0x54] sm:$0xf] }
 0x181   : > { %1212 = vst [vmem:[#allocation4 + $0x204] sm:$0xf] %v1146_v41  ;;  %v1148_v13 = vpack.c.bf16 %v1112_v7, %v1112_v7  ;;  %v879_v28 = vmul.f32 0.1, %v820_v21  ;;  %v1527_v33 = vpack.c.bf16 %v1442_v27, %v1442_v27 }
 0x182   : > { %1213 = vst [vmem:[#allocation4 + $0x228] sm:$0xf] %v1147_v44  ;;  %v5413_v9 = vld [vmem:[#allocation4 + $0x244] sm:$0xf] }
 0x183   : > { %1242 = vst [vmem:[#allocation4 + $0x1c8] sm:$0xf] %v1146_v41  ;;  %v915_v41 = vmax.f32 %v820_v21, %v879_v28 }
 0x184   : > { %1243 = vst [vmem:[#allocation4 + $0x1ec] sm:$0xf] %v1147_v44 }
 0x185   : > { %v5331_v61 = vld [vmem:[#allocation2 + $0x80] sm:$0xff]  ;;  %1315 = vst [vmem:[#allocation4 + $0x268] sm:$0xf] %v1279_v53  ;;  %v1027_v47 = vrot.slane %v915_v41, 7  ;;  %v1282_v49 = vpack.c.bf16 %v915_v41, %v915_v41 }
 0x186   : > { %1345 = vst [vmem:[#allocation4 + $0x22c] sm:$0xf] %v1279_v53  ;;  %v4732_v2 = vld [vmem:[#allocation4 + $0x240] sm:$0xf]  ;;  %848 = vmatmul.bf16.gmra.mxu0 %v5331_v61  ;;  %v821_v19 = vpop.f32.mrf.mxu0 }
 0x187   : > { %1375 = vst [vmem:[#allocation4 + $0x1f0] sm:$0xf] %v1279_v53  ;;  %v5417_v3 = vld [vmem:[#allocation4 + $0x260] sm:$0xf0]  ;;  %v822_v22 = vadd.f32 %v6327_v48, %v821_v19  ;;  %v1492_v48 = vsel %vm1395_vm2, 0.0, %v1460_v23 }
 0x188   : > { %1561 = vst [vmem:[#allocation4 + $0x248] sm:$0xf] %v1525_v57  ;;  %v4733_v5 = vor.u32 %v5417_v3, %v4732_v2  ;;  %v1528_v40 = vpack.c.bf16 %v1492_v48, %v1492_v48 }
 0x189   : > { %1562 = vst [vmem:[#allocation4 + $0x26c] sm:$0xf] %v1526_v62  ;;  %v880_v24 = vmul.f32 0.1, %v822_v22 }
 0x18a   : > { %1591 = vst [vmem:[#allocation4 + $0x20c] sm:$0xf] %v1525_v57  ;;  %3165 = vmatmul.bf16.gmra.mxu1 %v4733_v5  ;;  %v6494_v35 = vpop.f32.mrf.mxu1  ;;  %v4490_v5 = vld [vmem:[#allocation4 + $0x74] sm:$0xf0] }
 0x18b   : > { %1592 = vst [vmem:[#allocation4 + $0x230] sm:$0xf] %v1526_v62  ;;  %v6492_v29 = vmax.f32 %v822_v22, %v880_v24  ;;  %v4493_v14 = vor.u32 %v5351_v4, %v4490_v5 }
 0x18c   : > { %1621 = vst [vmem:[#allocation4 + $0x1d0] sm:$0xf] %v1525_v57  ;;  %v4734_v10 = vld [vmem:[#allocation4 + $0x264] sm:$0xf0] }
 0x18d   : > { %1622 = vst [vmem:[#allocation4 + $0x1f4] sm:$0xf] %v1526_v62  ;;  %v4737_v11 = vor.u32 %v5413_v9, %v4734_v10  ;;  %v1045_v43 = vrot.slane %v6492_v29, 7  ;;  %v6099_v62 = vmov 0.0|0.0   ;;  %v1424_v1 = vrot.slane %v6492_v29, 1  ;;  %v5522_v10 = vld [vmem:[#allocation13 + $0x128] sm:$0xff] }
 0x18e   : > { %1316 = vst [vmem:[#allocation4 + $0x28c] sm:$0xf] %v1280_v6  ;;  %v824_v38 = vpop.f32.mrf.mxu0  ;;  %v1283_v15 = vpack.c.bf16 %v6492_v29, %v6492_v29  ;;  %3475 = vmatpush.bf16.msrb.mxu2 %v5522_v10 }
 0x18f   : > { %1346 = vst [vmem:[#allocation4 + $0x250] sm:$0xf] %v1280_v6  ;;  %3254 = vmatmul.bf16.gmra.mxu2 %v4737_v11  ;;  %v1082_v50 = vsel %vm1053_vm1, %v1045_v43, %v1027_v47  ;;  %v1064_v60 = vsel %vm1053_vm1, %v1027_v47, %v1045_v43  ;;  %v825_v61 = vadd.f32 %v6504_v56, %v824_v38  ;;  %v5360_v47 = vld [vmem:[#allocation4 + $0x9c] sm:$0xf] }
 0x190   : > { %1376 = vst [vmem:[#allocation4 + $0x214] sm:$0xf] %v1280_v6  ;;  %v1114_v59 = vsel %vm1015_vm0, 0.0, %v1082_v50  ;;  %v1151_v3 = vpack.c.bf16 %v1064_v60, %v1064_v60  ;;  %v1406_v6 = vrot.slane %v915_v41, 1  ;;  %v5521_v60 = vld [vmem:[#allocation13 + $0x120] sm:$0xff] }
 0x191   : > { %546 = vst [vmem:[#allocation2 + $0x88] sm:$0xff] %v543_v12   ;;  %v1150_v0 = vpack.c.bf16 %v1114_v59, %v1114_v59  ;;  %v881_v7 = vmul.f32 0.1, %v825_v61  ;;  %v5507_v12 = vld [vmem:[#allocation13 + $0xb0] sm:$0xff]  ;;  %v5506_v59 = vld [vmem:[#allocation13 + $0xa8] sm:$0xff] }
 0x192   : > { %1184 = vst [vmem:[#allocation4 + $0x288] sm:$0xf] %v1148_v13  ;;  %v6499_v53 = vpop.f32.mrf.mxu1  ;;  %v1461_v8 = vsel %vm1432_vm3, %v1424_v1, %v1406_v6  ;;  %3296 = vmatpush.bf16.msrb.mxu3 %v5507_v12  ;;  %3476 = vmatpush.bf16.msrb.mxu2 %v5521_v60 }
 0x193   : > { %1185 = vst [vmem:[#allocation4 + $0x2ac] sm:$0xf] %v1149_v16  ;;  %v6523_v18 = vmax.f32 %v825_v61, %v881_v7  ;;  %v1494_v20 = vsel %vm1395_vm2, 0.0, %v1461_v8 }
 0x194   : > { %1214 = vst [vmem:[#allocation4 + $0x24c] sm:$0xf] %v1148_v13  ;;  %v1530_v25 = vpack.c.bf16 %v1494_v20, %v1494_v20 }
 0x195   : > { %1215 = vst [vmem:[#allocation4 + $0x270] sm:$0xf] %v1149_v16  ;;  %v5422_v51 = vld [vmem:[#allocation4 + $0x28c] sm:$0xf]  ;;  %v1284_v36 = vpack.c.bf16 %v6523_v18, %v6523_v18  ;;  %v1407_v50 = vrot.slane %v6523_v18, 1 }
 0x196   : > { %1244 = vst [vmem:[#allocation4 + $0x210] sm:$0xf] %v1148_v13  ;;  %v826_v54 = vpop.f32.mrf.mxu0  ;;  %3297 = vmatpush.bf16.msrb.mxu3 %v5506_v59 }
 0x197   : > { %1245 = vst [vmem:[#allocation4 + $0x234] sm:$0xf] %v1149_v16  ;;  %v827_v57 = vadd.f32 %v6504_v56, %v826_v54  ;;  %v1443_v16 = vsel %vm1432_vm3, %v1406_v6, %v1424_v1  ;;  %v4482_v54 = vld [vmem:[#allocation4 + $0x6c] sm:$0xf0] }
 0x198   : > { %v5332_v39 = vld [vmem:[#allocation2 + $0x88] sm:$0xff]  ;;  %1317 = vst [vmem:[#allocation4 + $0x2b0] sm:$0xf] %v1281_v26  ;;  %v1529_v24 = vpack.c.bf16 %v1443_v16, %v1443_v16 }
 0x199   : > { %1347 = vst [vmem:[#allocation4 + $0x274] sm:$0xf] %v1281_v26  ;;  %v4768_v42 = vld [vmem:[#allocation4 + $0x288] sm:$0xf]  ;;  %853 = vmatmul.bf16.gmra.mxu0 %v5332_v39  ;;  %v882_v2 = vmul.f32 0.1, %v827_v57 }
 0x19a   : > { %1377 = vst [vmem:[#allocation4 + $0x238] sm:$0xf] %v1281_v26  ;;  %v5426_v44 = vld [vmem:[#allocation4 + $0x2a8] sm:$0xf0]  ;;  %3392 = vmatmul.bf16.vlgmr.msrb.gmra.mxu1 %v4457_v45  ;;  %v6517_v11 = vpop.f32.mrf.mxu1  ;;  %v1028_v26 = vrot.slane %v6523_v18, 7 }
 0x19b   : > { %1563 = vst [vmem:[#allocation4 + $0x290] sm:$0xf] %v1527_v33  ;;  %v4769_v46 = vor.u32 %v5426_v44, %v4768_v42  ;;  %v6515_v9 = vmax.f32 %v827_v57, %v882_v2  ;;  %v5414_v32 = vld [vmem:[#allocation4 + $0x24c] sm:$0xf] }
 0x19c   : > { %1564 = vst [vmem:[#allocation4 + $0x2b4] sm:$0xf] %v1528_v40 }
 0x19d   : > { %1593 = vst [vmem:[#allocation4 + $0x254] sm:$0xf] %v1527_v33  ;;  %3170 = vmatmul.bf16.vlgmr.msra.gmra.mxu3 %v4769_v46  ;;  %v1046_v22 = vrot.slane %v6515_v9, 7  ;;  %v1425_v43 = vrot.slane %v6515_v9, 1 }
 0x19e   : > { %1594 = vst [vmem:[#allocation4 + $0x278] sm:$0xf] %v1528_v40  ;;  %v829_v13 = vpop.f32.mrf.mxu0 }
 0x19f   : > { %1623 = vst [vmem:[#allocation4 + $0x218] sm:$0xf] %v1527_v33  ;;  %v4770_v52 = vld [vmem:[#allocation4 + $0x2ac] sm:$0xf0]  ;;  %v1083_v28 = vsel %vm1053_vm1, %v1046_v22, %v1028_v26  ;;  %v1065_v38 = vsel %vm1053_vm1, %v1028_v26, %v1046_v22  ;;  %v830_v39 = vadd.f32 %v6504_v56, %v829_v13  ;;  %v1444_v1 = vsel %vm1432_vm3, %v1407_v50, %v1425_v43  ;;  %v4562_v26 = vld [vmem:[#allocation4 + $0x104] sm:$0xf0] }
 0x1a0   : > { %1624 = vst [vmem:[#allocation4 + $0x23c] sm:$0xf] %v1528_v40  ;;  %v4773_v55 = vor.u32 %v5422_v51, %v4770_v52  ;;  %v1116_v37 = vsel %vm1015_vm0, 0.0, %v1083_v28  ;;  %v1153_v46 = vpack.c.bf16 %v1065_v38, %v1065_v38  ;;  %v1531_v6 = vpack.c.bf16 %v1444_v1, %v1444_v1  ;;  %v5505_v38 = vld [vmem:[#allocation13 + $0xa0] sm:$0xff] }
 0x1a1   : > { %1318 = vst [vmem:[#allocation4 + $0x2d4] sm:$0xf] %v1282_v49  ;;  %v1152_v42 = vpack.c.bf16 %v1116_v37, %v1116_v37  ;;  %v883_v51 = vmul.f32 0.1, %v830_v39  ;;  %3298 = vmatpush.bf16.msrb.mxu3 %v5505_v38 }
 0x1a2   : > { %1348 = vst [vmem:[#allocation4 + $0x298] sm:$0xf] %v1282_v49  ;;  %3259 = vmatmul.bf16.gmra.mxu2 %v4773_v55  ;;  %v6531_v29 = vpop.f32.mrf.mxu1  ;;  %v1462_v55 = vsel %vm1432_vm3, %v1425_v43, %v1407_v50 }
 0x1a3   : > { %1378 = vst [vmem:[#allocation4 + $0x25c] sm:$0xf] %v1282_v49  ;;  %v4526_v49 = vld [vmem:[#allocation4 + $0xbc] sm:$0xf0]  ;;  %v919_v2 = vmax.f32 %v830_v39, %v883_v51  ;;  %v1496_v4 = vsel %vm1395_vm2, 0.0, %v1462_v55  ;;  %v5520_v39 = vld [vmem:[#allocation13 + $0x118] sm:$0xff] }
 0x1a4   : > { %1298 = vst [vmem:[#allocation4 + $0x4] sm:$0xf] %v6099_v62  ;;  %v4529_v61 = vor.u32 %v5360_v47, %v4526_v49  ;;  %v1532_v7 = vpack.c.bf16 %v1496_v4, %v1496_v4  ;;  %3477 = vmatpush.bf16.msrb.mxu2 %v5520_v39 }
 0x1a5   : > { %1299 = vst [vmem:[#allocation4 + $0x28] sm:$0xf] %v6099_v62  ;;  %v1029_v8 = vrot.slane %v919_v2, 7  ;;  %v1408_v28 = vrot.slane %v919_v2, 1 }
 0x1a6   : > { %1392 = vst [vmem:[#allocation4 + $0x454] sm:$0xf] %v6099_v62  ;;  %v831_v30 = vpop.f32.mrf.mxu0 }
 0x1a7   : > { %1393 = vst [vmem:[#allocation4 + $0x478] sm:$0xf] %v6099_v62  ;;  %v832_v33 = vadd.f32 %v6504_v56, %v831_v30  ;;  %v5350_v62 = vld [vmem:[#allocation4 + $0x4c] sm:$0xf] }
 0x1a8   : > { %1186 = vst [vmem:[#allocation4 + $0x2d0] sm:$0xf] %v1150_v0  ;;  %v5431_v40 = vld [vmem:[#allocation4 + $0x2d4] sm:$0xf] }
 0x1a9   : > { %1187 = vst [vmem:[#allocation4 + $0x2f4] sm:$0xf] %v1151_v3  ;;  %v884_v45 = vmul.f32 0.1, %v832_v33 }
 0x1aa   : > { %1216 = vst [vmem:[#allocation4 + $0x294] sm:$0xf] %v1150_v0  ;;  %3397 = vmatmul.bf16.gmra.mxu1 %v4493_v14  ;;  %v6543_v52 = vpop.f32.mrf.mxu1 }
 0x1ab   : > { %v5341_v19 = vld [vmem:[#allocation4 + $0x4] sm:$0xf]  ;;  %1217 = vst [vmem:[#allocation4 + $0x2b8] sm:$0xf] %v1151_v3  ;;  %v6547_v57 = vmax.f32 %v832_v33, %v884_v45  ;;  %v5359_v33 = vld [vmem:[#allocation4 + $0x94] sm:$0xf] }
 0x1ac   : > { %v4446_v21 = vld [vmem:[#allocation4 + $0x24] sm:$0xf0]  ;;  %1246 = vst [vmem:[#allocation4 + $0x258] sm:$0xf] %v1150_v0  ;;  %v1285_v0 = vpack.c.bf16 %v6515_v9, %v6515_v9  ;;  %v5504_v45 = vld [vmem:[#allocation13 + $0x98] sm:$0xff] }
 0x1ad   : > { %v4449_v23 = vor.u32 %v5341_v19, %v4446_v21  ;;  %1247 = vst [vmem:[#allocation4 + $0x27c] sm:$0xf] %v1151_v3  ;;  %v4485_v3 = vor.u32 %v5350_v62, %v4482_v54  ;;  %v1047_v5 = vrot.slane %v6547_v57, 7  ;;  %v5369_v19 = vld [vmem:[#allocation4 + $0xe4] sm:$0xf]  ;;  %3299 = vmatpush.bf16.msrb.mxu3 %v5504_v45 }
 0x1ae   : > { %1319 = vst [vmem:[#allocation4 + $0x2f8] sm:$0xf] %v1283_v15  ;;  %v5378_v62 = vld [vmem:[#allocation4 + $0x12c] sm:$0xf] }
 0x1af   : > { %3214 = vmatmul.bf16.vlgmr.msrb.gmra.mxu0 %v4449_v23  ;;  %1349 = vst [vmem:[#allocation4 + $0x2bc] sm:$0xf] %v1283_v15  ;;  %v4804_v27 = vld [vmem:[#allocation4 + $0x2d0] sm:$0xf]  ;;  %v1084_v12 = vsel %vm1053_vm1, %v1047_v5, %v1029_v8  ;;  %v1066_v18 = vsel %vm1053_vm1, %v1029_v8, %v1047_v5  ;;  %v1426_v23 = vrot.slane %v6547_v57, 1 }
 0x1b0   : > { %1379 = vst [vmem:[#allocation4 + $0x280] sm:$0xf] %v1283_v15  ;;  %v5435_v48 = vld [vmem:[#allocation4 + $0x2f0] sm:$0xf0]  ;;  %v1286_v15 = vpack.c.bf16 %v919_v2, %v919_v2  ;;  %v1118_v16 = vsel %vm1015_vm0, 0.0, %v1084_v12 }
 0x1b1   : > { %1565 = vst [vmem:[#allocation4 + $0x2d8] sm:$0xf] %v1529_v24  ;;  %v4805_v31 = vor.u32 %v5435_v48, %v4804_v27  ;;  %v1154_v22 = vpack.c.bf16 %v1118_v16, %v1118_v16  ;;  %v1155_v27 = vpack.c.bf16 %v1066_v18, %v1066_v18  ;;  %v4518_v48 = vld [vmem:[#allocation4 + $0xb4] sm:$0xf0] }
 0x1b2   : > { %1566 = vst [vmem:[#allocation4 + $0x2fc] sm:$0xf] %v1530_v25  ;;  %v6556_v9 = vpop.f32.mrf.mxu1 }
 0x1b3   : > { %1595 = vst [vmem:[#allocation4 + $0x29c] sm:$0xf] %v1529_v24  ;;  %3175 = vmatmul.bf16.gmra.mxu3 %v4805_v31  ;;  %v4565_v31 = vor.u32 %v5369_v19, %v4562_v26  ;;  %v5519_v26 = vld [vmem:[#allocation13 + $0x110] sm:$0xff] }
 0x1b4   : > { %1596 = vst [vmem:[#allocation4 + $0x2c0] sm:$0xf] %v1530_v25  ;;  %3478 = vmatpush.bf16.msrb.mxu2 %v5519_v26  ;;  %v5502_v26 = vld [vmem:[#allocation13 + $0x88] sm:$0xff] }
 0x1b5   : > { %1625 = vst [vmem:[#allocation4 + $0x260] sm:$0xf] %v1529_v24  ;;  %v4806_v41 = vld [vmem:[#allocation4 + $0x2f4] sm:$0xf0] }
 0x1b6   : > { %1626 = vst [vmem:[#allocation4 + $0x284] sm:$0xf] %v1530_v25  ;;  %v4809_v44 = vor.u32 %v5431_v40, %v4806_v41  ;;  %v4521_v40 = vor.u32 %v5359_v33, %v4518_v48  ;;  %v1287_v41 = vpack.c.bf16 %v6547_v57, %v6547_v57 }
 0x1b7   : > { %1320 = vst [vmem:[#allocation4 + $0x31c] sm:$0xf] %v1284_v36 }
 0x1b8   : > { %1350 = vst [vmem:[#allocation4 + $0x2e0] sm:$0xf] %v1284_v36  ;;  %3264 = vmatmul.bf16.gmra.mxu2 %v4809_v44 }
 0x1b9   : > { %1380 = vst [vmem:[#allocation4 + $0x2a4] sm:$0xf] %v1284_v36  ;;  %v1463_v36 = vsel %vm1432_vm3, %v1426_v23, %v1408_v28 }
 0x1ba   : > { %1188 = vst [vmem:[#allocation4 + $0x318] sm:$0xf] %v1152_v42  ;;  %3402 = vmatmul.bf16.gmra.mxu1 %v4529_v61  ;;  %v1498_v43 = vsel %vm1395_vm2, 0.0, %v1463_v36  ;;  %v5503_v36 = vld [vmem:[#allocation13 + $0x90] sm:$0xff] }
 0x1bb   : > { %1189 = vst [vmem:[#allocation4 + $0x33c] sm:$0xf] %v1153_v46  ;;  %v6565_v25 = vpop.f32.mrf.mxu1  ;;  %v1534_v49 = vpack.c.bf16 %v1498_v43, %v1498_v43  ;;  %3300 = vmatpush.bf16.msrb.mxu3 %v5503_v36  ;;  %v5534_v36 = vld [vmem:[#allocation13 + $0x188] sm:$0xff] }
 0x1bc   : > { %1218 = vst [vmem:[#allocation4 + $0x2dc] sm:$0xf] %v1152_v42 }
 0x1bd   : > { %1219 = vst [vmem:[#allocation4 + $0x300] sm:$0xf] %v1153_v46 }
 0x1be   : > { %1248 = vst [vmem:[#allocation4 + $0x2a0] sm:$0xf] %v1152_v42  ;;  %v5440_v20 = vld [vmem:[#allocation4 + $0x31c] sm:$0xf]  ;;  %v1445_v42 = vsel %vm1432_vm3, %v1408_v28, %v1426_v23 }
 0x1bf   : > { %3219 = vmatmul.bf16.gmra.mxu0 %v4485_v3  ;;  %1249 = vst [vmem:[#allocation4 + $0x2c4] sm:$0xf] %v1153_v46  ;;  %v1533_v47 = vpack.c.bf16 %v1445_v42, %v1445_v42  ;;  %v4598_v3 = vld [vmem:[#allocation4 + $0x14c] sm:$0xf0]  ;;  %3301 = vmatpush.bf16.msrb.mxu3 %v5502_v26 }
 0x1c0   : > { %1321 = vst [vmem:[#allocation4 + $0x340] sm:$0xf] %v1285_v0 }
 0x1c1   : > { %1351 = vst [vmem:[#allocation4 + $0x304] sm:$0xf] %v1285_v0  ;;  %v4840_v10 = vld [vmem:[#allocation4 + $0x318] sm:$0xf] }
 0x1c2   : > { %1381 = vst [vmem:[#allocation4 + $0x2c8] sm:$0xf] %v1285_v0  ;;  %v5444_v13 = vld [vmem:[#allocation4 + $0x338] sm:$0xf0] }
 0x1c3   : > { %1567 = vst [vmem:[#allocation4 + $0x320] sm:$0xf] %v1531_v6  ;;  %v4841_v14 = vor.u32 %v5444_v13, %v4840_v10  ;;  %v6576_v46 = vpop.f32.mrf.mxu1  ;;  %v4601_v13 = vor.u32 %v5378_v62, %v4598_v3  ;;  %v5537_v62 = vld [vmem:[#allocation13 + $0x1a0] sm:$0xff] }
 0x1c4   : > { %1568 = vst [vmem:[#allocation4 + $0x344] sm:$0xf] %v1532_v7 }
 0x1c5   : > { %1597 = vst [vmem:[#allocation4 + $0x2e4] sm:$0xf] %v1531_v6  ;;  %3180 = vmatmul.bf16.gmra.mxu3 %v4841_v14 }
 0x1c6   : > { %1598 = vst [vmem:[#allocation4 + $0x308] sm:$0xf] %v1532_v7 }
 0x1c7   : > { %1627 = vst [vmem:[#allocation4 + $0x2a8] sm:$0xf] %v1531_v6  ;;  %v4842_v21 = vld [vmem:[#allocation4 + $0x33c] sm:$0xf0] }
 0x1c8   : > { %1628 = vst [vmem:[#allocation4 + $0x2cc] sm:$0xf] %v1532_v7  ;;  %v4845_v24 = vor.u32 %v5440_v20, %v4842_v21  ;;  %v4554_v6 = vld [vmem:[#allocation4 + $0xfc] sm:$0xf0] }
 0x1c9   : > { %1322 = vst [vmem:[#allocation4 + $0x364] sm:$0xf] %v1286_v15 }
 0x1ca   : > { %1352 = vst [vmem:[#allocation4 + $0x328] sm:$0xf] %v1286_v15  ;;  %3269 = vmatmul.bf16.gmra.mxu2 %v4845_v24  ;;  %v834_v30 = vpop.f32.mrf.mxu0  ;;  %3407 = vmatmul.bf16.gmra.mxu1 %v4565_v31 }
 0x1cb   : > { %1382 = vst [vmem:[#allocation4 + $0x2ec] sm:$0xf] %v1286_v15  ;;  %v835_v37 = vadd.f32 %v6504_v56, %v834_v30  ;;  %v5368_v15 = vld [vmem:[#allocation4 + $0xdc] sm:$0xf] }
 0x1cc   : > { %1190 = vst [vmem:[#allocation4 + $0x360] sm:$0xf] %v1154_v22  ;;  %v4557_v19 = vor.u32 %v5368_v15, %v4554_v6 }
 0x1cd   : > { %1191 = vst [vmem:[#allocation4 + $0x384] sm:$0xf] %v1155_v27  ;;  %v885_v44 = vmul.f32 0.1, %v835_v37 }
 0x1ce   : > { %1220 = vst [vmem:[#allocation4 + $0x324] sm:$0xf] %v1154_v22  ;;  %v6579_v2 = vpop.f32.mrf.mxu1 }
 0x1cf   : > { %3224 = vmatmul.bf16.gmra.mxu0 %v4521_v40  ;;  %1221 = vst [vmem:[#allocation4 + $0x348] sm:$0xf] %v1155_v27  ;;  %v921_v50 = vmax.f32 %v835_v37, %v885_v44  ;;  %v5539_v37 = vld [vmem:[#allocation13 + $0x1b0] sm:$0xff]  ;;  %v5538_v44 = vld [vmem:[#allocation13 + $0x1a8] sm:$0xff] }
 0x1d0   : > { %1250 = vst [vmem:[#allocation4 + $0x2e8] sm:$0xf] %v1154_v22  ;;  %v5449_v1 = vld [vmem:[#allocation4 + $0x364] sm:$0xf] }
 0x1d1   : > { %1251 = vst [vmem:[#allocation4 + $0x30c] sm:$0xf] %v1155_v27  ;;  %v1288_v61 = vpack.c.bf16 %v921_v50, %v921_v50  ;;  %v1030_v4 = vrot.slane %v921_v50, 7  ;;  %v1409_v14 = vrot.slane %v921_v50, 1  ;;  %v5540_v27 = vld [vmem:[#allocation13 + $0x1b8] sm:$0xff] }
 0x1d2   : > { %1323 = vst [vmem:[#allocation4 + $0x388] sm:$0xf] %v1287_v41  ;;  %v836_v51 = vpop.f32.mrf.mxu0  ;;  %3651 = vmatpush.bf16.msra.mxu0 %v5540_v27  ;;  %v5535_v27 = vld [vmem:[#allocation13 + $0x190] sm:$0xff] }
 0x1d3   : > { %1353 = vst [vmem:[#allocation4 + $0x34c] sm:$0xf] %v1287_v41  ;;  %v4876_v54 = vld [vmem:[#allocation4 + $0x360] sm:$0xf]  ;;  %v837_v55 = vadd.f32 %v6504_v56, %v836_v51 }
 0x1d4   : > { %1383 = vst [vmem:[#allocation4 + $0x310] sm:$0xf] %v1287_v41  ;;  %v5453_v57 = vld [vmem:[#allocation4 + $0x380] sm:$0xf0] }
 0x1d5   : > { %1569 = vst [vmem:[#allocation4 + $0x368] sm:$0xf] %v1533_v47  ;;  %v4877_v59 = vor.u32 %v5453_v57, %v4876_v54  ;;  %v886_v60 = vmul.f32 0.1, %v837_v55 }
 0x1d6   : > { %1570 = vst [vmem:[#allocation4 + $0x38c] sm:$0xf] %v1534_v49  ;;  %v6592_v30 = vpop.f32.mrf.mxu1  ;;  %3652 = vmatpush.bf16.msra.mxu0 %v5539_v37 }
 0x1d7   : > { %1599 = vst [vmem:[#allocation4 + $0x32c] sm:$0xf] %v1533_v47  ;;  %3185 = vmatmul.bf16.gmra.mxu3 %v4877_v59  ;;  %v922_v0 = vmax.f32 %v837_v55, %v886_v60  ;;  %v5387_v55 = vld [vmem:[#allocation4 + $0x174] sm:$0xf]  ;;  %v4590_v59 = vld [vmem:[#allocation4 + $0x144] sm:$0xf0] }
 0x1d8   : > { %1600 = vst [vmem:[#allocation4 + $0x350] sm:$0xf] %v1534_v49 }
 0x1d9   : > { %1629 = vst [vmem:[#allocation4 + $0x2f0] sm:$0xf] %v1533_v47  ;;  %v4878_v5 = vld [vmem:[#allocation4 + $0x384] sm:$0xf0]  ;;  %v1048_v7 = vrot.slane %v922_v0, 7  ;;  %v1289_v8 = vpack.c.bf16 %v922_v0, %v922_v0  ;;  %v1427_v10 = vrot.slane %v922_v0, 1 }
 0x1da   : > { %1630 = vst [vmem:[#allocation4 + $0x314] sm:$0xf] %v1534_v49  ;;  %v4881_v12 = vor.u32 %v5449_v1, %v4878_v5  ;;  %3412 = vmatmul.bf16.gmra.mxu1 %v4601_v13  ;;  %v4634_v49 = vld [vmem:[#allocation4 + $0x194] sm:$0xf0]  ;;  %3653 = vmatpush.bf16.msra.mxu0 %v5538_v44  ;;  %v5377_v0 = vld [vmem:[#allocation4 + $0x124] sm:$0xf] }
 0x1db   : > { %1324 = vst [vmem:[#allocation4 + $0x3ac] sm:$0xf] %v1288_v61  ;;  %v1067_v16 = vsel %vm1053_vm1, %v1030_v4, %v1048_v7  ;;  %v1085_v18 = vsel %vm1053_vm1, %v1048_v7, %v1030_v4  ;;  %v1464_v23 = vsel %vm1432_vm3, %v1427_v10, %v1409_v14  ;;  %v1446_v48 = vsel %vm1432_vm3, %v1409_v14, %v1427_v10  ;;  %v6619_v44 = vld [vmem:[%s7177_s6] ss:$0 sm:$0xff] }
 0x1dc   : > { %1354 = vst [vmem:[#allocation4 + $0x370] sm:$0xf] %v1288_v61  ;;  %v1120_v20 = vsel %vm1015_vm0, 0.0, %v1085_v18  ;;  %v1157_v21 = vpack.c.bf16 %v1067_v16, %v1067_v16  ;;  %3274 = vmatmul.bf16.gmra.mxu2 %v4881_v12  ;;  %v1500_v31 = vsel %vm1395_vm2, 0.0, %v1464_v23  ;;  %v1535_v38 = vpack.c.bf16 %v1446_v48, %v1446_v48  ;;  %v5536_v12 = vld [vmem:[#allocation13 + $0x198] sm:$0xff] }
 0x1dd   : > { %1384 = vst [vmem:[#allocation4 + $0x334] sm:$0xf] %v1288_v61  ;;  %v1156_v22 = vpack.c.bf16 %v1120_v20, %v1120_v20  ;;  %v839_v24 = vpop.f32.mrf.mxu0  ;;  %v1536_v39 = vpack.c.bf16 %v1500_v31, %v1500_v31  ;;  %v4637_v3 = vor.u32 %v5387_v55, %v4634_v49  ;;  %v4593_v4 = vor.u32 %v5377_v0, %v4590_v59  ;;  %v5533_v55 = vld [vmem:[#allocation13 + $0x180] sm:$0xff] }
 0x1de   : > { %1325 = vst [vmem:[#allocation4 + $0x3d0] sm:$0xf] %v1289_v8  ;;  %v840_v28 = vadd.f32 %v6504_v56, %v839_v24  ;;  %3654 = vmatpush.bf16.msra.mxu0 %v5537_v62  ;;  %v5518_v24 = vld [vmem:[#allocation13 + $0x108] sm:$0xff] }
 0x1df   : > { %3229 = vmatmul.bf16.gmra.mxu0 %v4557_v19  ;;  %1193 = vst [vmem:[#allocation4 + $0x3cc] sm:$0xf] %v1157_v21  ;;  %3479 = vmatpush.bf16.msrb.mxu2 %v5518_v24 }
 0x1e0   : > { %1192 = vst [vmem:[#allocation4 + $0x3a8] sm:$0xf] %v1156_v22  ;;  %v887_v33 = vmul.f32 0.1, %v840_v28 }
 0x1e1   : > { %1222 = vst [vmem:[#allocation4 + $0x36c] sm:$0xf] %v1156_v22  ;;  %v6597_v54 = vpop.f32.mrf.mxu1 }
 0x1e2   : > { %1223 = vst [vmem:[#allocation4 + $0x390] sm:$0xf] %v1157_v21  ;;  %v923_v40 = vmax.f32 %v840_v28, %v887_v33  ;;  %v5458_v50 = vld [vmem:[#allocation4 + $0x3ac] sm:$0xf]  ;;  %3655 = vmatpush.bf16.msra.mxu0 %v5536_v12 }
 0x1e3   : > { %1252 = vst [vmem:[#allocation4 + $0x330] sm:$0xf] %v1156_v22 }
 0x1e4   : > { %1253 = vst [vmem:[#allocation4 + $0x354] sm:$0xf] %v1157_v21  ;;  %v1290_v57 = vpack.c.bf16 %v923_v40, %v923_v40  ;;  %v1031_v5 = vrot.slane %v923_v40, 7  ;;  %v1410_v10 = vrot.slane %v923_v40, 1  ;;  %v4626_v40 = vld [vmem:[#allocation4 + $0x18c] sm:$0xf0] }
 0x1e5   : > { %1355 = vst [vmem:[#allocation4 + $0x394] sm:$0xf] %v1289_v8  ;;  %v4914_v41 = vld [vmem:[#allocation4 + $0x3cc] sm:$0xf0]  ;;  %v841_v42 = vpop.f32.mrf.mxu0 }
 0x1e6   : > { %1385 = vst [vmem:[#allocation4 + $0x358] sm:$0xf] %v1289_v8  ;;  %v5462_v43 = vld [vmem:[#allocation4 + $0x3c8] sm:$0xf0]  ;;  %v842_v45 = vadd.f32 %v6504_v56, %v841_v42  ;;  %v4917_v61 = vor.u32 %v5458_v50, %v4914_v41  ;;  %3656 = vmatpush.bf16.msra.mxu0 %v5535_v27 }
 0x1e7   : > { %1571 = vst [vmem:[#allocation4 + $0x3b0] sm:$0xf] %v1535_v38  ;;  %v4912_v47 = vld [vmem:[#allocation4 + $0x3a8] sm:$0xf] }
 0x1e8   : > { %1572 = vst [vmem:[#allocation4 + $0x3d4] sm:$0xf] %v1536_v39  ;;  %v4913_v51 = vor.u32 %v5462_v43, %v4912_v47  ;;  %v888_v60 = vmul.f32 0.1, %v842_v45  ;;  %v5396_v43 = vld [vmem:[#allocation4 + $0x1bc] sm:$0xf] }
 0x1e9   : > { %1601 = vst [vmem:[#allocation4 + $0x374] sm:$0xf] %v1535_v38  ;;  %v6607_v19 = vpop.f32.mrf.mxu1 }
 0x1ea   : > { %1602 = vst [vmem:[#allocation4 + $0x398] sm:$0xf] %v1536_v39  ;;  %3190 = vmatmul.bf16.gmra.mxu3 %v4913_v51  ;;  %v924_v1 = vmax.f32 %v842_v45, %v888_v60  ;;  %3417 = vmatmul.bf16.gmra.mxu1 %v4637_v3  ;;  %v5386_v60 = vld [vmem:[#allocation4 + $0x16c] sm:$0xf] }
 0x1eb   : > { %1631 = vst [vmem:[#allocation4 + $0x338] sm:$0xf] %v1535_v38  ;;  %3657 = vmatpush.bf16.msra.mxu0 %v5534_v36 }
 0x1ec   : > { %1632 = vst [vmem:[#allocation4 + $0x35c] sm:$0xf] %v1536_v39  ;;  %v1049_v6 = vrot.slane %v924_v1, 7  ;;  %v1291_v7 = vpack.c.bf16 %v924_v1, %v924_v1  ;;  %v1428_v8 = vrot.slane %v924_v1, 1  ;;  %3279 = vmatmul.bf16.gmra.mxu2 %v4917_v61  ;;  %v4670_v39 = vld [vmem:[#allocation4 + $0x1dc] sm:$0xf0]  ;;  %v4629_v1 = vor.u32 %v5386_v60, %v4626_v40 }
 0x1ed   : > { %1326 = vst [vmem:[#allocation4 + $0x3f4] sm:$0xf] %v1290_v57  ;;  %v4673_v0 = vor.u32 %v5396_v43, %v4670_v39  ;;  %v5405_v40 = vld [vmem:[#allocation4 + $0x204] sm:$0xf] }
 0x1ee   : > { %1356 = vst [vmem:[#allocation4 + $0x3b8] sm:$0xf] %v1290_v57  ;;  %v1068_v13 = vsel %vm1053_vm1, %v1031_v5, %v1049_v6  ;;  %v1086_v14 = vsel %vm1053_vm1, %v1049_v6, %v1031_v5  ;;  %v1465_v18 = vsel %vm1432_vm3, %v1428_v8, %v1410_v10  ;;  %v1447_v22 = vsel %vm1432_vm3, %v1410_v10, %v1428_v8  ;;  %v5517_v8 = vld [vmem:[#allocation13 + $0x100] sm:$0xff] }
 0x1ef   : > { %1386 = vst [vmem:[#allocation4 + $0x37c] sm:$0xf] %v1290_v57  ;;  %3234 = vmatmul.bf16.gmra.mxu0 %v4593_v4  ;;  %v1122_v15 = vsel %vm1015_vm0, 0.0, %v1086_v14  ;;  %v1159_v16 = vpack.c.bf16 %v1068_v13, %v1068_v13  ;;  %v1502_v28 = vsel %vm1395_vm2, 0.0, %v1465_v18  ;;  %v1537_v31 = vpack.c.bf16 %v1447_v22, %v1447_v22  ;;  %3480 = vmatpush.bf16.msrb.mxu2 %v5517_v8 }
 0x1f0   : > { %1327 = vst [vmem:[#allocation4 + $0x418] sm:$0xf] %v1291_v7  ;;  %v1158_v20 = vpack.c.bf16 %v1122_v15, %v1122_v15  ;;  %v844_v21 = vpop.f32.mrf.mxu0  ;;  %v1538_v33 = vpack.c.bf16 %v1502_v28, %v1502_v28  ;;  %3658 = vmatpush.bf16.msra.mxu0 %v5533_v55 }
 0x1f1   : > { %1357 = vst [vmem:[#allocation4 + $0x3dc] sm:$0xf] %v1291_v7  ;;  %v845_v23 = vadd.f32 %v6504_v56, %v844_v21 }
 0x1f2   : > { %1195 = vst [vmem:[#allocation4 + $0x414] sm:$0xf] %v1159_v16 }
 0x1f3   : > { %1194 = vst [vmem:[#allocation4 + $0x3f0] sm:$0xf] %v1158_v20  ;;  %v889_v48 = vmul.f32 0.1, %v845_v23 }
 0x1f4   : > { %1224 = vst [vmem:[#allocation4 + $0x3b4] sm:$0xf] %v1158_v20  ;;  %v5467_v41 = vld [vmem:[#allocation4 + $0x3f4] sm:$0xf]  ;;  %v3161_v42 = vpop.f32.mrf.mxu1 }
 0x1f5   : > { %1225 = vst [vmem:[#allocation4 + $0x3d8] sm:$0xf] %v1159_v16  ;;  %v6614_v37 = vmax.f32 %v845_v23, %v889_v48  ;;  %v3162_v62 = vadd.f32 %v6619_v44, %v3161_v42 }
 0x1f6   : > { %1254 = vst [vmem:[#allocation4 + $0x378] sm:$0xf] %v1158_v20 }
 0x1f7   : > { %1255 = vst [vmem:[#allocation4 + $0x39c] sm:$0xf] %v1159_v16  ;;  %v4950_v38 = vld [vmem:[#allocation4 + $0x414] sm:$0xf0]  ;;  %v1292_v57 = vpack.c.bf16 %v6614_v37, %v6614_v37  ;;  %v1032_v4 = vrot.slane %v6614_v37, 7  ;;  %v1411_v5 = vrot.slane %v6614_v37, 1 }
 0x1f8   : > { %1387 = vst [vmem:[#allocation4 + $0x3a0] sm:$0xf] %v1291_v7  ;;  %v846_v45 = vpop.f32.mrf.mxu0  ;;  %v4953_v47 = vor.u32 %v5467_v41, %v4950_v38  ;;  %v5501_v7 = vld [vmem:[#allocation13 + $0x80] sm:$0xff]  ;;  %v5532_v16 = vld [vmem:[#allocation13 + $0x178] sm:$0xff]  ;;  %v4706_v41 = vld [vmem:[#allocation4 + $0x224] sm:$0xf0] }
 0x1f9   : > { %1573 = vst [vmem:[#allocation4 + $0x3f8] sm:$0xf] %v1537_v31  ;;  %v5471_v49 = vld [vmem:[#allocation4 + $0x410] sm:$0xf0]  ;;  %v847_v50 = vadd.f32 %v6504_v56, %v846_v45  ;;  %3302 = vmatpush.bf16.msrb.mxu3 %v5501_v7  ;;  %v4662_v45 = vld [vmem:[#allocation4 + $0x1d4] sm:$0xf0]  ;;  %v4709_v55 = vor.u32 %v5405_v40, %v4706_v41 }
 0x1fa   : > { %1574 = vst [vmem:[#allocation4 + $0x41c] sm:$0xf] %v1538_v33  ;;  %v4948_v51 = vld [vmem:[#allocation4 + $0x3f0] sm:$0xf]  ;;  %3422 = vmatmul.bf16.gmra.mxu1 %v4673_v0  ;;  %v5347_v40 = vld [vmem:[#allocation4 + $0x30] sm:$0xf0] }
 0x1fb   : > { %1603 = vst [vmem:[#allocation4 + $0x3bc] sm:$0xf] %v1537_v31  ;;  %v4949_v59 = vor.u32 %v5471_v49, %v4948_v51  ;;  %v890_v61 = vmul.f32 0.1, %v847_v50 }
 0x1fc   : > { %1604 = vst [vmem:[#allocation4 + $0x3e0] sm:$0xf] %v1538_v33  ;;  %3284 = vmatmul.bf16.gmra.mxu2 %v4953_v47  ;;  %v6629_v15 = vpop.f32.mrf.mxu1 }
 0x1fd   : > { %1633 = vst [vmem:[#allocation4 + $0x380] sm:$0xf] %v1537_v31  ;;  %3195 = vmatmul.bf16.gmra.mxu3 %v4949_v59  ;;  %v926_v3 = vmax.f32 %v847_v50, %v890_v61  ;;  %v1396_v31 = vrot.slane %v6098_v34, 1  ;;  %v5395_v34 = vld [vmem:[#allocation4 + $0x1b4] sm:$0xf] }
 0x1fe   : > { %1634 = vst [vmem:[#allocation4 + $0x3a4] sm:$0xf] %v1538_v33  ;;  %3562 = vmatpush.bf16.msra.mxu3 %v5532_v16  ;;  %v4665_v59 = vor.u32 %v5395_v34, %v4662_v45  ;;  %v5348_v45 = vld [vmem:[#allocation4 + $0x38] sm:$0xf0] }
 0x1ff   : > { %1328 = vst [vmem:[#allocation4 + $0x43c] sm:$0xf] %v1292_v57  ;;  %3239 = vmatmul.bf16.gmra.mxu0 %v4629_v1  ;;  %v3250_v6 = vpop.f32.mrf.mxu2  ;;  %v1050_v10 = vrot.slane %v926_v3, 7  ;;  %v1293_v12 = vpack.c.bf16 %v926_v3, %v926_v3  ;;  %v1429_v13 = vrot.slane %v926_v3, 1 }
 0x200   : > { %1358 = vst [vmem:[#allocation4 + $0x400] sm:$0xf] %v1292_v57  ;;  %v6627_v14 = vadd.f32 %v3250_v6, %v3162_v62  ;;  %v1474_v62 = vsel %vm1395_vm2, 0.0, %v1396_v31 }
 0x201   : > { %1388 = vst [vmem:[#allocation4 + $0x3c4] sm:$0xf] %v1292_v57  ;;  %v1069_v18 = vsel %vm1053_vm1, %v1032_v4, %v1050_v10  ;;  %v1087_v20 = vsel %vm1053_vm1, %v1050_v10, %v1032_v4  ;;  %v1466_v21 = vsel %vm1432_vm3, %v1429_v13, %v1411_v5  ;;  %v1448_v26 = vsel %vm1432_vm3, %v1411_v5, %v1429_v13  ;;  %v5556_v5 = vld [vmem:[#allocation13 + $0x238] sm:$0xff] }
 0x202   : > { %1329 = vst [vmem:[#allocation4 + $0x460] sm:$0xf] %v1293_v12  ;;  %v1124_v22 = vsel %vm1015_vm0, 0.0, %v1087_v20  ;;  %v1161_v23 = vpack.c.bf16 %v1069_v18, %v1069_v18  ;;  %v1504_v28 = vsel %vm1395_vm2, 0.0, %v1466_v21  ;;  %v1539_v33 = vpack.c.bf16 %v1448_v26, %v1448_v26  ;;  %3829 = vmatpush.bf16.msra.mxu2 %v5556_v5  ;;  %v5548_v26 = vld [vmem:[#allocation13 + $0x1f8] sm:$0xff] }
 0x203   : > { %1359 = vst [vmem:[#allocation4 + $0x424] sm:$0xf] %v1293_v12  ;;  %v1160_v24 = vpack.c.bf16 %v1124_v22, %v1124_v22  ;;  %v849_v27 = vpop.f32.mrf.mxu0  ;;  %v1540_v37 = vpack.c.bf16 %v1504_v28, %v1504_v28  ;;  %v1509_v4 = vpack.c.bf16 %v1396_v31, %v1396_v31  ;;  %v1510_v6 = vpack.c.bf16 %v1474_v62, %v1474_v62  ;;  %v5423_v5 = vld [vmem:[#allocation4 + $0x294] sm:$0xf] }
 0x204   : > { %1389 = vst [vmem:[#allocation4 + $0x3e8] sm:$0xf] %v1293_v12  ;;  %v850_v48 = vadd.f32 %v6504_v56, %v849_v27  ;;  %3740 = vmatpush.bf16.msra.mxu1 %v5548_v26 }
 0x205   : > { %1197 = vst [vmem:[#allocation4 + $0x45c] sm:$0xf] %v1161_v23 }
 0x206   : > { %1196 = vst [vmem:[#allocation4 + $0x438] sm:$0xf] %v1160_v24  ;;  %v891_v36 = vmul.f32 0.1, %v850_v48  ;;  %v5476_v42 = vld [vmem:[#allocation4 + $0x43c] sm:$0xf] }
 0x207   : > { %1226 = vst [vmem:[#allocation4 + $0x3fc] sm:$0xf] %v1160_v24  ;;  %v6645_v38 = vpop.f32.mrf.mxu2  ;;  %v3166_v39 = vpop.f32.mrf.mxu1 }
 0x208   : > { %1227 = vst [vmem:[#allocation4 + $0x420] sm:$0xf] %v1161_v23  ;;  %v927_v49 = vmax.f32 %v850_v48, %v891_v36  ;;  %v3167_v3 = vadd.f32 %v6619_v44, %v3166_v39  ;;  %v4460_v39 = vld [vmem:[#allocation4 + $0x10] sm:$0xf] }
 0x209   : > { %1256 = vst [vmem:[#allocation4 + $0x3c0] sm:$0xf] %v1160_v24  ;;  %v4986_v43 = vld [vmem:[#allocation4 + $0x45c] sm:$0xf0]  ;;  %v4461_v58 = vor.u32 %v5347_v40, %v4460_v39  ;;  %v5365_v40 = vld [vmem:[#allocation4 + $0xc0] sm:$0xf0] }
 0x20a   : > { %1257 = vst [vmem:[#allocation4 + $0x3e4] sm:$0xf] %v1161_v23  ;;  %v4989_v47 = vor.u32 %v5476_v42, %v4986_v43  ;;  %v1294_v57 = vpack.c.bf16 %v927_v49, %v927_v49  ;;  %3427 = vmatmul.bf16.gmra.mxu1 %v4709_v55  ;;  %v1412_v8 = vrot.slane %v927_v49, 1  ;;  %v4742_v43 = vld [vmem:[#allocation4 + $0x26c] sm:$0xf0] }
 0x20b   : > { %1575 = vst [vmem:[#allocation4 + $0x440] sm:$0xf] %v1539_v33  ;;  %v851_v50 = vpop.f32.mrf.mxu0 }
 0x20c   : > { %1576 = vst [vmem:[#allocation4 + $0x464] sm:$0xf] %v1540_v37  ;;  %v5480_v51 = vld [vmem:[#allocation4 + $0x458] sm:$0xf0]  ;;  %v852_v60 = vadd.f32 %v6504_v56, %v851_v50  ;;  %3289 = vmatmul.bf16.gmra.mxu2 %v4989_v47  ;;  %v1033_v56 = vrot.slane %v927_v49, 7 }
 0x20d   : > { %1605 = vst [vmem:[#allocation4 + $0x404] sm:$0xf] %v1539_v33  ;;  %v4984_v61 = vld [vmem:[#allocation4 + $0x438] sm:$0xf] }
 0x20e   : > { %1606 = vst [vmem:[#allocation4 + $0x428] sm:$0xf] %v1540_v37  ;;  %v4985_v0 = vor.u32 %v5480_v51, %v4984_v61  ;;  %v892_v1 = vmul.f32 0.1, %v852_v60  ;;  %v4745_v51 = vor.u32 %v5414_v32, %v4742_v43  ;;  %v5432_v32 = vld [vmem:[#allocation4 + $0x2dc] sm:$0xf] }
 0x20f   : > { %1635 = vst [vmem:[#allocation4 + $0x3c8] sm:$0xf] %v1539_v33  ;;  %3244 = vmatmul.bf16.gmra.mxu0 %v4665_v59  ;;  %v6651_v7 = vpop.f32.mrf.mxu1  ;;  %v4814_v43 = vld [vmem:[#allocation4 + $0x2fc] sm:$0xf0] }
 0x210   : > { %1636 = vst [vmem:[#allocation4 + $0x3ec] sm:$0xf] %v1540_v37  ;;  %3200 = vmatmul.bf16.gmra.mxu3 %v4985_v0  ;;  %v928_v10 = vmax.f32 %v852_v60, %v892_v1  ;;  %v4468_v37 = vld [vmem:[#allocation4 + $0x18] sm:$0xf]  ;;  %v5531_v0 = vld [vmem:[#allocation13 + $0x170] sm:$0xff] }
 0x211   : > { %1360 = vst [vmem:[#allocation4 + $0x448] sm:$0xf] %v1294_v57  ;;  %v4469_v55 = vor.u32 %v5348_v45, %v4468_v37  ;;  %3563 = vmatpush.bf16.msra.mxu3 %v5531_v0  ;;  %v5547_v37 = vld [vmem:[#allocation13 + $0x1f0] sm:$0xff]  ;;  %v4540_v45 = vld [vmem:[#allocation4 + $0xa8] sm:$0xf] }
 0x212   : > { %1390 = vst [vmem:[#allocation4 + $0x40c] sm:$0xf] %v1294_v57  ;;  %v3255_v12 = vpop.f32.mrf.mxu2  ;;  %v1051_v13 = vrot.slane %v928_v10, 7  ;;  %v1295_v16 = vpack.c.bf16 %v928_v10, %v928_v10  ;;  %v1430_v18 = vrot.slane %v928_v10, 1  ;;  %v5357_v10 = vld [vmem:[#allocation4 + $0x80] sm:$0xf0]  ;;  %3741 = vmatpush.bf16.msra.mxu1 %v5547_v37 }
 0x213   : > { %v6653_v20 = vadd.f32 %v3255_v12, %v3167_v3  ;;  %1545 = vst [vmem:[#allocation4 + $0x8] sm:$0xf] %v1509_v4  ;;  %v5356_v3 = vld [vmem:[#allocation4 + $0x78] sm:$0xf0]  ;;  %v4496_v12 = vld [vmem:[#allocation4 + $0x58] sm:$0xf] }
 0x214   : > { %1546 = vst [vmem:[#allocation4 + $0x2c] sm:$0xf] %v1510_v6  ;;  %v1070_v21 = vsel %vm1053_vm1, %v1033_v56, %v1051_v13  ;;  %v1088_v22 = vsel %vm1053_vm1, %v1051_v13, %v1033_v56  ;;  %v1449_v23 = vsel %vm1432_vm3, %v1412_v8, %v1430_v18  ;;  %v1467_v24 = vsel %vm1432_vm3, %v1430_v18, %v1412_v8  ;;  %v4778_v56 = vld [vmem:[#allocation4 + $0x2b4] sm:$0xf0]  ;;  %v4504_v8 = vld [vmem:[#allocation4 + $0x60] sm:$0xf] }
 0x215   : > { %1361 = vst [vmem:[#allocation4 + $0x46c] sm:$0xf] %v1295_v16  ;;  %v1126_v27 = vsel %vm1015_vm0, 0.0, %v1088_v22  ;;  %v1163_v28 = vpack.c.bf16 %v1070_v21, %v1070_v21  ;;  %v1506_v48 = vsel %vm1395_vm2, 0.0, %v1467_v24  ;;  %v1541_v36 = vpack.c.bf16 %v1449_v23, %v1449_v23  ;;  %v5355_v18 = vld [vmem:[#allocation4 + $0x70] sm:$0xf0] }
 0x216   : > { %1391 = vst [vmem:[#allocation4 + $0x430] sm:$0xf] %v1295_v16  ;;  %v1162_v31 = vpack.c.bf16 %v1126_v27, %v1126_v27  ;;  %v854_v33 = vpop.f32.mrf.mxu0  ;;  %v1542_v41 = vpack.c.bf16 %v1506_v48, %v1506_v48  ;;  %v4497_v13 = vor.u32 %v5356_v3, %v4496_v12  ;;  %v4488_v16 = vld [vmem:[#allocation4 + $0x50] sm:$0xf]  ;;  %v4781_v23 = vor.u32 %v5423_v5, %v4778_v56 }
 0x217   : > { %1639 = vst [vmem:[#allocation4 + $0x458] sm:$0xf] %v1509_v4  ;;  %v6667_v42 = vpop.f32.mrf.mxu1  ;;  %v4505_v26 = vor.u32 %v5357_v10, %v4504_v8  ;;  %v4489_v27 = vor.u32 %v5355_v18, %v4488_v16  ;;  %v5374_v16 = vld [vmem:[#allocation4 + $0x108] sm:$0xf0] }
 0x218   : > { %1229 = vst [vmem:[#allocation4 + $0x468] sm:$0xf] %v1163_v28 }
 0x219   : > { %1228 = vst [vmem:[#allocation4 + $0x444] sm:$0xf] %v1162_v31 }
 0x21a   : > { %1258 = vst [vmem:[#allocation4 + $0x408] sm:$0xf] %v1162_v31  ;;  %v4452_v47 = vld [vmem:[#allocation4 + $0x8] sm:$0xf]  ;;  %v6669_v34 = vpop.f32.mrf.mxu2  ;;  %3432 = vmatmul.bf16.gmra.mxu1 %v4745_v51 }
 0x21b   : > { %1259 = vst [vmem:[#allocation4 + $0x42c] sm:$0xf] %v1163_v28  ;;  %v5346_v49 = vld [vmem:[#allocation4 + $0x28] sm:$0xf0]  ;;  %v5555_v28 = vld [vmem:[#allocation13 + $0x230] sm:$0xff] }
 0x21c   : > { %1607 = vst [vmem:[#allocation4 + $0x44c] sm:$0xf] %v1541_v36  ;;  %v4453_v50 = vor.u32 %v5346_v49, %v4452_v47  ;;  %3481 = vmatmul.bf16.vlgmr.msrb.gmra.mxu2 %v4461_v58  ;;  %v5366_v47 = vld [vmem:[#allocation4 + $0xc8] sm:$0xf0]  ;;  %v4532_v58 = vld [vmem:[#allocation4 + $0xa0] sm:$0xf] }
 0x21d   : > { %1608 = vst [vmem:[#allocation4 + $0x470] sm:$0xf] %v1542_v41  ;;  %3830 = vmatpush.bf16.msra.mxu2 %v5555_v28  ;;  %v4541_v3 = vor.u32 %v5366_v47, %v4540_v45  ;;  %v4568_v28 = vld [vmem:[#allocation4 + $0xe8] sm:$0xf] }
 0x21e   : > { %1637 = vst [vmem:[#allocation4 + $0x410] sm:$0xf] %v1541_v36  ;;  %v856_v57 = vpop.f32.mrf.mxu0  ;;  %v4569_v37 = vor.u32 %v5374_v16, %v4568_v28  ;;  %v4886_v16 = vld [vmem:[#allocation4 + $0x38c] sm:$0xf0] }
 0x21f   : > { %1638 = vst [vmem:[#allocation4 + $0x434] sm:$0xf] %v1542_v41  ;;  %3659 = vmatmul.bf16.vlgmr.msra.gmra.mxu0 %v4469_v55  ;;  %v6671_v60 = vpop.f32.mrf.mxu1  ;;  %v4524_v55 = vld [vmem:[#allocation4 + $0x98] sm:$0xf]  ;;  %v5364_v57 = vld [vmem:[#allocation4 + $0xb8] sm:$0xf0] }
 0x220   : > { %3303 = vmatmul.bf16.vlgmr.msrb.gmra.mxu3 %v4453_v50  ;;  %1640 = vst [vmem:[#allocation4 + $0x47c] sm:$0xf] %v1510_v6  ;;  %v3171_v59 = vpop.f32.mrf.mxu3  ;;  %v3127_v6 = vadd.f32 %v6619_v44, %v6470_v63  ;;  %v3129_v63 = vadd.f32 %v6619_v44, %v6480_v17  ;;  %v3132_v50 = vadd.f32 %v6619_v44, %v6494_v35 }
 0x221   : > { %v3172_v61 = vadd.f32 %v6619_v44, %v3171_v59  ;;  %v4533_v17 = vor.u32 %v5365_v40, %v4532_v58  ;;  %v4525_v5 = vor.u32 %v5364_v57, %v4524_v55  ;;  %v3134_v35 = vadd.f32 %v6619_v44, %v6499_v53  ;;  %v5373_v40 = vld [vmem:[#allocation4 + $0x100] sm:$0xf0] }
 0x222   : > { %v3137_v53 = vadd.f32 %v6619_v44, %v6517_v11  ;;  %v3139_v57 = vadd.f32 %v6619_v44, %v6531_v29  ;;  %v4596_v29 = vld [vmem:[#allocation4 + $0x128] sm:$0xf] }
 0x225   : > { %v3260_v62 = vpop.f32.mrf.mxu2 }
 0x226   : > { %v6674_v1 = vadd.f32 %v3260_v62, %v3172_v61  ;;  %v4817_v61 = vor.u32 %v5432_v32, %v4814_v43 }
 0x227   : > { %v6676_v4 = vpop.f32.mrf.mxu1 }
 0x228   : > { %v6680_v22 = vpop.f32.mrf.mxu3 }
 0x22a   : > { %3437 = vmatmul.bf16.gmra.mxu1 %v4781_v23  ;;  %v4850_v23 = vld [vmem:[#allocation4 + $0x344] sm:$0xf0] }
 0x22c   : > { %v3215_v21 = vpop.f32.mrf.mxu0  ;;  %3486 = vmatmul.bf16.gmra.mxu2 %v4497_v13  ;;  %v5530_v13 = vld [vmem:[#allocation13 + $0x168] sm:$0xff] }
 0x22d   : > { %v6682_v24 = vadd.f32 %v3215_v21, %v3127_v6  ;;  %v6684_v48 = vpop.f32.mrf.mxu2  ;;  %3564 = vmatpush.bf16.msra.mxu3 %v5530_v13  ;;  %v5441_v21 = vld [vmem:[#allocation4 + $0x324] sm:$0xf]  ;;  %v5450_v13 = vld [vmem:[#allocation4 + $0x36c] sm:$0xf] }
 0x22e   : > { %v4853_v32 = vor.u32 %v5441_v21, %v4850_v23  ;;  %v5384_v21 = vld [vmem:[#allocation4 + $0x158] sm:$0xf0]  ;;  %v4604_v23 = vld [vmem:[#allocation4 + $0x130] sm:$0xf] }
 0x22f   : > { %3664 = vmatmul.bf16.gmra.mxu0 %v4505_v26  ;;  %v6686_v31 = vpop.f32.mrf.mxu1  ;;  %v4576_v26 = vld [vmem:[#allocation4 + $0xf0] sm:$0xf] }
 0x230   : > { %3308 = vmatmul.bf16.gmra.mxu3 %v4489_v27  ;;  %v5375_v27 = vld [vmem:[#allocation4 + $0x110] sm:$0xf0] }
 0x231   : > { %v4577_v45 = vor.u32 %v5375_v27, %v4576_v26  ;;  %v3142_v27 = vadd.f32 %v6619_v44, %v6543_v52 }
 0x234   : > { %v3217_v33 = vpop.f32.mrf.mxu0 }
 0x235   : > { %v6690_v36 = vadd.f32 %v3217_v33, %v3129_v63 }
 0x236   : > { %v3176_v39 = vpop.f32.mrf.mxu3 }
 0x237   : > { %v3177_v41 = vadd.f32 %v6619_v44, %v3176_v39  ;;  %v6693_v49 = vpop.f32.mrf.mxu1  ;;  %v4560_v39 = vld [vmem:[#allocation4 + $0xe0] sm:$0xf] }
 0x238   : > { %v4561_v58 = vor.u32 %v5373_v40, %v4560_v39  ;;  %v4889_v39 = vor.u32 %v5450_v13, %v4886_v16  ;;  %v5459_v13 = vld [vmem:[#allocation4 + $0x3b4] sm:$0xf]  ;;  %v4922_v16 = vld [vmem:[#allocation4 + $0x3d4] sm:$0xf0] }
 0x23a   : > { %3442 = vmatmul.bf16.gmra.mxu1 %v4817_v61 }
 0x23b   : > { %v3265_v51 = vpop.f32.mrf.mxu2 }
 0x23c   : > { %v3220_v59 = vpop.f32.mrf.mxu0  ;;  %v6697_v62 = vadd.f32 %v3265_v51, %v3177_v41  ;;  %3491 = vmatmul.bf16.gmra.mxu2 %v4533_v17  ;;  %v5554_v17 = vld [vmem:[#allocation13 + $0x228] sm:$0xff] }
 0x23d   : > { %v6699_v0 = vadd.f32 %v3220_v59, %v3132_v50  ;;  %3831 = vmatpush.bf16.msra.mxu2 %v5554_v17  ;;  %v3144_v17 = vadd.f32 %v6619_v44, %v6556_v9  ;;  %v3147_v9 = vadd.f32 %v6619_v44, %v6565_v25 }
 0x23e   : > { %v6701_v56 = vpop.f32.mrf.mxu3 }
 0x23f   : > { %3669 = vmatmul.bf16.gmra.mxu0 %v4541_v3  ;;  %v6703_v8 = vpop.f32.mrf.mxu1 }
 0x240   : > { %3313 = vmatmul.bf16.gmra.mxu3 %v4525_v5  ;;  %v5546_v5 = vld [vmem:[#allocation13 + $0x1e8] sm:$0xff] }
 0x241   : > { %3742 = vmatpush.bf16.msra.mxu1 %v5546_v5 }
 0x243   : > { %v6707_v10 = vpop.f32.mrf.mxu2 }
 0x244   : > { %v3222_v12 = vpop.f32.mrf.mxu0 }
 0x245   : > { %v6709_v6 = vadd.f32 %v3222_v12, %v3134_v35  ;;  %v5383_v12 = vld [vmem:[#allocation4 + $0x150] sm:$0xf0] }
 0x246   : > { %v4605_v28 = vor.u32 %v5383_v12, %v4604_v23  ;;  %v5392_v12 = vld [vmem:[#allocation4 + $0x198] sm:$0xf0]  ;;  %v5393_v23 = vld [vmem:[#allocation4 + $0x1a0] sm:$0xf0] }
 0x247   : > { %v6712_v33 = vpop.f32.mrf.mxu1 }
 0x248   : > { %v3181_v18 = vpop.f32.mrf.mxu3 }
 0x249   : > { %v3182_v63 = vadd.f32 %v6619_v44, %v3181_v18  ;;  %v4612_v18 = vld [vmem:[#allocation4 + $0x138] sm:$0xf] }
 0x24a   : > { %3447 = vmatmul.bf16.gmra.mxu1 %v4853_v32 }
 0x24c   : > { %v3225_v41 = vpop.f32.mrf.mxu0  ;;  %3496 = vmatmul.bf16.gmra.mxu2 %v4569_v37 }
 0x24d   : > { %v6716_v43 = vadd.f32 %v3225_v41, %v3137_v53  ;;  %v3270_v47 = vpop.f32.mrf.mxu2  ;;  %v4613_v41 = vor.u32 %v5384_v21, %v4612_v18  ;;  %v4648_v21 = vld [vmem:[#allocation4 + $0x180] sm:$0xf] }
 0x24e   : > { %v6718_v50 = vadd.f32 %v3270_v47, %v3182_v63  ;;  %v5382_v63 = vld [vmem:[#allocation4 + $0x148] sm:$0xf0] }
 0x24f   : > { %3674 = vmatmul.bf16.gmra.mxu0 %v4577_v45  ;;  %v6721_v55 = vpop.f32.mrf.mxu1  ;;  %v4597_v45 = vor.u32 %v5382_v63, %v4596_v29  ;;  %v5391_v29 = vld [vmem:[#allocation4 + $0x190] sm:$0xf0] }
 0x250   : > { %3318 = vmatmul.bf16.gmra.mxu3 %v4561_v58  ;;  %v3183_v51 = vpop.f32.mrf.mxu3 }
 0x251   : > { %v3184_v11 = vadd.f32 %v6619_v44, %v3183_v51 }
 0x254   : > { %v3227_v59 = vpop.f32.mrf.mxu0 }
 0x255   : > { %v6725_v61 = vadd.f32 %v3227_v59, %v3139_v57  ;;  %v3272_v3 = vpop.f32.mrf.mxu2  ;;  %v5529_v59 = vld [vmem:[#allocation13 + $0x160] sm:$0xff] }
 0x256   : > { %v6727_v35 = vadd.f32 %v3272_v3, %v3184_v11  ;;  %3565 = vmatpush.bf16.msra.mxu3 %v5529_v59 }
 0x257   : > { %v6731_v37 = vpop.f32.mrf.mxu1 }
 0x25a   : > { %v3186_v26 = vpop.f32.mrf.mxu3  ;;  %3452 = vmatmul.bf16.gmra.mxu1 %v4889_v39 }
 0x25b   : > { %v3187_v32 = vadd.f32 %v6619_v44, %v3186_v26  ;;  %v4640_v26 = vld [vmem:[#allocation4 + $0x178] sm:$0xf] }
 0x25c   : > { %v3230_v53 = vpop.f32.mrf.mxu0  ;;  %3501 = vmatmul.bf16.gmra.mxu2 %v4605_v28  ;;  %v4632_v28 = vld [vmem:[#allocation4 + $0x170] sm:$0xf] }
 0x25d   : > { %v6733_v40 = vadd.f32 %v3230_v53, %v3142_v27  ;;  %v4641_v27 = vor.u32 %v5392_v12, %v4640_v26  ;;  %v4925_v53 = vor.u32 %v5459_v13, %v4922_v16  ;;  %v5545_v13 = vld [vmem:[#allocation13 + $0x1e0] sm:$0xff]  ;;  %v5468_v26 = vld [vmem:[#allocation4 + $0x3fc] sm:$0xf] }
 0x25e   : > { %3743 = vmatpush.bf16.msra.mxu1 %v5545_v13 }
 0x25f   : > { %3679 = vmatmul.bf16.gmra.mxu0 %v4613_v41  ;;  %v3275_v47 = vpop.f32.mrf.mxu2  ;;  %v6743_v3 = vpop.f32.mrf.mxu1  ;;  %v4649_v41 = vor.u32 %v5393_v23, %v4648_v21  ;;  %v5401_v23 = vld [vmem:[#allocation4 + $0x1e0] sm:$0xf0] }
 0x260   : > { %3323 = vmatmul.bf16.gmra.mxu3 %v4597_v45  ;;  %v6736_v58 = vadd.f32 %v3275_v47, %v3187_v32  ;;  %v4633_v45 = vor.u32 %v5391_v29, %v4632_v28  ;;  %v4684_v28 = vld [vmem:[#allocation4 + $0x1c8] sm:$0xf]  ;;  %v5402_v29 = vld [vmem:[#allocation4 + $0x1e8] sm:$0xf0] }
 0x262   : > { %7211 = vst [vmem:[#allocation26_spill] sm:$0xff] %v6736_v58  ;;  %v3188_v52 = vpop.f32.mrf.mxu3 }
 0x263   : > { %v3189_v57 = vadd.f32 %v6619_v44, %v3188_v52  ;;  %v5553_v52 = vld [vmem:[#allocation13 + $0x220] sm:$0xff] }
 0x264   : > { %v3232_v51 = vpop.f32.mrf.mxu0  ;;  %3832 = vmatpush.bf16.msra.mxu2 %v5553_v52 }
 0x265   : > { %v6740_v11 = vadd.f32 %v3232_v51, %v3144_v17 }
 0x267   : > { %v3277_v5 = vpop.f32.mrf.mxu2  ;;  %v6752_v51 = vpop.f32.mrf.mxu1 }
 0x268   : > { %v6745_v18 = vadd.f32 %v3277_v5, %v3189_v57  ;;  %v3149_v57 = vadd.f32 %v6619_v44, %v6576_v46  ;;  %v3152_v46 = vadd.f32 %v6619_v44, %v6579_v2  ;;  %v3154_v2 = vadd.f32 %v6619_v44, %v6592_v30 }
 0x26a   : > { %7212 = vst [vmem:[#allocation27_spill] sm:$0xff] %v6745_v18  ;;  %3457 = vmatmul.bf16.gmra.mxu1 %v4925_v53 }
 0x26c   : > { %v3235_v63 = vpop.f32.mrf.mxu0  ;;  %3506 = vmatmul.bf16.gmra.mxu2 %v4641_v27 }
 0x26d   : > { %v6749_v39 = vadd.f32 %v3235_v63, %v3147_v9  ;;  %v3191_v32 = vpop.f32.mrf.mxu3  ;;  %v4958_v9 = vld [vmem:[#allocation4 + $0x41c] sm:$0xf0] }
 0x26e   : > { %v3192_v47 = vadd.f32 %v6619_v44, %v3191_v32  ;;  %v4676_v63 = vld [vmem:[#allocation4 + $0x1c0] sm:$0xf]  ;;  %v4668_v32 = vld [vmem:[#allocation4 + $0x1b8] sm:$0xf]  ;;  %v4961_v52 = vor.u32 %v5468_v26, %v4958_v9 }
 0x26f   : > { %3684 = vmatmul.bf16.gmra.mxu0 %v4649_v41  ;;  %v3280_v17 = vpop.f32.mrf.mxu2  ;;  %v6763_v53 = vpop.f32.mrf.mxu1  ;;  %v4677_v41 = vor.u32 %v5401_v23, %v4676_v63  ;;  %v5528_v26 = vld [vmem:[#allocation13 + $0x158] sm:$0xff] }
 0x270   : > { %3328 = vmatmul.bf16.gmra.mxu3 %v4633_v45  ;;  %v6754_v25 = vadd.f32 %v3280_v17, %v3192_v47  ;;  %v5400_v45 = vld [vmem:[#allocation4 + $0x1d8] sm:$0xf0] }
 0x271   : > { %3566 = vmatpush.bf16.msra.mxu3 %v5528_v26 }
 0x272   : > { %7213 = vst [vmem:[#allocation28_spill] sm:$0xff] %v6754_v25 }
 0x274   : > { %v3237_v59 = vpop.f32.mrf.mxu0 }
 0x275   : > { %v6758_v5 = vadd.f32 %v3237_v59, %v3149_v57  ;;  %v3193_v12 = vpop.f32.mrf.mxu3  ;;  %v4685_v57 = vor.u32 %v5402_v29, %v4684_v28  ;;  %v4669_v59 = vor.u32 %v5400_v45, %v4668_v32  ;;  %v5477_v28 = vld [vmem:[#allocation4 + $0x444] sm:$0xf]  ;;  %v4994_v29 = vld [vmem:[#allocation4 + $0x464] sm:$0xf0]  ;;  %v5410_v32 = vld [vmem:[#allocation4 + $0x228] sm:$0xf0] }
 0x276   : > { %v3194_v16 = vadd.f32 %v6619_v44, %v3193_v12  ;;  %v4997_v30 = vor.u32 %v5477_v28, %v4994_v29  ;;  %v5543_v28 = vld [vmem:[#allocation13 + $0x1d0] sm:$0xff]  ;;  %v5552_v29 = vld [vmem:[#allocation13 + $0x218] sm:$0xff] }
 0x277   : > { %v3282_v21 = vpop.f32.mrf.mxu2  ;;  %v6774_v63 = vpop.f32.mrf.mxu1  ;;  %3833 = vmatpush.bf16.msra.mxu2 %v5552_v29  ;;  %v5418_v29 = vld [vmem:[#allocation4 + $0x268] sm:$0xf0] }
 0x278   : > { %v6761_v27 = vadd.f32 %v3282_v21, %v3194_v16 }
 0x27a   : > { %7214 = vst [vmem:[#allocation29_spill] sm:$0xff] %v6761_v27  ;;  %3462 = vmatmul.bf16.gmra.mxu1 %v4961_v52  ;;  %v4720_v52 = vld [vmem:[#allocation4 + $0x210] sm:$0xf] }
 0x27c   : > { %v3240_v47 = vpop.f32.mrf.mxu0  ;;  %3511 = vmatmul.bf16.gmra.mxu2 %v4677_v41 }
 0x27d   : > { %v6767_v17 = vadd.f32 %v3240_v47, %v3152_v46  ;;  %v4712_v47 = vld [vmem:[#allocation4 + $0x208] sm:$0xf] }
 0x27f   : > { %3689 = vmatmul.bf16.gmra.mxu0 %v4685_v57  ;;  %v3285_v12 = vpop.f32.mrf.mxu2  ;;  %v5411_v57 = vld [vmem:[#allocation4 + $0x230] sm:$0xf0]  ;;  %v6785_v25 = vpop.f32.mrf.mxu1 }
 0x280   : > { %3333 = vmatmul.bf16.gmra.mxu3 %v4669_v59  ;;  %v3196_v13 = vpop.f32.mrf.mxu3  ;;  %v5544_v59 = vld [vmem:[#allocation13 + $0x1d8] sm:$0xff]  ;;  %v4721_v27 = vor.u32 %v5411_v57, %v4720_v52  ;;  %v5541_v52 = vld [vmem:[#allocation13 + $0x1c0] sm:$0xff] }
 0x281   : > { %v3197_v16 = vadd.f32 %v6619_v44, %v3196_v13  ;;  %v4713_v13 = vor.u32 %v5410_v32, %v4712_v47  ;;  %3744 = vmatpush.bf16.msra.mxu1 %v5544_v59  ;;  %v5419_v59 = vld [vmem:[#allocation4 + $0x270] sm:$0xf0] }
 0x283   : > { %v6772_v21 = vadd.f32 %v3285_v12, %v3197_v16  ;;  %v3157_v12 = vadd.f32 %v6619_v44, %v6597_v54  ;;  %v4704_v16 = vld [vmem:[#allocation4 + $0x200] sm:$0xf]  ;;  %v5542_v54 = vld [vmem:[#allocation13 + $0x1c8] sm:$0xff] }
 0x284   : > { %v3242_v23 = vpop.f32.mrf.mxu0 }
 0x285   : > { %7215 = vst [vmem:[#allocation30_spill] sm:$0xff] %v6772_v21  ;;  %v6776_v9 = vadd.f32 %v3242_v23, %v3154_v2  ;;  %v5409_v2 = vld [vmem:[#allocation4 + $0x220] sm:$0xf0]  ;;  %3745 = vmatpush.bf16.msra.mxu1 %v5543_v28  ;;  %v4740_v28 = vld [vmem:[#allocation4 + $0x248] sm:$0xf] }
 0x287   : > { %v3287_v46 = vpop.f32.mrf.mxu2 }
 0x288   : > { %v3198_v41 = vpop.f32.mrf.mxu3 }
 0x289   : > { %v3199_v45 = vadd.f32 %v6619_v44, %v3198_v41  ;;  %v4705_v41 = vor.u32 %v5409_v2, %v4704_v16  ;;  %3746 = vmatpush.bf16.msra.mxu1 %v5542_v54  ;;  %v4756_v16 = vld [vmem:[#allocation4 + $0x258] sm:$0xf]  ;;  %v5420_v2 = vld [vmem:[#allocation4 + $0x278] sm:$0xf0] }
 0x28a   : > { %3467 = vmatmul.bf16.gmra.mxu1 %v4997_v30 }
 0x28b   : > { %v6781_v23 = vadd.f32 %v3287_v46, %v3199_v45  ;;  %v3159_v46 = vadd.f32 %v6619_v44, %v6607_v19 }
 0x28c   : > { %v3245_v26 = vpop.f32.mrf.mxu0  ;;  %3516 = vmatmul.bf16.gmra.mxu2 %v4713_v13  ;;  %v4470_v13 = vld [vmem:[#allocation4 + $0x3c] sm:$0xf0] }
 0x28d   : > { %7216 = vst [vmem:[#allocation31_spill] sm:$0xff] %v6781_v23  ;;  %v6783_v21 = vadd.f32 %v3245_v26, %v3157_v12  ;;  %v6794_v12 = vpop.f32.mrf.mxu1  ;;  %3747 = vmatpush.bf16.msra.mxu1 %v5541_v52  ;;  %v4748_v26 = vld [vmem:[#allocation4 + $0x250] sm:$0xf] }
 0x28f   : > { %3694 = vmatmul.bf16.gmra.mxu0 %v4721_v27  ;;  %v3290_v18 = vpop.f32.mrf.mxu2 }
 0x290   : > { %3338 = vmatmul.bf16.gmra.mxu3 %v4705_v41  ;;  %v4749_v41 = vor.u32 %v5419_v59, %v4748_v26  ;;  %v5527_v26 = vld [vmem:[#allocation13 + $0x150] sm:$0xff] }
 0x291   : > { %3567 = vmatpush.bf16.msra.mxu3 %v5527_v26 }
 0x293   : > { %v3201_v32 = vpop.f32.mrf.mxu3 }
 0x294   : > { %v3247_v45 = vpop.f32.mrf.mxu0  ;;  %v3202_v47 = vadd.f32 %v6619_v44, %v3201_v32  ;;  %v5344_v32 = vld [vmem:[#allocation4 + $0x1c] sm:$0xf] }
 0x295   : > { %v6790_v57 = vadd.f32 %v3247_v45, %v3159_v46  ;;  %v4473_v46 = vor.u32 %v5344_v32, %v4470_v13  ;;  %v4757_v45 = vor.u32 %v5420_v2, %v4756_v16  ;;  %v5428_v13 = vld [vmem:[#allocation4 + $0x2b8] sm:$0xf0]  ;;  %v4506_v2 = vld [vmem:[#allocation4 + $0x84] sm:$0xf0]  ;;  %v4776_v32 = vld [vmem:[#allocation4 + $0x290] sm:$0xf] }
 0x296   : > { %v6792_v30 = vadd.f32 %v3290_v18, %v3202_v47  ;;  %v4741_v18 = vor.u32 %v5418_v29, %v4740_v28 }
 0x297   : > { %v3292_v27 = vpop.f32.mrf.mxu2 }
 0x298   : > { %7217 = vst [vmem:[#allocation32_spill] sm:$0xff] %v6792_v30  ;;  %v6799_v30 = vpop.f32.mrf.mxu1 }
 0x29a   : > { %3748 = vmatmul.bf16.vlgmr.msra.gmra.mxu1 %v4473_v46  ;;  %v5353_v46 = vld [vmem:[#allocation4 + $0x64] sm:$0xf] }
 0x29b   : > { %v3203_v19 = vpop.f32.mrf.mxu3 }
 0x29c   : > { %v3204_v54 = vadd.f32 %v6619_v44, %v3203_v19  ;;  %3521 = vmatmul.bf16.gmra.mxu2 %v4749_v41  ;;  %v4792_v19 = vld [vmem:[#allocation4 + $0x2a0] sm:$0xf]  ;;  %v4784_v41 = vld [vmem:[#allocation4 + $0x298] sm:$0xf] }
 0x29d   : > { %v4785_v29 = vor.u32 %v5428_v13, %v4784_v41 }
 0x29e   : > { %v6797_v47 = vadd.f32 %v3292_v27, %v3204_v54  ;;  %v5429_v27 = vld [vmem:[#allocation4 + $0x2c0] sm:$0xf0]  ;;  %v5427_v54 = vld [vmem:[#allocation4 + $0x2b0] sm:$0xf0] }
 0x29f   : > { %3699 = vmatmul.bf16.gmra.mxu0 %v4757_v45  ;;  %v3482_v52 = vpop.f32.mrf.mxu2 }
 0x2a0   : > { %3343 = vmatmul.bf16.gmra.mxu3 %v4741_v18 }
 0x2a3   : > { %v3304_v23 = vpop.f32.mrf.mxu3 }
 0x2a4   : > { %v3305_v59 = vadd.f32 %v3304_v23, %v6682_v24  ;;  %v6806_v24 = vpop.f32.mrf.mxu1  ;;  %v4509_v23 = vor.u32 %v5353_v46, %v4506_v2 }
 0x2a6   : > { %v3394_v58 = vadd.f32 %v6667_v42, %v3305_v59  ;;  %v4793_v42 = vor.u32 %v5429_v27, %v4792_v19  ;;  %v5437_v19 = vld [vmem:[#allocation4 + $0x300] sm:$0xf0] }
 0x2a7   : > { %v3484_v44 = vpop.f32.mrf.mxu2 }
 0x2a8   : > { %v6803_v16 = vadd.f32 %v3482_v52, %v3394_v58  ;;  %v4777_v58 = vor.u32 %v5427_v54, %v4776_v32  ;;  %v5551_v52 = vld [vmem:[#allocation13 + $0x210] sm:$0xff]  ;;  %v5438_v32 = vld [vmem:[#allocation4 + $0x308] sm:$0xf0]  ;;  %v4820_v54 = vld [vmem:[#allocation4 + $0x2e0] sm:$0xf] }
 0x2a9   : > { %3834 = vmatpush.bf16.msra.mxu2 %v5551_v52 }
 0x2aa   : > { %3753 = vmatmul.bf16.gmra.mxu1 %v4509_v23  ;;  %v5436_v23 = vld [vmem:[#allocation4 + $0x2f8] sm:$0xf0] }
 0x2ab   : > { %v3306_v28 = vpop.f32.mrf.mxu3 }
 0x2ac   : > { %v3307_v45 = vadd.f32 %v3306_v28, %v6690_v36  ;;  %3526 = vmatmul.bf16.gmra.mxu2 %v4785_v29  ;;  %v6813_v28 = vpop.f32.mrf.mxu1  ;;  %v4828_v29 = vld [vmem:[#allocation4 + $0x2e8] sm:$0xf] }
 0x2ae   : > { %v3396_v18 = vadd.f32 %v6671_v60, %v3307_v45  ;;  %v4542_v60 = vld [vmem:[#allocation4 + $0xcc] sm:$0xf0]  ;;  %v4821_v45 = vor.u32 %v5437_v19, %v4820_v54  ;;  %v5526_v54 = vld [vmem:[#allocation13 + $0x148] sm:$0xff] }
 0x2af   : > { %3704 = vmatmul.bf16.gmra.mxu0 %v4793_v42  ;;  %v3487_v59 = vpop.f32.mrf.mxu2  ;;  %v5362_v42 = vld [vmem:[#allocation4 + $0xac] sm:$0xf]  ;;  %3568 = vmatpush.bf16.msra.mxu3 %v5526_v54 }
 0x2b0   : > { %3348 = vmatmul.bf16.gmra.mxu3 %v4777_v58  ;;  %v6809_v26 = vadd.f32 %v3484_v44, %v3396_v18  ;;  %v4812_v44 = vld [vmem:[#allocation4 + $0x2d8] sm:$0xf]  ;;  %v4829_v58 = vor.u32 %v5438_v32, %v4828_v29  ;;  %v5446_v29 = vld [vmem:[#allocation4 + $0x348] sm:$0xf0] }
 0x2b1   : > { %v4813_v52 = vor.u32 %v5436_v23, %v4812_v44  ;;  %v4856_v23 = vld [vmem:[#allocation4 + $0x328] sm:$0xf] }
 0x2b3   : > { %v3309_v13 = vpop.f32.mrf.mxu3 }
 0x2b4   : > { %v3310_v41 = vadd.f32 %v3309_v13, %v6699_v0  ;;  %v4545_v0 = vor.u32 %v5362_v42, %v4542_v60 }
 0x2b6   : > { %v3399_v36 = vadd.f32 %v6676_v4, %v3310_v41 }
 0x2b7   : > { %v3489_v2 = vpop.f32.mrf.mxu2 }
 0x2b8   : > { %v6815_v27 = vadd.f32 %v3487_v59, %v3399_v36  ;;  %v6819_v59 = vpop.f32.mrf.mxu1 }
 0x2ba   : > { %3758 = vmatmul.bf16.gmra.mxu1 %v4545_v0  ;;  %v5445_v0 = vld [vmem:[#allocation4 + $0x340] sm:$0xf0] }
 0x2bb   : > { %v3311_v46 = vpop.f32.mrf.mxu3 }
 0x2bc   : > { %v3312_v18 = vadd.f32 %v3311_v46, %v6709_v6  ;;  %3531 = vmatmul.bf16.gmra.mxu2 %v4821_v45  ;;  %v4864_v46 = vld [vmem:[#allocation4 + $0x330] sm:$0xf]  ;;  %v5447_v45 = vld [vmem:[#allocation4 + $0x350] sm:$0xf0] }
 0x2be   : > { %v3401_v4 = vadd.f32 %v6686_v31, %v3312_v18  ;;  %v4578_v31 = vld [vmem:[#allocation4 + $0x114] sm:$0xf0]  ;;  %v4848_v18 = vld [vmem:[#allocation4 + $0x320] sm:$0xf] }
 0x2bf   : > { %3709 = vmatmul.bf16.gmra.mxu0 %v4829_v58  ;;  %v3492_v13 = vpop.f32.mrf.mxu2  ;;  %v5371_v58 = vld [vmem:[#allocation4 + $0xf4] sm:$0xf] }
 0x2c0   : > { %3353 = vmatmul.bf16.gmra.mxu3 %v4813_v52  ;;  %v6821_v41 = vadd.f32 %v3489_v2, %v3401_v4  ;;  %v6827_v44 = vpop.f32.mrf.mxu1  ;;  %v4857_v2 = vor.u32 %v5446_v29, %v4856_v23  ;;  %v4581_v4 = vor.u32 %v5371_v58, %v4578_v31  ;;  %v4865_v52 = vor.u32 %v5447_v45, %v4864_v46  ;;  %v4892_v58 = vld [vmem:[#allocation4 + $0x370] sm:$0xf] }
 0x2c3   : > { %v3314_v36 = vpop.f32.mrf.mxu3 }
 0x2c4   : > { %v3315_v19 = vadd.f32 %v3314_v36, %v6716_v43  ;;  %v4849_v36 = vor.u32 %v5445_v0, %v4848_v18  ;;  %v4900_v18 = vld [vmem:[#allocation4 + $0x378] sm:$0xf]  ;;  %v5456_v0 = vld [vmem:[#allocation4 + $0x398] sm:$0xf0] }
 0x2c6   : > { %v3404_v6 = vadd.f32 %v6693_v49, %v3315_v19  ;;  %v6830_v49 = vpop.f32.mrf.mxu0  ;;  %v5550_v19 = vld [vmem:[#allocation13 + $0x208] sm:$0xff] }
 0x2c7   : > { %v3494_v60 = vpop.f32.mrf.mxu2  ;;  %3835 = vmatpush.bf16.msra.mxu2 %v5550_v19  ;;  %v4901_v19 = vor.u32 %v5456_v0, %v4900_v18 }
 0x2c8   : > { %v6825_v32 = vadd.f32 %v3492_v13, %v3404_v6  ;;  %v6835_v23 = vpop.f32.mrf.mxu1 }
 0x2ca   : > { %3763 = vmatmul.bf16.gmra.mxu1 %v4581_v4  ;;  %v4884_v4 = vld [vmem:[#allocation4 + $0x368] sm:$0xf] }
 0x2cb   : > { %v3316_v42 = vpop.f32.mrf.mxu3 }
 0x2cc   : > { %v3317_v43 = vadd.f32 %v3316_v42, %v6725_v61  ;;  %3536 = vmatmul.bf16.gmra.mxu2 %v4857_v2  ;;  %v4614_v2 = vld [vmem:[#allocation4 + $0x15c] sm:$0xf0] }
 0x2ce   : > { %v3406_v13 = vadd.f32 %v6703_v8, %v3317_v43  ;;  %v6839_v46 = vpop.f32.mrf.mxu0  ;;  %v5455_v8 = vld [vmem:[#allocation4 + $0x390] sm:$0xf0] }
 0x2cf   : > { %3714 = vmatmul.bf16.gmra.mxu0 %v4865_v52  ;;  %v3497_v54 = vpop.f32.mrf.mxu2  ;;  %v4893_v43 = vor.u32 %v5455_v8, %v4892_v58  ;;  %v5454_v52 = vld [vmem:[#allocation4 + $0x388] sm:$0xf0] }
 0x2d0   : > { %3358 = vmatmul.bf16.gmra.mxu3 %v4849_v36  ;;  %v6833_v6 = vadd.f32 %v3494_v60, %v3406_v13  ;;  %v5380_v13 = vld [vmem:[#allocation4 + $0x13c] sm:$0xf] }
 0x2d3   : > { %v3319_v29 = vpop.f32.mrf.mxu3 }
 0x2d4   : > { %v3320_v61 = vadd.f32 %v3319_v29, %v6733_v40  ;;  %v4617_v40 = vor.u32 %v5380_v13, %v4614_v2 }
 0x2d6   : > { %v3409_v31 = vadd.f32 %v6712_v33, %v3320_v61  ;;  %v6844_v33 = vpop.f32.mrf.mxu1  ;;  %v6849_v8 = vpop.f32.mrf.mxu0 }
 0x2d7   : > { %v3499_v45 = vpop.f32.mrf.mxu2 }
 0x2d8   : > { %v6841_v42 = vadd.f32 %v3497_v54, %v3409_v31  ;;  %v4885_v54 = vor.u32 %v5454_v52, %v4884_v4  ;;  %v4936_v4 = vld [vmem:[#allocation4 + $0x3c0] sm:$0xf]  ;;  %v5465_v52 = vld [vmem:[#allocation4 + $0x3e0] sm:$0xf0] }
 0x2da   : > { %7218 = vst [vmem:[#allocation33_spill] sm:$0xff] %v6841_v42  ;;  %3768 = vmatmul.bf16.gmra.mxu1 %v4617_v40 }
 0x2db   : > { %v3321_v60 = vpop.f32.mrf.mxu3 }
 0x2dc   : > { %v3322_v36 = vadd.f32 %v3321_v60, %v6740_v11  ;;  %3541 = vmatmul.bf16.gmra.mxu2 %v4893_v43  ;;  %v5525_v11 = vld [vmem:[#allocation13 + $0x140] sm:$0xff]  ;;  %v4650_v43 = vld [vmem:[#allocation4 + $0x1a4] sm:$0xf0] }
 0x2dd   : > { %3569 = vmatpush.bf16.msra.mxu3 %v5525_v11 }
 0x2de   : > { %v3411_v29 = vadd.f32 %v6721_v55, %v3322_v36  ;;  %v6853_v18 = vpop.f32.mrf.mxu1  ;;  %v5464_v55 = vld [vmem:[#allocation4 + $0x3d8] sm:$0xf0]  ;;  %v6857_v13 = vpop.f32.mrf.mxu0 }
 0x2df   : > { %3719 = vmatmul.bf16.gmra.mxu0 %v4901_v19  ;;  %v3502_v61 = vpop.f32.mrf.mxu2  ;;  %v4920_v19 = vld [vmem:[#allocation4 + $0x3b0] sm:$0xf] }
 0x2e0   : > { %3363 = vmatmul.bf16.gmra.mxu3 %v4885_v54  ;;  %v6847_v31 = vadd.f32 %v3499_v45, %v3411_v29  ;;  %v4928_v45 = vld [vmem:[#allocation4 + $0x3b8] sm:$0xf]  ;;  %v5389_v29 = vld [vmem:[#allocation4 + $0x184] sm:$0xf] }
 0x2e1   : > { %v4929_v40 = vor.u32 %v5464_v55, %v4928_v45  ;;  %v5549_v54 = vld [vmem:[#allocation13 + $0x200] sm:$0xff] }
 0x2e2   : > { %7219 = vst [vmem:[#allocation34_spill] sm:$0xff] %v6847_v31  ;;  %3836 = vmatpush.bf16.msra.mxu2 %v5549_v54 }
 0x2e3   : > { %v3324_v58 = vpop.f32.mrf.mxu3 }
 0x2e4   : > { %v3325_v42 = vadd.f32 %v3324_v58, %v6749_v39  ;;  %v5463_v39 = vld [vmem:[#allocation4 + $0x3d0] sm:$0xf0]  ;;  %v4937_v58 = vor.u32 %v5465_v52, %v4936_v4  ;;  %v5473_v52 = vld [vmem:[#allocation4 + $0x420] sm:$0xf0] }
 0x2e5   : > { %v4921_v11 = vor.u32 %v5463_v39, %v4920_v19  ;;  %v4686_v19 = vld [vmem:[#allocation4 + $0x1ec] sm:$0xf0]  ;;  %v4964_v39 = vld [vmem:[#allocation4 + $0x400] sm:$0xf] }
 0x2e6   : > { %v3414_v2 = vadd.f32 %v6731_v37, %v3325_v42  ;;  %v4653_v42 = vor.u32 %v5389_v29, %v4650_v43  ;;  %v6863_v55 = vpop.f32.mrf.mxu1 }
 0x2e7   : > { %v3504_v0 = vpop.f32.mrf.mxu2 }
 0x2e8   : > { %v6855_v60 = vadd.f32 %v3502_v61, %v3414_v2 }
 0x2ea   : > { %7220 = vst [vmem:[#allocation35_spill] sm:$0xff] %v6855_v60  ;;  %3773 = vmatmul.bf16.gmra.mxu1 %v4653_v42  ;;  %v5472_v42 = vld [vmem:[#allocation4 + $0x418] sm:$0xf0] }
 0x2eb   : > { %v3326_v36 = vpop.f32.mrf.mxu3 }
 0x2ec   : > { %v3327_v37 = vadd.f32 %v3326_v36, %v6758_v5  ;;  %3546 = vmatmul.bf16.gmra.mxu2 %v4929_v40  ;;  %v6866_v5 = vpop.f32.mrf.mxu0  ;;  %v5474_v36 = vld [vmem:[#allocation4 + $0x428] sm:$0xf0] }
 0x2ee   : > { %v3416_v61 = vadd.f32 %v6743_v3, %v3327_v37  ;;  %v4972_v3 = vld [vmem:[#allocation4 + $0x408] sm:$0xf]  ;;  %v4956_v37 = vld [vmem:[#allocation4 + $0x3f8] sm:$0xf] }
 0x2ef   : > { %3724 = vmatmul.bf16.gmra.mxu0 %v4937_v58  ;;  %v3507_v2 = vpop.f32.mrf.mxu2  ;;  %v4973_v54 = vor.u32 %v5474_v36, %v4972_v3  ;;  %v5398_v58 = vld [vmem:[#allocation4 + $0x1cc] sm:$0xf] }
 0x2f0   : > { %3368 = vmatmul.bf16.gmra.mxu3 %v4921_v11  ;;  %v6861_v60 = vadd.f32 %v3504_v0, %v3416_v61  ;;  %v4965_v0 = vor.u32 %v5473_v52, %v4964_v39  ;;  %v6871_v61 = vpop.f32.mrf.mxu1  ;;  %v4689_v11 = vor.u32 %v5398_v58, %v4686_v19  ;;  %v5000_v19 = vld [vmem:[#allocation4 + $0x448] sm:$0xf]  ;;  %v5482_v39 = vld [vmem:[#allocation4 + $0x468] sm:$0xf0]  ;;  %v5481_v58 = vld [vmem:[#allocation4 + $0x460] sm:$0xf0] }
 0x2f3   : > { %v3329_v45 = vpop.f32.mrf.mxu3 }
 0x2f4   : > { %v3330_v31 = vadd.f32 %v3329_v45, %v6767_v17 }
 0x2f6   : > { %v3419_v43 = vadd.f32 %v6752_v51, %v3330_v31  ;;  %v4957_v31 = vor.u32 %v5472_v42, %v4956_v37  ;;  %v4722_v37 = vld [vmem:[#allocation4 + $0x234] sm:$0xf0] }
 0x2f7   : > { %v3509_v4 = vpop.f32.mrf.mxu2 }
 0x2f8   : > { %v6869_v40 = vadd.f32 %v3507_v2, %v3419_v43  ;;  %v6875_v2 = vpop.f32.mrf.mxu0  ;;  %v6880_v36 = vpop.f32.mrf.mxu1 }
 0x2fa   : > { %3778 = vmatmul.bf16.gmra.mxu1 %v4689_v11 }
 0x2fb   : > { %v3331_v29 = vpop.f32.mrf.mxu3 }
 0x2fc   : > { %v3332_v17 = vadd.f32 %v3331_v29, %v6776_v9  ;;  %3551 = vmatmul.bf16.gmra.mxu2 %v4965_v0  ;;  %v5001_v0 = vor.u32 %v5482_v39, %v5000_v19  ;;  %v4476_v39 = vld [vmem:[#allocation4 + $0x20] sm:$0xf] }
 0x2fe   : > { %v3421_v51 = vadd.f32 %v6763_v53, %v3332_v17  ;;  %v5407_v17 = vld [vmem:[#allocation4 + $0x214] sm:$0xf] }
 0x2ff   : > { %3729 = vmatmul.bf16.gmra.mxu0 %v4973_v54  ;;  %v3512_v45 = vpop.f32.mrf.mxu2  ;;  %v4992_v54 = vld [vmem:[#allocation4 + $0x440] sm:$0xf]  ;;  %v4725_v11 = vor.u32 %v5407_v17, %v4722_v37  ;;  %v5343_v17 = vld [vmem:[#allocation4 + $0x14] sm:$0xf] }
 0x300   : > { %3373 = vmatmul.bf16.gmra.mxu3 %v4957_v31  ;;  %v6877_v43 = vadd.f32 %v3509_v4, %v3421_v51  ;;  %v4993_v51 = vor.u32 %v5481_v58, %v4992_v54 }
 0x303   : > { %v3334_v52 = vpop.f32.mrf.mxu3 }
 0x304   : > { %v3335_v3 = vadd.f32 %v3334_v52, %v6783_v21 }
 0x306   : > { %v3424_v9 = vadd.f32 %v6774_v63, %v3335_v3  ;;  %v6887_v63 = vpop.f32.mrf.mxu1 }
 0x307   : > { %v3514_v29 = vpop.f32.mrf.mxu2 }
 0x308   : > { %v6883_v53 = vadd.f32 %v3512_v45, %v3424_v9  ;;  %v6895_v9 = vld [vmem:[%s7177_s6] ss:$0 sm:$0xff] }
 0x30a   : > { %3783 = vmatmul.bf16.gmra.mxu1 %v4725_v11  ;;  %v5416_v11 = vld [vmem:[#allocation4 + $0x25c] sm:$0xf] }
 0x30b   : > { %v3336_v42 = vpop.f32.mrf.mxu3 }
 0x30c   : > { %v3337_v4 = vadd.f32 %v3336_v42, %v6790_v57  ;;  %3556 = vmatmul.bf16.gmra.mxu2 %v5001_v0  ;;  %v3164_v57 = vadd.f32 %v6895_v9, %v6629_v15  ;;  %v5349_v0 = vld [vmem:[#allocation4 + $0x40] sm:$0xf0] }
 0x30d   : > { %v4477_v58 = vor.u32 %v5349_v0, %v4476_v39 }
 0x30e   : > { %v3426_v21 = vadd.f32 %v6785_v25, %v3337_v4  ;;  %v3253_v42 = vadd.f32 %v6645_v38, %v3164_v57  ;;  %v6903_v54 = vpop.f32.mrf.mxu1  ;;  %v4462_v4 = vld [vmem:[#allocation4 + $0x34] sm:$0xf0] }
 0x30f   : > { %v3517_v31 = vpop.f32.mrf.mxu2 }
 0x310   : > { %3378 = vmatmul.bf16.gmra.mxu3 %v4993_v51  ;;  %v6889_v45 = vadd.f32 %v3514_v29, %v3426_v21  ;;  %v4758_v29 = vld [vmem:[#allocation4 + $0x27c] sm:$0xf0] }
 0x311   : > { %v4761_v51 = vor.u32 %v5416_v11, %v4758_v29  ;;  %v4512_v29 = vld [vmem:[#allocation4 + $0x68] sm:$0xf]  ;;  %v4498_v11 = vld [vmem:[#allocation4 + $0x7c] sm:$0xf0] }
 0x313   : > { %v3339_v52 = vpop.f32.mrf.mxu3 }
 0x314   : > { %v3340_v3 = vadd.f32 %v3339_v52, %v6627_v14 }
 0x316   : > { %v3429_v25 = vadd.f32 %v6794_v12, %v3340_v3  ;;  %v4465_v12 = vor.u32 %v5343_v17, %v4462_v4  ;;  %v6908_v38 = vpop.f32.mrf.mxu1  ;;  %v5352_v4 = vld [vmem:[#allocation4 + $0x5c] sm:$0xf] }
 0x317   : > { %v3519_v19 = vpop.f32.mrf.mxu2 }
 0x318   : > { %v6900_v37 = vadd.f32 %v3517_v31, %v3429_v25  ;;  %v3169_v25 = vadd.f32 %v6895_v9, %v6651_v7 }
 0x31a   : > { %3788 = vmatmul.bf16.gmra.mxu1 %v4761_v51 }
 0x31b   : > { %v3341_v14 = vpop.f32.mrf.mxu3 }
 0x31c   : > { %v3342_v21 = vadd.f32 %v3341_v14, %v3253_v42  ;;  %3837 = vmatmul.bf16.vlgmr.msra.gmra.mxu2 %v4477_v58  ;;  %v5358_v42 = vld [vmem:[#allocation4 + $0x88] sm:$0xf0]  ;;  %v4794_v14 = vld [vmem:[#allocation4 + $0x2c4] sm:$0xf0]  ;;  %v3258_v58 = vadd.f32 %v6669_v34, %v3169_v25 }
 0x31d   : > { %v4513_v17 = vor.u32 %v5358_v42, %v4512_v29  ;;  %v4548_v42 = vld [vmem:[#allocation4 + $0xb0] sm:$0xf] }
 0x31e   : > { %v3431_v15 = vadd.f32 %v6799_v30, %v3342_v21  ;;  %v5425_v21 = vld [vmem:[#allocation4 + $0x2a4] sm:$0xf] }
 0x31f   : > { %v3522_v52 = vpop.f32.mrf.mxu2 }
 0x320   : > { %3570 = vmatmul.bf16.vlgmr.msra.gmra.mxu3 %v4465_v12  ;;  %v6906_v31 = vadd.f32 %v3519_v19, %v3431_v15  ;;  %v6917_v15 = vpop.f32.mrf.mxu1 }
 0x323   : > { %v3344_v3 = vpop.f32.mrf.mxu3 }
 0x324   : > { %v3345_v57 = vadd.f32 %v3344_v3, %v6653_v20  ;;  %v4797_v20 = vor.u32 %v5425_v21, %v4794_v14  ;;  %v5367_v14 = vld [vmem:[#allocation4 + $0xd0] sm:$0xf0] }
 0x326   : > { %v3434_v39 = vadd.f32 %v6806_v24, %v3345_v57  ;;  %v4501_v24 = vor.u32 %v5352_v4, %v4498_v11  ;;  %v3174_v57 = vadd.f32 %v6895_v9, %v6680_v22  ;;  %v5361_v4 = vld [vmem:[#allocation4 + $0xa4] sm:$0xf]  ;;  %v4534_v11 = vld [vmem:[#allocation4 + $0xc4] sm:$0xf0] }
 0x327   : > { %v3524_v0 = vpop.f32.mrf.mxu2 }
 0x328   : > { %v6914_v30 = vadd.f32 %v3522_v52, %v3434_v39  ;;  %v6926_v39 = vpop.f32.mrf.mxu1 }
 0x32a   : > { %3793 = vmatmul.bf16.gmra.mxu1 %v4797_v20 }
 0x32b   : > { %v3346_v19 = vpop.f32.mrf.mxu3 }
 0x32c   : > { %v3347_v51 = vadd.f32 %v3346_v19, %v3258_v58  ;;  %3842 = vmatmul.bf16.gmra.mxu2 %v4513_v17  ;;  %v4830_v58 = vld [vmem:[#allocation4 + $0x30c] sm:$0xf0]  ;;  %v3263_v19 = vadd.f32 %v6684_v48, %v3174_v57  ;;  %v4549_v17 = vor.u32 %v5367_v14, %v4548_v42  ;;  %v5376_v42 = vld [vmem:[#allocation4 + $0x118] sm:$0xf0]  ;;  %v4866_v14 = vld [vmem:[#allocation4 + $0x354] sm:$0xf0] }
 0x32e   : > { %v3436_v7 = vadd.f32 %v6813_v28, %v3347_v51 }
 0x32f   : > { %v3527_v12 = vpop.f32.mrf.mxu2 }
 0x330   : > { %3575 = vmatmul.bf16.gmra.mxu3 %v4501_v24  ;;  %v6920_v52 = vadd.f32 %v3524_v0, %v3436_v7  ;;  %v6934_v24 = vpop.f32.mrf.mxu1 }
 0x333   : > { %v3349_v3 = vpop.f32.mrf.mxu3 }
 0x334   : > { %v3350_v34 = vadd.f32 %v3349_v3, %v6674_v1  ;;  %v5434_v1 = vld [vmem:[#allocation4 + $0x2ec] sm:$0xf]  ;;  %v3179_v3 = vadd.f32 %v6895_v9, %v6701_v56 }
 0x335   : > { %v4833_v51 = vor.u32 %v5434_v1, %v4830_v58 }
 0x336   : > { %v3439_v25 = vadd.f32 %v6819_v59, %v3350_v34  ;;  %v4537_v59 = vor.u32 %v5361_v4, %v4534_v11  ;;  %v3268_v58 = vadd.f32 %v6707_v10, %v3179_v3  ;;  %v5443_v4 = vld [vmem:[#allocation4 + $0x334] sm:$0xf] }
 0x337   : > { %v3529_v29 = vpop.f32.mrf.mxu2  ;;  %v4869_v1 = vor.u32 %v5443_v4, %v4866_v14  ;;  %v4606_v14 = vld [vmem:[#allocation4 + $0x154] sm:$0xf0] }
 0x338   : > { %v6928_v28 = vadd.f32 %v3527_v12, %v3439_v25  ;;  %v4584_v25 = vld [vmem:[#allocation4 + $0xf8] sm:$0xf]  ;;  %v6943_v11 = vpop.f32.mrf.mxu1 }
 0x33a   : > { %3798 = vmatmul.bf16.gmra.mxu1 %v4833_v51 }
 0x33b   : > { %v3351_v0 = vpop.f32.mrf.mxu3 }
 0x33c   : > { %v3352_v21 = vadd.f32 %v3351_v0, %v3263_v19  ;;  %3847 = vmatmul.bf16.gmra.mxu2 %v4549_v17  ;;  %v4585_v19 = vor.u32 %v5376_v42, %v4584_v25  ;;  %v5370_v0 = vld [vmem:[#allocation4 + $0xec] sm:$0xf]  ;;  %v4570_v17 = vld [vmem:[#allocation4 + $0x10c] sm:$0xf0]  ;;  %v5379_v42 = vld [vmem:[#allocation4 + $0x134] sm:$0xf] }
 0x33e   : > { %v3441_v22 = vadd.f32 %v6827_v44, %v3352_v21 }
 0x33f   : > { %v3532_v20 = vpop.f32.mrf.mxu2 }
 0x340   : > { %3580 = vmatmul.bf16.gmra.mxu3 %v4537_v59  ;;  %v6932_v7 = vadd.f32 %v3529_v29, %v3441_v22  ;;  %v6949_v22 = vpop.f32.mrf.mxu1 }
 0x343   : > { %v3354_v12 = vpop.f32.mrf.mxu3 }
 0x344   : > { %v3355_v48 = vadd.f32 %v3354_v12, %v6697_v62  ;;  %v4620_v12 = vld [vmem:[#allocation4 + $0x140] sm:$0xf] }
 0x346   : > { %v3444_v34 = vadd.f32 %v6835_v23, %v3355_v48  ;;  %v4573_v23 = vor.u32 %v5370_v0, %v4570_v17  ;;  %v5385_v48 = vld [vmem:[#allocation4 + $0x160] sm:$0xf0] }
 0x347   : > { %v3534_v57 = vpop.f32.mrf.mxu2  ;;  %v4621_v25 = vor.u32 %v5385_v48, %v4620_v12  ;;  %v5388_v48 = vld [vmem:[#allocation4 + $0x17c] sm:$0xf] }
 0x348   : > { %v6940_v44 = vadd.f32 %v3532_v20, %v3444_v34  ;;  %v4902_v34 = vld [vmem:[#allocation4 + $0x39c] sm:$0xf0] }
 0x34a   : > { %3803 = vmatmul.bf16.gmra.mxu1 %v4869_v1 }
 0x34b   : > { %v3356_v29 = vpop.f32.mrf.mxu3 }
 0x34c   : > { %v3357_v62 = vadd.f32 %v3356_v29, %v3268_v58  ;;  %3852 = vmatmul.bf16.gmra.mxu2 %v4585_v19  ;;  %v5452_v58 = vld [vmem:[#allocation4 + $0x37c] sm:$0xf]  ;;  %v4609_v19 = vor.u32 %v5379_v42, %v4606_v14 }
 0x34d   : > { %v4905_v29 = vor.u32 %v5452_v58, %v4902_v34  ;;  %v4642_v34 = vld [vmem:[#allocation4 + $0x19c] sm:$0xf0] }
 0x34e   : > { %v3446_v56 = vadd.f32 %v6844_v33, %v3357_v62  ;;  %v7221_v62 = vld [vmem:[#allocation26_spill] sm:$0xff] }
 0x34f   : > { %v3537_v9 = vpop.f32.mrf.mxu2 }
 0x350   : > { %3585 = vmatmul.bf16.gmra.mxu3 %v4573_v23  ;;  %v6946_v21 = vadd.f32 %v3534_v57, %v3446_v56 }
 0x353   : > { %v3359_v51 = vpop.f32.mrf.mxu3 }
 0x354   : > { %v3360_v10 = vadd.f32 %v3359_v51, %v6718_v50 }
 0x356   : > { %v3449_v59 = vadd.f32 %v6853_v18, %v3360_v10  ;;  %v6956_v18 = vpop.f32.mrf.mxu1  ;;  %v4938_v10 = vld [vmem:[#allocation4 + $0x3e4] sm:$0xf0] }
 0x357   : > { %v3539_v20 = vpop.f32.mrf.mxu2 }
 0x358   : > { %v6952_v3 = vadd.f32 %v3537_v9, %v3449_v59  ;;  %v4656_v9 = vld [vmem:[#allocation4 + $0x188] sm:$0xf] }
 0x35a   : > { %3808 = vmatmul.bf16.gmra.mxu1 %v4905_v29 }
 0x35b   : > { %v3361_v33 = vpop.f32.mrf.mxu3 }
 0x35c   : > { %v3362_v57 = vadd.f32 %v3361_v33, %v6727_v35  ;;  %3857 = vmatmul.bf16.gmra.mxu2 %v4621_v25  ;;  %v5394_v35 = vld [vmem:[#allocation4 + $0x1a8] sm:$0xf0]  ;;  %v5461_v33 = vld [vmem:[#allocation4 + $0x3c4] sm:$0xf] }
 0x35d   : > { %v4657_v12 = vor.u32 %v5394_v35, %v4656_v9  ;;  %v4941_v42 = vor.u32 %v5461_v33, %v4938_v10  ;;  %v5470_v35 = vld [vmem:[#allocation4 + $0x40c] sm:$0xf] }
 0x35e   : > { %v3451_v50 = vadd.f32 %v6863_v55, %v3362_v57  ;;  %v6964_v55 = vpop.f32.mrf.mxu1 }
 0x35f   : > { %v3542_v0 = vpop.f32.mrf.mxu2 }
 0x360   : > { %3590 = vmatmul.bf16.gmra.mxu3 %v4609_v19  ;;  %v6958_v17 = vadd.f32 %v3539_v20, %v3451_v50  ;;  %v7222_v20 = vld [vmem:[#allocation27_spill] sm:$0xff]  ;;  %v7223_v19 = vld [vmem:[#allocation28_spill] sm:$0xff] }
 0x363   : > { %v3364_v4 = vpop.f32.mrf.mxu3 }
 0x364   : > { %v3365_v1 = vadd.f32 %v3364_v4, %v7221_v62 }
 0x366   : > { %v3454_v56 = vadd.f32 %v6871_v61, %v3365_v1  ;;  %v4645_v61 = vor.u32 %v5388_v48, %v4642_v34  ;;  %v6970_v50 = vpop.f32.mrf.mxu1  ;;  %v4692_v1 = vld [vmem:[#allocation4 + $0x1d0] sm:$0xf]  ;;  %v4678_v48 = vld [vmem:[#allocation4 + $0x1e4] sm:$0xf0] }
 0x367   : > { %v3544_v23 = vpop.f32.mrf.mxu2 }
 0x368   : > { %v6962_v51 = vadd.f32 %v3542_v0, %v3454_v56  ;;  %v5403_v56 = vld [vmem:[#allocation4 + $0x1f0] sm:$0xf0] }
 0x36a   : > { %3813 = vmatmul.bf16.gmra.mxu1 %v4941_v42 }
 0x36b   : > { %v3366_v59 = vpop.f32.mrf.mxu3 }
 0x36c   : > { %v3367_v25 = vadd.f32 %v3366_v59, %v7222_v20  ;;  %3862 = vmatmul.bf16.gmra.mxu2 %v4657_v12  ;;  %v4693_v59 = vor.u32 %v5403_v56, %v4692_v1  ;;  %v5397_v12 = vld [vmem:[#allocation4 + $0x1c4] sm:$0xf]  ;;  %v5412_v1 = vld [vmem:[#allocation4 + $0x238] sm:$0xf0] }
 0x36e   : > { %v3456_v14 = vadd.f32 %v6880_v36, %v3367_v25  ;;  %v4974_v36 = vld [vmem:[#allocation4 + $0x42c] sm:$0xf0]  ;;  %v6977_v20 = vpop.f32.mrf.mxu1 }
 0x36f   : > { %v3547_v58 = vpop.f32.mrf.mxu2  ;;  %v4977_v33 = vor.u32 %v5470_v35, %v4974_v36 }
 0x370   : > { %3595 = vmatmul.bf16.gmra.mxu3 %v4645_v61  ;;  %v6968_v57 = vadd.f32 %v3544_v23, %v3456_v14  ;;  %v7224_v23 = vld [vmem:[#allocation29_spill] sm:$0xff] }
 0x373   : > { %v3369_v29 = vpop.f32.mrf.mxu3 }
 0x374   : > { %v3370_v0 = vadd.f32 %v3369_v29, %v7223_v19 }
 0x376   : > { %v3459_v4 = vadd.f32 %v6887_v63, %v3370_v0  ;;  %v4681_v63 = vor.u32 %v5397_v12, %v4678_v48 }
 0x377   : > { %v3549_v62 = vpop.f32.mrf.mxu2 }
 0x378   : > { %v6974_v9 = vadd.f32 %v3547_v58, %v3459_v4  ;;  %v7225_v58 = vld [vmem:[#allocation30_spill] sm:$0xff]  ;;  %v4728_v4 = vld [vmem:[#allocation4 + $0x218] sm:$0xf] }
 0x379   : > { %v4729_v36 = vor.u32 %v5412_v1, %v4728_v4  ;;  %v5415_v1 = vld [vmem:[#allocation4 + $0x254] sm:$0xf] }
 0x37a   : > { %3818 = vmatmul.bf16.gmra.mxu1 %v4977_v33  ;;  %v7227_v33 = vld [vmem:[#allocation32_spill] sm:$0xff] }
 0x37b   : > { %v3371_v10 = vpop.f32.mrf.mxu3 }
 0x37c   : > { %v3372_v34 = vadd.f32 %v3371_v10, %v7224_v23  ;;  %3867 = vmatmul.bf16.gmra.mxu2 %v4693_v59  ;;  %v5406_v10 = vld [vmem:[#allocation4 + $0x20c] sm:$0xf] }
 0x37d   : > { %v7226_v59 = vld [vmem:[#allocation31_spill] sm:$0xff] }
 0x37e   : > { %v3461_v25 = vadd.f32 %v6903_v54, %v3372_v34  ;;  %v4714_v54 = vld [vmem:[#allocation4 + $0x22c] sm:$0xf0] }
 0x37f   : > { %v3552_v42 = vpop.f32.mrf.mxu2  ;;  %v4717_v48 = vor.u32 %v5406_v10, %v4714_v54 }
 0x380   : > { %3600 = vmatmul.bf16.gmra.mxu3 %v4681_v63  ;;  %v6980_v14 = vadd.f32 %v3549_v62, %v3461_v25 }
 0x383   : > { %v3374_v61 = vpop.f32.mrf.mxu3 }
 0x384   : > { %v3375_v29 = vadd.f32 %v3374_v61, %v7225_v58  ;;  %v4764_v61 = vld [vmem:[#allocation4 + $0x260] sm:$0xf]  ;;  %v5421_v58 = vld [vmem:[#allocation4 + $0x280] sm:$0xf0] }
 0x385   : > { %v4765_v4 = vor.u32 %v5421_v58, %v4764_v61 }
 0x386   : > { %v3464_v19 = vadd.f32 %v6908_v38, %v3375_v29 }
 0x387   : > { %v3554_v0 = vpop.f32.mrf.mxu2 }
 0x388   : > { %v6984_v56 = vadd.f32 %v3552_v42, %v3464_v19 }
 0x38b   : > { %v3376_v35 = vpop.f32.mrf.mxu3 }
 0x38c   : > { %v3377_v12 = vadd.f32 %v3376_v35, %v7226_v59  ;;  %3872 = vmatmul.bf16.gmra.mxu2 %v4729_v36  ;;  %v4750_v35 = vld [vmem:[#allocation4 + $0x274] sm:$0xf0] }
 0x38d   : > { %v4753_v36 = vor.u32 %v5415_v1, %v4750_v35  ;;  %v5559_v1 = vld [vmem:[%s6290_s11] sm:$0xff]  }
 0x38e   : > { %v3466_v62 = vadd.f32 %v6917_v15, %v3377_v12  ;;  %v6999_v12 = vpop.f32.mrf.mxu0 }
 0x38f   : > { %v3557_v23 = vpop.f32.mrf.mxu2 }
 0x390   : > { %3605 = vmatmul.bf16.gmra.mxu3 %v4717_v48  ;;  %v6988_v34 = vadd.f32 %v3554_v0, %v3466_v62  ;;  %v7002_v48 = vpop.f32.mrf.mxu1 }
 0x393   : > { %v3379_v38 = vpop.f32.mrf.mxu3 }
 0x394   : > { %v3380_v25 = vadd.f32 %v3379_v38, %v7227_v33  ;;  %v4800_v38 = vld [vmem:[#allocation4 + $0x2a8] sm:$0xf] }
 0x396   : > { %v3469_v63 = vadd.f32 %v6926_v39, %v3380_v25 }
 0x397   : > { %v3559_v42 = vpop.f32.mrf.mxu2 }
 0x398   : > { %v6992_v29 = vadd.f32 %v3557_v23, %v3469_v63  ;;  %v5424_v63 = vld [vmem:[#allocation4 + $0x29c] sm:$0xf] }
 0x39b   : > { %v3381_v19 = vpop.f32.mrf.mxu3 }
 0x39c   : > { %v3382_v15 = vadd.f32 %v3381_v19, %v6797_v47  ;;  %3877 = vmatmul.bf16.gmra.mxu2 %v4765_v4 }
 0x39e   : > { %v3471_v0 = vadd.f32 %v6934_v24, %v3382_v15  ;;  %v5430_v24 = vld [vmem:[#allocation4 + $0x2c8] sm:$0xf0]  ;;  %v7011_v15 = vpop.f32.mrf.mxu1 }
 0x39f   : > { %v3838_v10 = vpop.f32.mrf.mxu2  ;;  %v4801_v25 = vor.u32 %v5430_v24, %v4800_v38 }
 0x3a0   : > { %3610 = vmatmul.bf16.gmra.mxu3 %v4753_v36  ;;  %v6996_v54 = vadd.f32 %v3559_v42, %v3471_v0  ;;  %v4786_v42 = vld [vmem:[#allocation4 + $0x2bc] sm:$0xf0]  ;;  %v5560_v36 = vunpack.c.l.bf16 %v5559_v1 }
 0x3a1   : > { %v4789_v19 = vor.u32 %v5424_v63, %v4786_v42  ;;  %v5439_v63 = vld [vmem:[#allocation4 + $0x310] sm:$0xf0] }
 0x3a3   : > { %v3571_v39 = vpop.f32.mrf.mxu3 }
 0x3a4   : > { %v3572_v59 = vadd.f32 %v3571_v39, %v6803_v16 }
 0x3a6   : > { %v3661_v62 = vadd.f32 %v6830_v49, %v3572_v59  ;;  %v7007_v49 = vpop.f32.mrf.mxu0 }
 0x3a7   : > { %v3840_v23 = vpop.f32.mrf.mxu2 }
 0x3a8   : > { %v3750_v47 = vadd.f32 %v6943_v11, %v3661_v62 }
 0x3aa   : > { %v3839_v61 = vadd.f32 %v3838_v10, %v3750_v47 }
 0x3ab   : > { %v3573_v33 = vpop.f32.mrf.mxu3 }
 0x3ac   : > { %v3574_v58 = vadd.f32 %v3573_v33, %v6809_v26  ;;  %3882 = vmatmul.bf16.gmra.mxu2 %v4801_v25  ;;  %v3918_v4 = vmul.f32 0.1, %v3839_v61  ;;  %v5561_v26 = vunpack.c.h.bf16 %v5559_v1  ;;  %v4836_v25 = vld [vmem:[#allocation4 + $0x2f0] sm:$0xf] }
 0x3ae   : > { %v3663_v16 = vadd.f32 %v6839_v46, %v3574_v58  ;;  %v3950_v10 = vmax.f32 %v3839_v61, %v3918_v4  ;;  %v7018_v61 = vpop.f32.mrf.mxu1 }
 0x3af   : > { %v3843_v35 = vpop.f32.mrf.mxu2 }
 0x3b0   : > { %v3752_v11 = vadd.f32 %v6949_v22, %v3663_v16  ;;  %3615 = vmatmul.bf16.gmra.mxu3 %v4789_v19  ;;  %v4046_v38 = vadd.f32 %v5560_v36, %v3950_v10  ;;  %v4837_v16 = vor.u32 %v5439_v63, %v4836_v25  ;;  %v4822_v19 = vld [vmem:[#allocation4 + $0x304] sm:$0xf0]  ;;  %v4872_v63 = vld [vmem:[#allocation4 + $0x338] sm:$0xf] }
 0x3b2   : > { %v3841_v0 = vadd.f32 %v3840_v23, %v3752_v11  ;;  %v7016_v23 = vpop.f32.mrf.mxu0 }
 0x3b3   : > { %v3576_v39 = vpop.f32.mrf.mxu3 }
 0x3b4   : > { %v3919_v59 = vmul.f32 0.1, %v3841_v0  ;;  %v3577_v62 = vadd.f32 %v3576_v39, %v6815_v27  ;;  %v5433_v27 = vld [vmem:[#allocation4 + $0x2e4] sm:$0xf] }
 0x3b5   : > { %v4825_v1 = vor.u32 %v5433_v27, %v4822_v19  ;;  %v5442_v19 = vld [vmem:[#allocation4 + $0x32c] sm:$0xf] }
 0x3b6   : > { %v3951_v46 = vmax.f32 %v3841_v0, %v3919_v59  ;;  %v3666_v47 = vadd.f32 %v6849_v8, %v3577_v62  ;;  %v5703_v0 = vld [vmem:[%s6290_s11 + $0x8] sm:$0xff]  }
 0x3b7   : > { %v3845_v33 = vpop.f32.mrf.mxu2  ;;  %v5564_v59 = vunpack.c.l.bf16 %v5703_v0 }
 0x3b8   : > { %v4047_v24 = vadd.f32 %v5561_v26, %v3951_v46  ;;  %v3755_v22 = vadd.f32 %v6956_v18, %v3666_v47 }
 0x3ba   : > { %v5625_v42 = vpack.c.bf16 %v4047_v24, %v4046_v38  ;;  %v3844_v8 = vadd.f32 %v3843_v35, %v3755_v22  ;;  %v7029_v62 = vpop.f32.mrf.mxu0  ;;  %v5565_v35 = vunpack.c.h.bf16 %v5703_v0  ;;  %v7032_v38 = vpop.f32.mrf.mxu1  ;;  %v5704_v0 = vld [vmem:[%s6290_s11 + $0x10] sm:$0xff]  }
 0x3bb   : > { %v3578_v58 = vpop.f32.mrf.mxu3 }
 0x3bc   : > { %5626 = vst [vmem:[%s7022_s16] sm:$0xff] %v5625_v42   ;;  %v3579_v18 = vadd.f32 %v3578_v58, %v6821_v41  ;;  %3887 = vmatmul.bf16.gmra.mxu2 %v4837_v16  ;;  %v3920_v11 = vmul.f32 0.1, %v3844_v8  ;;  %v5448_v42 = vld [vmem:[#allocation4 + $0x358] sm:$0xf0] }
 0x3bd   : > { %v4873_v27 = vor.u32 %v5448_v42, %v4872_v63  ;;  %v5457_v63 = vld [vmem:[#allocation4 + $0x3a0] sm:$0xf0] }
 0x3be   : > { %v3668_v4 = vadd.f32 %v6857_v13, %v3579_v18  ;;  %v3952_v46 = vmax.f32 %v3844_v8, %v3920_v11  ;;  %v4858_v8 = vld [vmem:[#allocation4 + $0x34c] sm:$0xf0] }
 0x3bf   : > { %v3848_v39 = vpop.f32.mrf.mxu2 }
 0x3c0   : > { %v3757_v36 = vadd.f32 %v6964_v55, %v3668_v4  ;;  %3620 = vmatmul.bf16.gmra.mxu3 %v4825_v1  ;;  %v4048_v22 = vadd.f32 %v5564_v59, %v3952_v46  ;;  %v4861_v1 = vor.u32 %v5442_v19, %v4858_v8  ;;  %v5451_v19 = vld [vmem:[#allocation4 + $0x374] sm:$0xf]  ;;  %v4894_v8 = vld [vmem:[#allocation4 + $0x394] sm:$0xf0] }
 0x3c2   : > { %v3846_v10 = vadd.f32 %v3845_v33, %v3757_v36  ;;  %v7038_v4 = vpop.f32.mrf.mxu0 }
 0x3c3   : > { %v3581_v26 = vpop.f32.mrf.mxu3 }
 0x3c4   : > { %v3921_v47 = vmul.f32 0.1, %v3846_v10  ;;  %v3582_v41 = vadd.f32 %v3581_v26, %v6825_v32  ;;  %v5568_v26 = vunpack.c.l.bf16 %v5704_v0 }
 0x3c6   : > { %v3953_v13 = vmax.f32 %v3846_v10, %v3921_v47  ;;  %v3671_v24 = vadd.f32 %v6866_v5, %v3582_v41 }
 0x3c7   : > { %v3850_v33 = vpop.f32.mrf.mxu2 }
 0x3c8   : > { %v4049_v55 = vadd.f32 %v5565_v35, %v3953_v13  ;;  %v3760_v25 = vadd.f32 %v6970_v50, %v3671_v24  ;;  %v7041_v50 = vpop.f32.mrf.mxu1  ;;  %v7228_v35 = vld [vmem:[#allocation33_spill] sm:$0xff] }
 0x3ca   : > { %v5630_v58 = vpack.c.bf16 %v4049_v55, %v4048_v22  ;;  %v3849_v32 = vadd.f32 %v3848_v39, %v3760_v25  ;;  %v7047_v24 = vpop.f32.mrf.mxu0 }
 0x3cb   : > { %v3583_v16 = vpop.f32.mrf.mxu3 }
 0x3cc   : > { %5718 = vst [vmem:[%s7022_s16 + $0x8] sm:$0xff] %v5630_v58   ;;  %v3584_v18 = vadd.f32 %v3583_v16, %v6833_v6  ;;  %3892 = vmatmul.bf16.gmra.mxu2 %v4873_v27  ;;  %v3922_v11 = vmul.f32 0.1, %v3849_v32  ;;  %v5569_v6 = vunpack.c.h.bf16 %v5704_v0 }
 0x3ce   : > { %v3673_v5 = vadd.f32 %v6875_v2, %v3584_v18  ;;  %v3954_v39 = vmax.f32 %v3849_v32, %v3922_v11  ;;  %v5705_v11 = vld [vmem:[%s6290_s11 + $0x18] sm:$0xff]  }
 0x3cf   : > { %v3853_v10 = vpop.f32.mrf.mxu2 }
 0x3d0   : > { %v3762_v36 = vadd.f32 %v6977_v20, %v3673_v5  ;;  %3625 = vmatmul.bf16.gmra.mxu3 %v4861_v1  ;;  %v4050_v22 = vadd.f32 %v5568_v26, %v3954_v39  ;;  %v7050_v42 = vpop.f32.mrf.mxu1  ;;  %v4897_v1 = vor.u32 %v5451_v19, %v4894_v8  ;;  %v5572_v39 = vunpack.c.l.bf16 %v5705_v11  ;;  %v4930_v19 = vld [vmem:[#allocation4 + $0x3dc] sm:$0xf0] }
 0x3d2   : > { %v3851_v59 = vadd.f32 %v3850_v33, %v3762_v36  ;;  %v4908_v33 = vld [vmem:[#allocation4 + $0x380] sm:$0xf] }
 0x3d3   : > { %v3586_v46 = vpop.f32.mrf.mxu3  ;;  %v4909_v27 = vor.u32 %v5457_v63, %v4908_v33  ;;  %v4944_v33 = vld [vmem:[#allocation4 + $0x3c8] sm:$0xf] }
 0x3d4   : > { %v3923_v47 = vmul.f32 0.1, %v3851_v59  ;;  %v3587_v41 = vadd.f32 %v3586_v46, %v7228_v35  ;;  %v5573_v35 = vunpack.c.h.bf16 %v5705_v11 }
 0x3d6   : > { %v3955_v13 = vmax.f32 %v3851_v59, %v3923_v47  ;;  %v3676_v2 = vadd.f32 %v6999_v12, %v3587_v41  ;;  %v7229_v12 = vld [vmem:[#allocation34_spill] sm:$0xff]  ;;  %v7057_v59 = vpop.f32.mrf.mxu0  ;;  %v7230_v41 = vld [vmem:[#allocation35_spill] sm:$0xff] }
 0x3d7   : > { %v3855_v25 = vpop.f32.mrf.mxu2 }
 0x3d8   : > { %v4051_v55 = vadd.f32 %v5569_v6, %v3955_v13  ;;  %v3765_v20 = vadd.f32 %v7002_v48, %v3676_v2  ;;  %v7059_v46 = vpop.f32.mrf.mxu1 }
 0x3da   : > { %v5635_v58 = vpack.c.bf16 %v4051_v55, %v4050_v22  ;;  %v3854_v32 = vadd.f32 %v3853_v10, %v3765_v20 }
 0x3db   : > { %v3588_v16 = vpop.f32.mrf.mxu3 }
 0x3dc   : > { %5719 = vst [vmem:[%s7022_s16 + $0x10] sm:$0xff] %v5635_v58   ;;  %v3589_v18 = vadd.f32 %v3588_v16, %v7229_v12  ;;  %3897 = vmatmul.bf16.gmra.mxu2 %v4909_v27  ;;  %v3924_v48 = vmul.f32 0.1, %v3854_v32  ;;  %v5460_v27 = vld [vmem:[#allocation4 + $0x3bc] sm:$0xf] }
 0x3de   : > { %v3678_v5 = vadd.f32 %v7007_v49, %v3589_v18  ;;  %v3956_v10 = vmax.f32 %v3854_v32, %v3924_v48  ;;  %v7064_v8 = vpop.f32.mrf.mxu0  ;;  %v4933_v18 = vor.u32 %v5460_v27, %v4930_v19  ;;  %v4966_v27 = vld [vmem:[#allocation4 + $0x424] sm:$0xf0] }
 0x3df   : > { %v3858_v36 = vpop.f32.mrf.mxu2 }
 0x3e0   : > { %v3767_v0 = vadd.f32 %v7011_v15, %v3678_v5  ;;  %3630 = vmatmul.bf16.gmra.mxu3 %v4897_v1  ;;  %v4052_v22 = vadd.f32 %v5572_v39, %v3956_v10  ;;  %v5706_v1 = vld [vmem:[%s6290_s11 + $0x20] sm:$0xff]  }
 0x3e2   : > { %v3856_v26 = vadd.f32 %v3855_v25, %v3767_v0  ;;  %v5466_v25 = vld [vmem:[#allocation4 + $0x3e8] sm:$0xf0] }
 0x3e3   : > { %v3591_v47 = vpop.f32.mrf.mxu3  ;;  %v4945_v16 = vor.u32 %v5466_v25, %v4944_v33 }
 0x3e4   : > { %v3925_v6 = vmul.f32 0.1, %v3856_v26  ;;  %v3592_v49 = vadd.f32 %v3591_v47, %v7230_v41 }
 0x3e6   : > { %v3957_v13 = vmax.f32 %v3856_v26, %v3925_v6  ;;  %v3681_v2 = vadd.f32 %v7016_v23, %v3592_v49  ;;  %v7068_v23 = vpop.f32.mrf.mxu1  ;;  %v5576_v26 = vunpack.c.l.bf16 %v5706_v1  ;;  %v7074_v6 = vpop.f32.mrf.mxu0  ;;  %v4980_v49 = vld [vmem:[#allocation4 + $0x410] sm:$0xf] }
 0x3e7   : > { %v3860_v20 = vpop.f32.mrf.mxu2 }
 0x3e8   : > { %v4053_v15 = vadd.f32 %v5573_v35, %v3957_v13  ;;  %v3770_v55 = vadd.f32 %v7018_v61, %v3681_v2 }
 0x3ea   : > { %v5640_v63 = vpack.c.bf16 %v4053_v15, %v4052_v22  ;;  %v3859_v32 = vadd.f32 %v3858_v36, %v3770_v55  ;;  %v5577_v36 = vunpack.c.h.bf16 %v5706_v1  ;;  %v5475_v15 = vld [vmem:[#allocation4 + $0x430] sm:$0xf0]  ;;  %v5008_v55 = vld [vmem:[#allocation4 + $0x450] sm:$0xf]  ;;  %v5707_v1 = vld [vmem:[%s6290_s11 + $0x28] sm:$0xff]  }
 0x3eb   : > { %v3593_v58 = vpop.f32.mrf.mxu3 }
 0x3ec   : > { %5720 = vst [vmem:[%s7022_s16 + $0x18] sm:$0xff] %v5640_v63   ;;  %v3594_v12 = vadd.f32 %v3593_v58, %v6861_v60  ;;  %3902 = vmatmul.bf16.gmra.mxu2 %v4945_v16  ;;  %v3926_v5 = vmul.f32 0.1, %v3859_v32  ;;  %v5010_v63 = vld [vmem:[#allocation4 + $0x474] sm:$0xf0]  ;;  %v4981_v16 = vor.u32 %v5475_v15, %v4980_v49 }
 0x3ed   : > { %v5484_v49 = vld [vmem:[#allocation4 + $0x478] sm:$0xf0] }
 0x3ee   : > { %v3683_v61 = vadd.f32 %v7029_v62, %v3594_v12  ;;  %v3958_v47 = vmax.f32 %v3859_v32, %v3926_v5  ;;  %v7077_v41 = vpop.f32.mrf.mxu1 }
 0x3ef   : > { %v3863_v11 = vpop.f32.mrf.mxu2 }
 0x3f0   : > { %v3772_v48 = vadd.f32 %v7032_v38, %v3683_v61  ;;  %3635 = vmatmul.bf16.gmra.mxu3 %v4933_v18  ;;  %v4054_v13 = vadd.f32 %v5576_v26, %v3958_v47  ;;  %v3697_v18 = vpop.f32.mrf.mxu0  ;;  %v5580_v47 = vunpack.c.l.bf16 %v5707_v1 }
 0x3f2   : > { %v3861_v0 = vadd.f32 %v3860_v20, %v3772_v48  ;;  %v5483_v20 = vld [vmem:[#allocation4 + $0x470] sm:$0xf0] }
 0x3f3   : > { %v3596_v39 = vpop.f32.mrf.mxu3  ;;  %v5009_v33 = vor.u32 %v5483_v20, %v5008_v55 }
 0x3f4   : > { %v3927_v10 = vmul.f32 0.1, %v3861_v0  ;;  %v3597_v60 = vadd.f32 %v3596_v39, %v6869_v40  ;;  %v5479_v40 = vld [vmem:[#allocation4 + $0x454] sm:$0xf] }
 0x3f5   : > { %3734 = vmatmul.bf16.gmra.mxu0 %v5009_v33  ;;  %v5013_v19 = vor.u32 %v5479_v40, %v5010_v63  ;;  %v5002_v40 = vld [vmem:[#allocation4 + $0x46c] sm:$0xf0] }
 0x3f6   : > { %v3959_v35 = vmax.f32 %v3861_v0, %v3927_v10  ;;  %v3686_v62 = vadd.f32 %v7038_v4, %v3597_v60  ;;  %v5469_v4 = vld [vmem:[#allocation4 + $0x404] sm:$0xf]  ;;  %v3786_v26 = vpop.f32.mrf.mxu1  ;;  %v5581_v60 = vunpack.c.h.bf16 %v5707_v1 }
 0x3f7   : > { %v3865_v22 = vpop.f32.mrf.mxu2  ;;  %3823 = vmatmul.bf16.gmra.mxu1 %v5013_v19  ;;  %v4969_v61 = vor.u32 %v5469_v4, %v4966_v27  ;;  %v5708_v4 = vld [vmem:[%s6290_s11 + $0x30] sm:$0xff]  }
 0x3f8   : > { %v4055_v38 = vadd.f32 %v5577_v36, %v3959_v35  ;;  %v3775_v2 = vadd.f32 %v7041_v50, %v3686_v62  ;;  %v5016_v62 = vld [vmem:[#allocation4 + $0x458] sm:$0xf]  ;;  %v3700_v15 = vpop.f32.mrf.mxu0  ;;  %v5585_v1 = vunpack.c.h.bf16 %v5708_v4 }
 0x3fa   : > { %v5645_v25 = vpack.c.bf16 %v4055_v38, %v4054_v13  ;;  %v3864_v32 = vadd.f32 %v3863_v11, %v3775_v2 }
 0x3fb   : > { %v3598_v58 = vpop.f32.mrf.mxu3 }
 0x3fc   : > { %5721 = vst [vmem:[%s7022_s16 + $0x20] sm:$0xff] %v5645_v25   ;;  %v3599_v12 = vadd.f32 %v3598_v58, %v6877_v43  ;;  %3907 = vmatmul.bf16.gmra.mxu2 %v4981_v16  ;;  %v3928_v5 = vmul.f32 0.1, %v3864_v32  ;;  %v5478_v25 = vld [vmem:[#allocation4 + $0x44c] sm:$0xf] }
 0x3fd   : > { %v5005_v58 = vor.u32 %v5478_v25, %v5002_v40 }
 0x3fe   : > { %v3688_v50 = vadd.f32 %v7047_v24, %v3599_v12  ;;  %v3960_v36 = vmax.f32 %v3864_v32, %v3928_v5  ;;  %v3789_v20 = vpop.f32.mrf.mxu1  ;;  %v5584_v32 = vunpack.c.l.bf16 %v5708_v4 }
 0x3ff   : > { %v3868_v0 = vpop.f32.mrf.mxu2 }
 0x400   : > { %v3777_v48 = vadd.f32 %v7050_v42, %v3688_v50  ;;  %3640 = vmatmul.bf16.gmra.mxu3 %v4969_v61  ;;  %v4056_v13 = vadd.f32 %v5580_v47, %v3960_v36  ;;  %v3702_v50 = vpop.f32.mrf.mxu0 }
 0x402   : > { %v3866_v39 = vadd.f32 %v3865_v22, %v3777_v48  ;;  %v5017_v22 = vor.u32 %v5484_v49, %v5016_v62  ;;  %v5709_v49 = vld [vmem:[%s6290_s11 + $0x38] sm:$0xff]  }
 0x403   : > { %v3601_v10 = vpop.f32.mrf.mxu3 }
 0x404   : > { %v3929_v11 = vmul.f32 0.1, %v3866_v39  ;;  %v3602_v43 = vadd.f32 %v3601_v10, %v6883_v53 }
 0x406   : > { %v3961_v35 = vmax.f32 %v3866_v39, %v3929_v11  ;;  %v3691_v24 = vadd.f32 %v7057_v59, %v3602_v43  ;;  %v3791_v48 = vpop.f32.mrf.mxu1 }
 0x407   : > { %v3870_v2 = vpop.f32.mrf.mxu2 }
 0x408   : > { %v4057_v38 = vadd.f32 %v5581_v60, %v3961_v35  ;;  %v3780_v42 = vadd.f32 %v7059_v46, %v3691_v24  ;;  %v3705_v35 = vpop.f32.mrf.mxu0 }
 0x40a   : > { %v5650_v55 = vpack.c.bf16 %v4057_v38, %v4056_v13  ;;  %v3869_v53 = vadd.f32 %v3868_v0, %v3780_v42 }
 0x40b   : > { %v3603_v33 = vpop.f32.mrf.mxu3 }
 0x40c   : > { %5722 = vst [vmem:[%s7022_s16 + $0x28] sm:$0xff] %v5650_v55   ;;  %v3604_v63 = vadd.f32 %v3603_v33, %v6889_v45  ;;  %3912 = vmatmul.bf16.gmra.mxu2 %v5017_v22  ;;  %v3930_v16 = vmul.f32 0.1, %v3869_v53  ;;  %v5589_v55 = vunpack.c.h.bf16 %v5709_v49 }
 0x40e   : > { %v3693_v59 = vadd.f32 %v7064_v8, %v3604_v63  ;;  %v3962_v61 = vmax.f32 %v3869_v53, %v3930_v16  ;;  %v3794_v62 = vpop.f32.mrf.mxu1 }
 0x40f   : > { %v3873_v27 = vpop.f32.mrf.mxu2 }
 0x410   : > { %v3782_v46 = vadd.f32 %v7068_v23, %v3693_v59  ;;  %3645 = vmatmul.bf16.gmra.mxu3 %v5005_v58  ;;  %v4058_v39 = vadd.f32 %v5584_v32, %v3962_v61  ;;  %v5710_v32 = vld [vmem:[%s6290_s11 + $0x40] sm:$0xff]  }
 0x412   : > { %v3871_v19 = vadd.f32 %v3870_v2, %v3782_v46 }
 0x413   : > { %v3606_v12 = vpop.f32.mrf.mxu3 }
 0x414   : > { %v3931_v5 = vmul.f32 0.1, %v3871_v19  ;;  %v3607_v45 = vadd.f32 %v3606_v12, %v6900_v37 }
 0x416   : > { %v3963_v8 = vmax.f32 %v3871_v19, %v3931_v5  ;;  %v3696_v0 = vadd.f32 %v7074_v6, %v3607_v45  ;;  %v5588_v6 = vunpack.c.l.bf16 %v5709_v49  ;;  %v3796_v58 = vpop.f32.mrf.mxu1 }
 0x417   : > { %v3875_v10 = vpop.f32.mrf.mxu2 }
 0x418   : > { %v4059_v47 = vadd.f32 %v5585_v1, %v3963_v8  ;;  %v3785_v23 = vadd.f32 %v7077_v41, %v3696_v0  ;;  %v5592_v1 = vunpack.c.l.bf16 %v5710_v32  ;;  %v5593_v0 = vunpack.c.h.bf16 %v5710_v32 }
 0x41a   : > { %v5655_v36 = vpack.c.bf16 %v4059_v47, %v4058_v39  ;;  %v3874_v60 = vadd.f32 %v3873_v27, %v3785_v23 }
 0x41b   : > { %v3608_v11 = vpop.f32.mrf.mxu3 }
 0x41c   : > { %5723 = vst [vmem:[%s7022_s16 + $0x30] sm:$0xff] %v5655_v36   ;;  %v3609_v43 = vadd.f32 %v3608_v11, %v6906_v31  ;;  %v3932_v37 = vmul.f32 0.1, %v3874_v60  ;;  %v3707_v31 = vpop.f32.mrf.mxu0 }
 0x41e   : > { %v3698_v24 = vadd.f32 %v3697_v18, %v3609_v43  ;;  %v3964_v22 = vmax.f32 %v3874_v60, %v3932_v37 }
 0x41f   : > { %v3878_v38 = vpop.f32.mrf.mxu2 }
 0x420   : > { %v3787_v13 = vadd.f32 %v3786_v26, %v3698_v24  ;;  %v4060_v53 = vadd.f32 %v5588_v6, %v3964_v22 }
 0x422   : > { %v3876_v42 = vadd.f32 %v3875_v10, %v3787_v13 }
 0x423   : > { %v3611_v2 = vpop.f32.mrf.mxu3 }
 0x424   : > { %v3933_v41 = vmul.f32 0.1, %v3876_v42  ;;  %v3612_v33 = vadd.f32 %v3611_v2, %v6914_v30  ;;  %v3710_v61 = vpop.f32.mrf.mxu0 }
 0x426   : > { %v3965_v25 = vmax.f32 %v3876_v42, %v3933_v41  ;;  %v3701_v40 = vadd.f32 %v3700_v15, %v3612_v33  ;;  %v3799_v15 = vpop.f32.mrf.mxu1 }
 0x427   : > { %v3880_v59 = vpop.f32.mrf.mxu2 }
 0x428   : > { %v4061_v18 = vadd.f32 %v5589_v55, %v3965_v25  ;;  %v3790_v63 = vadd.f32 %v3789_v20, %v3701_v40 }
 0x42a   : > { %v5660_v26 = vpack.c.bf16 %v4061_v18, %v4060_v53  ;;  %v3879_v4 = vadd.f32 %v3878_v38, %v3790_v63  ;;  %v5711_v38 = vld [vmem:[%s6290_s11 + $0x48] sm:$0xff]  }
 0x42b   : > { %v3613_v16 = vpop.f32.mrf.mxu3  ;;  %v5596_v2 = vunpack.c.l.bf16 %v5711_v38  ;;  %v5597_v41 = vunpack.c.h.bf16 %v5711_v38 }
 0x42c   : > { %5724 = vst [vmem:[%s7022_s16 + $0x38] sm:$0xff] %v5660_v26   ;;  %v3614_v46 = vadd.f32 %v3613_v16, %v6920_v52  ;;  %v3934_v19 = vmul.f32 0.1, %v3879_v4  ;;  %v3712_v60 = vpop.f32.mrf.mxu0 }
 0x42e   : > { %v3703_v27 = vadd.f32 %v3702_v50, %v3614_v46  ;;  %v3966_v20 = vmax.f32 %v3879_v4, %v3934_v19  ;;  %v3801_v37 = vpop.f32.mrf.mxu1  ;;  %v5712_v19 = vld [vmem:[%s6290_s11 + $0x50] sm:$0xff]  }
 0x42f   : > { %v3883_v30 = vpop.f32.mrf.mxu2 }
 0x430   : > { %v3792_v12 = vadd.f32 %v3791_v48, %v3703_v27  ;;  %v4062_v52 = vadd.f32 %v5592_v1, %v3966_v20 }
 0x432   : > { %v3881_v5 = vadd.f32 %v3880_v59, %v3792_v12 }
 0x433   : > { %v3616_v45 = vpop.f32.mrf.mxu3 }
 0x434   : > { %v3935_v8 = vmul.f32 0.1, %v3881_v5  ;;  %v3617_v39 = vadd.f32 %v3616_v45, %v6928_v28  ;;  %v3715_v33 = vpop.f32.mrf.mxu0  ;;  %v5601_v45 = vunpack.c.h.bf16 %v5712_v19 }
 0x436   : > { %v3967_v47 = vmax.f32 %v3881_v5, %v3935_v8  ;;  %v3706_v23 = vadd.f32 %v3705_v35, %v3617_v39 }
 0x437   : > { %v3885_v36 = vpop.f32.mrf.mxu2 }
 0x438   : > { %v4063_v50 = vadd.f32 %v5593_v0, %v3967_v47  ;;  %v3795_v10 = vadd.f32 %v3794_v62, %v3706_v23 }
 0x43a   : > { %v5665_v48 = vpack.c.bf16 %v4063_v50, %v4062_v52  ;;  %v3884_v43 = vadd.f32 %v3883_v30, %v3795_v10 }
 0x43b   : > { %v3618_v11 = vpop.f32.mrf.mxu3 }
 0x43c   : > { %5725 = vst [vmem:[%s7022_s16 + $0x40] sm:$0xff] %v5665_v48   ;;  %v3619_v24 = vadd.f32 %v3618_v11, %v6932_v7  ;;  %v3936_v13 = vmul.f32 0.1, %v3884_v43  ;;  %v3804_v7 = vpop.f32.mrf.mxu1  ;;  %v3717_v46 = vpop.f32.mrf.mxu0 }
 0x43e   : > { %v3708_v49 = vadd.f32 %v3707_v31, %v3619_v24  ;;  %v3968_v22 = vmax.f32 %v3884_v43, %v3936_v13  ;;  %v5713_v24 = vld [vmem:[%s6290_s11 + $0x58] sm:$0xff]  }
 0x43f   : > { %v3888_v28 = vpop.f32.mrf.mxu2  ;;  %v5604_v13 = vunpack.c.l.bf16 %v5713_v24 }
 0x440   : > { %v3797_v42 = vadd.f32 %v3796_v58, %v3708_v49  ;;  %v4064_v53 = vadd.f32 %v5596_v2, %v3968_v22 }
 0x442   : > { %v3886_v6 = vadd.f32 %v3885_v36, %v3797_v42 }
 0x443   : > { %v3621_v35 = vpop.f32.mrf.mxu3 }
 0x444   : > { %v3937_v62 = vmul.f32 0.1, %v3886_v6  ;;  %v3622_v55 = vadd.f32 %v3621_v35, %v6940_v44  ;;  %v3806_v12 = vpop.f32.mrf.mxu1  ;;  %v3720_v52 = vpop.f32.mrf.mxu0 }
 0x446   : > { %v3969_v25 = vmax.f32 %v3886_v6, %v3937_v62  ;;  %v3711_v40 = vadd.f32 %v3710_v61, %v3622_v55  ;;  %v5600_v61 = vunpack.c.l.bf16 %v5712_v19  ;;  %v5605_v6 = vunpack.c.h.bf16 %v5713_v24 }
 0x447   : > { %v3890_v63 = vpop.f32.mrf.mxu2 }
 0x448   : > { %v4065_v31 = vadd.f32 %v5597_v41, %v3969_v25  ;;  %v3800_v18 = vadd.f32 %v3799_v15, %v3711_v40 }
 0x44a   : > { %v5670_v59 = vpack.c.bf16 %v4065_v31, %v4064_v53  ;;  %v3889_v26 = vadd.f32 %v3888_v28, %v3800_v18 }
 0x44b   : > { %v3623_v58 = vpop.f32.mrf.mxu3 }
 0x44c   : > { %5726 = vst [vmem:[%s7022_s16 + $0x48] sm:$0xff] %v5670_v59   ;;  %v3624_v16 = vadd.f32 %v3623_v58, %v6946_v21  ;;  %v3938_v27 = vmul.f32 0.1, %v3889_v26  ;;  %v3809_v10 = vpop.f32.mrf.mxu1  ;;  %v3722_v35 = vpop.f32.mrf.mxu0 }
 0x44e   : > { %v3713_v4 = vadd.f32 %v3712_v60, %v3624_v16  ;;  %v3970_v1 = vmax.f32 %v3889_v26, %v3938_v27 }
 0x44f   : > { %v3893_v32 = vpop.f32.mrf.mxu2 }
 0x450   : > { %v3802_v44 = vadd.f32 %v3801_v37, %v3713_v4  ;;  %v4066_v21 = vadd.f32 %v5600_v61, %v3970_v1 }
 0x452   : > { %v3891_v30 = vadd.f32 %v3890_v63, %v3802_v44 }
 0x453   : > { %v3626_v5 = vpop.f32.mrf.mxu3 }
 0x454   : > { %v3939_v15 = vmul.f32 0.1, %v3891_v30  ;;  %v3627_v20 = vadd.f32 %v3626_v5, %v6952_v3  ;;  %v3811_v22 = vpop.f32.mrf.mxu1  ;;  %v3725_v63 = vpop.f32.mrf.mxu0 }
 0x456   : > { %v3971_v8 = vmax.f32 %v3891_v30, %v3939_v15  ;;  %v3716_v0 = vadd.f32 %v3715_v33, %v3627_v20 }
 0x457   : > { %v3895_v23 = vpop.f32.mrf.mxu2 }
 0x458   : > { %v4067_v39 = vadd.f32 %v5601_v45, %v3971_v8  ;;  %v3805_v47 = vadd.f32 %v3804_v7, %v3716_v0 }
 0x45a   : > { %v5675_v50 = vpack.c.bf16 %v4067_v39, %v4066_v21  ;;  %v3894_v48 = vadd.f32 %v3893_v32, %v3805_v47 }
 0x45b   : > { %v3628_v36 = vpop.f32.mrf.mxu3 }
 0x45c   : > { %5727 = vst [vmem:[%s7022_s16 + $0x50] sm:$0xff] %v5675_v50   ;;  %v3629_v11 = vadd.f32 %v3628_v36, %v6958_v17  ;;  %v3940_v43 = vmul.f32 0.1, %v3894_v48  ;;  %v3814_v59 = vpop.f32.mrf.mxu1  ;;  %v3727_v15 = vpop.f32.mrf.mxu0 }
 0x45e   : > { %v3718_v60 = vadd.f32 %v3717_v46, %v3629_v11  ;;  %v3972_v42 = vmax.f32 %v3894_v48, %v3940_v43 }
 0x45f   : > { %v3898_v3 = vpop.f32.mrf.mxu2 }
 0x460   : > { %v3807_v37 = vadd.f32 %v3806_v12, %v3718_v60  ;;  %v4068_v17 = vadd.f32 %v5604_v13, %v3972_v42 }
 0x462   : > { %v3896_v49 = vadd.f32 %v3895_v23, %v3807_v37 }
 0x463   : > { %v3631_v38 = vpop.f32.mrf.mxu3 }
 0x464   : > { %v3941_v28 = vmul.f32 0.1, %v3896_v49  ;;  %v3632_v2 = vadd.f32 %v3631_v38, %v6962_v51  ;;  %v5714_v51 = vld [vmem:[%s6290_s11 + $0x60] sm:$0xff]   ;;  %v3816_v45 = vpop.f32.mrf.mxu1 }
 0x465   : > { %v5608_v46 = vunpack.c.l.bf16 %v5714_v51  ;;  %v5609_v32 = vunpack.c.h.bf16 %v5714_v51 }
 0x466   : > { %v3973_v62 = vmax.f32 %v3896_v49, %v3941_v28  ;;  %v3721_v41 = vadd.f32 %v3720_v52, %v3632_v2  ;;  %v5715_v52 = vld [vmem:[%s6290_s11 + $0x68] sm:$0xff]  }
 0x467   : > { %v3900_v25 = vpop.f32.mrf.mxu2  ;;  %v5612_v48 = vunpack.c.l.bf16 %v5715_v52  ;;  %v5613_v24 = vunpack.c.h.bf16 %v5715_v52 }
 0x468   : > { %v4069_v55 = vadd.f32 %v5605_v6, %v3973_v62  ;;  %v3810_v33 = vadd.f32 %v3809_v10, %v3721_v41 }
 0x46a   : > { %v5680_v40 = vpack.c.bf16 %v4069_v55, %v4068_v17  ;;  %v3899_v53 = vadd.f32 %v3898_v3, %v3810_v33  ;;  %v5716_v33 = vld [vmem:[%s6290_s11 + $0x70] sm:$0xff]  }
 0x46b   : > { %v3633_v7 = vpop.f32.mrf.mxu3 }
 0x46c   : > { %5728 = vst [vmem:[%s7022_s16 + $0x58] sm:$0xff] %v5680_v40   ;;  %v3634_v31 = vadd.f32 %v3633_v7, %v6968_v57  ;;  %v3942_v58 = vmul.f32 0.1, %v3899_v53  ;;  %v3819_v36 = vpop.f32.mrf.mxu1  ;;  %v5616_v40 = vunpack.c.l.bf16 %v5716_v33 }
 0x46e   : > { %v3723_v18 = vadd.f32 %v3722_v35, %v3634_v31  ;;  %v3974_v19 = vmax.f32 %v3899_v53, %v3942_v58 }
 0x46f   : > { %v3903_v16 = vpop.f32.mrf.mxu2 }
 0x470   : > { %v3812_v26 = vadd.f32 %v3811_v22, %v3723_v18  ;;  %v4070_v57 = vadd.f32 %v5608_v46, %v3974_v19 }
 0x472   : > { %v3901_v4 = vadd.f32 %v3900_v25, %v3812_v26 }
 0x473   : > { %v3636_v27 = vpop.f32.mrf.mxu3 }
 0x474   : > { %v3943_v44 = vmul.f32 0.1, %v3901_v4  ;;  %v3637_v12 = vadd.f32 %v3636_v27, %v6974_v9  ;;  %v3730_v9 = vpop.f32.mrf.mxu0  ;;  %v3821_v62 = vpop.f32.mrf.mxu1 }
 0x476   : > { %v3975_v30 = vmax.f32 %v3901_v4, %v3943_v44  ;;  %v3726_v61 = vadd.f32 %v3725_v63, %v3637_v12  ;;  %v5617_v63 = vunpack.c.h.bf16 %v5716_v33 }
 0x477   : > { %v3905_v8 = vpop.f32.mrf.mxu2 }
 0x478   : > { %v4071_v5 = vadd.f32 %v5609_v32, %v3975_v30  ;;  %v3815_v1 = vadd.f32 %v3814_v59, %v3726_v61 }
 0x47a   : > { %v5685_v20 = vpack.c.bf16 %v4071_v5, %v4070_v57  ;;  %v3904_v21 = vadd.f32 %v3903_v16, %v3815_v1  ;;  %v5717_v5 = vld [vmem:[%s6290_s11 + $0x78] sm:$0xff]   ;;  %s6016_s11 = sshra.s32 %s4161_s26, 4  ;;  %s6017_s11 = int_to_ptr.hbm [resolvable:$true] %s6016_s11 }
 0x47b   : > { %v3638_v0 = vpop.f32.mrf.mxu3  ;;  %s6018_s24 = scalar_lea.hbm %s6017_s11, 128  ;;  %p6023_p8 = scmp.lt.s32.totalorder %s6017_s11, %s7178_s7 }
 0x47c   : > { %5729 = vst [vmem:[%s7022_s16 + $0x60] sm:$0xff] %v5685_v20   ;;  %v3639_v39 = vadd.f32 %v3638_v0, %v6980_v14  ;;  %v3944_v23 = vmul.f32 0.1, %v3904_v21  ;;  %v3732_v6 = vpop.f32.mrf.mxu0  ;;  %v3824_v58 = vpop.f32.mrf.mxu1  ;;  %v5620_v20 = vunpack.c.l.bf16 %v5717_v5  ;;  %p6019_p1 = scmp.ne.s32.totalorder %s6017_s11, %s6018_s24  ;;  %p6024_p10 = scmp.lt.s32.totalorder %s6022_s22, %s6018_s24 }
 0x47e   : > { %v3728_v47 = vadd.f32 %v3727_v15, %v3639_v39  ;;  %v3976_v60 = vmax.f32 %v3904_v21, %v3944_v23  ;;  %p6020_p2 = pnand %p6019_p1, %p6222_p5  ;;  %p6025_p11 = por %p6024_p10, %p6023_p8 }
 0x47f   : > { %v3908_v3 = vpop.f32.mrf.mxu2 }
 0x480   : > { %v3817_v50 = vadd.f32 %v3816_v45, %v3728_v47  ;;  %v4072_v14 = vadd.f32 %v5612_v48, %v3976_v60  ;;  %p6021_p4 = pneg %p6020_p2 }
 0x482   : > { %v3906_v10 = vadd.f32 %v3905_v8, %v3817_v50  ;;  %p6026_p12 = pnand %p6025_p11, %p6021_p4 }
 0x483   : > { %v3641_v11 = vpop.f32.mrf.mxu3 }
 0x484   : > { %v3945_v43 = vmul.f32 0.1, %v3906_v10  ;;  %v3642_v37 = vadd.f32 %v3641_v11, %v6984_v56  ;;  %v3735_v7 = vpop.f32.mrf.mxu0  ;;  %v3826_v61 = vpop.f32.mrf.mxu1 }
 0x486   : > { %v3977_v49 = vmax.f32 %v3906_v10, %v3945_v43  ;;  %v3731_v13 = vadd.f32 %v3730_v9, %v3642_v37 }
 0x487   : > { %v3910_v17 = vpop.f32.mrf.mxu2 }
 0x488   : > { %v4073_v38 = vadd.f32 %v5613_v24, %v3977_v49  ;;  %v3820_v42 = vadd.f32 %v3819_v36, %v3731_v13 }
 0x48a   : > { %v5690_v28 = vpack.c.bf16 %v4073_v38, %v4072_v14  ;;  %v3909_v35 = vadd.f32 %v3908_v3, %v3820_v42 }
 0x48b   : > { %v3643_v2 = vpop.f32.mrf.mxu3 }
 0x48c   : > { %5730 = vst [vmem:[%s7022_s16 + $0x68] sm:$0xff] %v5690_v28   ;;  %v3644_v22 = vadd.f32 %v3643_v2, %v6988_v34  ;;  %v3946_v55 = vmul.f32 0.1, %v3909_v35  ;;  %v3737_v12 = vpop.f32.mrf.mxu0 }
 0x48e   : > { %v3733_v41 = vadd.f32 %v3732_v6, %v3644_v22  ;;  %v3978_v31 = vmax.f32 %v3909_v35, %v3946_v55 }
 0x48f   : > { %v3913_v26 = vpop.f32.mrf.mxu2 }
 0x490   : > { %v3822_v56 = vadd.f32 %v3821_v62, %v3733_v41  ;;  %v4074_v16 = vadd.f32 %v5616_v40, %v3978_v31 }
 0x492   : > { %v3911_v25 = vadd.f32 %v3910_v17, %v3822_v56 }
 0x493   : > { %v3646_v53 = vpop.f32.mrf.mxu3 }
 0x494   : > { %v3947_v18 = vmul.f32 0.1, %v3911_v25  ;;  %v3647_v59 = vadd.f32 %v3646_v53, %v6992_v29 }
 0x496   : > { %v3979_v51 = vmax.f32 %v3911_v25, %v3947_v18  ;;  %v3736_v34 = vadd.f32 %v3735_v7, %v3647_v59 }
 0x497   : > { %v3915_v1 = vpop.f32.mrf.mxu2 }
 0x498   : > { %v4075_v4 = vadd.f32 %v5617_v63, %v3979_v51  ;;  %v3825_v46 = vadd.f32 %v3824_v58, %v3736_v34 }
 0x49a   : > { %v5695_v27 = vpack.c.bf16 %v4075_v4, %v4074_v16  ;;  %v3914_v44 = vadd.f32 %v3913_v26, %v3825_v46 }
 0x49b   : > { %v3648_v19 = vpop.f32.mrf.mxu3 }
 0x49c   : > { %5731 = vst [vmem:[%s7022_s16 + $0x70] sm:$0xff] %v5695_v27   ;;  %v3649_v32 = vadd.f32 %v3648_v19, %v6996_v54  ;;  %v3948_v29 = vmul.f32 0.1, %v3914_v44  ;;  %v5621_v54 = vunpack.c.h.bf16 %v5717_v5 }
 0x49e   : > { %v3738_v30 = vadd.f32 %v3737_v12, %v3649_v32  ;;  %v3980_v45 = vmax.f32 %v3914_v44, %v3948_v29 }
 0x4a0   : > { %v3827_v57 = vadd.f32 %v3826_v61, %v3738_v30  ;;  %v4076_v21 = vadd.f32 %v5620_v20, %v3980_v45 }
 0x4a2   : > { %v3916_v15 = vadd.f32 %v3915_v1, %v3827_v57 }
 0x4a4   : > { %v3949_v8 = vmul.f32 0.1, %v3916_v15 }
 0x4a6   : > { %v3981_v0 = vmax.f32 %v3916_v15, %v3949_v8 }
 0x4a8   : > { %v4077_v39 = vadd.f32 %v5621_v54, %v3981_v0 }
 0x4aa   : > { %v5700_v47 = vpack.c.bf16 %v4077_v39, %v4076_v21 }
 0x4ac   : > { %5732 = vst [vmem:[%s7022_s16 + $0x78] sm:$0xff] %v5700_v47  }
 0x4ad   : > { %6029 = shalt.err (!%p6026_p12)
}
 0x4ae   : > { %s6100_s5 = smov 64   ;;  %s6101_s9 = smov 4  }
 0x4af   : > { %5763 = dma.vmem_to_hbm [thread:$0]  (%p6222_p5), %s4159_s8, 2048, %s4161_s26, %s4143_s27, %s6100_s5, %s6100_s5, %s6101_s9  }
 0x4b0 PF: > { %s7232_s23 = sld [smem:[#allocation19_spill]]  ;;  %p7234_p13 = scmp.ge.s32.totalorder %s6092_s29, 2 }
 0x4b2   : > { %p5783_p0 = pnand %p7234_p13, %p6187_p6 }
 0x4b4   : > { %p5784_p3 = pneg %p5783_p0 }
 0x4b6   : > { %s4175_s3 = sand.u32 1, %s7232_s23  }
 0x4b7   : > { %s4176_s28 = scalar_lea.sflag [#allocation7], %s4175_s3 }
 0x4b8   : > { %6067 = dma.done.wait (%p5784_p3), %s4176_s28, 2048  }
 0x4b9   : > { %6069 = vsyncadd (%p5784_p3), %s4176_s28, 4294965248  ;;  %s27_s29 = sadd.s32 1, %s6092_s29   ;;  %s7235_s13 = sld [smem:[#allocation20_spill]] }
 0x4ba   : > { %p24_p7 = scmp.ge.s32.totalorder %s27_s29, 4   ;;  %s7236_s26 = sld [smem:[#allocation25_spill]] }
 0x4bb   : > { %s7237_s27 = sld [smem:[#allocation21_spill]]  ;;  %s7239_s24 = smov %s6076_s25 }
 0x4bc   : > { %s7238_s28 = sld [smem:[#allocation23_spill]]  ;;  %26 = sbr.rel (!%p24_p7) target bundleno = 13 (0xd), region = 132 }
 0x4bf   : > { %s7240_s25 = smov %s7235_s13 }
 0x4c1   :  { %4182 = vsyncpa [#allocation6], 1 }
 0x4c2   :  { %4184 = vsyncpa [#allocation6 + $0x1], 1 }
 0x4c3   :  { %4185 = vsyncpa [#allocation9], 1 }
 0x4c4   :  { %4187 = vsyncpa [#allocation9 + $0x1], 1 }
 0x4c5   :  { %4188 = vsyncpa [#allocation12], 1 }
 0x4c6   :  { %4189 = vsyncpa [#allocation7], 1 }
 0x4c7   :  { %4191 = vsyncpa [#allocation7 + $0x1], 1 }

</bundles_post_ra>
